<compile_context>
chip_gen: v5e
topology: v5e:2x2
jax: 0.10.0
libtpu: 0.0.40
codegen_flags: <defaults>
</compile_context>

<pallas_src>
import functools

import jax
import jax.numpy as jnp
from jax.experimental import pallas as pl
from jax.experimental.pallas import tpu as pltpu


def _round_up(x, m):
    return (x + m - 1) // m * m


def _pad_to(x, shape):
    return jnp.pad(x, [(0, t - s) for s, t in zip(x.shape, shape)])


# ---------------------------------------------------------------------------
# Fused encoder + decoder kernel (single invocation, grid=(1,))
# ---------------------------------------------------------------------------
def _seq2seq_kernel(tf_ref,                                   # SMEM: teacher-forcing mask
                    src_emb_ref, trg_emb_ref, emb_ref,        # VMEM inputs
                    enc_wx_ref, enc_wh_ref, enc_b_ref,
                    dec_wx_ref, dec_wh_ref, dec_b_ref,
                    wfc_ref, bfc_ref,
                    out_ref,                                  # [T_trg, Bp, Vp]
                    x_scr,                                    # VMEM scratch: next dec input
                    *, src_len, trg_len, bp, ep, hp, vp, vocab):

    def lstm_cell(x, h, c, wx_ref, wh_ref, b_ref):
        # Split matmul: x @ W_ih + h @ W_hh ; bias pre-broadcast to (Bp, 4Hp).
        gates = (jnp.dot(x, wx_ref[...], preferred_element_type=jnp.float32)
                 + jnp.dot(h, wh_ref[...], preferred_element_type=jnp.float32)
                 + b_ref[...])
        i = jax.nn.sigmoid(gates[:, 0 * hp:1 * hp])
        f = jax.nn.sigmoid(gates[:, 1 * hp:2 * hp])
        g = jnp.tanh(gates[:, 2 * hp:3 * hp])
        o = jax.nn.sigmoid(gates[:, 3 * hp:4 * hp])
        c_new = f * c + i * g
        h_new = o * jnp.tanh(c_new)
        return h_new, c_new

    # ---------------- Encoder: h/c carried in vregs ----------------
    def enc_step(t, carry):
        h, c = carry
        return lstm_cell(src_emb_ref[t], h, c, enc_wx_ref, enc_wh_ref, enc_b_ref)

    h0 = jnp.zeros((bp, hp), jnp.float32)
    c0 = jnp.zeros((bp, hp), jnp.float32)
    # NOTE: full unroll is fine at seq_len=8; use a partial unroll (e.g. 2-4) for long seqs.
    h, c = jax.lax.fori_loop(0, src_len, enc_step, (h0, c0), unroll=True)

    # ---------------- Decoder ----------------
    out_ref[0] = jnp.zeros((bp, vp), jnp.float32)   # outputs[0] stays zero
    x_scr[...] = trg_emb_ref[0]                     # first decoder input = trg[0]

    def dec_step(t, carry):
        h, c = carry
        h_new, c_new = lstm_cell(x_scr[...], h, c, dec_wx_ref, dec_wh_ref, dec_b_ref)

        logits = (jnp.dot(h_new, wfc_ref[...], preferred_element_type=jnp.float32)
                  + bfc_ref[...])
        out_ref[t] = logits                         # lane-dense [Bp, Vp] store

        # Next input: teacher-forced embedding by default (one vreg copy) ...
        x_scr[...] = trg_emb_ref[t]

        # ... argmax path only when NOT teacher forcing (saves Vp-wide reduction + MXU
        # one-hot @ emb matmul on ~50% of steps).
        @pl.when(tf_ref[t] == 0)
        def _greedy():
            col = jax.lax.broadcasted_iota(jnp.int32, (bp, vp), 1)
            masked = jnp.where(col < vocab, logits, jnp.float32(-1e30))
            row_max = jnp.max(masked, axis=1, keepdims=True)
            top1 = jnp.min(jnp.where(masked == row_max, col, jnp.int32(vp)),
                           axis=1, keepdims=True)   # first-argmax, matches jnp.argmax
            one_hot = (col == top1).astype(jnp.float32)
            x_scr[...] = jnp.dot(one_hot, emb_ref[...],
                                 preferred_element_type=jnp.float32)

        return h_new, c_new

    jax.lax.fori_loop(1, trg_len, dec_step, (h, c), unroll=True)


def run_seq2seq(tf_mask, src_emb, trg_emb, dec_emb,
                enc_wx, enc_wh, enc_b, dec_wx, dec_wh, dec_b, wfc, bfc, *, vocab):
    src_len, bp, ep = src_emb.shape
    trg_len = trg_emb.shape[0]
    hp = enc_wh.shape[0]
    vp = wfc.shape[1]

    kernel = functools.partial(_seq2seq_kernel, src_len=src_len, trg_len=trg_len,
                               bp=bp, ep=ep, hp=hp, vp=vp, vocab=vocab)

    grid_spec = pltpu.PrefetchScalarGridSpec(
        num_scalar_prefetch=1,                 # teacher-forcing mask -> SMEM
        grid=(1,),                             # single invocation; loops are in-kernel
        in_specs=[
            pl.BlockSpec((src_len, bp, ep), lambda i, tf: (0, 0, 0)),  # src embeddings
            pl.BlockSpec((trg_len, bp, ep), lambda i, tf: (0, 0, 0)),  # teacher embeddings
            pl.BlockSpec((vp, ep), lambda i, tf: (0, 0)),              # dec embedding table
            pl.BlockSpec((ep, 4 * hp), lambda i, tf: (0, 0)),          # enc W_ih
            pl.BlockSpec((hp, 4 * hp), lambda i, tf: (0, 0)),          # enc W_hh
            pl.BlockSpec((bp, 4 * hp), lambda i, tf: (0, 0)),          # enc bias (pre-bcast)
            pl.BlockSpec((ep, 4 * hp), lambda i, tf: (0, 0)),          # dec W_ih
            pl.BlockSpec((hp, 4 * hp), lambda i, tf: (0, 0)),          # dec W_hh
            pl.BlockSpec((bp, 4 * hp), lambda i, tf: (0, 0)),          # dec bias (pre-bcast)
            pl.BlockSpec((hp, vp), lambda i, tf: (0, 0)),              # FC weight
            pl.BlockSpec((bp, vp), lambda i, tf: (0, 0)),              # FC bias (pre-bcast)
        ],
        out_specs=pl.BlockSpec((trg_len, bp, vp), lambda i, tf: (0, 0, 0)),
        scratch_shapes=[pltpu.VMEM((bp, ep), jnp.float32)],            # next decoder input
    )
    return pl.pallas_call(
        kernel,
        out_shape=jax.ShapeDtypeStruct((trg_len, bp, vp), jnp.float32),
        grid_spec=grid_spec,
        compiler_params=pltpu.CompilerParams(dimension_semantics=("arbitrary",)),
    )(tf_mask, src_emb, trg_emb, dec_emb,
      enc_wx, enc_wh, enc_b, dec_wx, dec_wh, dec_b, wfc, bfc)


# ---------------------------------------------------------------------------
# Parameter packing / padding (host side, once)
# ---------------------------------------------------------------------------
def _pack_lstm_split(wih_t, whh_t, b, *, bp, ep, hp):
    e, four_h = wih_t.shape
    h = four_h // 4
    wx = jnp.zeros((ep, 4 * hp), jnp.float32)
    wh = jnp.zeros((hp, 4 * hp), jnp.float32)
    bb = jnp.zeros((bp, 4 * hp), jnp.float32)
    for k in range(4):                              # preserve i, f, g, o gate order
        wx = wx.at[:e, k * hp:k * hp + h].set(wih_t[:, k * h:(k + 1) * h])
        wh = wh.at[:h, k * hp:k * hp + h].set(whh_t[:, k * h:(k + 1) * h])
        bb = bb.at[:, k * hp:k * hp + h].set(
            jnp.broadcast_to(b[k * h:(k + 1) * h], (bp, h)))
    return wx, wh, bb


def prepare_params(params, *, bp, ep, hp, vp):
    enc_wx, enc_wh, enc_b = _pack_lstm_split(params["enc_wih_t"], params["enc_whh_t"],
                                             params["enc_b"], bp=bp, ep=ep, hp=hp)
    dec_wx, dec_wh, dec_b = _pack_lstm_split(params["dec_wih_t"], params["dec_whh_t"],
                                             params["dec_b"], bp=bp, ep=ep, hp=hp)
    v = params["dec_fc_b"].shape[0]
    fc_b = _pad_to(jnp.broadcast_to(params["dec_fc_b"][None, :], (bp, v)), (bp, vp))
    return {
        "enc_emb": _pad_to(params["enc_emb"], (params["enc_emb"].shape[0], ep)),
        "dec_emb": _pad_to(params["dec_emb"], (vp, ep)),
        "enc_wx": enc_wx, "enc_wh": enc_wh, "enc_b": enc_b,
        "dec_wx": dec_wx, "dec_wh": dec_wh, "dec_b": dec_b,
        "dec_fc_w": _pad_to(params["dec_fc_w_t"], (hp, vp)),
        "dec_fc_b": fc_b,
    }


# ---------------------------------------------------------------------------
# Seq2Seq forward (mirrors the PyTorch module's forward; one jitted graph)
# ---------------------------------------------------------------------------
@functools.partial(jax.jit, static_argnames=("batch", "trg_vocab", "bp", "ep"))
def seq2seq_forward(padded, src, trg, tf_mask, *, batch, trg_vocab, bp, ep):
    # embedding gathers happen once, outside the kernel; pad B->Bp, E->Ep
    src_emb = _pad_to(padded["enc_emb"][src], (src.shape[0], bp, ep))
    trg_emb = _pad_to(padded["dec_emb"][trg], (trg.shape[0], bp, ep))
    out = run_seq2seq(tf_mask.astype(jnp.int32), src_emb, trg_emb, padded["dec_emb"],
                      padded["enc_wx"], padded["enc_wh"], padded["enc_b"],
                      padded["dec_wx"], padded["dec_wh"], padded["dec_b"],
                      padded["dec_fc_w"], padded["dec_fc_b"],
                      vocab=trg_vocab)
    return out[:, :batch, :trg_vocab]


# ---------------------------------------------------------------------------
# Synthetic params (logical shapes) + pure-JAX reference for validation
# ---------------------------------------------------------------------------
def init_params(key, src_vocab, trg_vocab, emb_dim, hid_dim):
    ks = jax.random.split(key, 10)
    s = 1.0 / float(hid_dim) ** 0.5
    u = lambda k, shape, sc: jax.random.uniform(k, shape, jnp.float32, -sc, sc)
    return {
        "enc_emb":    u(ks[0], (src_vocab, emb_dim), 1.0),
        "enc_wih_t":  u(ks[1], (emb_dim, 4 * hid_dim), s),
        "enc_whh_t":  u(ks[2], (hid_dim, 4 * hid_dim), s),
        "enc_b":      u(ks[3], (4 * hid_dim,), s),          # b_ih + b_hh folded
        "dec_emb":    u(ks[4], (trg_vocab, emb_dim), 1.0),
        "dec_wih_t":  u(ks[5], (emb_dim, 4 * hid_dim), s),
        "dec_whh_t":  u(ks[6], (hid_dim, 4 * hid_dim), s),
        "dec_b":      u(ks[7], (4 * hid_dim,), s),
        "dec_fc_w_t": u(ks[8], (hid_dim, trg_vocab), s),
        "dec_fc_b":   u(ks[9], (trg_vocab,), s),
    }


def reference_forward(params, src, trg, tf_mask):
    H = params["enc_whh_t"].shape[0]
    V = params["dec_fc_b"].shape[0]
    T, B = trg.shape

    def cell(x, h, c, wih, whh, b):
        g = x @ wih + h @ whh + b
        i = jax.nn.sigmoid(g[:, :H]); f = jax.nn.sigmoid(g[:, H:2 * H])
        gg = jnp.tanh(g[:, 2 * H:3 * H]); o = jax.nn.sigmoid(g[:, 3 * H:])
        c = f * c + i * gg
        return o * jnp.tanh(c), c

    h = jnp.zeros((B, H), jnp.float32)
    c = jnp.zeros((B, H), jnp.float32)
    for t in range(src.shape[0]):
        h, c = cell(params["enc_emb"][src[t]], h, c,
                    params["enc_wih_t"], params["enc_whh_t"], params["enc_b"])

    outputs = [jnp.zeros((B, V), jnp.float32)]
    inp = trg[0]
    for t in range(1, T):
        x = params["dec_emb"][inp]
        h, c = cell(x, h, c, params["dec_wih_t"], params["dec_whh_t"], params["dec_b"])
        logits = h @ params["dec_fc_w_t"] + params["dec_fc_b"]
        outputs.append(logits)
        top1 = jnp.argmax(logits, axis=1).astype(trg.dtype)
        inp = jnp.where(tf_mask[t], trg[t], top1)
    return jnp.stack(outputs, axis=0)


if __name__ == "__main__":
    SRC_VOCAB, TRG_VOCAB = 16, 16
    EMB_DIM, HID_DIM = 16, 32
    SRC_LEN, TRG_LEN, BATCH = 8, 8, 2

    # lane/sublane-friendly padded compute sizes
    BP = max(8, _round_up(BATCH, 8))
    EP = max(128, _round_up(EMB_DIM, 128))
    HP = max(128, _round_up(HID_DIM, 128))
    VP = max(128, _round_up(TRG_VOCAB, 128))

    key = jax.random.PRNGKey(0)
    kp, ks, kt, kf = jax.random.split(key, 4)
    params = init_params(kp, SRC_VOCAB, TRG_VOCAB, EMB_DIM, HID_DIM)
    padded = prepare_params(params, bp=BP, ep=EP, hp=HP, vp=VP)

    src = jax.random.randint(ks, (SRC_LEN, BATCH), 0, SRC_VOCAB, jnp.int32)
    trg = jax.random.randint(kt, (TRG_LEN, BATCH), 0, TRG_VOCAB, jnp.int32)
    # device-side teacher-forcing coin flips (replaces host random.random())
    tf_mask = jax.random.bernoulli(kf, 0.5, (TRG_LEN,))

    out = seq2seq_forward(padded, src, trg, tf_mask,
                          batch=BATCH, trg_vocab=TRG_VOCAB, bp=BP, ep=EP)
    out = jax.block_until_ready(out)

    assert out.shape == (TRG_LEN, BATCH, TRG_VOCAB)
    assert bool(jnp.all(jnp.isfinite(out)))

    ref = reference_forward(params, src, trg, tf_mask)
    assert bool(jnp.allclose(out, ref, atol=1e-3, rtol=1e-3)), \
        float(jnp.max(jnp.abs(out - ref)))

    print("KERNEL_OK")
</pallas_src>

<mosaic_0001>
module attributes {stable_mosaic.version = 11 : i64} {
  func.func @_seq2seq_kernel(%arg0: i32, %arg1: memref<8xi32, #tpu.memory_space<smem>>, %arg2: memref<8x8x128xf32, #tpu.memory_space<vmem>>, %arg3: memref<8x8x128xf32, #tpu.memory_space<vmem>>, %arg4: memref<128x128xf32, #tpu.memory_space<vmem>>, %arg5: memref<128x512xf32, #tpu.memory_space<vmem>>, %arg6: memref<128x512xf32, #tpu.memory_space<vmem>>, %arg7: memref<8x512xf32, #tpu.memory_space<vmem>>, %arg8: memref<128x512xf32, #tpu.memory_space<vmem>>, %arg9: memref<128x512xf32, #tpu.memory_space<vmem>>, %arg10: memref<8x512xf32, #tpu.memory_space<vmem>>, %arg11: memref<128x128xf32, #tpu.memory_space<vmem>>, %arg12: memref<8x128xf32, #tpu.memory_space<vmem>>, %arg13: memref<8x8x128xf32, #tpu.memory_space<vmem>>, %arg14: memref<8x128xf32, #tpu.memory_space<vmem>>) attributes {dimension_semantics = [#tpu.dimension_semantics<arbitrary>], iteration_bounds = array<i64: 1>, scalar_prefetch = 1 : i64, scratch_operands = 1 : i64, tpu.core_type = #tpu.core_type<tc>, window_params = [{pipeline_mode = #tpu.pipeline_mode<synchronous>, transform_indices = @transform_0, window_bounds = array<i64: 8, 8, 128>}, {pipeline_mode = #tpu.pipeline_mode<synchronous>, transform_indices = @transform_1, window_bounds = array<i64: 8, 8, 128>}, {pipeline_mode = #tpu.pipeline_mode<synchronous>, transform_indices = @transform_2, window_bounds = array<i64: 128, 128>}, {pipeline_mode = #tpu.pipeline_mode<synchronous>, transform_indices = @transform_3, window_bounds = array<i64: 128, 512>}, {pipeline_mode = #tpu.pipeline_mode<synchronous>, transform_indices = @transform_4, window_bounds = array<i64: 128, 512>}, {pipeline_mode = #tpu.pipeline_mode<synchronous>, transform_indices = @transform_5, window_bounds = array<i64: 8, 512>}, {pipeline_mode = #tpu.pipeline_mode<synchronous>, transform_indices = @transform_6, window_bounds = array<i64: 128, 512>}, {pipeline_mode = #tpu.pipeline_mode<synchronous>, transform_indices = @transform_7, window_bounds = array<i64: 128, 512>}, {pipeline_mode = #tpu.pipeline_mode<synchronous>, transform_indices = @transform_8, window_bounds = array<i64: 8, 512>}, {pipeline_mode = #tpu.pipeline_mode<synchronous>, transform_indices = @transform_9, window_bounds = array<i64: 128, 128>}, {pipeline_mode = #tpu.pipeline_mode<synchronous>, transform_indices = @transform_10, window_bounds = array<i64: 8, 128>}, {pipeline_mode = #tpu.pipeline_mode<synchronous>, transform_indices = @transform_11, window_bounds = array<i64: 8, 8, 128>}]} {
    %cst = arith.constant 0.000000e+00 : f32
    %0 = vector.broadcast %cst : f32 to vector<8x128xf32>
    %cst_0 = arith.constant 0.000000e+00 : f32
    %1 = vector.broadcast %cst_0 : f32 to vector<8x128xf32>
    %c0_i32 = arith.constant 0 : i32
    %2 = arith.index_cast %c0_i32 : i32 to index
    %c0 = arith.constant 0 : index
    %c0_1 = arith.constant 0 : index
    %3 = vector.load %arg2[%2, %c0, %c0_1] : memref<8x8x128xf32, #tpu.memory_space<vmem>>, vector<1x8x128xf32>
    %4 = vector.shape_cast %3 : vector<1x8x128xf32> to vector<8x128xf32>
    %c0_2 = arith.constant 0 : index
    %c0_3 = arith.constant 0 : index
    %5 = vector.load %arg5[%c0_2, %c0_3] : memref<128x512xf32, #tpu.memory_space<vmem>>, vector<128x512xf32>
    %cst_4 = arith.constant dense<0.000000e+00> : vector<8x512xf32>
    %6 = tpu.matmul %4, %5, %cst_4 {dimension_numbers = #tpu.dot_dimension_numbers<[1], [0], [0], [1], [0, 0, 1, 1], [], []>} : vector<8x128xf32>, vector<128x512xf32>, vector<8x512xf32> -> vector<8x512xf32>
    %c0_5 = arith.constant 0 : index
    %c0_6 = arith.constant 0 : index
    %7 = vector.load %arg6[%c0_5, %c0_6] : memref<128x512xf32, #tpu.memory_space<vmem>>, vector<128x512xf32>
    %cst_7 = arith.constant dense<0.000000e+00> : vector<8x512xf32>
    %8 = tpu.matmul %0, %7, %cst_7 {dimension_numbers = #tpu.dot_dimension_numbers<[1], [0], [0], [1], [0, 0, 1, 1], [], []>} : vector<8x128xf32>, vector<128x512xf32>, vector<8x512xf32> -> vector<8x512xf32>
    %9 = arith.addf %6, %8 : vector<8x512xf32>
    %c0_8 = arith.constant 0 : index
    %c0_9 = arith.constant 0 : index
    %10 = vector.load %arg7[%c0_8, %c0_9] : memref<8x512xf32, #tpu.memory_space<vmem>>, vector<8x512xf32>
    %11 = arith.addf %9, %10 : vector<8x512xf32>
    %12 = vector.extract_strided_slice %11 {offsets = [0, 0], sizes = [8, 128], strides = [1, 1]} : vector<8x512xf32> to vector<8x128xf32>
    %13 = arith.negf %12 : vector<8x128xf32>
    %14 = math.exp %13 : vector<8x128xf32>
    %cst_10 = arith.constant 1.000000e+00 : f32
    %15 = vector.broadcast %cst_10 : f32 to vector<8x128xf32>
    %16 = arith.addf %15, %14 : vector<8x128xf32>
    %17 = arith.divf %15, %16 : vector<8x128xf32>
    %18 = vector.extract_strided_slice %11 {offsets = [0, 128], sizes = [8, 128], strides = [1, 1]} : vector<8x512xf32> to vector<8x128xf32>
    %19 = arith.negf %18 : vector<8x128xf32>
    %20 = math.exp %19 : vector<8x128xf32>
    %cst_11 = arith.constant 1.000000e+00 : f32
    %21 = vector.broadcast %cst_11 : f32 to vector<8x128xf32>
    %22 = arith.addf %21, %20 : vector<8x128xf32>
    %23 = arith.divf %21, %22 : vector<8x128xf32>
    %24 = vector.extract_strided_slice %11 {offsets = [0, 256], sizes = [8, 128], strides = [1, 1]} : vector<8x512xf32> to vector<8x128xf32>
    %25 = math.tanh %24 : vector<8x128xf32>
    %26 = vector.extract_strided_slice %11 {offsets = [0, 384], sizes = [8, 128], strides = [1, 1]} : vector<8x512xf32> to vector<8x128xf32>
    %27 = arith.negf %26 : vector<8x128xf32>
    %28 = math.exp %27 : vector<8x128xf32>
    %cst_12 = arith.constant 1.000000e+00 : f32
    %29 = vector.broadcast %cst_12 : f32 to vector<8x128xf32>
    %30 = arith.addf %29, %28 : vector<8x128xf32>
    %31 = arith.divf %29, %30 : vector<8x128xf32>
    %32 = arith.mulf %23, %1 : vector<8x128xf32>
    %33 = arith.mulf %17, %25 : vector<8x128xf32>
    %34 = arith.addf %32, %33 : vector<8x128xf32>
    %35 = math.tanh %34 : vector<8x128xf32>
    %36 = arith.mulf %31, %35 : vector<8x128xf32>
    %c1_i32 = arith.constant 1 : i32
    %37 = arith.index_cast %c1_i32 : i32 to index
    %c0_13 = arith.constant 0 : index
    %c0_14 = arith.constant 0 : index
    %38 = vector.load %arg2[%37, %c0_13, %c0_14] : memref<8x8x128xf32, #tpu.memory_space<vmem>>, vector<1x8x128xf32>
    %39 = vector.shape_cast %38 : vector<1x8x128xf32> to vector<8x128xf32>
    %c0_15 = arith.constant 0 : index
    %c0_16 = arith.constant 0 : index
    %40 = vector.load %arg5[%c0_15, %c0_16] : memref<128x512xf32, #tpu.memory_space<vmem>>, vector<128x512xf32>
    %cst_17 = arith.constant dense<0.000000e+00> : vector<8x512xf32>
    %41 = tpu.matmul %39, %40, %cst_17 {dimension_numbers = #tpu.dot_dimension_numbers<[1], [0], [0], [1], [0, 0, 1, 1], [], []>} : vector<8x128xf32>, vector<128x512xf32>, vector<8x512xf32> -> vector<8x512xf32>
    %c0_18 = arith.constant 0 : index
    %c0_19 = arith.constant 0 : index
    %42 = vector.load %arg6[%c0_18, %c0_19] : memref<128x512xf32, #tpu.memory_space<vmem>>, vector<128x512xf32>
    %cst_20 = arith.constant dense<0.000000e+00> : vector<8x512xf32>
    %43 = tpu.matmul %36, %42, %cst_20 {dimension_numbers = #tpu.dot_dimension_numbers<[1], [0], [0], [1], [0, 0, 1, 1], [], []>} : vector<8x128xf32>, vector<128x512xf32>, vector<8x512xf32> -> vector<8x512xf32>
    %44 = arith.addf %41, %43 : vector<8x512xf32>
    %c0_21 = arith.constant 0 : index
    %c0_22 = arith.constant 0 : index
    %45 = vector.load %arg7[%c0_21, %c0_22] : memref<8x512xf32, #tpu.memory_space<vmem>>, vector<8x512xf32>
    %46 = arith.addf %44, %45 : vector<8x512xf32>
    %47 = vector.extract_strided_slice %46 {offsets = [0, 0], sizes = [8, 128], strides = [1, 1]} : vector<8x512xf32> to vector<8x128xf32>
    %48 = arith.negf %47 : vector<8x128xf32>
    %49 = math.exp %48 : vector<8x128xf32>
    %cst_23 = arith.constant 1.000000e+00 : f32
    %50 = vector.broadcast %cst_23 : f32 to vector<8x128xf32>
    %51 = arith.addf %50, %49 : vector<8x128xf32>
    %52 = arith.divf %50, %51 : vector<8x128xf32>
    %53 = vector.extract_strided_slice %46 {offsets = [0, 128], sizes = [8, 128], strides = [1, 1]} : vector<8x512xf32> to vector<8x128xf32>
    %54 = arith.negf %53 : vector<8x128xf32>
    %55 = math.exp %54 : vector<8x128xf32>
    %cst_24 = arith.constant 1.000000e+00 : f32
    %56 = vector.broadcast %cst_24 : f32 to vector<8x128xf32>
    %57 = arith.addf %56, %55 : vector<8x128xf32>
    %58 = arith.divf %56, %57 : vector<8x128xf32>
    %59 = vector.extract_strided_slice %46 {offsets = [0, 256], sizes = [8, 128], strides = [1, 1]} : vector<8x512xf32> to vector<8x128xf32>
    %60 = math.tanh %59 : vector<8x128xf32>
    %61 = vector.extract_strided_slice %46 {offsets = [0, 384], sizes = [8, 128], strides = [1, 1]} : vector<8x512xf32> to vector<8x128xf32>
    %62 = arith.negf %61 : vector<8x128xf32>
    %63 = math.exp %62 : vector<8x128xf32>
    %cst_25 = arith.constant 1.000000e+00 : f32
    %64 = vector.broadcast %cst_25 : f32 to vector<8x128xf32>
    %65 = arith.addf %64, %63 : vector<8x128xf32>
    %66 = arith.divf %64, %65 : vector<8x128xf32>
    %67 = arith.mulf %58, %34 : vector<8x128xf32>
    %68 = arith.mulf %52, %60 : vector<8x128xf32>
    %69 = arith.addf %67, %68 : vector<8x128xf32>
    %70 = math.tanh %69 : vector<8x128xf32>
    %71 = arith.mulf %66, %70 : vector<8x128xf32>
    %c2_i32 = arith.constant 2 : i32
    %72 = arith.index_cast %c2_i32 : i32 to index
    %c0_26 = arith.constant 0 : index
    %c0_27 = arith.constant 0 : index
    %73 = vector.load %arg2[%72, %c0_26, %c0_27] : memref<8x8x128xf32, #tpu.memory_space<vmem>>, vector<1x8x128xf32>
    %74 = vector.shape_cast %73 : vector<1x8x128xf32> to vector<8x128xf32>
    %c0_28 = arith.constant 0 : index
    %c0_29 = arith.constant 0 : index
    %75 = vector.load %arg5[%c0_28, %c0_29] : memref<128x512xf32, #tpu.memory_space<vmem>>, vector<128x512xf32>
    %cst_30 = arith.constant dense<0.000000e+00> : vector<8x512xf32>
    %76 = tpu.matmul %74, %75, %cst_30 {dimension_numbers = #tpu.dot_dimension_numbers<[1], [0], [0], [1], [0, 0, 1, 1], [], []>} : vector<8x128xf32>, vector<128x512xf32>, vector<8x512xf32> -> vector<8x512xf32>
    %c0_31 = arith.constant 0 : index
    %c0_32 = arith.constant 0 : index
    %77 = vector.load %arg6[%c0_31, %c0_32] : memref<128x512xf32, #tpu.memory_space<vmem>>, vector<128x512xf32>
    %cst_33 = arith.constant dense<0.000000e+00> : vector<8x512xf32>
    %78 = tpu.matmul %71, %77, %cst_33 {dimension_numbers = #tpu.dot_dimension_numbers<[1], [0], [0], [1], [0, 0, 1, 1], [], []>} : vector<8x128xf32>, vector<128x512xf32>, vector<8x512xf32> -> vector<8x512xf32>
    %79 = arith.addf %76, %78 : vector<8x512xf32>
    %c0_34 = arith.constant 0 : index
    %c0_35 = arith.constant 0 : index
    %80 = vector.load %arg7[%c0_34, %c0_35] : memref<8x512xf32, #tpu.memory_space<vmem>>, vector<8x512xf32>
    %81 = arith.addf %79, %80 : vector<8x512xf32>
    %82 = vector.extract_strided_slice %81 {offsets = [0, 0], sizes = [8, 128], strides = [1, 1]} : vector<8x512xf32> to vector<8x128xf32>
    %83 = arith.negf %82 : vector<8x128xf32>
    %84 = math.exp %83 : vector<8x128xf32>
    %cst_36 = arith.constant 1.000000e+00 : f32
    %85 = vector.broadcast %cst_36 : f32 to vector<8x128xf32>
    %86 = arith.addf %85, %84 : vector<8x128xf32>
    %87 = arith.divf %85, %86 : vector<8x128xf32>
    %88 = vector.extract_strided_slice %81 {offsets = [0, 128], sizes = [8, 128], strides = [1, 1]} : vector<8x512xf32> to vector<8x128xf32>
    %89 = arith.negf %88 : vector<8x128xf32>
    %90 = math.exp %89 : vector<8x128xf32>
    %cst_37 = arith.constant 1.000000e+00 : f32
    %91 = vector.broadcast %cst_37 : f32 to vector<8x128xf32>
    %92 = arith.addf %91, %90 : vector<8x128xf32>
    %93 = arith.divf %91, %92 : vector<8x128xf32>
    %94 = vector.extract_strided_slice %81 {offsets = [0, 256], sizes = [8, 128], strides = [1, 1]} : vector<8x512xf32> to vector<8x128xf32>
    %95 = math.tanh %94 : vector<8x128xf32>
    %96 = vector.extract_strided_slice %81 {offsets = [0, 384], sizes = [8, 128], strides = [1, 1]} : vector<8x512xf32> to vector<8x128xf32>
    %97 = arith.negf %96 : vector<8x128xf32>
    %98 = math.exp %97 : vector<8x128xf32>
    %cst_38 = arith.constant 1.000000e+00 : f32
    %99 = vector.broadcast %cst_38 : f32 to vector<8x128xf32>
    %100 = arith.addf %99, %98 : vector<8x128xf32>
    %101 = arith.divf %99, %100 : vector<8x128xf32>
    %102 = arith.mulf %93, %69 : vector<8x128xf32>
    %103 = arith.mulf %87, %95 : vector<8x128xf32>
    %104 = arith.addf %102, %103 : vector<8x128xf32>
    %105 = math.tanh %104 : vector<8x128xf32>
    %106 = arith.mulf %101, %105 : vector<8x128xf32>
    %c3_i32 = arith.constant 3 : i32
    %107 = arith.index_cast %c3_i32 : i32 to index
    %c0_39 = arith.constant 0 : index
    %c0_40 = arith.constant 0 : index
    %108 = vector.load %arg2[%107, %c0_39, %c0_40] : memref<8x8x128xf32, #tpu.memory_space<vmem>>, vector<1x8x128xf32>
    %109 = vector.shape_cast %108 : vector<1x8x128xf32> to vector<8x128xf32>
    %c0_41 = arith.constant 0 : index
    %c0_42 = arith.constant 0 : index
    %110 = vector.load %arg5[%c0_41, %c0_42] : memref<128x512xf32, #tpu.memory_space<vmem>>, vector<128x512xf32>
    %cst_43 = arith.constant dense<0.000000e+00> : vector<8x512xf32>
    %111 = tpu.matmul %109, %110, %cst_43 {dimension_numbers = #tpu.dot_dimension_numbers<[1], [0], [0], [1], [0, 0, 1, 1], [], []>} : vector<8x128xf32>, vector<128x512xf32>, vector<8x512xf32> -> vector<8x512xf32>
    %c0_44 = arith.constant 0 : index
    %c0_45 = arith.constant 0 : index
    %112 = vector.load %arg6[%c0_44, %c0_45] : memref<128x512xf32, #tpu.memory_space<vmem>>, vector<128x512xf32>
    %cst_46 = arith.constant dense<0.000000e+00> : vector<8x512xf32>
    %113 = tpu.matmul %106, %112, %cst_46 {dimension_numbers = #tpu.dot_dimension_numbers<[1], [0], [0], [1], [0, 0, 1, 1], [], []>} : vector<8x128xf32>, vector<128x512xf32>, vector<8x512xf32> -> vector<8x512xf32>
    %114 = arith.addf %111, %113 : vector<8x512xf32>
    %c0_47 = arith.constant 0 : index
    %c0_48 = arith.constant 0 : index
    %115 = vector.load %arg7[%c0_47, %c0_48] : memref<8x512xf32, #tpu.memory_space<vmem>>, vector<8x512xf32>
    %116 = arith.addf %114, %115 : vector<8x512xf32>
    %117 = vector.extract_strided_slice %116 {offsets = [0, 0], sizes = [8, 128], strides = [1, 1]} : vector<8x512xf32> to vector<8x128xf32>
    %118 = arith.negf %117 : vector<8x128xf32>
    %119 = math.exp %118 : vector<8x128xf32>
    %cst_49 = arith.constant 1.000000e+00 : f32
    %120 = vector.broadcast %cst_49 : f32 to vector<8x128xf32>
    %121 = arith.addf %120, %119 : vector<8x128xf32>
    %122 = arith.divf %120, %121 : vector<8x128xf32>
    %123 = vector.extract_strided_slice %116 {offsets = [0, 128], sizes = [8, 128], strides = [1, 1]} : vector<8x512xf32> to vector<8x128xf32>
    %124 = arith.negf %123 : vector<8x128xf32>
    %125 = math.exp %124 : vector<8x128xf32>
    %cst_50 = arith.constant 1.000000e+00 : f32
    %126 = vector.broadcast %cst_50 : f32 to vector<8x128xf32>
    %127 = arith.addf %126, %125 : vector<8x128xf32>
    %128 = arith.divf %126, %127 : vector<8x128xf32>
    %129 = vector.extract_strided_slice %116 {offsets = [0, 256], sizes = [8, 128], strides = [1, 1]} : vector<8x512xf32> to vector<8x128xf32>
    %130 = math.tanh %129 : vector<8x128xf32>
    %131 = vector.extract_strided_slice %116 {offsets = [0, 384], sizes = [8, 128], strides = [1, 1]} : vector<8x512xf32> to vector<8x128xf32>
    %132 = arith.negf %131 : vector<8x128xf32>
    %133 = math.exp %132 : vector<8x128xf32>
    %cst_51 = arith.constant 1.000000e+00 : f32
    %134 = vector.broadcast %cst_51 : f32 to vector<8x128xf32>
    %135 = arith.addf %134, %133 : vector<8x128xf32>
    %136 = arith.divf %134, %135 : vector<8x128xf32>
    %137 = arith.mulf %128, %104 : vector<8x128xf32>
    %138 = arith.mulf %122, %130 : vector<8x128xf32>
    %139 = arith.addf %137, %138 : vector<8x128xf32>
    %140 = math.tanh %139 : vector<8x128xf32>
    %141 = arith.mulf %136, %140 : vector<8x128xf32>
    %c4_i32 = arith.constant 4 : i32
    %142 = arith.index_cast %c4_i32 : i32 to index
    %c0_52 = arith.constant 0 : index
    %c0_53 = arith.constant 0 : index
    %143 = vector.load %arg2[%142, %c0_52, %c0_53] : memref<8x8x128xf32, #tpu.memory_space<vmem>>, vector<1x8x128xf32>
    %144 = vector.shape_cast %143 : vector<1x8x128xf32> to vector<8x128xf32>
    %c0_54 = arith.constant 0 : index
    %c0_55 = arith.constant 0 : index
    %145 = vector.load %arg5[%c0_54, %c0_55] : memref<128x512xf32, #tpu.memory_space<vmem>>, vector<128x512xf32>
    %cst_56 = arith.constant dense<0.000000e+00> : vector<8x512xf32>
    %146 = tpu.matmul %144, %145, %cst_56 {dimension_numbers = #tpu.dot_dimension_numbers<[1], [0], [0], [1], [0, 0, 1, 1], [], []>} : vector<8x128xf32>, vector<128x512xf32>, vector<8x512xf32> -> vector<8x512xf32>
    %c0_57 = arith.constant 0 : index
    %c0_58 = arith.constant 0 : index
    %147 = vector.load %arg6[%c0_57, %c0_58] : memref<128x512xf32, #tpu.memory_space<vmem>>, vector<128x512xf32>
    %cst_59 = arith.constant dense<0.000000e+00> : vector<8x512xf32>
    %148 = tpu.matmul %141, %147, %cst_59 {dimension_numbers = #tpu.dot_dimension_numbers<[1], [0], [0], [1], [0, 0, 1, 1], [], []>} : vector<8x128xf32>, vector<128x512xf32>, vector<8x512xf32> -> vector<8x512xf32>
    %149 = arith.addf %146, %148 : vector<8x512xf32>
    %c0_60 = arith.constant 0 : index
    %c0_61 = arith.constant 0 : index
    %150 = vector.load %arg7[%c0_60, %c0_61] : memref<8x512xf32, #tpu.memory_space<vmem>>, vector<8x512xf32>
    %151 = arith.addf %149, %150 : vector<8x512xf32>
    %152 = vector.extract_strided_slice %151 {offsets = [0, 0], sizes = [8, 128], strides = [1, 1]} : vector<8x512xf32> to vector<8x128xf32>
    %153 = arith.negf %152 : vector<8x128xf32>
    %154 = math.exp %153 : vector<8x128xf32>
    %cst_62 = arith.constant 1.000000e+00 : f32
    %155 = vector.broadcast %cst_62 : f32 to vector<8x128xf32>
    %156 = arith.addf %155, %154 : vector<8x128xf32>
    %157 = arith.divf %155, %156 : vector<8x128xf32>
    %158 = vector.extract_strided_slice %151 {offsets = [0, 128], sizes = [8, 128], strides = [1, 1]} : vector<8x512xf32> to vector<8x128xf32>
    %159 = arith.negf %158 : vector<8x128xf32>
    %160 = math.exp %159 : vector<8x128xf32>
    %cst_63 = arith.constant 1.000000e+00 : f32
    %161 = vector.broadcast %cst_63 : f32 to vector<8x128xf32>
    %162 = arith.addf %161, %160 : vector<8x128xf32>
    %163 = arith.divf %161, %162 : vector<8x128xf32>
    %164 = vector.extract_strided_slice %151 {offsets = [0, 256], sizes = [8, 128], strides = [1, 1]} : vector<8x512xf32> to vector<8x128xf32>
    %165 = math.tanh %164 : vector<8x128xf32>
    %166 = vector.extract_strided_slice %151 {offsets = [0, 384], sizes = [8, 128], strides = [1, 1]} : vector<8x512xf32> to vector<8x128xf32>
    %167 = arith.negf %166 : vector<8x128xf32>
    %168 = math.exp %167 : vector<8x128xf32>
    %cst_64 = arith.constant 1.000000e+00 : f32
    %169 = vector.broadcast %cst_64 : f32 to vector<8x128xf32>
    %170 = arith.addf %169, %168 : vector<8x128xf32>
    %171 = arith.divf %169, %170 : vector<8x128xf32>
    %172 = arith.mulf %163, %139 : vector<8x128xf32>
    %173 = arith.mulf %157, %165 : vector<8x128xf32>
    %174 = arith.addf %172, %173 : vector<8x128xf32>
    %175 = math.tanh %174 : vector<8x128xf32>
    %176 = arith.mulf %171, %175 : vector<8x128xf32>
    %c5_i32 = arith.constant 5 : i32
    %177 = arith.index_cast %c5_i32 : i32 to index
    %c0_65 = arith.constant 0 : index
    %c0_66 = arith.constant 0 : index
    %178 = vector.load %arg2[%177, %c0_65, %c0_66] : memref<8x8x128xf32, #tpu.memory_space<vmem>>, vector<1x8x128xf32>
    %179 = vector.shape_cast %178 : vector<1x8x128xf32> to vector<8x128xf32>
    %c0_67 = arith.constant 0 : index
    %c0_68 = arith.constant 0 : index
    %180 = vector.load %arg5[%c0_67, %c0_68] : memref<128x512xf32, #tpu.memory_space<vmem>>, vector<128x512xf32>
    %cst_69 = arith.constant dense<0.000000e+00> : vector<8x512xf32>
    %181 = tpu.matmul %179, %180, %cst_69 {dimension_numbers = #tpu.dot_dimension_numbers<[1], [0], [0], [1], [0, 0, 1, 1], [], []>} : vector<8x128xf32>, vector<128x512xf32>, vector<8x512xf32> -> vector<8x512xf32>
    %c0_70 = arith.constant 0 : index
    %c0_71 = arith.constant 0 : index
    %182 = vector.load %arg6[%c0_70, %c0_71] : memref<128x512xf32, #tpu.memory_space<vmem>>, vector<128x512xf32>
    %cst_72 = arith.constant dense<0.000000e+00> : vector<8x512xf32>
    %183 = tpu.matmul %176, %182, %cst_72 {dimension_numbers = #tpu.dot_dimension_numbers<[1], [0], [0], [1], [0, 0, 1, 1], [], []>} : vector<8x128xf32>, vector<128x512xf32>, vector<8x512xf32> -> vector<8x512xf32>
    %184 = arith.addf %181, %183 : vector<8x512xf32>
    %c0_73 = arith.constant 0 : index
    %c0_74 = arith.constant 0 : index
    %185 = vector.load %arg7[%c0_73, %c0_74] : memref<8x512xf32, #tpu.memory_space<vmem>>, vector<8x512xf32>
    %186 = arith.addf %184, %185 : vector<8x512xf32>
    %187 = vector.extract_strided_slice %186 {offsets = [0, 0], sizes = [8, 128], strides = [1, 1]} : vector<8x512xf32> to vector<8x128xf32>
    %188 = arith.negf %187 : vector<8x128xf32>
    %189 = math.exp %188 : vector<8x128xf32>
    %cst_75 = arith.constant 1.000000e+00 : f32
    %190 = vector.broadcast %cst_75 : f32 to vector<8x128xf32>
    %191 = arith.addf %190, %189 : vector<8x128xf32>
    %192 = arith.divf %190, %191 : vector<8x128xf32>
    %193 = vector.extract_strided_slice %186 {offsets = [0, 128], sizes = [8, 128], strides = [1, 1]} : vector<8x512xf32> to vector<8x128xf32>
    %194 = arith.negf %193 : vector<8x128xf32>
    %195 = math.exp %194 : vector<8x128xf32>
    %cst_76 = arith.constant 1.000000e+00 : f32
    %196 = vector.broadcast %cst_76 : f32 to vector<8x128xf32>
    %197 = arith.addf %196, %195 : vector<8x128xf32>
    %198 = arith.divf %196, %197 : vector<8x128xf32>
    %199 = vector.extract_strided_slice %186 {offsets = [0, 256], sizes = [8, 128], strides = [1, 1]} : vector<8x512xf32> to vector<8x128xf32>
    %200 = math.tanh %199 : vector<8x128xf32>
    %201 = vector.extract_strided_slice %186 {offsets = [0, 384], sizes = [8, 128], strides = [1, 1]} : vector<8x512xf32> to vector<8x128xf32>
    %202 = arith.negf %201 : vector<8x128xf32>
    %203 = math.exp %202 : vector<8x128xf32>
    %cst_77 = arith.constant 1.000000e+00 : f32
    %204 = vector.broadcast %cst_77 : f32 to vector<8x128xf32>
    %205 = arith.addf %204, %203 : vector<8x128xf32>
    %206 = arith.divf %204, %205 : vector<8x128xf32>
    %207 = arith.mulf %198, %174 : vector<8x128xf32>
    %208 = arith.mulf %192, %200 : vector<8x128xf32>
    %209 = arith.addf %207, %208 : vector<8x128xf32>
    %210 = math.tanh %209 : vector<8x128xf32>
    %211 = arith.mulf %206, %210 : vector<8x128xf32>
    %c6_i32 = arith.constant 6 : i32
    %212 = arith.index_cast %c6_i32 : i32 to index
    %c0_78 = arith.constant 0 : index
    %c0_79 = arith.constant 0 : index
    %213 = vector.load %arg2[%212, %c0_78, %c0_79] : memref<8x8x128xf32, #tpu.memory_space<vmem>>, vector<1x8x128xf32>
    %214 = vector.shape_cast %213 : vector<1x8x128xf32> to vector<8x128xf32>
    %c0_80 = arith.constant 0 : index
    %c0_81 = arith.constant 0 : index
    %215 = vector.load %arg5[%c0_80, %c0_81] : memref<128x512xf32, #tpu.memory_space<vmem>>, vector<128x512xf32>
    %cst_82 = arith.constant dense<0.000000e+00> : vector<8x512xf32>
    %216 = tpu.matmul %214, %215, %cst_82 {dimension_numbers = #tpu.dot_dimension_numbers<[1], [0], [0], [1], [0, 0, 1, 1], [], []>} : vector<8x128xf32>, vector<128x512xf32>, vector<8x512xf32> -> vector<8x512xf32>
    %c0_83 = arith.constant 0 : index
    %c0_84 = arith.constant 0 : index
    %217 = vector.load %arg6[%c0_83, %c0_84] : memref<128x512xf32, #tpu.memory_space<vmem>>, vector<128x512xf32>
    %cst_85 = arith.constant dense<0.000000e+00> : vector<8x512xf32>
    %218 = tpu.matmul %211, %217, %cst_85 {dimension_numbers = #tpu.dot_dimension_numbers<[1], [0], [0], [1], [0, 0, 1, 1], [], []>} : vector<8x128xf32>, vector<128x512xf32>, vector<8x512xf32> -> vector<8x512xf32>
    %219 = arith.addf %216, %218 : vector<8x512xf32>
    %c0_86 = arith.constant 0 : index
    %c0_87 = arith.constant 0 : index
    %220 = vector.load %arg7[%c0_86, %c0_87] : memref<8x512xf32, #tpu.memory_space<vmem>>, vector<8x512xf32>
    %221 = arith.addf %219, %220 : vector<8x512xf32>
    %222 = vector.extract_strided_slice %221 {offsets = [0, 0], sizes = [8, 128], strides = [1, 1]} : vector<8x512xf32> to vector<8x128xf32>
    %223 = arith.negf %222 : vector<8x128xf32>
    %224 = math.exp %223 : vector<8x128xf32>
    %cst_88 = arith.constant 1.000000e+00 : f32
    %225 = vector.broadcast %cst_88 : f32 to vector<8x128xf32>
    %226 = arith.addf %225, %224 : vector<8x128xf32>
    %227 = arith.divf %225, %226 : vector<8x128xf32>
    %228 = vector.extract_strided_slice %221 {offsets = [0, 128], sizes = [8, 128], strides = [1, 1]} : vector<8x512xf32> to vector<8x128xf32>
    %229 = arith.negf %228 : vector<8x128xf32>
    %230 = math.exp %229 : vector<8x128xf32>
    %cst_89 = arith.constant 1.000000e+00 : f32
    %231 = vector.broadcast %cst_89 : f32 to vector<8x128xf32>
    %232 = arith.addf %231, %230 : vector<8x128xf32>
    %233 = arith.divf %231, %232 : vector<8x128xf32>
    %234 = vector.extract_strided_slice %221 {offsets = [0, 256], sizes = [8, 128], strides = [1, 1]} : vector<8x512xf32> to vector<8x128xf32>
    %235 = math.tanh %234 : vector<8x128xf32>
    %236 = vector.extract_strided_slice %221 {offsets = [0, 384], sizes = [8, 128], strides = [1, 1]} : vector<8x512xf32> to vector<8x128xf32>
    %237 = arith.negf %236 : vector<8x128xf32>
    %238 = math.exp %237 : vector<8x128xf32>
    %cst_90 = arith.constant 1.000000e+00 : f32
    %239 = vector.broadcast %cst_90 : f32 to vector<8x128xf32>
    %240 = arith.addf %239, %238 : vector<8x128xf32>
    %241 = arith.divf %239, %240 : vector<8x128xf32>
    %242 = arith.mulf %233, %209 : vector<8x128xf32>
    %243 = arith.mulf %227, %235 : vector<8x128xf32>
    %244 = arith.addf %242, %243 : vector<8x128xf32>
    %245 = math.tanh %244 : vector<8x128xf32>
    %246 = arith.mulf %241, %245 : vector<8x128xf32>
    %c7_i32 = arith.constant 7 : i32
    %247 = arith.index_cast %c7_i32 : i32 to index
    %c0_91 = arith.constant 0 : index
    %c0_92 = arith.constant 0 : index
    %248 = vector.load %arg2[%247, %c0_91, %c0_92] : memref<8x8x128xf32, #tpu.memory_space<vmem>>, vector<1x8x128xf32>
    %249 = vector.shape_cast %248 : vector<1x8x128xf32> to vector<8x128xf32>
    %c0_93 = arith.constant 0 : index
    %c0_94 = arith.constant 0 : index
    %250 = vector.load %arg5[%c0_93, %c0_94] : memref<128x512xf32, #tpu.memory_space<vmem>>, vector<128x512xf32>
    %cst_95 = arith.constant dense<0.000000e+00> : vector<8x512xf32>
    %251 = tpu.matmul %249, %250, %cst_95 {dimension_numbers = #tpu.dot_dimension_numbers<[1], [0], [0], [1], [0, 0, 1, 1], [], []>} : vector<8x128xf32>, vector<128x512xf32>, vector<8x512xf32> -> vector<8x512xf32>
    %c0_96 = arith.constant 0 : index
    %c0_97 = arith.constant 0 : index
    %252 = vector.load %arg6[%c0_96, %c0_97] : memref<128x512xf32, #tpu.memory_space<vmem>>, vector<128x512xf32>
    %cst_98 = arith.constant dense<0.000000e+00> : vector<8x512xf32>
    %253 = tpu.matmul %246, %252, %cst_98 {dimension_numbers = #tpu.dot_dimension_numbers<[1], [0], [0], [1], [0, 0, 1, 1], [], []>} : vector<8x128xf32>, vector<128x512xf32>, vector<8x512xf32> -> vector<8x512xf32>
    %254 = arith.addf %251, %253 : vector<8x512xf32>
    %c0_99 = arith.constant 0 : index
    %c0_100 = arith.constant 0 : index
    %255 = vector.load %arg7[%c0_99, %c0_100] : memref<8x512xf32, #tpu.memory_space<vmem>>, vector<8x512xf32>
    %256 = arith.addf %254, %255 : vector<8x512xf32>
    %257 = vector.extract_strided_slice %256 {offsets = [0, 0], sizes = [8, 128], strides = [1, 1]} : vector<8x512xf32> to vector<8x128xf32>
    %258 = arith.negf %257 : vector<8x128xf32>
    %259 = math.exp %258 : vector<8x128xf32>
    %cst_101 = arith.constant 1.000000e+00 : f32
    %260 = vector.broadcast %cst_101 : f32 to vector<8x128xf32>
    %261 = arith.addf %260, %259 : vector<8x128xf32>
    %262 = arith.divf %260, %261 : vector<8x128xf32>
    %263 = vector.extract_strided_slice %256 {offsets = [0, 128], sizes = [8, 128], strides = [1, 1]} : vector<8x512xf32> to vector<8x128xf32>
    %264 = arith.negf %263 : vector<8x128xf32>
    %265 = math.exp %264 : vector<8x128xf32>
    %cst_102 = arith.constant 1.000000e+00 : f32
    %266 = vector.broadcast %cst_102 : f32 to vector<8x128xf32>
    %267 = arith.addf %266, %265 : vector<8x128xf32>
    %268 = arith.divf %266, %267 : vector<8x128xf32>
    %269 = vector.extract_strided_slice %256 {offsets = [0, 256], sizes = [8, 128], strides = [1, 1]} : vector<8x512xf32> to vector<8x128xf32>
    %270 = math.tanh %269 : vector<8x128xf32>
    %271 = vector.extract_strided_slice %256 {offsets = [0, 384], sizes = [8, 128], strides = [1, 1]} : vector<8x512xf32> to vector<8x128xf32>
    %272 = arith.negf %271 : vector<8x128xf32>
    %273 = math.exp %272 : vector<8x128xf32>
    %cst_103 = arith.constant 1.000000e+00 : f32
    %274 = vector.broadcast %cst_103 : f32 to vector<8x128xf32>
    %275 = arith.addf %274, %273 : vector<8x128xf32>
    %276 = arith.divf %274, %275 : vector<8x128xf32>
    %277 = arith.mulf %268, %244 : vector<8x128xf32>
    %278 = arith.mulf %262, %270 : vector<8x128xf32>
    %279 = arith.addf %277, %278 : vector<8x128xf32>
    %280 = math.tanh %279 : vector<8x128xf32>
    %281 = arith.mulf %276, %280 : vector<8x128xf32>
    %c8_i32 = arith.constant 8 : i32
    %cst_104 = arith.constant 0.000000e+00 : f32
    %282 = vector.broadcast %cst_104 : f32 to vector<8x128xf32>
    %c0_105 = arith.constant 0 : index
    %c0_106 = arith.constant 0 : index
    %c0_107 = arith.constant 0 : index
    %283 = vector.load %arg13[%c0_105, %c0_106, %c0_107] : memref<8x8x128xf32, #tpu.memory_space<vmem>>, vector<1x8x128xf32>
    %284 = vector.shape_cast %283 : vector<1x8x128xf32> to vector<8x128xf32>
    %285 = vector.shape_cast %282 : vector<8x128xf32> to vector<1x8x128xf32>
    tpu.vector_store %arg13[%c0_105, %c0_106, %c0_107], %285 {strides = array<i32>} : memref<8x8x128xf32, #tpu.memory_space<vmem>>, vector<1x8x128xf32>,
    %c0_108 = arith.constant 0 : index
    %c0_109 = arith.constant 0 : index
    %c0_110 = arith.constant 0 : index
    %286 = vector.load %arg3[%c0_108, %c0_109, %c0_110] : memref<8x8x128xf32, #tpu.memory_space<vmem>>, vector<1x8x128xf32>
    %287 = vector.shape_cast %286 : vector<1x8x128xf32> to vector<8x128xf32>
    %c0_111 = arith.constant 0 : index
    %c0_112 = arith.constant 0 : index
    %288 = vector.load %arg14[%c0_111, %c0_112] : memref<8x128xf32, #tpu.memory_space<vmem>>, vector<8x128xf32>
    tpu.vector_store %arg14[%c0_111, %c0_112], %287 {strides = array<i32>} : memref<8x128xf32, #tpu.memory_space<vmem>>, vector<8x128xf32>,
    %c1_i32_113 = arith.constant 1 : i32
    %c0_114 = arith.constant 0 : index
    %c0_115 = arith.constant 0 : index
    %289 = vector.load %arg14[%c0_114, %c0_115] : memref<8x128xf32, #tpu.memory_space<vmem>>, vector<8x128xf32>
    %c0_116 = arith.constant 0 : index
    %c0_117 = arith.constant 0 : index
    %290 = vector.load %arg8[%c0_116, %c0_117] : memref<128x512xf32, #tpu.memory_space<vmem>>, vector<128x512xf32>
    %cst_118 = arith.constant dense<0.000000e+00> : vector<8x512xf32>
    %291 = tpu.matmul %289, %290, %cst_118 {dimension_numbers = #tpu.dot_dimension_numbers<[1], [0], [0], [1], [0, 0, 1, 1], [], []>} : vector<8x128xf32>, vector<128x512xf32>, vector<8x512xf32> -> vector<8x512xf32>
    %c0_119 = arith.constant 0 : index
    %c0_120 = arith.constant 0 : index
    %292 = vector.load %arg9[%c0_119, %c0_120] : memref<128x512xf32, #tpu.memory_space<vmem>>, vector<128x512xf32>
    %cst_121 = arith.constant dense<0.000000e+00> : vector<8x512xf32>
    %293 = tpu.matmul %281, %292, %cst_121 {dimension_numbers = #tpu.dot_dimension_numbers<[1], [0], [0], [1], [0, 0, 1, 1], [], []>} : vector<8x128xf32>, vector<128x512xf32>, vector<8x512xf32> -> vector<8x512xf32>
    %294 = arith.addf %291, %293 : vector<8x512xf32>
    %c0_122 = arith.constant 0 : index
    %c0_123 = arith.constant 0 : index
    %295 = vector.load %arg10[%c0_122, %c0_123] : memref<8x512xf32, #tpu.memory_space<vmem>>, vector<8x512xf32>
    %296 = arith.addf %294, %295 : vector<8x512xf32>
    %297 = vector.extract_strided_slice %296 {offsets = [0, 0], sizes = [8, 128], strides = [1, 1]} : vector<8x512xf32> to vector<8x128xf32>
    %298 = arith.negf %297 : vector<8x128xf32>
    %299 = math.exp %298 : vector<8x128xf32>
    %cst_124 = arith.constant 1.000000e+00 : f32
    %300 = vector.broadcast %cst_124 : f32 to vector<8x128xf32>
    %301 = arith.addf %300, %299 : vector<8x128xf32>
    %302 = arith.divf %300, %301 : vector<8x128xf32>
    %303 = vector.extract_strided_slice %296 {offsets = [0, 128], sizes = [8, 128], strides = [1, 1]} : vector<8x512xf32> to vector<8x128xf32>
    %304 = arith.negf %303 : vector<8x128xf32>
    %305 = math.exp %304 : vector<8x128xf32>
    %cst_125 = arith.constant 1.000000e+00 : f32
    %306 = vector.broadcast %cst_125 : f32 to vector<8x128xf32>
    %307 = arith.addf %306, %305 : vector<8x128xf32>
    %308 = arith.divf %306, %307 : vector<8x128xf32>
    %309 = vector.extract_strided_slice %296 {offsets = [0, 256], sizes = [8, 128], strides = [1, 1]} : vector<8x512xf32> to vector<8x128xf32>
    %310 = math.tanh %309 : vector<8x128xf32>
    %311 = vector.extract_strided_slice %296 {offsets = [0, 384], sizes = [8, 128], strides = [1, 1]} : vector<8x512xf32> to vector<8x128xf32>
    %312 = arith.negf %311 : vector<8x128xf32>
    %313 = math.exp %312 : vector<8x128xf32>
    %cst_126 = arith.constant 1.000000e+00 : f32
    %314 = vector.broadcast %cst_126 : f32 to vector<8x128xf32>
    %315 = arith.addf %314, %313 : vector<8x128xf32>
    %316 = arith.divf %314, %315 : vector<8x128xf32>
    %317 = arith.mulf %308, %279 : vector<8x128xf32>
    %318 = arith.mulf %302, %310 : vector<8x128xf32>
    %319 = arith.addf %317, %318 : vector<8x128xf32>
    %320 = math.tanh %319 : vector<8x128xf32>
    %321 = arith.mulf %316, %320 : vector<8x128xf32>
    %c0_127 = arith.constant 0 : index
    %c0_128 = arith.constant 0 : index
    %322 = vector.load %arg11[%c0_127, %c0_128] : memref<128x128xf32, #tpu.memory_space<vmem>>, vector<128x128xf32>
    %cst_129 = arith.constant dense<0.000000e+00> : vector<8x128xf32>
    %323 = tpu.matmul %321, %322, %cst_129 {dimension_numbers = #tpu.dot_dimension_numbers<[1], [0], [0], [1], [0, 0, 1, 1], [], []>} : vector<8x128xf32>, vector<128x128xf32>, vector<8x128xf32> -> vector<8x128xf32>
    %c0_130 = arith.constant 0 : index
    %c0_131 = arith.constant 0 : index
    %324 = vector.load %arg12[%c0_130, %c0_131] : memref<8x128xf32, #tpu.memory_space<vmem>>, vector<8x128xf32>
    %325 = arith.addf %323, %324 : vector<8x128xf32>
    %326 = arith.index_cast %c1_i32_113 : i32 to index
    %c0_132 = arith.constant 0 : index
    %c0_133 = arith.constant 0 : index
    %327 = vector.load %arg13[%326, %c0_132, %c0_133] : memref<8x8x128xf32, #tpu.memory_space<vmem>>, vector<1x8x128xf32>
    %328 = vector.shape_cast %327 : vector<1x8x128xf32> to vector<8x128xf32>
    %329 = vector.shape_cast %325 : vector<8x128xf32> to vector<1x8x128xf32>
    tpu.vector_store %arg13[%326, %c0_132, %c0_133], %329 {strides = array<i32>} : memref<8x8x128xf32, #tpu.memory_space<vmem>>, vector<1x8x128xf32>,
    %330 = arith.index_cast %c1_i32_113 : i32 to index
    %c0_134 = arith.constant 0 : index
    %c0_135 = arith.constant 0 : index
    %331 = vector.load %arg3[%330, %c0_134, %c0_135] : memref<8x8x128xf32, #tpu.memory_space<vmem>>, vector<1x8x128xf32>
    %332 = vector.shape_cast %331 : vector<1x8x128xf32> to vector<8x128xf32>
    %c0_136 = arith.constant 0 : index
    %c0_137 = arith.constant 0 : index
    %333 = vector.load %arg14[%c0_136, %c0_137] : memref<8x128xf32, #tpu.memory_space<vmem>>, vector<8x128xf32>
    tpu.vector_store %arg14[%c0_136, %c0_137], %332 {strides = array<i32>} : memref<8x128xf32, #tpu.memory_space<vmem>>, vector<8x128xf32>,
    %334 = arith.index_cast %c1_i32_113 : i32 to index
    %335 = memref.load %arg1[%334] : memref<8xi32, #tpu.memory_space<smem>>
    %c0_i32_138 = arith.constant 0 : i32
    %336 = arith.cmpi eq, %335, %c0_i32_138 : i32
    %337 = arith.extui %336 : i1 to i32
    %c0_i32_139 = arith.constant 0 : i32
    %338 = arith.cmpi ne, %337, %c0_i32_139 : i32
    scf.if %338 {
      %639 = tpu.iota {dimensions = array<i32: 1>} : vector<8x128xi32>
      %c16_i32 = arith.constant 16 : i32
      %640 = vector.broadcast %c16_i32 : i32 to vector<8x128xi32>
      %641 = arith.cmpi slt, %639, %640 : vector<8x128xi32>
      %cst_303 = arith.constant -1.000000e+30 : f32
      %642 = vector.broadcast %cst_303 : f32 to vector<8x128xf32>
      %643 = arith.select %641, %325, %642 : vector<8x128xi1>, vector<8x128xf32>
      %cst_304 = arith.constant dense<0xFF800000> : vector<8xf32>
      %644 = vector.multi_reduction <maximumf>, %643, %cst_304 [1] : vector<8x128xf32> to vector<8xf32>
      %645 = vector.shape_cast %644 : vector<8xf32> to vector<8x1xf32>
      %646 = vector.broadcast %645 : vector<8x1xf32> to vector<8x128xf32>
      %647 = arith.cmpf oeq, %643, %646 : vector<8x128xf32>
      %c128_i32 = arith.constant 128 : i32
      %648 = vector.broadcast %c128_i32 : i32 to vector<8x128xi32>
      %649 = arith.select %647, %639, %648 : vector<8x128xi1>, vector<8x128xi32>
      %cst_305 = arith.constant dense<2147483647> : vector<8xi32>
      %650 = vector.multi_reduction <minsi>, %649, %cst_305 [1] : vector<8x128xi32> to vector<8xi32>
      %651 = vector.shape_cast %650 : vector<8xi32> to vector<8x1xi32>
      %652 = vector.broadcast %651 : vector<8x1xi32> to vector<8x128xi32>
      %653 = arith.cmpi eq, %639, %652 : vector<8x128xi32>
      %654 = arith.extui %653 : vector<8x128xi1> to vector<8x128xi32>
      %655 = arith.sitofp %654 : vector<8x128xi32> to vector<8x128xf32>
      %c0_306 = arith.constant 0 : index
      %c0_307 = arith.constant 0 : index
      %656 = vector.load %arg4[%c0_306, %c0_307] : memref<128x128xf32, #tpu.memory_space<vmem>>, vector<128x128xf32>
      %cst_308 = arith.constant dense<0.000000e+00> : vector<8x128xf32>
      %657 = tpu.matmul %655, %656, %cst_308 {dimension_numbers = #tpu.dot_dimension_numbers<[1], [0], [0], [1], [0, 0, 1, 1], [], []>} : vector<8x128xf32>, vector<128x128xf32>, vector<8x128xf32> -> vector<8x128xf32>
      %c0_309 = arith.constant 0 : index
      %c0_310 = arith.constant 0 : index
      %658 = vector.load %arg14[%c0_309, %c0_310] : memref<8x128xf32, #tpu.memory_space<vmem>>, vector<8x128xf32>
      tpu.vector_store %arg14[%c0_309, %c0_310], %657 {strides = array<i32>} : memref<8x128xf32, #tpu.memory_space<vmem>>, vector<8x128xf32>,
    } else {
    }
    %c2_i32_140 = arith.constant 2 : i32
    %c0_141 = arith.constant 0 : index
    %c0_142 = arith.constant 0 : index
    %339 = vector.load %arg14[%c0_141, %c0_142] : memref<8x128xf32, #tpu.memory_space<vmem>>, vector<8x128xf32>
    %c0_143 = arith.constant 0 : index
    %c0_144 = arith.constant 0 : index
    %340 = vector.load %arg8[%c0_143, %c0_144] : memref<128x512xf32, #tpu.memory_space<vmem>>, vector<128x512xf32>
    %cst_145 = arith.constant dense<0.000000e+00> : vector<8x512xf32>
    %341 = tpu.matmul %339, %340, %cst_145 {dimension_numbers = #tpu.dot_dimension_numbers<[1], [0], [0], [1], [0, 0, 1, 1], [], []>} : vector<8x128xf32>, vector<128x512xf32>, vector<8x512xf32> -> vector<8x512xf32>
    %c0_146 = arith.constant 0 : index
    %c0_147 = arith.constant 0 : index
    %342 = vector.load %arg9[%c0_146, %c0_147] : memref<128x512xf32, #tpu.memory_space<vmem>>, vector<128x512xf32>
    %cst_148 = arith.constant dense<0.000000e+00> : vector<8x512xf32>
    %343 = tpu.matmul %321, %342, %cst_148 {dimension_numbers = #tpu.dot_dimension_numbers<[1], [0], [0], [1], [0, 0, 1, 1], [], []>} : vector<8x128xf32>, vector<128x512xf32>, vector<8x512xf32> -> vector<8x512xf32>
    %344 = arith.addf %341, %343 : vector<8x512xf32>
    %c0_149 = arith.constant 0 : index
    %c0_150 = arith.constant 0 : index
    %345 = vector.load %arg10[%c0_149, %c0_150] : memref<8x512xf32, #tpu.memory_space<vmem>>, vector<8x512xf32>
    %346 = arith.addf %344, %345 : vector<8x512xf32>
    %347 = vector.extract_strided_slice %346 {offsets = [0, 0], sizes = [8, 128], strides = [1, 1]} : vector<8x512xf32> to vector<8x128xf32>
    %348 = arith.negf %347 : vector<8x128xf32>
    %349 = math.exp %348 : vector<8x128xf32>
    %cst_151 = arith.constant 1.000000e+00 : f32
    %350 = vector.broadcast %cst_151 : f32 to vector<8x128xf32>
    %351 = arith.addf %350, %349 : vector<8x128xf32>
    %352 = arith.divf %350, %351 : vector<8x128xf32>
    %353 = vector.extract_strided_slice %346 {offsets = [0, 128], sizes = [8, 128], strides = [1, 1]} : vector<8x512xf32> to vector<8x128xf32>
    %354 = arith.negf %353 : vector<8x128xf32>
    %355 = math.exp %354 : vector<8x128xf32>
    %cst_152 = arith.constant 1.000000e+00 : f32
    %356 = vector.broadcast %cst_152 : f32 to vector<8x128xf32>
    %357 = arith.addf %356, %355 : vector<8x128xf32>
    %358 = arith.divf %356, %357 : vector<8x128xf32>
    %359 = vector.extract_strided_slice %346 {offsets = [0, 256], sizes = [8, 128], strides = [1, 1]} : vector<8x512xf32> to vector<8x128xf32>
    %360 = math.tanh %359 : vector<8x128xf32>
    %361 = vector.extract_strided_slice %346 {offsets = [0, 384], sizes = [8, 128], strides = [1, 1]} : vector<8x512xf32> to vector<8x128xf32>
    %362 = arith.negf %361 : vector<8x128xf32>
    %363 = math.exp %362 : vector<8x128xf32>
    %cst_153 = arith.constant 1.000000e+00 : f32
    %364 = vector.broadcast %cst_153 : f32 to vector<8x128xf32>
    %365 = arith.addf %364, %363 : vector<8x128xf32>
    %366 = arith.divf %364, %365 : vector<8x128xf32>
    %367 = arith.mulf %358, %319 : vector<8x128xf32>
    %368 = arith.mulf %352, %360 : vector<8x128xf32>
    %369 = arith.addf %367, %368 : vector<8x128xf32>
    %370 = math.tanh %369 : vector<8x128xf32>
    %371 = arith.mulf %366, %370 : vector<8x128xf32>
    %c0_154 = arith.constant 0 : index
    %c0_155 = arith.constant 0 : index
    %372 = vector.load %arg11[%c0_154, %c0_155] : memref<128x128xf32, #tpu.memory_space<vmem>>, vector<128x128xf32>
    %cst_156 = arith.constant dense<0.000000e+00> : vector<8x128xf32>
    %373 = tpu.matmul %371, %372, %cst_156 {dimension_numbers = #tpu.dot_dimension_numbers<[1], [0], [0], [1], [0, 0, 1, 1], [], []>} : vector<8x128xf32>, vector<128x128xf32>, vector<8x128xf32> -> vector<8x128xf32>
    %c0_157 = arith.constant 0 : index
    %c0_158 = arith.constant 0 : index
    %374 = vector.load %arg12[%c0_157, %c0_158] : memref<8x128xf32, #tpu.memory_space<vmem>>, vector<8x128xf32>
    %375 = arith.addf %373, %374 : vector<8x128xf32>
    %376 = arith.index_cast %c2_i32_140 : i32 to index
    %c0_159 = arith.constant 0 : index
    %c0_160 = arith.constant 0 : index
    %377 = vector.load %arg13[%376, %c0_159, %c0_160] : memref<8x8x128xf32, #tpu.memory_space<vmem>>, vector<1x8x128xf32>
    %378 = vector.shape_cast %377 : vector<1x8x128xf32> to vector<8x128xf32>
    %379 = vector.shape_cast %375 : vector<8x128xf32> to vector<1x8x128xf32>
    tpu.vector_store %arg13[%376, %c0_159, %c0_160], %379 {strides = array<i32>} : memref<8x8x128xf32, #tpu.memory_space<vmem>>, vector<1x8x128xf32>,
    %380 = arith.index_cast %c2_i32_140 : i32 to index
    %c0_161 = arith.constant 0 : index
    %c0_162 = arith.constant 0 : index
    %381 = vector.load %arg3[%380, %c0_161, %c0_162] : memref<8x8x128xf32, #tpu.memory_space<vmem>>, vector<1x8x128xf32>
    %382 = vector.shape_cast %381 : vector<1x8x128xf32> to vector<8x128xf32>
    %c0_163 = arith.constant 0 : index
    %c0_164 = arith.constant 0 : index
    %383 = vector.load %arg14[%c0_163, %c0_164] : memref<8x128xf32, #tpu.memory_space<vmem>>, vector<8x128xf32>
    tpu.vector_store %arg14[%c0_163, %c0_164], %382 {strides = array<i32>} : memref<8x128xf32, #tpu.memory_space<vmem>>, vector<8x128xf32>,
    %384 = arith.index_cast %c2_i32_140 : i32 to index
    %385 = memref.load %arg1[%384] : memref<8xi32, #tpu.memory_space<smem>>
    %c0_i32_165 = arith.constant 0 : i32
    %386 = arith.cmpi eq, %385, %c0_i32_165 : i32
    %387 = arith.extui %386 : i1 to i32
    %c0_i32_166 = arith.constant 0 : i32
    %388 = arith.cmpi ne, %387, %c0_i32_166 : i32
    scf.if %388 {
      %639 = tpu.iota {dimensions = array<i32: 1>} : vector<8x128xi32>
      %c16_i32 = arith.constant 16 : i32
      %640 = vector.broadcast %c16_i32 : i32 to vector<8x128xi32>
      %641 = arith.cmpi slt, %639, %640 : vector<8x128xi32>
      %cst_303 = arith.constant -1.000000e+30 : f32
      %642 = vector.broadcast %cst_303 : f32 to vector<8x128xf32>
      %643 = arith.select %641, %375, %642 : vector<8x128xi1>, vector<8x128xf32>
      %cst_304 = arith.constant dense<0xFF800000> : vector<8xf32>
      %644 = vector.multi_reduction <maximumf>, %643, %cst_304 [1] : vector<8x128xf32> to vector<8xf32>
      %645 = vector.shape_cast %644 : vector<8xf32> to vector<8x1xf32>
      %646 = vector.broadcast %645 : vector<8x1xf32> to vector<8x128xf32>
      %647 = arith.cmpf oeq, %643, %646 : vector<8x128xf32>
      %c128_i32 = arith.constant 128 : i32
      %648 = vector.broadcast %c128_i32 : i32 to vector<8x128xi32>
      %649 = arith.select %647, %639, %648 : vector<8x128xi1>, vector<8x128xi32>
      %cst_305 = arith.constant dense<2147483647> : vector<8xi32>
      %650 = vector.multi_reduction <minsi>, %649, %cst_305 [1] : vector<8x128xi32> to vector<8xi32>
      %651 = vector.shape_cast %650 : vector<8xi32> to vector<8x1xi32>
      %652 = vector.broadcast %651 : vector<8x1xi32> to vector<8x128xi32>
      %653 = arith.cmpi eq, %639, %652 : vector<8x128xi32>
      %654 = arith.extui %653 : vector<8x128xi1> to vector<8x128xi32>
      %655 = arith.sitofp %654 : vector<8x128xi32> to vector<8x128xf32>
      %c0_306 = arith.constant 0 : index
      %c0_307 = arith.constant 0 : index
      %656 = vector.load %arg4[%c0_306, %c0_307] : memref<128x128xf32, #tpu.memory_space<vmem>>, vector<128x128xf32>
      %cst_308 = arith.constant dense<0.000000e+00> : vector<8x128xf32>
      %657 = tpu.matmul %655, %656, %cst_308 {dimension_numbers = #tpu.dot_dimension_numbers<[1], [0], [0], [1], [0, 0, 1, 1], [], []>} : vector<8x128xf32>, vector<128x128xf32>, vector<8x128xf32> -> vector<8x128xf32>
      %c0_309 = arith.constant 0 : index
      %c0_310 = arith.constant 0 : index
      %658 = vector.load %arg14[%c0_309, %c0_310] : memref<8x128xf32, #tpu.memory_space<vmem>>, vector<8x128xf32>
      tpu.vector_store %arg14[%c0_309, %c0_310], %657 {strides = array<i32>} : memref<8x128xf32, #tpu.memory_space<vmem>>, vector<8x128xf32>,
    } else {
    }
    %c3_i32_167 = arith.constant 3 : i32
    %c0_168 = arith.constant 0 : index
    %c0_169 = arith.constant 0 : index
    %389 = vector.load %arg14[%c0_168, %c0_169] : memref<8x128xf32, #tpu.memory_space<vmem>>, vector<8x128xf32>
    %c0_170 = arith.constant 0 : index
    %c0_171 = arith.constant 0 : index
    %390 = vector.load %arg8[%c0_170, %c0_171] : memref<128x512xf32, #tpu.memory_space<vmem>>, vector<128x512xf32>
    %cst_172 = arith.constant dense<0.000000e+00> : vector<8x512xf32>
    %391 = tpu.matmul %389, %390, %cst_172 {dimension_numbers = #tpu.dot_dimension_numbers<[1], [0], [0], [1], [0, 0, 1, 1], [], []>} : vector<8x128xf32>, vector<128x512xf32>, vector<8x512xf32> -> vector<8x512xf32>
    %c0_173 = arith.constant 0 : index
    %c0_174 = arith.constant 0 : index
    %392 = vector.load %arg9[%c0_173, %c0_174] : memref<128x512xf32, #tpu.memory_space<vmem>>, vector<128x512xf32>
    %cst_175 = arith.constant dense<0.000000e+00> : vector<8x512xf32>
    %393 = tpu.matmul %371, %392, %cst_175 {dimension_numbers = #tpu.dot_dimension_numbers<[1], [0], [0], [1], [0, 0, 1, 1], [], []>} : vector<8x128xf32>, vector<128x512xf32>, vector<8x512xf32> -> vector<8x512xf32>
    %394 = arith.addf %391, %393 : vector<8x512xf32>
    %c0_176 = arith.constant 0 : index
    %c0_177 = arith.constant 0 : index
    %395 = vector.load %arg10[%c0_176, %c0_177] : memref<8x512xf32, #tpu.memory_space<vmem>>, vector<8x512xf32>
    %396 = arith.addf %394, %395 : vector<8x512xf32>
    %397 = vector.extract_strided_slice %396 {offsets = [0, 0], sizes = [8, 128], strides = [1, 1]} : vector<8x512xf32> to vector<8x128xf32>
    %398 = arith.negf %397 : vector<8x128xf32>
    %399 = math.exp %398 : vector<8x128xf32>
    %cst_178 = arith.constant 1.000000e+00 : f32
    %400 = vector.broadcast %cst_178 : f32 to vector<8x128xf32>
    %401 = arith.addf %400, %399 : vector<8x128xf32>
    %402 = arith.divf %400, %401 : vector<8x128xf32>
    %403 = vector.extract_strided_slice %396 {offsets = [0, 128], sizes = [8, 128], strides = [1, 1]} : vector<8x512xf32> to vector<8x128xf32>
    %404 = arith.negf %403 : vector<8x128xf32>
    %405 = math.exp %404 : vector<8x128xf32>
    %cst_179 = arith.constant 1.000000e+00 : f32
    %406 = vector.broadcast %cst_179 : f32 to vector<8x128xf32>
    %407 = arith.addf %406, %405 : vector<8x128xf32>
    %408 = arith.divf %406, %407 : vector<8x128xf32>
    %409 = vector.extract_strided_slice %396 {offsets = [0, 256], sizes = [8, 128], strides = [1, 1]} : vector<8x512xf32> to vector<8x128xf32>
    %410 = math.tanh %409 : vector<8x128xf32>
    %411 = vector.extract_strided_slice %396 {offsets = [0, 384], sizes = [8, 128], strides = [1, 1]} : vector<8x512xf32> to vector<8x128xf32>
    %412 = arith.negf %411 : vector<8x128xf32>
    %413 = math.exp %412 : vector<8x128xf32>
    %cst_180 = arith.constant 1.000000e+00 : f32
    %414 = vector.broadcast %cst_180 : f32 to vector<8x128xf32>
    %415 = arith.addf %414, %413 : vector<8x128xf32>
    %416 = arith.divf %414, %415 : vector<8x128xf32>
    %417 = arith.mulf %408, %369 : vector<8x128xf32>
    %418 = arith.mulf %402, %410 : vector<8x128xf32>
    %419 = arith.addf %417, %418 : vector<8x128xf32>
    %420 = math.tanh %419 : vector<8x128xf32>
    %421 = arith.mulf %416, %420 : vector<8x128xf32>
    %c0_181 = arith.constant 0 : index
    %c0_182 = arith.constant 0 : index
    %422 = vector.load %arg11[%c0_181, %c0_182] : memref<128x128xf32, #tpu.memory_space<vmem>>, vector<128x128xf32>
    %cst_183 = arith.constant dense<0.000000e+00> : vector<8x128xf32>
    %423 = tpu.matmul %421, %422, %cst_183 {dimension_numbers = #tpu.dot_dimension_numbers<[1], [0], [0], [1], [0, 0, 1, 1], [], []>} : vector<8x128xf32>, vector<128x128xf32>, vector<8x128xf32> -> vector<8x128xf32>
    %c0_184 = arith.constant 0 : index
    %c0_185 = arith.constant 0 : index
    %424 = vector.load %arg12[%c0_184, %c0_185] : memref<8x128xf32, #tpu.memory_space<vmem>>, vector<8x128xf32>
    %425 = arith.addf %423, %424 : vector<8x128xf32>
    %426 = arith.index_cast %c3_i32_167 : i32 to index
    %c0_186 = arith.constant 0 : index
    %c0_187 = arith.constant 0 : index
    %427 = vector.load %arg13[%426, %c0_186, %c0_187] : memref<8x8x128xf32, #tpu.memory_space<vmem>>, vector<1x8x128xf32>
    %428 = vector.shape_cast %427 : vector<1x8x128xf32> to vector<8x128xf32>
    %429 = vector.shape_cast %425 : vector<8x128xf32> to vector<1x8x128xf32>
    tpu.vector_store %arg13[%426, %c0_186, %c0_187], %429 {strides = array<i32>} : memref<8x8x128xf32, #tpu.memory_space<vmem>>, vector<1x8x128xf32>,
    %430 = arith.index_cast %c3_i32_167 : i32 to index
    %c0_188 = arith.constant 0 : index
    %c0_189 = arith.constant 0 : index
    %431 = vector.load %arg3[%430, %c0_188, %c0_189] : memref<8x8x128xf32, #tpu.memory_space<vmem>>, vector<1x8x128xf32>
    %432 = vector.shape_cast %431 : vector<1x8x128xf32> to vector<8x128xf32>
    %c0_190 = arith.constant 0 : index
    %c0_191 = arith.constant 0 : index
    %433 = vector.load %arg14[%c0_190, %c0_191] : memref<8x128xf32, #tpu.memory_space<vmem>>, vector<8x128xf32>
    tpu.vector_store %arg14[%c0_190, %c0_191], %432 {strides = array<i32>} : memref<8x128xf32, #tpu.memory_space<vmem>>, vector<8x128xf32>,
    %434 = arith.index_cast %c3_i32_167 : i32 to index
    %435 = memref.load %arg1[%434] : memref<8xi32, #tpu.memory_space<smem>>
    %c0_i32_192 = arith.constant 0 : i32
    %436 = arith.cmpi eq, %435, %c0_i32_192 : i32
    %437 = arith.extui %436 : i1 to i32
    %c0_i32_193 = arith.constant 0 : i32
    %438 = arith.cmpi ne, %437, %c0_i32_193 : i32
    scf.if %438 {
      %639 = tpu.iota {dimensions = array<i32: 1>} : vector<8x128xi32>
      %c16_i32 = arith.constant 16 : i32
      %640 = vector.broadcast %c16_i32 : i32 to vector<8x128xi32>
      %641 = arith.cmpi slt, %639, %640 : vector<8x128xi32>
      %cst_303 = arith.constant -1.000000e+30 : f32
      %642 = vector.broadcast %cst_303 : f32 to vector<8x128xf32>
      %643 = arith.select %641, %425, %642 : vector<8x128xi1>, vector<8x128xf32>
      %cst_304 = arith.constant dense<0xFF800000> : vector<8xf32>
      %644 = vector.multi_reduction <maximumf>, %643, %cst_304 [1] : vector<8x128xf32> to vector<8xf32>
      %645 = vector.shape_cast %644 : vector<8xf32> to vector<8x1xf32>
      %646 = vector.broadcast %645 : vector<8x1xf32> to vector<8x128xf32>
      %647 = arith.cmpf oeq, %643, %646 : vector<8x128xf32>
      %c128_i32 = arith.constant 128 : i32
      %648 = vector.broadcast %c128_i32 : i32 to vector<8x128xi32>
      %649 = arith.select %647, %639, %648 : vector<8x128xi1>, vector<8x128xi32>
      %cst_305 = arith.constant dense<2147483647> : vector<8xi32>
      %650 = vector.multi_reduction <minsi>, %649, %cst_305 [1] : vector<8x128xi32> to vector<8xi32>
      %651 = vector.shape_cast %650 : vector<8xi32> to vector<8x1xi32>
      %652 = vector.broadcast %651 : vector<8x1xi32> to vector<8x128xi32>
      %653 = arith.cmpi eq, %639, %652 : vector<8x128xi32>
      %654 = arith.extui %653 : vector<8x128xi1> to vector<8x128xi32>
      %655 = arith.sitofp %654 : vector<8x128xi32> to vector<8x128xf32>
      %c0_306 = arith.constant 0 : index
      %c0_307 = arith.constant 0 : index
      %656 = vector.load %arg4[%c0_306, %c0_307] : memref<128x128xf32, #tpu.memory_space<vmem>>, vector<128x128xf32>
      %cst_308 = arith.constant dense<0.000000e+00> : vector<8x128xf32>
      %657 = tpu.matmul %655, %656, %cst_308 {dimension_numbers = #tpu.dot_dimension_numbers<[1], [0], [0], [1], [0, 0, 1, 1], [], []>} : vector<8x128xf32>, vector<128x128xf32>, vector<8x128xf32> -> vector<8x128xf32>
      %c0_309 = arith.constant 0 : index
      %c0_310 = arith.constant 0 : index
      %658 = vector.load %arg14[%c0_309, %c0_310] : memref<8x128xf32, #tpu.memory_space<vmem>>, vector<8x128xf32>
      tpu.vector_store %arg14[%c0_309, %c0_310], %657 {strides = array<i32>} : memref<8x128xf32, #tpu.memory_space<vmem>>, vector<8x128xf32>,
    } else {
    }
    %c4_i32_194 = arith.constant 4 : i32
    %c0_195 = arith.constant 0 : index
    %c0_196 = arith.constant 0 : index
    %439 = vector.load %arg14[%c0_195, %c0_196] : memref<8x128xf32, #tpu.memory_space<vmem>>, vector<8x128xf32>
    %c0_197 = arith.constant 0 : index
    %c0_198 = arith.constant 0 : index
    %440 = vector.load %arg8[%c0_197, %c0_198] : memref<128x512xf32, #tpu.memory_space<vmem>>, vector<128x512xf32>
    %cst_199 = arith.constant dense<0.000000e+00> : vector<8x512xf32>
    %441 = tpu.matmul %439, %440, %cst_199 {dimension_numbers = #tpu.dot_dimension_numbers<[1], [0], [0], [1], [0, 0, 1, 1], [], []>} : vector<8x128xf32>, vector<128x512xf32>, vector<8x512xf32> -> vector<8x512xf32>
    %c0_200 = arith.constant 0 : index
    %c0_201 = arith.constant 0 : index
    %442 = vector.load %arg9[%c0_200, %c0_201] : memref<128x512xf32, #tpu.memory_space<vmem>>, vector<128x512xf32>
    %cst_202 = arith.constant dense<0.000000e+00> : vector<8x512xf32>
    %443 = tpu.matmul %421, %442, %cst_202 {dimension_numbers = #tpu.dot_dimension_numbers<[1], [0], [0], [1], [0, 0, 1, 1], [], []>} : vector<8x128xf32>, vector<128x512xf32>, vector<8x512xf32> -> vector<8x512xf32>
    %444 = arith.addf %441, %443 : vector<8x512xf32>
    %c0_203 = arith.constant 0 : index
    %c0_204 = arith.constant 0 : index
    %445 = vector.load %arg10[%c0_203, %c0_204] : memref<8x512xf32, #tpu.memory_space<vmem>>, vector<8x512xf32>
    %446 = arith.addf %444, %445 : vector<8x512xf32>
    %447 = vector.extract_strided_slice %446 {offsets = [0, 0], sizes = [8, 128], strides = [1, 1]} : vector<8x512xf32> to vector<8x128xf32>
    %448 = arith.negf %447 : vector<8x128xf32>
    %449 = math.exp %448 : vector<8x128xf32>
    %cst_205 = arith.constant 1.000000e+00 : f32
    %450 = vector.broadcast %cst_205 : f32 to vector<8x128xf32>
    %451 = arith.addf %450, %449 : vector<8x128xf32>
    %452 = arith.divf %450, %451 : vector<8x128xf32>
    %453 = vector.extract_strided_slice %446 {offsets = [0, 128], sizes = [8, 128], strides = [1, 1]} : vector<8x512xf32> to vector<8x128xf32>
    %454 = arith.negf %453 : vector<8x128xf32>
    %455 = math.exp %454 : vector<8x128xf32>
    %cst_206 = arith.constant 1.000000e+00 : f32
    %456 = vector.broadcast %cst_206 : f32 to vector<8x128xf32>
    %457 = arith.addf %456, %455 : vector<8x128xf32>
    %458 = arith.divf %456, %457 : vector<8x128xf32>
    %459 = vector.extract_strided_slice %446 {offsets = [0, 256], sizes = [8, 128], strides = [1, 1]} : vector<8x512xf32> to vector<8x128xf32>
    %460 = math.tanh %459 : vector<8x128xf32>
    %461 = vector.extract_strided_slice %446 {offsets = [0, 384], sizes = [8, 128], strides = [1, 1]} : vector<8x512xf32> to vector<8x128xf32>
    %462 = arith.negf %461 : vector<8x128xf32>
    %463 = math.exp %462 : vector<8x128xf32>
    %cst_207 = arith.constant 1.000000e+00 : f32
    %464 = vector.broadcast %cst_207 : f32 to vector<8x128xf32>
    %465 = arith.addf %464, %463 : vector<8x128xf32>
    %466 = arith.divf %464, %465 : vector<8x128xf32>
    %467 = arith.mulf %458, %419 : vector<8x128xf32>
    %468 = arith.mulf %452, %460 : vector<8x128xf32>
    %469 = arith.addf %467, %468 : vector<8x128xf32>
    %470 = math.tanh %469 : vector<8x128xf32>
    %471 = arith.mulf %466, %470 : vector<8x128xf32>
    %c0_208 = arith.constant 0 : index
    %c0_209 = arith.constant 0 : index
    %472 = vector.load %arg11[%c0_208, %c0_209] : memref<128x128xf32, #tpu.memory_space<vmem>>, vector<128x128xf32>
    %cst_210 = arith.constant dense<0.000000e+00> : vector<8x128xf32>
    %473 = tpu.matmul %471, %472, %cst_210 {dimension_numbers = #tpu.dot_dimension_numbers<[1], [0], [0], [1], [0, 0, 1, 1], [], []>} : vector<8x128xf32>, vector<128x128xf32>, vector<8x128xf32> -> vector<8x128xf32>
    %c0_211 = arith.constant 0 : index
    %c0_212 = arith.constant 0 : index
    %474 = vector.load %arg12[%c0_211, %c0_212] : memref<8x128xf32, #tpu.memory_space<vmem>>, vector<8x128xf32>
    %475 = arith.addf %473, %474 : vector<8x128xf32>
    %476 = arith.index_cast %c4_i32_194 : i32 to index
    %c0_213 = arith.constant 0 : index
    %c0_214 = arith.constant 0 : index
    %477 = vector.load %arg13[%476, %c0_213, %c0_214] : memref<8x8x128xf32, #tpu.memory_space<vmem>>, vector<1x8x128xf32>
    %478 = vector.shape_cast %477 : vector<1x8x128xf32> to vector<8x128xf32>
    %479 = vector.shape_cast %475 : vector<8x128xf32> to vector<1x8x128xf32>
    tpu.vector_store %arg13[%476, %c0_213, %c0_214], %479 {strides = array<i32>} : memref<8x8x128xf32, #tpu.memory_space<vmem>>, vector<1x8x128xf32>,
    %480 = arith.index_cast %c4_i32_194 : i32 to index
    %c0_215 = arith.constant 0 : index
    %c0_216 = arith.constant 0 : index
    %481 = vector.load %arg3[%480, %c0_215, %c0_216] : memref<8x8x128xf32, #tpu.memory_space<vmem>>, vector<1x8x128xf32>
    %482 = vector.shape_cast %481 : vector<1x8x128xf32> to vector<8x128xf32>
    %c0_217 = arith.constant 0 : index
    %c0_218 = arith.constant 0 : index
    %483 = vector.load %arg14[%c0_217, %c0_218] : memref<8x128xf32, #tpu.memory_space<vmem>>, vector<8x128xf32>
    tpu.vector_store %arg14[%c0_217, %c0_218], %482 {strides = array<i32>} : memref<8x128xf32, #tpu.memory_space<vmem>>, vector<8x128xf32>,
    %484 = arith.index_cast %c4_i32_194 : i32 to index
    %485 = memref.load %arg1[%484] : memref<8xi32, #tpu.memory_space<smem>>
    %c0_i32_219 = arith.constant 0 : i32
    %486 = arith.cmpi eq, %485, %c0_i32_219 : i32
    %487 = arith.extui %486 : i1 to i32
    %c0_i32_220 = arith.constant 0 : i32
    %488 = arith.cmpi ne, %487, %c0_i32_220 : i32
    scf.if %488 {
      %639 = tpu.iota {dimensions = array<i32: 1>} : vector<8x128xi32>
      %c16_i32 = arith.constant 16 : i32
      %640 = vector.broadcast %c16_i32 : i32 to vector<8x128xi32>
      %641 = arith.cmpi slt, %639, %640 : vector<8x128xi32>
      %cst_303 = arith.constant -1.000000e+30 : f32
      %642 = vector.broadcast %cst_303 : f32 to vector<8x128xf32>
      %643 = arith.select %641, %475, %642 : vector<8x128xi1>, vector<8x128xf32>
      %cst_304 = arith.constant dense<0xFF800000> : vector<8xf32>
      %644 = vector.multi_reduction <maximumf>, %643, %cst_304 [1] : vector<8x128xf32> to vector<8xf32>
      %645 = vector.shape_cast %644 : vector<8xf32> to vector<8x1xf32>
      %646 = vector.broadcast %645 : vector<8x1xf32> to vector<8x128xf32>
      %647 = arith.cmpf oeq, %643, %646 : vector<8x128xf32>
      %c128_i32 = arith.constant 128 : i32
      %648 = vector.broadcast %c128_i32 : i32 to vector<8x128xi32>
      %649 = arith.select %647, %639, %648 : vector<8x128xi1>, vector<8x128xi32>
      %cst_305 = arith.constant dense<2147483647> : vector<8xi32>
      %650 = vector.multi_reduction <minsi>, %649, %cst_305 [1] : vector<8x128xi32> to vector<8xi32>
      %651 = vector.shape_cast %650 : vector<8xi32> to vector<8x1xi32>
      %652 = vector.broadcast %651 : vector<8x1xi32> to vector<8x128xi32>
      %653 = arith.cmpi eq, %639, %652 : vector<8x128xi32>
      %654 = arith.extui %653 : vector<8x128xi1> to vector<8x128xi32>
      %655 = arith.sitofp %654 : vector<8x128xi32> to vector<8x128xf32>
      %c0_306 = arith.constant 0 : index
      %c0_307 = arith.constant 0 : index
      %656 = vector.load %arg4[%c0_306, %c0_307] : memref<128x128xf32, #tpu.memory_space<vmem>>, vector<128x128xf32>
      %cst_308 = arith.constant dense<0.000000e+00> : vector<8x128xf32>
      %657 = tpu.matmul %655, %656, %cst_308 {dimension_numbers = #tpu.dot_dimension_numbers<[1], [0], [0], [1], [0, 0, 1, 1], [], []>} : vector<8x128xf32>, vector<128x128xf32>, vector<8x128xf32> -> vector<8x128xf32>
      %c0_309 = arith.constant 0 : index
      %c0_310 = arith.constant 0 : index
      %658 = vector.load %arg14[%c0_309, %c0_310] : memref<8x128xf32, #tpu.memory_space<vmem>>, vector<8x128xf32>
      tpu.vector_store %arg14[%c0_309, %c0_310], %657 {strides = array<i32>} : memref<8x128xf32, #tpu.memory_space<vmem>>, vector<8x128xf32>,
    } else {
    }
    %c5_i32_221 = arith.constant 5 : i32
    %c0_222 = arith.constant 0 : index
    %c0_223 = arith.constant 0 : index
    %489 = vector.load %arg14[%c0_222, %c0_223] : memref<8x128xf32, #tpu.memory_space<vmem>>, vector<8x128xf32>
    %c0_224 = arith.constant 0 : index
    %c0_225 = arith.constant 0 : index
    %490 = vector.load %arg8[%c0_224, %c0_225] : memref<128x512xf32, #tpu.memory_space<vmem>>, vector<128x512xf32>
    %cst_226 = arith.constant dense<0.000000e+00> : vector<8x512xf32>
    %491 = tpu.matmul %489, %490, %cst_226 {dimension_numbers = #tpu.dot_dimension_numbers<[1], [0], [0], [1], [0, 0, 1, 1], [], []>} : vector<8x128xf32>, vector<128x512xf32>, vector<8x512xf32> -> vector<8x512xf32>
    %c0_227 = arith.constant 0 : index
    %c0_228 = arith.constant 0 : index
    %492 = vector.load %arg9[%c0_227, %c0_228] : memref<128x512xf32, #tpu.memory_space<vmem>>, vector<128x512xf32>
    %cst_229 = arith.constant dense<0.000000e+00> : vector<8x512xf32>
    %493 = tpu.matmul %471, %492, %cst_229 {dimension_numbers = #tpu.dot_dimension_numbers<[1], [0], [0], [1], [0, 0, 1, 1], [], []>} : vector<8x128xf32>, vector<128x512xf32>, vector<8x512xf32> -> vector<8x512xf32>
    %494 = arith.addf %491, %493 : vector<8x512xf32>
    %c0_230 = arith.constant 0 : index
    %c0_231 = arith.constant 0 : index
    %495 = vector.load %arg10[%c0_230, %c0_231] : memref<8x512xf32, #tpu.memory_space<vmem>>, vector<8x512xf32>
    %496 = arith.addf %494, %495 : vector<8x512xf32>
    %497 = vector.extract_strided_slice %496 {offsets = [0, 0], sizes = [8, 128], strides = [1, 1]} : vector<8x512xf32> to vector<8x128xf32>
    %498 = arith.negf %497 : vector<8x128xf32>
    %499 = math.exp %498 : vector<8x128xf32>
    %cst_232 = arith.constant 1.000000e+00 : f32
    %500 = vector.broadcast %cst_232 : f32 to vector<8x128xf32>
    %501 = arith.addf %500, %499 : vector<8x128xf32>
    %502 = arith.divf %500, %501 : vector<8x128xf32>
    %503 = vector.extract_strided_slice %496 {offsets = [0, 128], sizes = [8, 128], strides = [1, 1]} : vector<8x512xf32> to vector<8x128xf32>
    %504 = arith.negf %503 : vector<8x128xf32>
    %505 = math.exp %504 : vector<8x128xf32>
    %cst_233 = arith.constant 1.000000e+00 : f32
    %506 = vector.broadcast %cst_233 : f32 to vector<8x128xf32>
    %507 = arith.addf %506, %505 : vector<8x128xf32>
    %508 = arith.divf %506, %507 : vector<8x128xf32>
    %509 = vector.extract_strided_slice %496 {offsets = [0, 256], sizes = [8, 128], strides = [1, 1]} : vector<8x512xf32> to vector<8x128xf32>
    %510 = math.tanh %509 : vector<8x128xf32>
    %511 = vector.extract_strided_slice %496 {offsets = [0, 384], sizes = [8, 128], strides = [1, 1]} : vector<8x512xf32> to vector<8x128xf32>
    %512 = arith.negf %511 : vector<8x128xf32>
    %513 = math.exp %512 : vector<8x128xf32>
    %cst_234 = arith.constant 1.000000e+00 : f32
    %514 = vector.broadcast %cst_234 : f32 to vector<8x128xf32>
    %515 = arith.addf %514, %513 : vector<8x128xf32>
    %516 = arith.divf %514, %515 : vector<8x128xf32>
    %517 = arith.mulf %508, %469 : vector<8x128xf32>
    %518 = arith.mulf %502, %510 : vector<8x128xf32>
    %519 = arith.addf %517, %518 : vector<8x128xf32>
    %520 = math.tanh %519 : vector<8x128xf32>
    %521 = arith.mulf %516, %520 : vector<8x128xf32>
    %c0_235 = arith.constant 0 : index
    %c0_236 = arith.constant 0 : index
    %522 = vector.load %arg11[%c0_235, %c0_236] : memref<128x128xf32, #tpu.memory_space<vmem>>, vector<128x128xf32>
    %cst_237 = arith.constant dense<0.000000e+00> : vector<8x128xf32>
    %523 = tpu.matmul %521, %522, %cst_237 {dimension_numbers = #tpu.dot_dimension_numbers<[1], [0], [0], [1], [0, 0, 1, 1], [], []>} : vector<8x128xf32>, vector<128x128xf32>, vector<8x128xf32> -> vector<8x128xf32>
    %c0_238 = arith.constant 0 : index
    %c0_239 = arith.constant 0 : index
    %524 = vector.load %arg12[%c0_238, %c0_239] : memref<8x128xf32, #tpu.memory_space<vmem>>, vector<8x128xf32>
    %525 = arith.addf %523, %524 : vector<8x128xf32>
    %526 = arith.index_cast %c5_i32_221 : i32 to index
    %c0_240 = arith.constant 0 : index
    %c0_241 = arith.constant 0 : index
    %527 = vector.load %arg13[%526, %c0_240, %c0_241] : memref<8x8x128xf32, #tpu.memory_space<vmem>>, vector<1x8x128xf32>
    %528 = vector.shape_cast %527 : vector<1x8x128xf32> to vector<8x128xf32>
    %529 = vector.shape_cast %525 : vector<8x128xf32> to vector<1x8x128xf32>
    tpu.vector_store %arg13[%526, %c0_240, %c0_241], %529 {strides = array<i32>} : memref<8x8x128xf32, #tpu.memory_space<vmem>>, vector<1x8x128xf32>,
    %530 = arith.index_cast %c5_i32_221 : i32 to index
    %c0_242 = arith.constant 0 : index
    %c0_243 = arith.constant 0 : index
    %531 = vector.load %arg3[%530, %c0_242, %c0_243] : memref<8x8x128xf32, #tpu.memory_space<vmem>>, vector<1x8x128xf32>
    %532 = vector.shape_cast %531 : vector<1x8x128xf32> to vector<8x128xf32>
    %c0_244 = arith.constant 0 : index
    %c0_245 = arith.constant 0 : index
    %533 = vector.load %arg14[%c0_244, %c0_245] : memref<8x128xf32, #tpu.memory_space<vmem>>, vector<8x128xf32>
    tpu.vector_store %arg14[%c0_244, %c0_245], %532 {strides = array<i32>} : memref<8x128xf32, #tpu.memory_space<vmem>>, vector<8x128xf32>,
    %534 = arith.index_cast %c5_i32_221 : i32 to index
    %535 = memref.load %arg1[%534] : memref<8xi32, #tpu.memory_space<smem>>
    %c0_i32_246 = arith.constant 0 : i32
    %536 = arith.cmpi eq, %535, %c0_i32_246 : i32
    %537 = arith.extui %536 : i1 to i32
    %c0_i32_247 = arith.constant 0 : i32
    %538 = arith.cmpi ne, %537, %c0_i32_247 : i32
    scf.if %538 {
      %639 = tpu.iota {dimensions = array<i32: 1>} : vector<8x128xi32>
      %c16_i32 = arith.constant 16 : i32
      %640 = vector.broadcast %c16_i32 : i32 to vector<8x128xi32>
      %641 = arith.cmpi slt, %639, %640 : vector<8x128xi32>
      %cst_303 = arith.constant -1.000000e+30 : f32
      %642 = vector.broadcast %cst_303 : f32 to vector<8x128xf32>
      %643 = arith.select %641, %525, %642 : vector<8x128xi1>, vector<8x128xf32>
      %cst_304 = arith.constant dense<0xFF800000> : vector<8xf32>
      %644 = vector.multi_reduction <maximumf>, %643, %cst_304 [1] : vector<8x128xf32> to vector<8xf32>
      %645 = vector.shape_cast %644 : vector<8xf32> to vector<8x1xf32>
      %646 = vector.broadcast %645 : vector<8x1xf32> to vector<8x128xf32>
      %647 = arith.cmpf oeq, %643, %646 : vector<8x128xf32>
      %c128_i32 = arith.constant 128 : i32
      %648 = vector.broadcast %c128_i32 : i32 to vector<8x128xi32>
      %649 = arith.select %647, %639, %648 : vector<8x128xi1>, vector<8x128xi32>
      %cst_305 = arith.constant dense<2147483647> : vector<8xi32>
      %650 = vector.multi_reduction <minsi>, %649, %cst_305 [1] : vector<8x128xi32> to vector<8xi32>
      %651 = vector.shape_cast %650 : vector<8xi32> to vector<8x1xi32>
      %652 = vector.broadcast %651 : vector<8x1xi32> to vector<8x128xi32>
      %653 = arith.cmpi eq, %639, %652 : vector<8x128xi32>
      %654 = arith.extui %653 : vector<8x128xi1> to vector<8x128xi32>
      %655 = arith.sitofp %654 : vector<8x128xi32> to vector<8x128xf32>
      %c0_306 = arith.constant 0 : index
      %c0_307 = arith.constant 0 : index
      %656 = vector.load %arg4[%c0_306, %c0_307] : memref<128x128xf32, #tpu.memory_space<vmem>>, vector<128x128xf32>
      %cst_308 = arith.constant dense<0.000000e+00> : vector<8x128xf32>
      %657 = tpu.matmul %655, %656, %cst_308 {dimension_numbers = #tpu.dot_dimension_numbers<[1], [0], [0], [1], [0, 0, 1, 1], [], []>} : vector<8x128xf32>, vector<128x128xf32>, vector<8x128xf32> -> vector<8x128xf32>
      %c0_309 = arith.constant 0 : index
      %c0_310 = arith.constant 0 : index
      %658 = vector.load %arg14[%c0_309, %c0_310] : memref<8x128xf32, #tpu.memory_space<vmem>>, vector<8x128xf32>
      tpu.vector_store %arg14[%c0_309, %c0_310], %657 {strides = array<i32>} : memref<8x128xf32, #tpu.memory_space<vmem>>, vector<8x128xf32>,
    } else {
    }
    %c6_i32_248 = arith.constant 6 : i32
    %c0_249 = arith.constant 0 : index
    %c0_250 = arith.constant 0 : index
    %539 = vector.load %arg14[%c0_249, %c0_250] : memref<8x128xf32, #tpu.memory_space<vmem>>, vector<8x128xf32>
    %c0_251 = arith.constant 0 : index
    %c0_252 = arith.constant 0 : index
    %540 = vector.load %arg8[%c0_251, %c0_252] : memref<128x512xf32, #tpu.memory_space<vmem>>, vector<128x512xf32>
    %cst_253 = arith.constant dense<0.000000e+00> : vector<8x512xf32>
    %541 = tpu.matmul %539, %540, %cst_253 {dimension_numbers = #tpu.dot_dimension_numbers<[1], [0], [0], [1], [0, 0, 1, 1], [], []>} : vector<8x128xf32>, vector<128x512xf32>, vector<8x512xf32> -> vector<8x512xf32>
    %c0_254 = arith.constant 0 : index
    %c0_255 = arith.constant 0 : index
    %542 = vector.load %arg9[%c0_254, %c0_255] : memref<128x512xf32, #tpu.memory_space<vmem>>, vector<128x512xf32>
    %cst_256 = arith.constant dense<0.000000e+00> : vector<8x512xf32>
    %543 = tpu.matmul %521, %542, %cst_256 {dimension_numbers = #tpu.dot_dimension_numbers<[1], [0], [0], [1], [0, 0, 1, 1], [], []>} : vector<8x128xf32>, vector<128x512xf32>, vector<8x512xf32> -> vector<8x512xf32>
    %544 = arith.addf %541, %543 : vector<8x512xf32>
    %c0_257 = arith.constant 0 : index
    %c0_258 = arith.constant 0 : index
    %545 = vector.load %arg10[%c0_257, %c0_258] : memref<8x512xf32, #tpu.memory_space<vmem>>, vector<8x512xf32>
    %546 = arith.addf %544, %545 : vector<8x512xf32>
    %547 = vector.extract_strided_slice %546 {offsets = [0, 0], sizes = [8, 128], strides = [1, 1]} : vector<8x512xf32> to vector<8x128xf32>
    %548 = arith.negf %547 : vector<8x128xf32>
    %549 = math.exp %548 : vector<8x128xf32>
    %cst_259 = arith.constant 1.000000e+00 : f32
    %550 = vector.broadcast %cst_259 : f32 to vector<8x128xf32>
    %551 = arith.addf %550, %549 : vector<8x128xf32>
    %552 = arith.divf %550, %551 : vector<8x128xf32>
    %553 = vector.extract_strided_slice %546 {offsets = [0, 128], sizes = [8, 128], strides = [1, 1]} : vector<8x512xf32> to vector<8x128xf32>
    %554 = arith.negf %553 : vector<8x128xf32>
    %555 = math.exp %554 : vector<8x128xf32>
    %cst_260 = arith.constant 1.000000e+00 : f32
    %556 = vector.broadcast %cst_260 : f32 to vector<8x128xf32>
    %557 = arith.addf %556, %555 : vector<8x128xf32>
    %558 = arith.divf %556, %557 : vector<8x128xf32>
    %559 = vector.extract_strided_slice %546 {offsets = [0, 256], sizes = [8, 128], strides = [1, 1]} : vector<8x512xf32> to vector<8x128xf32>
    %560 = math.tanh %559 : vector<8x128xf32>
    %561 = vector.extract_strided_slice %546 {offsets = [0, 384], sizes = [8, 128], strides = [1, 1]} : vector<8x512xf32> to vector<8x128xf32>
    %562 = arith.negf %561 : vector<8x128xf32>
    %563 = math.exp %562 : vector<8x128xf32>
    %cst_261 = arith.constant 1.000000e+00 : f32
    %564 = vector.broadcast %cst_261 : f32 to vector<8x128xf32>
    %565 = arith.addf %564, %563 : vector<8x128xf32>
    %566 = arith.divf %564, %565 : vector<8x128xf32>
    %567 = arith.mulf %558, %519 : vector<8x128xf32>
    %568 = arith.mulf %552, %560 : vector<8x128xf32>
    %569 = arith.addf %567, %568 : vector<8x128xf32>
    %570 = math.tanh %569 : vector<8x128xf32>
    %571 = arith.mulf %566, %570 : vector<8x128xf32>
    %c0_262 = arith.constant 0 : index
    %c0_263 = arith.constant 0 : index
    %572 = vector.load %arg11[%c0_262, %c0_263] : memref<128x128xf32, #tpu.memory_space<vmem>>, vector<128x128xf32>
    %cst_264 = arith.constant dense<0.000000e+00> : vector<8x128xf32>
    %573 = tpu.matmul %571, %572, %cst_264 {dimension_numbers = #tpu.dot_dimension_numbers<[1], [0], [0], [1], [0, 0, 1, 1], [], []>} : vector<8x128xf32>, vector<128x128xf32>, vector<8x128xf32> -> vector<8x128xf32>
    %c0_265 = arith.constant 0 : index
    %c0_266 = arith.constant 0 : index
    %574 = vector.load %arg12[%c0_265, %c0_266] : memref<8x128xf32, #tpu.memory_space<vmem>>, vector<8x128xf32>
    %575 = arith.addf %573, %574 : vector<8x128xf32>
    %576 = arith.index_cast %c6_i32_248 : i32 to index
    %c0_267 = arith.constant 0 : index
    %c0_268 = arith.constant 0 : index
    %577 = vector.load %arg13[%576, %c0_267, %c0_268] : memref<8x8x128xf32, #tpu.memory_space<vmem>>, vector<1x8x128xf32>
    %578 = vector.shape_cast %577 : vector<1x8x128xf32> to vector<8x128xf32>
    %579 = vector.shape_cast %575 : vector<8x128xf32> to vector<1x8x128xf32>
    tpu.vector_store %arg13[%576, %c0_267, %c0_268], %579 {strides = array<i32>} : memref<8x8x128xf32, #tpu.memory_space<vmem>>, vector<1x8x128xf32>,
    %580 = arith.index_cast %c6_i32_248 : i32 to index
    %c0_269 = arith.constant 0 : index
    %c0_270 = arith.constant 0 : index
    %581 = vector.load %arg3[%580, %c0_269, %c0_270] : memref<8x8x128xf32, #tpu.memory_space<vmem>>, vector<1x8x128xf32>
    %582 = vector.shape_cast %581 : vector<1x8x128xf32> to vector<8x128xf32>
    %c0_271 = arith.constant 0 : index
    %c0_272 = arith.constant 0 : index
    %583 = vector.load %arg14[%c0_271, %c0_272] : memref<8x128xf32, #tpu.memory_space<vmem>>, vector<8x128xf32>
    tpu.vector_store %arg14[%c0_271, %c0_272], %582 {strides = array<i32>} : memref<8x128xf32, #tpu.memory_space<vmem>>, vector<8x128xf32>,
    %584 = arith.index_cast %c6_i32_248 : i32 to index
    %585 = memref.load %arg1[%584] : memref<8xi32, #tpu.memory_space<smem>>
    %c0_i32_273 = arith.constant 0 : i32
    %586 = arith.cmpi eq, %585, %c0_i32_273 : i32
    %587 = arith.extui %586 : i1 to i32
    %c0_i32_274 = arith.constant 0 : i32
    %588 = arith.cmpi ne, %587, %c0_i32_274 : i32
    scf.if %588 {
      %639 = tpu.iota {dimensions = array<i32: 1>} : vector<8x128xi32>
      %c16_i32 = arith.constant 16 : i32
      %640 = vector.broadcast %c16_i32 : i32 to vector<8x128xi32>
      %641 = arith.cmpi slt, %639, %640 : vector<8x128xi32>
      %cst_303 = arith.constant -1.000000e+30 : f32
      %642 = vector.broadcast %cst_303 : f32 to vector<8x128xf32>
      %643 = arith.select %641, %575, %642 : vector<8x128xi1>, vector<8x128xf32>
      %cst_304 = arith.constant dense<0xFF800000> : vector<8xf32>
      %644 = vector.multi_reduction <maximumf>, %643, %cst_304 [1] : vector<8x128xf32> to vector<8xf32>
      %645 = vector.shape_cast %644 : vector<8xf32> to vector<8x1xf32>
      %646 = vector.broadcast %645 : vector<8x1xf32> to vector<8x128xf32>
      %647 = arith.cmpf oeq, %643, %646 : vector<8x128xf32>
      %c128_i32 = arith.constant 128 : i32
      %648 = vector.broadcast %c128_i32 : i32 to vector<8x128xi32>
      %649 = arith.select %647, %639, %648 : vector<8x128xi1>, vector<8x128xi32>
      %cst_305 = arith.constant dense<2147483647> : vector<8xi32>
      %650 = vector.multi_reduction <minsi>, %649, %cst_305 [1] : vector<8x128xi32> to vector<8xi32>
      %651 = vector.shape_cast %650 : vector<8xi32> to vector<8x1xi32>
      %652 = vector.broadcast %651 : vector<8x1xi32> to vector<8x128xi32>
      %653 = arith.cmpi eq, %639, %652 : vector<8x128xi32>
      %654 = arith.extui %653 : vector<8x128xi1> to vector<8x128xi32>
      %655 = arith.sitofp %654 : vector<8x128xi32> to vector<8x128xf32>
      %c0_306 = arith.constant 0 : index
      %c0_307 = arith.constant 0 : index
      %656 = vector.load %arg4[%c0_306, %c0_307] : memref<128x128xf32, #tpu.memory_space<vmem>>, vector<128x128xf32>
      %cst_308 = arith.constant dense<0.000000e+00> : vector<8x128xf32>
      %657 = tpu.matmul %655, %656, %cst_308 {dimension_numbers = #tpu.dot_dimension_numbers<[1], [0], [0], [1], [0, 0, 1, 1], [], []>} : vector<8x128xf32>, vector<128x128xf32>, vector<8x128xf32> -> vector<8x128xf32>
      %c0_309 = arith.constant 0 : index
      %c0_310 = arith.constant 0 : index
      %658 = vector.load %arg14[%c0_309, %c0_310] : memref<8x128xf32, #tpu.memory_space<vmem>>, vector<8x128xf32>
      tpu.vector_store %arg14[%c0_309, %c0_310], %657 {strides = array<i32>} : memref<8x128xf32, #tpu.memory_space<vmem>>, vector<8x128xf32>,
    } else {
    }
    %c7_i32_275 = arith.constant 7 : i32
    %c0_276 = arith.constant 0 : index
    %c0_277 = arith.constant 0 : index
    %589 = vector.load %arg14[%c0_276, %c0_277] : memref<8x128xf32, #tpu.memory_space<vmem>>, vector<8x128xf32>
    %c0_278 = arith.constant 0 : index
    %c0_279 = arith.constant 0 : index
    %590 = vector.load %arg8[%c0_278, %c0_279] : memref<128x512xf32, #tpu.memory_space<vmem>>, vector<128x512xf32>
    %cst_280 = arith.constant dense<0.000000e+00> : vector<8x512xf32>
    %591 = tpu.matmul %589, %590, %cst_280 {dimension_numbers = #tpu.dot_dimension_numbers<[1], [0], [0], [1], [0, 0, 1, 1], [], []>} : vector<8x128xf32>, vector<128x512xf32>, vector<8x512xf32> -> vector<8x512xf32>
    %c0_281 = arith.constant 0 : index
    %c0_282 = arith.constant 0 : index
    %592 = vector.load %arg9[%c0_281, %c0_282] : memref<128x512xf32, #tpu.memory_space<vmem>>, vector<128x512xf32>
    %cst_283 = arith.constant dense<0.000000e+00> : vector<8x512xf32>
    %593 = tpu.matmul %571, %592, %cst_283 {dimension_numbers = #tpu.dot_dimension_numbers<[1], [0], [0], [1], [0, 0, 1, 1], [], []>} : vector<8x128xf32>, vector<128x512xf32>, vector<8x512xf32> -> vector<8x512xf32>
    %594 = arith.addf %591, %593 : vector<8x512xf32>
    %c0_284 = arith.constant 0 : index
    %c0_285 = arith.constant 0 : index
    %595 = vector.load %arg10[%c0_284, %c0_285] : memref<8x512xf32, #tpu.memory_space<vmem>>, vector<8x512xf32>
    %596 = arith.addf %594, %595 : vector<8x512xf32>
    %597 = vector.extract_strided_slice %596 {offsets = [0, 0], sizes = [8, 128], strides = [1, 1]} : vector<8x512xf32> to vector<8x128xf32>
    %598 = arith.negf %597 : vector<8x128xf32>
    %599 = math.exp %598 : vector<8x128xf32>
    %cst_286 = arith.constant 1.000000e+00 : f32
    %600 = vector.broadcast %cst_286 : f32 to vector<8x128xf32>
    %601 = arith.addf %600, %599 : vector<8x128xf32>
    %602 = arith.divf %600, %601 : vector<8x128xf32>
    %603 = vector.extract_strided_slice %596 {offsets = [0, 128], sizes = [8, 128], strides = [1, 1]} : vector<8x512xf32> to vector<8x128xf32>
    %604 = arith.negf %603 : vector<8x128xf32>
    %605 = math.exp %604 : vector<8x128xf32>
    %cst_287 = arith.constant 1.000000e+00 : f32
    %606 = vector.broadcast %cst_287 : f32 to vector<8x128xf32>
    %607 = arith.addf %606, %605 : vector<8x128xf32>
    %608 = arith.divf %606, %607 : vector<8x128xf32>
    %609 = vector.extract_strided_slice %596 {offsets = [0, 256], sizes = [8, 128], strides = [1, 1]} : vector<8x512xf32> to vector<8x128xf32>
    %610 = math.tanh %609 : vector<8x128xf32>
    %611 = vector.extract_strided_slice %596 {offsets = [0, 384], sizes = [8, 128], strides = [1, 1]} : vector<8x512xf32> to vector<8x128xf32>
    %612 = arith.negf %611 : vector<8x128xf32>
    %613 = math.exp %612 : vector<8x128xf32>
    %cst_288 = arith.constant 1.000000e+00 : f32
    %614 = vector.broadcast %cst_288 : f32 to vector<8x128xf32>
    %615 = arith.addf %614, %613 : vector<8x128xf32>
    %616 = arith.divf %614, %615 : vector<8x128xf32>
    %617 = arith.mulf %608, %569 : vector<8x128xf32>
    %618 = arith.mulf %602, %610 : vector<8x128xf32>
    %619 = arith.addf %617, %618 : vector<8x128xf32>
    %620 = math.tanh %619 : vector<8x128xf32>
    %621 = arith.mulf %616, %620 : vector<8x128xf32>
    %c0_289 = arith.constant 0 : index
    %c0_290 = arith.constant 0 : index
    %622 = vector.load %arg11[%c0_289, %c0_290] : memref<128x128xf32, #tpu.memory_space<vmem>>, vector<128x128xf32>
    %cst_291 = arith.constant dense<0.000000e+00> : vector<8x128xf32>
    %623 = tpu.matmul %621, %622, %cst_291 {dimension_numbers = #tpu.dot_dimension_numbers<[1], [0], [0], [1], [0, 0, 1, 1], [], []>} : vector<8x128xf32>, vector<128x128xf32>, vector<8x128xf32> -> vector<8x128xf32>
    %c0_292 = arith.constant 0 : index
    %c0_293 = arith.constant 0 : index
    %624 = vector.load %arg12[%c0_292, %c0_293] : memref<8x128xf32, #tpu.memory_space<vmem>>, vector<8x128xf32>
    %625 = arith.addf %623, %624 : vector<8x128xf32>
    %626 = arith.index_cast %c7_i32_275 : i32 to index
    %c0_294 = arith.constant 0 : index
    %c0_295 = arith.constant 0 : index
    %627 = vector.load %arg13[%626, %c0_294, %c0_295] : memref<8x8x128xf32, #tpu.memory_space<vmem>>, vector<1x8x128xf32>
    %628 = vector.shape_cast %627 : vector<1x8x128xf32> to vector<8x128xf32>
    %629 = vector.shape_cast %625 : vector<8x128xf32> to vector<1x8x128xf32>
    tpu.vector_store %arg13[%626, %c0_294, %c0_295], %629 {strides = array<i32>} : memref<8x8x128xf32, #tpu.memory_space<vmem>>, vector<1x8x128xf32>,
    %630 = arith.index_cast %c7_i32_275 : i32 to index
    %c0_296 = arith.constant 0 : index
    %c0_297 = arith.constant 0 : index
    %631 = vector.load %arg3[%630, %c0_296, %c0_297] : memref<8x8x128xf32, #tpu.memory_space<vmem>>, vector<1x8x128xf32>
    %632 = vector.shape_cast %631 : vector<1x8x128xf32> to vector<8x128xf32>
    %c0_298 = arith.constant 0 : index
    %c0_299 = arith.constant 0 : index
    %633 = vector.load %arg14[%c0_298, %c0_299] : memref<8x128xf32, #tpu.memory_space<vmem>>, vector<8x128xf32>
    tpu.vector_store %arg14[%c0_298, %c0_299], %632 {strides = array<i32>} : memref<8x128xf32, #tpu.memory_space<vmem>>, vector<8x128xf32>,
    %634 = arith.index_cast %c7_i32_275 : i32 to index
    %635 = memref.load %arg1[%634] : memref<8xi32, #tpu.memory_space<smem>>
    %c0_i32_300 = arith.constant 0 : i32
    %636 = arith.cmpi eq, %635, %c0_i32_300 : i32
    %637 = arith.extui %636 : i1 to i32
    %c0_i32_301 = arith.constant 0 : i32
    %638 = arith.cmpi ne, %637, %c0_i32_301 : i32
    scf.if %638 {
      %639 = tpu.iota {dimensions = array<i32: 1>} : vector<8x128xi32>
      %c16_i32 = arith.constant 16 : i32
      %640 = vector.broadcast %c16_i32 : i32 to vector<8x128xi32>
      %641 = arith.cmpi slt, %639, %640 : vector<8x128xi32>
      %cst_303 = arith.constant -1.000000e+30 : f32
      %642 = vector.broadcast %cst_303 : f32 to vector<8x128xf32>
      %643 = arith.select %641, %625, %642 : vector<8x128xi1>, vector<8x128xf32>
      %cst_304 = arith.constant dense<0xFF800000> : vector<8xf32>
      %644 = vector.multi_reduction <maximumf>, %643, %cst_304 [1] : vector<8x128xf32> to vector<8xf32>
      %645 = vector.shape_cast %644 : vector<8xf32> to vector<8x1xf32>
      %646 = vector.broadcast %645 : vector<8x1xf32> to vector<8x128xf32>
      %647 = arith.cmpf oeq, %643, %646 : vector<8x128xf32>
      %c128_i32 = arith.constant 128 : i32
      %648 = vector.broadcast %c128_i32 : i32 to vector<8x128xi32>
      %649 = arith.select %647, %639, %648 : vector<8x128xi1>, vector<8x128xi32>
      %cst_305 = arith.constant dense<2147483647> : vector<8xi32>
      %650 = vector.multi_reduction <minsi>, %649, %cst_305 [1] : vector<8x128xi32> to vector<8xi32>
      %651 = vector.shape_cast %650 : vector<8xi32> to vector<8x1xi32>
      %652 = vector.broadcast %651 : vector<8x1xi32> to vector<8x128xi32>
      %653 = arith.cmpi eq, %639, %652 : vector<8x128xi32>
      %654 = arith.extui %653 : vector<8x128xi1> to vector<8x128xi32>
      %655 = arith.sitofp %654 : vector<8x128xi32> to vector<8x128xf32>
      %c0_306 = arith.constant 0 : index
      %c0_307 = arith.constant 0 : index
      %656 = vector.load %arg4[%c0_306, %c0_307] : memref<128x128xf32, #tpu.memory_space<vmem>>, vector<128x128xf32>
      %cst_308 = arith.constant dense<0.000000e+00> : vector<8x128xf32>
      %657 = tpu.matmul %655, %656, %cst_308 {dimension_numbers = #tpu.dot_dimension_numbers<[1], [0], [0], [1], [0, 0, 1, 1], [], []>} : vector<8x128xf32>, vector<128x128xf32>, vector<8x128xf32> -> vector<8x128xf32>
      %c0_309 = arith.constant 0 : index
      %c0_310 = arith.constant 0 : index
      %658 = vector.load %arg14[%c0_309, %c0_310] : memref<8x128xf32, #tpu.memory_space<vmem>>, vector<8x128xf32>
      tpu.vector_store %arg14[%c0_309, %c0_310], %657 {strides = array<i32>} : memref<8x128xf32, #tpu.memory_space<vmem>>, vector<8x128xf32>,
    } else {
    }
    %c7_i32_302 = arith.constant 7 : i32
    return
  }
  func.func @transform_0(%arg0: i32, %arg1: memref<8xi32, #tpu.memory_space<smem>>) -> (i32, i32, i32) {
    %c0_i32 = arith.constant 0 : i32
    %c0_i32_0 = arith.constant 0 : i32
    %c0_i32_1 = arith.constant 0 : i32
    %c0_i32_2 = arith.constant 0 : i32
    return %c0_i32, %c0_i32_0, %c0_i32_1 : i32, i32, i32
  }
  func.func @transform_1(%arg0: i32, %arg1: memref<8xi32, #tpu.memory_space<smem>>) -> (i32, i32, i32) {
    %c0_i32 = arith.constant 0 : i32
    %c0_i32_0 = arith.constant 0 : i32
    %c0_i32_1 = arith.constant 0 : i32
    %c0_i32_2 = arith.constant 0 : i32
    return %c0_i32, %c0_i32_0, %c0_i32_1 : i32, i32, i32
  }
  func.func @transform_2(%arg0: i32, %arg1: memref<8xi32, #tpu.memory_space<smem>>) -> (i32, i32) {
    %c0_i32 = arith.constant 0 : i32
    %c0_i32_0 = arith.constant 0 : i32
    %c0_i32_1 = arith.constant 0 : i32
    return %c0_i32, %c0_i32_0 : i32, i32
  }
  func.func @transform_3(%arg0: i32, %arg1: memref<8xi32, #tpu.memory_space<smem>>) -> (i32, i32) {
    %c0_i32 = arith.constant 0 : i32
    %c0_i32_0 = arith.constant 0 : i32
    %c0_i32_1 = arith.constant 0 : i32
    return %c0_i32, %c0_i32_0 : i32, i32
  }
  func.func @transform_4(%arg0: i32, %arg1: memref<8xi32, #tpu.memory_space<smem>>) -> (i32, i32) {
    %c0_i32 = arith.constant 0 : i32
    %c0_i32_0 = arith.constant 0 : i32
    %c0_i32_1 = arith.constant 0 : i32
    return %c0_i32, %c0_i32_0 : i32, i32
  }
  func.func @transform_5(%arg0: i32, %arg1: memref<8xi32, #tpu.memory_space<smem>>) -> (i32, i32) {
    %c0_i32 = arith.constant 0 : i32
    %c0_i32_0 = arith.constant 0 : i32
    %c0_i32_1 = arith.constant 0 : i32
    return %c0_i32, %c0_i32_0 : i32, i32
  }
  func.func @transform_6(%arg0: i32, %arg1: memref<8xi32, #tpu.memory_space<smem>>) -> (i32, i32) {
    %c0_i32 = arith.constant 0 : i32
    %c0_i32_0 = arith.constant 0 : i32
    %c0_i32_1 = arith.constant 0 : i32
    return %c0_i32, %c0_i32_0 : i32, i32
  }
  func.func @transform_7(%arg0: i32, %arg1: memref<8xi32, #tpu.memory_space<smem>>) -> (i32, i32) {
    %c0_i32 = arith.constant 0 : i32
    %c0_i32_0 = arith.constant 0 : i32
    %c0_i32_1 = arith.constant 0 : i32
    return %c0_i32, %c0_i32_0 : i32, i32
  }
  func.func @transform_8(%arg0: i32, %arg1: memref<8xi32, #tpu.memory_space<smem>>) -> (i32, i32) {
    %c0_i32 = arith.constant 0 : i32
    %c0_i32_0 = arith.constant 0 : i32
    %c0_i32_1 = arith.constant 0 : i32
    return %c0_i32, %c0_i32_0 : i32, i32
  }
  func.func @transform_9(%arg0: i32, %arg1: memref<8xi32, #tpu.memory_space<smem>>) -> (i32, i32) {
    %c0_i32 = arith.constant 0 : i32
    %c0_i32_0 = arith.constant 0 : i32
    %c0_i32_1 = arith.constant 0 : i32
    return %c0_i32, %c0_i32_0 : i32, i32
  }
  func.func @transform_10(%arg0: i32, %arg1: memref<8xi32, #tpu.memory_space<smem>>) -> (i32, i32) {
    %c0_i32 = arith.constant 0 : i32
    %c0_i32_0 = arith.constant 0 : i32
    %c0_i32_1 = arith.constant 0 : i32
    return %c0_i32, %c0_i32_0 : i32, i32
  }
  func.func @transform_11(%arg0: i32, %arg1: memref<8xi32, #tpu.memory_space<smem>>) -> (i32, i32, i32) {
    %c0_i32 = arith.constant 0 : i32
    %c0_i32_0 = arith.constant 0 : i32
    %c0_i32_1 = arith.constant 0 : i32
    %c0_i32_2 = arith.constant 0 : i32
    return %c0_i32, %c0_i32_0, %c0_i32_1 : i32, i32, i32
  }
}

</mosaic_0001>

<bundles_post_ra>
// kernel: seq2seq_forward.1
= control target key start
LH: loop header
LB: loop body
LE: loop exit
PB: predicated region body
PF: predicated region fallthrough
CT: control target
= control target key end

     0   :  { %s6095_s24 = smov [#allocation4]   ;;  %s9082_s0 = inlined_call_operand.vmem [shape: s32[8], index: 0, kind: input, shape index: {}]   ;;  %s9083_s1 = inlined_call_operand.vmem [shape: f32[8,8,128], index: 1, kind: input, shape index: {}]   ;;  %s9084_s2 = inlined_call_operand.vmem [shape: f32[8,8,128], index: 2, kind: input, shape index: {}]   ;;  %s9085_s3 = inlined_call_operand.vmem [shape: f32[128,128], index: 3, kind: input, shape index: {}]   ;;  %s9086_s4 = inlined_call_operand.hbm [shape: f32[128,512], index: 4, kind: input, shape index: {}]   ;;  %s9087_s5 = inlined_call_operand.hbm [shape: f32[128,512], index: 5, kind: input, shape index: {}]   ;;  %s9088_s6 = inlined_call_operand.vmem [shape: f32[8,512], index: 6, kind: input, shape index: {}]   ;;  %s9089_s7 = inlined_call_operand.hbm [shape: f32[128,512], index: 7, kind: input, shape index: {}]   ;;  %s9090_s8 = inlined_call_operand.hbm [shape: f32[128,512], index: 8, kind: input, shape index: {}]   ;;  %s9091_s9 = inlined_call_operand.vmem [shape: f32[8,512], index: 9, kind: input, shape index: {}]   ;;  %s9092_s10 = inlined_call_operand.vmem [shape: f32[128,128], index: 10, kind: input, shape index: {}]   ;;  %s9093_s11 = inlined_call_operand.vmem [shape: f32[8,128], index: 11, kind: input, shape index: {}]   ;;  %s9094_s12 = inlined_call_operand.vmem [shape: f32[8,8,128], index: 12, kind: output, shape index: {}]  }
   0x1   :  { %s18_s23 = sshll.u32 %s9082_s0, 4  ;;  %s19_s23 = int_to_ptr.vmem [resolvable:$true] %s18_s23 }
   0x2   :  { %21 = dma.vmem_to_smem %s19_s23, 16, %s6095_s24, [#allocation3] }
   0x3   :  { %6087 = dma.done.wait [#allocation3], 16 }
   0x4   :  { %6088 = vsyncadd [#allocation3], 4294967280 }
   0x5   :  { %24 = sfence }
   0x6   :  { %25 = vsyncpa [#allocation6], 0 }
   0x7   :  { %26 = vsyncpa [#allocation8], 0 }
   0x8   :  { %27 = vsyncpa [#allocation11], 0  ;;  %s51_s27 = sshll.u32 %s9087_s5, 4  ;;  %s6096_s28 = smov [#allocation7]   ;;  %s52_s27 = int_to_ptr.hbm [resolvable:$true] %s51_s27 }
   0x9   :  { %s53_s29 = sshll.u32 %s6096_s28, 4  ;;  %s38_s0 = sshll.u32 %s9086_s4, 4  ;;  %s54_s29 = int_to_ptr.vmem [resolvable:$true] %s53_s29  ;;  %s39_s0 = int_to_ptr.hbm [resolvable:$true] %s38_s0 }
   0xa   :  { %s6097_s14 = smov 512   ;;  %s6098_s15 = smov 32  }
   0xb   :  { %59 = dma.hbm_to_vmem [thread:$0]  %s52_s27, 8192, %s54_s29, [#allocation8], %s6097_s14, %s6097_s14, %s6098_s15  }
   0xc   :  { %s6099_s16 = smov [#allocation5]   ;;  %s66_s20 = sshll.u32 %s9089_s7, 4  ;;  %s67_s20 = int_to_ptr.hbm [resolvable:$true] %s66_s20 }
   0xd   :  { %s40_s17 = sshll.u32 %s6099_s16, 4  ;;  %s79_s22 = sshll.u32 %s9090_s8, 4  ;;  %s41_s17 = int_to_ptr.vmem [resolvable:$true] %s40_s17  ;;  %s80_s22 = int_to_ptr.hbm [resolvable:$true] %s79_s22 }
   0xe   :  { %46 = dma.hbm_to_vmem [thread:$0]  %s39_s0, 8192, %s41_s17, [#allocation6], %s6097_s14, %s6097_s14, %s6098_s15  }
   0xf   :  { %s6100_s23 = smov [#allocation9]   ;;  %s6101_s4 = smov [#allocation10]  }
  0x10   :  { %s68_s24 = sshll.u32 %s6100_s23, 4  ;;  %s81_s25 = sshll.u32 %s6101_s4, 4  ;;  %s69_s24 = int_to_ptr.vmem [resolvable:$true] %s68_s24  ;;  %s82_s25 = int_to_ptr.vmem [resolvable:$true] %s81_s25 }
  0x11   :  { %74 = dma.hbm_to_vmem [thread:$0]  %s67_s20, 8192, %s69_s24, [#allocation8], %s6097_s14, %s6097_s14, %s6098_s15  }
  0x12   :  { %87 = dma.hbm_to_vmem [thread:$0]  %s80_s22, 8192, %s82_s25, [#allocation11], %s6097_s14, %s6097_s14, %s6098_s15  }
  0x13   :  { %6089 = dma.done.wait [#allocation6], 8192  }
  0x14   :  { %6090 = vsyncadd [#allocation6], 4294959104 }
  0x15   :  { %6091 = dma.done.wait [#allocation8], 16384  }
  0x16   :  { %6092 = vsyncadd [#allocation8], 4294950912 }
  0x17   :  { %6093 = dma.done.wait [#allocation11], 8192  }
  0x18   :  { %6094 = vsyncadd [#allocation11], 4294959104  ;;  %s6190_s7 = sld [smem:[#allocation4 + $0x1]]  ;;  %v6192_v0 = vld [vmem:[#allocation7 + $0x1e0] sm:$0xff]  ;;  %v6194_v1 = vld [vmem:[#allocation7 + $0x1e8] sm:$0xff]  ;;  %v9095_v52 = vmov 0.0  }
  0x19   :  { %v6196_v2 = vld [vmem:[#allocation7 + $0x1f8] sm:$0xff]  ;;  %239 = vmatpush.msra.mxu0 %v6192_v0  ;;  %259 = vmatpush.msra.mxu1 %v6194_v1  ;;  %v6200_v3 = vld [vmem:[#allocation7 + $0x1c0] sm:$0xff]  ;;  %v6202_v4 = vld [vmem:[#allocation7 + $0x1c8] sm:$0xff]  ;;  %2073 = vst [vmem:[%s9094_s12] sm:$0xff] %v9095_v52 }
  0x1a   :  { %v6204_v5 = vld [vmem:[#allocation7 + $0x1d8] sm:$0xff]  ;;  %299 = vmatpush.msra.mxu3 %v6196_v2  ;;  %v6207_v6 = vld [vmem:[#allocation7 + $0x1a0] sm:$0xff]  ;;  %v6209_v7 = vld [vmem:[#allocation7 + $0x1a8] sm:$0xff] }
  0x1b   :  { %240 = vmatpush.msra.mxu0 %v6200_v3  ;;  %260 = vmatpush.msra.mxu1 %v6202_v4  ;;  %v6213_v8 = vld [vmem:[#allocation7 + $0x1b8] sm:$0xff]  ;;  %v6216_v9 = vld [vmem:[#allocation7 + $0x180] sm:$0xff]  ;;  %v6218_v10 = vld [vmem:[#allocation7 + $0x188] sm:$0xff] }
  0x1c   :  { %300 = vmatpush.msra.mxu3 %v6204_v5  ;;  %v6220_v11 = vld [vmem:[#allocation7 + $0x1f0] sm:$0xff]  ;;  %v6224_v12 = vld [vmem:[#allocation7 + $0x198] sm:$0xff]  ;;  %v6230_v14 = vld [vmem:[#allocation7 + $0x160] sm:$0xff] }
  0x1d   :  { %241 = vmatpush.msra.mxu0 %v6207_v6  ;;  %261 = vmatpush.msra.mxu1 %v6209_v7  ;;  %v6226_v13 = vld [vmem:[#allocation7 + $0x1d0] sm:$0xff]  ;;  %v6232_v15 = vld [vmem:[#allocation7 + $0x168] sm:$0xff]  ;;  %v6236_v16 = vld [vmem:[#allocation7 + $0x178] sm:$0xff] }
  0x1e   :  { %301 = vmatpush.msra.mxu3 %v6213_v8  ;;  %279 = vmatpush.msra.mxu2 %v6220_v11  ;;  %v6238_v17 = vld [vmem:[#allocation7 + $0x1b0] sm:$0xff]  ;;  %v6242_v18 = vld [vmem:[#allocation7 + $0x140] sm:$0xff]  ;;  %v6244_v19 = vld [vmem:[#allocation7 + $0x148] sm:$0xff]  ;;  %p5403_p0 = scmp.ne.s32.totalorder %s6190_s7, 0 }
  0x1f   :  { %242 = vmatpush.msra.mxu0 %v6216_v9  ;;  %262 = vmatpush.msra.mxu1 %v6218_v10  ;;  %v6248_v20 = vld [vmem:[#allocation7 + $0x158] sm:$0xff]  ;;  %v6250_v21 = vld [vmem:[#allocation7 + $0x190] sm:$0xff]  ;;  %v6254_v22 = vld [vmem:[#allocation7 + $0x120] sm:$0xff] }
  0x20   :  { %302 = vmatpush.msra.mxu3 %v6224_v12  ;;  %280 = vmatpush.msra.mxu2 %v6226_v13  ;;  %v6256_v23 = vld [vmem:[#allocation7 + $0x128] sm:$0xff]  ;;  %v6260_v24 = vld [vmem:[#allocation7 + $0x138] sm:$0xff]  ;;  %v6262_v25 = vld [vmem:[#allocation7 + $0x170] sm:$0xff] }
  0x21   :  { %243 = vmatpush.msra.mxu0 %v6230_v14  ;;  %263 = vmatpush.msra.mxu1 %v6232_v15  ;;  %v6266_v26 = vld [vmem:[#allocation7 + $0x100] sm:$0xff]  ;;  %v6268_v27 = vld [vmem:[#allocation7 + $0x108] sm:$0xff]  ;;  %v6272_v28 = vld [vmem:[#allocation7 + $0x118] sm:$0xff] }
  0x22   :  { %303 = vmatpush.msra.mxu3 %v6236_v16  ;;  %281 = vmatpush.msra.mxu2 %v6238_v17  ;;  %v6274_v29 = vld [vmem:[#allocation7 + $0x150] sm:$0xff]  ;;  %v6278_v30 = vld [vmem:[#allocation7 + $0xe0] sm:$0xff]  ;;  %v6280_v31 = vld [vmem:[#allocation7 + $0xe8] sm:$0xff] }
  0x23   :  { %244 = vmatpush.msra.mxu0 %v6242_v18  ;;  %264 = vmatpush.msra.mxu1 %v6244_v19  ;;  %v6284_v32 = vld [vmem:[#allocation7 + $0xf8] sm:$0xff]  ;;  %v6286_v33 = vld [vmem:[#allocation7 + $0x130] sm:$0xff]  ;;  %v6290_v34 = vld [vmem:[#allocation7 + $0xc0] sm:$0xff] }
  0x24   :  { %304 = vmatpush.msra.mxu3 %v6248_v20  ;;  %282 = vmatpush.msra.mxu2 %v6250_v21  ;;  %v6292_v35 = vld [vmem:[#allocation7 + $0xc8] sm:$0xff]  ;;  %v6296_v36 = vld [vmem:[#allocation7 + $0xd8] sm:$0xff]  ;;  %v6298_v37 = vld [vmem:[#allocation7 + $0x110] sm:$0xff] }
  0x25   :  { %245 = vmatpush.msra.mxu0 %v6254_v22  ;;  %265 = vmatpush.msra.mxu1 %v6256_v23  ;;  %9538 = vst [vmem:[#allocation16_spill] sm:$0xff] %v6296_v36  ;;  %v6302_v38 = vld [vmem:[#allocation7 + $0xa0] sm:$0xff]  ;;  %v6304_v39 = vld [vmem:[#allocation7 + $0xa8] sm:$0xff]  ;;  %v6308_v40 = vld [vmem:[#allocation7 + $0xb8] sm:$0xff] }
  0x26   :  { %305 = vmatpush.msra.mxu3 %v6260_v24  ;;  %283 = vmatpush.msra.mxu2 %v6262_v25  ;;  %9539 = vst [vmem:[#allocation17_spill] sm:$0xff] %v6302_v38  ;;  %v6310_v41 = vld [vmem:[#allocation7 + $0xf0] sm:$0xff]  ;;  %v6314_v42 = vld [vmem:[#allocation7 + $0x80] sm:$0xff]  ;;  %v6316_v43 = vld [vmem:[#allocation7 + $0x88] sm:$0xff] }
  0x27   :  { %246 = vmatpush.msra.mxu0 %v6266_v26  ;;  %266 = vmatpush.msra.mxu1 %v6268_v27  ;;  %9540 = vst [vmem:[#allocation18_spill] sm:$0xff] %v6304_v39  ;;  %v6320_v44 = vld [vmem:[#allocation7 + $0x98] sm:$0xff]  ;;  %v6322_v45 = vld [vmem:[#allocation7 + $0xd0] sm:$0xff]  ;;  %v6326_v46 = vld [vmem:[#allocation7 + $0x60] sm:$0xff] }
  0x28   :  { %306 = vmatpush.msra.mxu3 %v6272_v28  ;;  %284 = vmatpush.msra.mxu2 %v6274_v29  ;;  %9541 = vst [vmem:[#allocation19_spill] sm:$0xff] %v6308_v40  ;;  %v6328_v47 = vld [vmem:[#allocation7 + $0x68] sm:$0xff]  ;;  %v6332_v48 = vld [vmem:[#allocation7 + $0x78] sm:$0xff]  ;;  %v6334_v49 = vld [vmem:[#allocation7 + $0xb0] sm:$0xff] }
  0x29   :  { %247 = vmatpush.msra.mxu0 %v6278_v30  ;;  %267 = vmatpush.msra.mxu1 %v6280_v31  ;;  %9542 = vst [vmem:[#allocation20_spill] sm:$0xff] %v6314_v42  ;;  %v6338_v50 = vld [vmem:[#allocation7 + $0x40] sm:$0xff]  ;;  %v6340_v51 = vld [vmem:[#allocation7 + $0x48] sm:$0xff]  ;;  %v6348_v53 = vld [vmem:[#allocation7 + $0x58] sm:$0xff] }
  0x2a   :  { %307 = vmatpush.msra.mxu3 %v6284_v32  ;;  %285 = vmatpush.msra.mxu2 %v6286_v33  ;;  %9543 = vst [vmem:[#allocation21_spill] sm:$0xff] %v6316_v43  ;;  %v6350_v54 = vld [vmem:[#allocation7 + $0x90] sm:$0xff]  ;;  %v6354_v55 = vld [vmem:[#allocation7 + $0x20] sm:$0xff]  ;;  %v6356_v56 = vld [vmem:[#allocation7 + $0x28] sm:$0xff] }
  0x2b   :  { %248 = vmatpush.msra.mxu0 %v6290_v34  ;;  %268 = vmatpush.msra.mxu1 %v6292_v35  ;;  %9544 = vst [vmem:[#allocation22_spill] sm:$0xff] %v6320_v44  ;;  %v6360_v57 = vld [vmem:[#allocation7 + $0x38] sm:$0xff]  ;;  %v6362_v58 = vld [vmem:[#allocation7 + $0x70] sm:$0xff]  ;;  %v6366_v59 = vld [vmem:[#allocation7] sm:$0xff] }
  0x2c   :  { %308 = vmatpush.msra.mxu3 %v6296_v36  ;;  %286 = vmatpush.msra.mxu2 %v6298_v37  ;;  %9545 = vst [vmem:[#allocation23_spill] sm:$0xff] %v6322_v45  ;;  %v6368_v60 = vld [vmem:[#allocation7 + $0x8] sm:$0xff]  ;;  %v6372_v61 = vld [vmem:[#allocation7 + $0x18] sm:$0xff]  ;;  %v6374_v62 = vld [vmem:[#allocation5 + $0x1e0] sm:$0xff] }
  0x2d   :  { %249 = vmatpush.msra.mxu0 %v6302_v38  ;;  %269 = vmatpush.msra.mxu1 %v6304_v39  ;;  %9546 = vst [vmem:[#allocation24_spill] sm:$0xff] %v6326_v46  ;;  %v6378_v63 = vld [vmem:[#allocation5 + $0x1e8] sm:$0xff]  ;;  %v6380_v52 = vld [vmem:[#allocation5 + $0x1f8] sm:$0xff] }
  0x2e   :  { %309 = vmatpush.msra.mxu3 %v6308_v40  ;;  %287 = vmatpush.msra.mxu2 %v6310_v41  ;;  %9547 = vst [vmem:[#allocation25_spill] sm:$0xff] %v6328_v47 }
  0x2f   :  { %250 = vmatpush.msra.mxu0 %v6314_v42  ;;  %270 = vmatpush.msra.mxu1 %v6316_v43  ;;  %9548 = vst [vmem:[#allocation26_spill] sm:$0xff] %v6332_v48 }
  0x30   :  { %9549 = vst [vmem:[#allocation27_spill] sm:$0xff] %v6334_v49  ;;  %310 = vmatpush.msra.mxu3 %v6320_v44  ;;  %288 = vmatpush.msra.mxu2 %v6322_v45 }
  0x31   :  { %9550 = vst [vmem:[#allocation28_spill] sm:$0xff] %v6338_v50  ;;  %251 = vmatpush.msra.mxu0 %v6326_v46  ;;  %271 = vmatpush.msra.mxu1 %v6328_v47 }
  0x32   :  { %9551 = vst [vmem:[#allocation29_spill] sm:$0xff] %v6340_v51  ;;  %311 = vmatpush.msra.mxu3 %v6332_v48  ;;  %289 = vmatpush.msra.mxu2 %v6334_v49 }
  0x33   :  { %9552 = vst [vmem:[#allocation30_spill] sm:$0xff] %v6348_v53  ;;  %252 = vmatpush.msra.mxu0 %v6338_v50  ;;  %272 = vmatpush.msra.mxu1 %v6340_v51 }
  0x34   :  { %9553 = vst [vmem:[#allocation31_spill] sm:$0xff] %v6350_v54  ;;  %312 = vmatpush.msra.mxu3 %v6348_v53  ;;  %290 = vmatpush.msra.mxu2 %v6350_v54  ;;  %v6384_v54 = vld [vmem:[#allocation7 + $0x50] sm:$0xff]  ;;  %v6548_v53 = vld [vmem:[#allocation5 + $0x28] sm:$0xff] }
  0x35   :  { %9554 = vst [vmem:[#allocation32_spill] sm:$0xff] %v6354_v55  ;;  %253 = vmatpush.msra.mxu0 %v6354_v55  ;;  %273 = vmatpush.msra.mxu1 %v6356_v56  ;;  %v6386_v55 = vld [vmem:[#allocation5 + $0x1c0] sm:$0xff] }
  0x36   :  { %9555 = vst [vmem:[#allocation33_spill] sm:$0xff] %v6356_v56  ;;  %313 = vmatpush.msra.mxu3 %v6360_v57  ;;  %291 = vmatpush.msra.mxu2 %v6362_v58  ;;  %v6390_v56 = vld [vmem:[#allocation5 + $0x1c8] sm:$0xff] }
  0x37   :  { %9556 = vst [vmem:[#allocation34_spill] sm:$0xff] %v6360_v57  ;;  %254 = vmatpush.msra.mxu0 %v6366_v59  ;;  %274 = vmatpush.msra.mxu1 %v6368_v60  ;;  %v6392_v57 = vld [vmem:[#allocation5 + $0x1d8] sm:$0xff] }
  0x38   :  { %9557 = vst [vmem:[#allocation35_spill] sm:$0xff] %v6362_v58  ;;  %314 = vmatpush.msra.mxu3 %v6372_v61  ;;  %v6396_v58 = vld [vmem:[#allocation7 + $0x30] sm:$0xff]  ;;  %292 = vmatpush.msra.mxu2 %v6384_v54 }
  0x39   :  { %9558 = vst [vmem:[#allocation36_spill] sm:$0xff] %v6366_v59  ;;  %319 = vmatpush.msrb.mxu0 %v6374_v62  ;;  %339 = vmatpush.msrb.mxu1 %v6378_v63  ;;  %v6398_v59 = vld [vmem:[#allocation5 + $0x1a0] sm:$0xff] }
  0x3a   :  { %9559 = vst [vmem:[#allocation37_spill] sm:$0xff] %v6368_v60  ;;  %379 = vmatpush.msrb.mxu3 %v6380_v52  ;;  %v6402_v60 = vld [vmem:[#allocation5 + $0x1a8] sm:$0xff]  ;;  %293 = vmatpush.msra.mxu2 %v6396_v58 }
  0x3b   :  { %9560 = vst [vmem:[#allocation38_spill] sm:$0xff] %v6372_v61  ;;  %320 = vmatpush.msrb.mxu0 %v6386_v55  ;;  %v6404_v61 = vld [vmem:[#allocation5 + $0x1b8] sm:$0xff]  ;;  %340 = vmatpush.msrb.mxu1 %v6390_v56 }
  0x3c   :  { %9561 = vst [vmem:[#allocation39_spill] sm:$0xff] %v6374_v62  ;;  %380 = vmatpush.msrb.mxu3 %v6392_v57  ;;  %v6408_v62 = vld [vmem:[#allocation7 + $0x10] sm:$0xff] }
  0x3d   :  { %9562 = vst [vmem:[#allocation40_spill] sm:$0xff] %v6378_v63  ;;  %v6410_v63 = vld [vmem:[#allocation5 + $0x180] sm:$0xff]  ;;  %321 = vmatpush.msrb.mxu0 %v6398_v59  ;;  %341 = vmatpush.msrb.mxu1 %v6402_v60 }
  0x3e   :  { %9563 = vst [vmem:[#allocation41_spill] sm:$0xff] %v6380_v52  ;;  %v6414_v52 = vld [vmem:[#allocation5 + $0x188] sm:$0xff]  ;;  %381 = vmatpush.msrb.mxu3 %v6404_v61  ;;  %294 = vmatpush.msra.mxu2 %v6408_v62 }
  0x3f   :  { %9564 = vst [vmem:[#allocation42_spill] sm:$0xff] %v6384_v54  ;;  %v6416_v54 = vld [vmem:[#allocation5 + $0x198] sm:$0xff]  ;;  %322 = vmatpush.msrb.mxu0 %v6410_v63  ;;  %342 = vmatpush.msrb.mxu1 %v6414_v52 }
  0x40   :  { %9565 = vst [vmem:[#allocation43_spill] sm:$0xff] %v6386_v55  ;;  %v6420_v55 = vld [vmem:[#allocation5 + $0x1f0] sm:$0xff]  ;;  %382 = vmatpush.msrb.mxu3 %v6416_v54 }
  0x41   :  { %9566 = vst [vmem:[#allocation44_spill] sm:$0xff] %v6390_v56  ;;  %v6422_v56 = vld [vmem:[#allocation5 + $0x160] sm:$0xff]  ;;  %359 = vmatpush.msrb.mxu2 %v6420_v55 }
  0x42   :  { %9567 = vst [vmem:[#allocation45_spill] sm:$0xff] %v6392_v57  ;;  %v6426_v57 = vld [vmem:[#allocation5 + $0x168] sm:$0xff]  ;;  %323 = vmatpush.msrb.mxu0 %v6422_v56 }
  0x43   :  { %9568 = vst [vmem:[#allocation46_spill] sm:$0xff] %v6396_v58  ;;  %v6428_v58 = vld [vmem:[#allocation5 + $0x178] sm:$0xff]  ;;  %343 = vmatpush.msrb.mxu1 %v6426_v57 }
  0x44   :  { %9569 = vst [vmem:[#allocation47_spill] sm:$0xff] %v6398_v59  ;;  %v6432_v59 = vld [vmem:[#allocation5 + $0x1d0] sm:$0xff]  ;;  %383 = vmatpush.msrb.mxu3 %v6428_v58 }
  0x45   :  { %9570 = vst [vmem:[#allocation48_spill] sm:$0xff] %v6402_v60  ;;  %v6434_v60 = vld [vmem:[#allocation5 + $0x140] sm:$0xff]  ;;  %360 = vmatpush.msrb.mxu2 %v6432_v59 }
  0x46   :  { %9571 = vst [vmem:[#allocation49_spill] sm:$0xff] %v6404_v61  ;;  %v6438_v61 = vld [vmem:[#allocation5 + $0x148] sm:$0xff]  ;;  %324 = vmatpush.msrb.mxu0 %v6434_v60 }
  0x47   :  { %9572 = vst [vmem:[#allocation50_spill] sm:$0xff] %v6408_v62  ;;  %v6440_v62 = vld [vmem:[#allocation5 + $0x158] sm:$0xff]  ;;  %344 = vmatpush.msrb.mxu1 %v6438_v61 }
  0x48   :  { %9573 = vst [vmem:[#allocation51_spill] sm:$0xff] %v6410_v63  ;;  %v6444_v63 = vld [vmem:[#allocation5 + $0x1b0] sm:$0xff]  ;;  %384 = vmatpush.msrb.mxu3 %v6440_v62 }
  0x49   :  { %9574 = vst [vmem:[#allocation52_spill] sm:$0xff] %v6414_v52  ;;  %v6446_v52 = vld [vmem:[#allocation5 + $0x120] sm:$0xff]  ;;  %361 = vmatpush.msrb.mxu2 %v6444_v63 }
  0x4a   :  { %9575 = vst [vmem:[#allocation53_spill] sm:$0xff] %v6416_v54  ;;  %v6450_v54 = vld [vmem:[#allocation5 + $0x128] sm:$0xff]  ;;  %325 = vmatpush.msrb.mxu0 %v6446_v52 }
  0x4b   :  { %9576 = vst [vmem:[#allocation54_spill] sm:$0xff] %v6420_v55  ;;  %v6452_v55 = vld [vmem:[#allocation5 + $0x138] sm:$0xff]  ;;  %345 = vmatpush.msrb.mxu1 %v6450_v54 }
  0x4c   :  { %9577 = vst [vmem:[#allocation55_spill] sm:$0xff] %v6422_v56  ;;  %v6456_v56 = vld [vmem:[#allocation5 + $0x190] sm:$0xff]  ;;  %385 = vmatpush.msrb.mxu3 %v6452_v55 }
  0x4d   :  { %9578 = vst [vmem:[#allocation56_spill] sm:$0xff] %v6426_v57  ;;  %v6458_v57 = vld [vmem:[#allocation5 + $0x100] sm:$0xff]  ;;  %362 = vmatpush.msrb.mxu2 %v6456_v56 }
  0x4e   :  { %9579 = vst [vmem:[#allocation57_spill] sm:$0xff] %v6428_v58  ;;  %v6462_v58 = vld [vmem:[#allocation5 + $0x108] sm:$0xff]  ;;  %326 = vmatpush.msrb.mxu0 %v6458_v57 }
  0x4f   :  { %9580 = vst [vmem:[#allocation58_spill] sm:$0xff] %v6432_v59  ;;  %v6464_v59 = vld [vmem:[#allocation5 + $0x118] sm:$0xff]  ;;  %346 = vmatpush.msrb.mxu1 %v6462_v58 }
  0x50   :  { %9581 = vst [vmem:[#allocation59_spill] sm:$0xff] %v6434_v60  ;;  %v6468_v60 = vld [vmem:[#allocation5 + $0x170] sm:$0xff]  ;;  %386 = vmatpush.msrb.mxu3 %v6464_v59 }
  0x51   :  { %9582 = vst [vmem:[#allocation60_spill] sm:$0xff] %v6438_v61  ;;  %v6470_v61 = vld [vmem:[#allocation5 + $0xe0] sm:$0xff]  ;;  %363 = vmatpush.msrb.mxu2 %v6468_v60 }
  0x52   :  { %9583 = vst [vmem:[#allocation61_spill] sm:$0xff] %v6440_v62  ;;  %v6474_v62 = vld [vmem:[#allocation5 + $0xe8] sm:$0xff]  ;;  %327 = vmatpush.msrb.mxu0 %v6470_v61 }
  0x53   :  { %9584 = vst [vmem:[#allocation62_spill] sm:$0xff] %v6444_v63  ;;  %v6476_v63 = vld [vmem:[#allocation5 + $0xf8] sm:$0xff]  ;;  %347 = vmatpush.msrb.mxu1 %v6474_v62 }
  0x54   :  { %9585 = vst [vmem:[#allocation63_spill] sm:$0xff] %v6446_v52  ;;  %v6480_v52 = vld [vmem:[#allocation5 + $0x150] sm:$0xff]  ;;  %387 = vmatpush.msrb.mxu3 %v6476_v63 }
  0x55   :  { %9586 = vst [vmem:[#allocation64_spill] sm:$0xff] %v6450_v54  ;;  %v6482_v54 = vld [vmem:[#allocation5 + $0xc0] sm:$0xff]  ;;  %364 = vmatpush.msrb.mxu2 %v6480_v52 }
  0x56   :  { %9587 = vst [vmem:[#allocation65_spill] sm:$0xff] %v6452_v55  ;;  %v6486_v55 = vld [vmem:[#allocation5 + $0xc8] sm:$0xff]  ;;  %328 = vmatpush.msrb.mxu0 %v6482_v54 }
  0x57   :  { %9588 = vst [vmem:[#allocation66_spill] sm:$0xff] %v6456_v56  ;;  %v6488_v56 = vld [vmem:[#allocation5 + $0xd8] sm:$0xff]  ;;  %348 = vmatpush.msrb.mxu1 %v6486_v55 }
  0x58   :  { %9589 = vst [vmem:[#allocation67_spill] sm:$0xff] %v6458_v57  ;;  %v6492_v57 = vld [vmem:[#allocation5 + $0x130] sm:$0xff]  ;;  %388 = vmatpush.msrb.mxu3 %v6488_v56 }
  0x59   :  { %9590 = vst [vmem:[#allocation68_spill] sm:$0xff] %v6462_v58  ;;  %v6494_v58 = vld [vmem:[#allocation5 + $0xa0] sm:$0xff]  ;;  %365 = vmatpush.msrb.mxu2 %v6492_v57 }
  0x5a   :  { %9591 = vst [vmem:[#allocation69_spill] sm:$0xff] %v6464_v59  ;;  %v6498_v59 = vld [vmem:[#allocation5 + $0xa8] sm:$0xff]  ;;  %329 = vmatpush.msrb.mxu0 %v6494_v58 }
  0x5b   :  { %9592 = vst [vmem:[#allocation70_spill] sm:$0xff] %v6468_v60  ;;  %v6500_v60 = vld [vmem:[#allocation5 + $0xb8] sm:$0xff]  ;;  %349 = vmatpush.msrb.mxu1 %v6498_v59 }
  0x5c   :  { %9593 = vst [vmem:[#allocation71_spill] sm:$0xff] %v6470_v61  ;;  %v6504_v61 = vld [vmem:[#allocation5 + $0x110] sm:$0xff]  ;;  %389 = vmatpush.msrb.mxu3 %v6500_v60 }
  0x5d   :  { %9594 = vst [vmem:[#allocation72_spill] sm:$0xff] %v6474_v62  ;;  %v6506_v62 = vld [vmem:[#allocation5 + $0x80] sm:$0xff]  ;;  %366 = vmatpush.msrb.mxu2 %v6504_v61 }
  0x5e   :  { %9595 = vst [vmem:[#allocation73_spill] sm:$0xff] %v6476_v63  ;;  %v6510_v63 = vld [vmem:[#allocation5 + $0x88] sm:$0xff]  ;;  %330 = vmatpush.msrb.mxu0 %v6506_v62 }
  0x5f   :  { %9596 = vst [vmem:[#allocation74_spill] sm:$0xff] %v6480_v52  ;;  %v6512_v52 = vld [vmem:[#allocation5 + $0x98] sm:$0xff]  ;;  %350 = vmatpush.msrb.mxu1 %v6510_v63 }
  0x60   :  { %9597 = vst [vmem:[#allocation75_spill] sm:$0xff] %v6482_v54  ;;  %390 = vmatpush.msrb.mxu3 %v6512_v52  ;;  %v9611_v54 = vmov 0.0  }
  0x61   :  { %9598 = vst [vmem:[#allocation76_spill] sm:$0xff] %v6486_v55  ;;  %v6522_v55 = vld [vmem:[#allocation5 + $0x60] sm:$0xff]  ;;  %255 = vmatmul.f32.vlgmr.msra.gmra.mxu0 %v9611_v54  ;;  %275 = vmatmul.f32.vlgmr.msra.gmra.mxu1 %v9611_v54 }
  0x62   :  { %9599 = vst [vmem:[#allocation77_spill] sm:$0xff] %v6488_v56  ;;  %v6518_v56 = vld [vmem:[#allocation5 + $0xf0] sm:$0xff]  ;;  %315 = vmatmul.f32.vlgmr.msra.gmra.mxu3 %v9611_v54  ;;  %331 = vmatpush.msrb.mxu0 %v6522_v55 }
  0x63   :  { %9600 = vst [vmem:[#allocation78_spill] sm:$0xff] %v6492_v57  ;;  %367 = vmatpush.msrb.mxu2 %v6518_v56  ;;  %v6546_v57 = vld [vmem:[#allocation5 + $0x20] sm:$0xff] }
  0x64   :  { %9601 = vst [vmem:[#allocation79_spill] sm:$0xff] %v6494_v58  ;;  %v6524_v58 = vld [vmem:[#allocation5 + $0x68] sm:$0xff]  ;;  %295 = vmatmul.f32.vlgmr.msra.gmra.mxu2 %v9611_v54  ;;  %v6586_v54 = vld [vmem:[#allocation5 + $0x10] sm:$0xff] }
  0x65   :  { %9602 = vst [vmem:[#allocation80_spill] sm:$0xff] %v6498_v59  ;;  %v6528_v59 = vld [vmem:[#allocation5 + $0x78] sm:$0xff]  ;;  %351 = vmatpush.msrb.mxu1 %v6524_v58 }
  0x66   :  { %9603 = vst [vmem:[#allocation81_spill] sm:$0xff] %v6500_v60  ;;  %v6530_v60 = vld [vmem:[#allocation5 + $0xd0] sm:$0xff]  ;;  %391 = vmatpush.msrb.mxu3 %v6528_v59 }
  0x67   :  { %9604 = vst [vmem:[#allocation82_spill] sm:$0xff] %v6504_v61  ;;  %v6542_v61 = vld [vmem:[#allocation5 + $0xb0] sm:$0xff]  ;;  %368 = vmatpush.msrb.mxu2 %v6530_v60 }
  0x68   :  { %9605 = vst [vmem:[#allocation83_spill] sm:$0xff] %v6506_v62  ;;  %v6534_v62 = vld [vmem:[#allocation5 + $0x40] sm:$0xff] }
  0x69   :  { %9606 = vst [vmem:[#allocation84_spill] sm:$0xff] %v6510_v63  ;;  %v6536_v63 = vld [vmem:[#allocation5 + $0x48] sm:$0xff]  ;;  %332 = vmatpush.msrb.mxu0 %v6534_v62  ;;  %369 = vmatpush.msrb.mxu2 %v6542_v61 }
  0x6a   :  { %9607 = vst [vmem:[#allocation85_spill] sm:$0xff] %v6512_v52  ;;  %v6540_v52 = vld [vmem:[#allocation5 + $0x58] sm:$0xff]  ;;  %352 = vmatpush.msrb.mxu1 %v6536_v63 }
  0x6b   :  { %9608 = vst [vmem:[#allocation86_spill] sm:$0xff] %v6518_v56  ;;  %v6552_v56 = vld [vmem:[#allocation5 + $0x38] sm:$0xff]  ;;  %392 = vmatpush.msrb.mxu3 %v6540_v52  ;;  %333 = vmatpush.msrb.mxu0 %v6546_v57 }
  0x6c   :  { %9609 = vst [vmem:[#allocation87_spill] sm:$0xff] %v6522_v55  ;;  %v6554_v55 = vld [vmem:[#allocation5 + $0x90] sm:$0xff]  ;;  %353 = vmatpush.msrb.mxu1 %v6548_v53 }
  0x6d   :  { %9610 = vst [vmem:[#allocation88_spill] sm:$0xff] %v6524_v58  ;;  %v6558_v58 = vld [vmem:[#allocation5] sm:$0xff]  ;;  %393 = vmatpush.msrb.mxu3 %v6552_v56  ;;  %370 = vmatpush.msrb.mxu2 %v6554_v55 }
  0x6e   :  { %9612 = vst [vmem:[#allocation89_spill] sm:$0xff] %v6528_v59  ;;  %v6562_v59 = vld [vmem:[#allocation5 + $0x8] sm:$0xff]  ;;  %334 = vmatpush.msrb.mxu0 %v6558_v58 }
  0x6f   :  { %9613 = vst [vmem:[#allocation90_spill] sm:$0xff] %v6530_v60  ;;  %v6564_v60 = vld [vmem:[#allocation5 + $0x18] sm:$0xff]  ;;  %354 = vmatpush.msrb.mxu1 %v6562_v59 }
  0x70   :  { %9614 = vst [vmem:[#allocation91_spill] sm:$0xff] %v6534_v62  ;;  %394 = vmatpush.msrb.mxu3 %v6564_v60  ;;  %472 = vmatpush.msra.mxu0 %v6192_v0 }
  0x71   :  { %9615 = vst [vmem:[#allocation92_spill] sm:$0xff] %v6536_v63  ;;  %v6573_v63 = vld [vmem:[#allocation5 + $0x70] sm:$0xff]  ;;  %492 = vmatpush.msra.mxu1 %v6194_v1 }
  0x72   :  { %9616 = vst [vmem:[#allocation93_spill] sm:$0xff] %v6540_v52  ;;  %v110_v52 = vld [vmem:[%s9083_s1] sm:$0xff]  ;;  %371 = vmatpush.msrb.mxu2 %v6573_v63  ;;  %532 = vmatpush.msra.mxu3 %v6196_v2 }
  0x73   :  { %9617 = vst [vmem:[#allocation94_spill] sm:$0xff] %v6542_v61  ;;  %335 = vmatmul.f32.vlgmr.msrb.gmra.mxu0 %v110_v52  ;;  %355 = vmatmul.f32.vlgmr.msrb.gmra.mxu1 %v110_v52 }
  0x74   :  { %9618 = vst [vmem:[#allocation95_spill] sm:$0xff] %v6546_v57  ;;  %395 = vmatmul.f32.vlgmr.msrb.gmra.mxu3 %v110_v52  ;;  %473 = vmatpush.msra.mxu0 %v6200_v3 }
  0x75   :  { %9619 = vst [vmem:[#allocation96_spill] sm:$0xff] %v6548_v53  ;;  %v6577_v53 = vld [vmem:[#allocation5 + $0x50] sm:$0xff]  ;;  %493 = vmatpush.msra.mxu1 %v6202_v4  ;;  %533 = vmatpush.msra.mxu3 %v6204_v5 }
  0x76   :  { %9620 = vst [vmem:[#allocation97_spill] sm:$0xff] %v6552_v56  ;;  %v6580_v56 = vld [vmem:[#allocation5 + $0x30] sm:$0xff]  ;;  %372 = vmatpush.msrb.mxu2 %v6577_v53  ;;  %474 = vmatpush.msra.mxu0 %v6207_v6 }
  0x77   :  { %9621 = vst [vmem:[#allocation98_spill] sm:$0xff] %v6554_v55  ;;  %494 = vmatpush.msra.mxu1 %v6209_v7  ;;  %534 = vmatpush.msra.mxu3 %v6213_v8 }
  0x78   :  { %9622 = vst [vmem:[#allocation99_spill] sm:$0xff] %v6558_v58  ;;  %373 = vmatpush.msrb.mxu2 %v6580_v56  ;;  %475 = vmatpush.msra.mxu0 %v6216_v9 }
  0x79   :  { %9623 = vst [vmem:[#allocation100_spill] sm:$0xff] %v6562_v59  ;;  %495 = vmatpush.msra.mxu1 %v6218_v10  ;;  %535 = vmatpush.msra.mxu3 %v6224_v12 }
  0x7a   :  { %9624 = vst [vmem:[#allocation101_spill] sm:$0xff] %v6564_v60  ;;  %374 = vmatpush.msrb.mxu2 %v6586_v54  ;;  %476 = vmatpush.msra.mxu0 %v6230_v14 }
  0x7b   :  { %9625 = vst [vmem:[#allocation102_spill] sm:$0xff] %v6573_v63  ;;  %375 = vmatmul.f32.vlgmr.msrb.gmra.mxu2 %v110_v52  ;;  %496 = vmatpush.msra.mxu1 %v6232_v15  ;;  %v9629_v52 = vld [vmem:[#allocation30_spill] sm:$0xff] }
  0x7c   :  { %9626 = vst [vmem:[#allocation103_spill] sm:$0xff] %v6577_v53  ;;  %512 = vmatpush.msra.mxu2 %v6220_v11  ;;  %536 = vmatpush.msra.mxu3 %v6236_v16 }
  0x7d   :  { %9627 = vst [vmem:[#allocation104_spill] sm:$0xff] %v6580_v56  ;;  %477 = vmatpush.msra.mxu0 %v6242_v18  ;;  %497 = vmatpush.msra.mxu1 %v6244_v19 }
  0x7e   :  { %9628 = vst [vmem:[#allocation105_spill] sm:$0xff] %v6586_v54  ;;  %513 = vmatpush.msra.mxu2 %v6226_v13  ;;  %537 = vmatpush.msra.mxu3 %v6248_v20 }
  0x7f   :  { %478 = vmatpush.msra.mxu0 %v6254_v22  ;;  %498 = vmatpush.msra.mxu1 %v6256_v23 }
  0x80   :  { %514 = vmatpush.msra.mxu2 %v6238_v17  ;;  %538 = vmatpush.msra.mxu3 %v6260_v24 }
  0x81   :  { %479 = vmatpush.msra.mxu0 %v6266_v26  ;;  %499 = vmatpush.msra.mxu1 %v6268_v27 }
  0x82   :  { %515 = vmatpush.msra.mxu2 %v6250_v21  ;;  %539 = vmatpush.msra.mxu3 %v6272_v28 }
  0x83   :  { %480 = vmatpush.msra.mxu0 %v6278_v30  ;;  %500 = vmatpush.msra.mxu1 %v6280_v31 }
  0x84   :  { %516 = vmatpush.msra.mxu2 %v6262_v25  ;;  %540 = vmatpush.msra.mxu3 %v6284_v32 }
  0x85   :  { %481 = vmatpush.msra.mxu0 %v6290_v34  ;;  %501 = vmatpush.msra.mxu1 %v6292_v35 }
  0x86   :  { %517 = vmatpush.msra.mxu2 %v6274_v29  ;;  %541 = vmatpush.msra.mxu3 %v6296_v36 }
  0x87   :  { %482 = vmatpush.msra.mxu0 %v6302_v38  ;;  %502 = vmatpush.msra.mxu1 %v6304_v39 }
  0x88   :  { %518 = vmatpush.msra.mxu2 %v6286_v33  ;;  %542 = vmatpush.msra.mxu3 %v6308_v40  ;;  %v9634_v40 = vld [vmem:[#allocation36_spill] sm:$0xff] }
  0x89   :  { %483 = vmatpush.msra.mxu0 %v6314_v42  ;;  %503 = vmatpush.msra.mxu1 %v6316_v43  ;;  %v9630_v42 = vld [vmem:[#allocation32_spill] sm:$0xff]  ;;  %v9631_v43 = vld [vmem:[#allocation31_spill] sm:$0xff] }
  0x8a   :  { %519 = vmatpush.msra.mxu2 %v6298_v37  ;;  %543 = vmatpush.msra.mxu3 %v6320_v44  ;;  %v9632_v44 = vld [vmem:[#allocation33_spill] sm:$0xff] }
  0x8b   :  { %484 = vmatpush.msra.mxu0 %v6326_v46  ;;  %504 = vmatpush.msra.mxu1 %v6328_v47  ;;  %v9633_v46 = vld [vmem:[#allocation34_spill] sm:$0xff]  ;;  %v9635_v47 = vld [vmem:[#allocation35_spill] sm:$0xff] }
  0x8c   :  { %520 = vmatpush.msra.mxu2 %v6310_v41  ;;  %544 = vmatpush.msra.mxu3 %v6332_v48  ;;  %v9636_v48 = vld [vmem:[#allocation37_spill] sm:$0xff] }
  0x8d   :  { %485 = vmatpush.msra.mxu0 %v6338_v50  ;;  %505 = vmatpush.msra.mxu1 %v6340_v51  ;;  %v9637_v50 = vld [vmem:[#allocation38_spill] sm:$0xff] }
  0x8e   :  { %521 = vmatpush.msra.mxu2 %v6322_v45  ;;  %545 = vmatpush.msra.mxu3 %v9629_v52  ;;  %v9639_v51 = vld [vmem:[#allocation42_spill] sm:$0xff]  ;;  %v9640_v52 = vld [vmem:[#allocation40_spill] sm:$0xff] }
  0x8f   :  { %486 = vmatpush.msra.mxu0 %v9630_v42  ;;  %506 = vmatpush.msra.mxu1 %v9632_v44  ;;  %v9641_v42 = vld [vmem:[#allocation41_spill] sm:$0xff]  ;;  %v9643_v44 = vld [vmem:[#allocation46_spill] sm:$0xff] }
  0x90   :  { %522 = vmatpush.msra.mxu2 %v6334_v49  ;;  %546 = vmatpush.msra.mxu3 %v9633_v46  ;;  %v9638_v49 = vld [vmem:[#allocation39_spill] sm:$0xff]  ;;  %v9644_v46 = vld [vmem:[#allocation44_spill] sm:$0xff] }
  0x91   :  { %487 = vmatpush.msra.mxu0 %v9634_v40  ;;  %507 = vmatpush.msra.mxu1 %v9636_v48  ;;  %v9645_v40 = vld [vmem:[#allocation45_spill] sm:$0xff]  ;;  %v9647_v48 = vld [vmem:[#allocation50_spill] sm:$0xff] }
  0x92   :  { %523 = vmatpush.msra.mxu2 %v9631_v43  ;;  %547 = vmatpush.msra.mxu3 %v9637_v50  ;;  %v9642_v43 = vld [vmem:[#allocation43_spill] sm:$0xff]  ;;  %v9648_v50 = vld [vmem:[#allocation48_spill] sm:$0xff] }
  0x93   :  { %552 = vmatpush.msrb.mxu0 %v9638_v49  ;;  %572 = vmatpush.msrb.mxu1 %v9640_v52  ;;  %v9649_v49 = vld [vmem:[#allocation54_spill] sm:$0xff]  ;;  %v9651_v52 = vld [vmem:[#allocation51_spill] sm:$0xff] }
  0x94   :  { %524 = vmatpush.msra.mxu2 %v9635_v47  ;;  %612 = vmatpush.msrb.mxu3 %v9641_v42  ;;  %v9646_v47 = vld [vmem:[#allocation47_spill] sm:$0xff]  ;;  %v9652_v42 = vld [vmem:[#allocation52_spill] sm:$0xff] }
  0x95   :  { %553 = vmatpush.msrb.mxu0 %v9642_v43  ;;  %573 = vmatpush.msrb.mxu1 %v9644_v46  ;;  %v9653_v43 = vld [vmem:[#allocation58_spill] sm:$0xff]  ;;  %v9655_v46 = vld [vmem:[#allocation55_spill] sm:$0xff] }
  0x96   :  { %525 = vmatpush.msra.mxu2 %v9639_v51  ;;  %613 = vmatpush.msrb.mxu3 %v9645_v40  ;;  %v9650_v51 = vld [vmem:[#allocation49_spill] sm:$0xff]  ;;  %v9656_v40 = vld [vmem:[#allocation56_spill] sm:$0xff] }
  0x97   :  { %554 = vmatpush.msrb.mxu0 %v9646_v47  ;;  %574 = vmatpush.msrb.mxu1 %v9648_v50  ;;  %v9657_v47 = vld [vmem:[#allocation62_spill] sm:$0xff]  ;;  %v9659_v50 = vld [vmem:[#allocation59_spill] sm:$0xff] }
  0x98   :  { %526 = vmatpush.msra.mxu2 %v9643_v44  ;;  %614 = vmatpush.msrb.mxu3 %v9650_v51  ;;  %v9654_v44 = vld [vmem:[#allocation53_spill] sm:$0xff]  ;;  %v9661_v51 = vld [vmem:[#allocation66_spill] sm:$0xff] }
  0x99   :  { %555 = vmatpush.msrb.mxu0 %v9651_v52  ;;  %575 = vmatpush.msrb.mxu1 %v9652_v42  ;;  %v9662_v52 = vld [vmem:[#allocation61_spill] sm:$0xff]  ;;  %v9663_v42 = vld [vmem:[#allocation63_spill] sm:$0xff] }
  0x9a   :  { %527 = vmatpush.msra.mxu2 %v9647_v48  ;;  %615 = vmatpush.msrb.mxu3 %v9654_v44  ;;  %v9658_v48 = vld [vmem:[#allocation57_spill] sm:$0xff]  ;;  %v9665_v44 = vld [vmem:[#allocation70_spill] sm:$0xff] }
  0x9b   :  { %556 = vmatpush.msrb.mxu0 %v9655_v46  ;;  %576 = vmatpush.msrb.mxu1 %v9656_v40  ;;  %v9666_v46 = vld [vmem:[#allocation65_spill] sm:$0xff]  ;;  %v9667_v40 = vld [vmem:[#allocation67_spill] sm:$0xff] }
  0x9c   :  { %592 = vmatpush.msrb.mxu2 %v9649_v49  ;;  %616 = vmatpush.msrb.mxu3 %v9658_v48  ;;  %v9660_v49 = vld [vmem:[#allocation60_spill] sm:$0xff]  ;;  %v9669_v48 = vld [vmem:[#allocation74_spill] sm:$0xff] }
  0x9d   :  { %557 = vmatpush.msrb.mxu0 %v9659_v50  ;;  %577 = vmatpush.msrb.mxu1 %v9660_v49  ;;  %v9670_v50 = vld [vmem:[#allocation69_spill] sm:$0xff]  ;;  %v9671_v49 = vld [vmem:[#allocation71_spill] sm:$0xff] }
  0x9e   :  { %593 = vmatpush.msrb.mxu2 %v9653_v43  ;;  %617 = vmatpush.msrb.mxu3 %v9662_v52  ;;  %v9664_v43 = vld [vmem:[#allocation64_spill] sm:$0xff]  ;;  %v9673_v52 = vld [vmem:[#allocation78_spill] sm:$0xff] }
  0x9f   :  { %558 = vmatpush.msrb.mxu0 %v9663_v42  ;;  %578 = vmatpush.msrb.mxu1 %v9664_v43  ;;  %v9674_v42 = vld [vmem:[#allocation73_spill] sm:$0xff]  ;;  %v9675_v43 = vld [vmem:[#allocation75_spill] sm:$0xff] }
  0xa0   :  { %594 = vmatpush.msrb.mxu2 %v9657_v47  ;;  %618 = vmatpush.msrb.mxu3 %v9666_v46  ;;  %v9668_v47 = vld [vmem:[#allocation68_spill] sm:$0xff]  ;;  %v9677_v46 = vld [vmem:[#allocation82_spill] sm:$0xff] }
  0xa1   :  { %559 = vmatpush.msrb.mxu0 %v9667_v40  ;;  %579 = vmatpush.msrb.mxu1 %v9668_v47  ;;  %v9678_v40 = vld [vmem:[#allocation77_spill] sm:$0xff]  ;;  %v9679_v47 = vld [vmem:[#allocation79_spill] sm:$0xff] }
  0xa2   :  { %595 = vmatpush.msrb.mxu2 %v9661_v51  ;;  %619 = vmatpush.msrb.mxu3 %v9670_v50  ;;  %v9672_v51 = vld [vmem:[#allocation72_spill] sm:$0xff]  ;;  %v9681_v50 = vld [vmem:[#allocation86_spill] sm:$0xff] }
  0xa3   :  { %560 = vmatpush.msrb.mxu0 %v9671_v49  ;;  %580 = vmatpush.msrb.mxu1 %v9672_v51  ;;  %v9682_v49 = vld [vmem:[#allocation81_spill] sm:$0xff]  ;;  %v9683_v51 = vld [vmem:[#allocation83_spill] sm:$0xff] }
  0xa4   :  { %596 = vmatpush.msrb.mxu2 %v9665_v44  ;;  %620 = vmatpush.msrb.mxu3 %v9674_v42  ;;  %v9676_v44 = vld [vmem:[#allocation76_spill] sm:$0xff]  ;;  %v9685_v42 = vld [vmem:[#allocation90_spill] sm:$0xff] }
  0xa5   :  { %561 = vmatpush.msrb.mxu0 %v9675_v43  ;;  %581 = vmatpush.msrb.mxu1 %v9676_v44  ;;  %v9686_v43 = vld [vmem:[#allocation85_spill] sm:$0xff]  ;;  %v9687_v44 = vld [vmem:[#allocation87_spill] sm:$0xff] }
  0xa6   :  { %597 = vmatpush.msrb.mxu2 %v9669_v48  ;;  %621 = vmatpush.msrb.mxu3 %v9678_v40  ;;  %v9680_v48 = vld [vmem:[#allocation80_spill] sm:$0xff] }
  0xa7   :  { %562 = vmatpush.msrb.mxu0 %v9679_v47  ;;  %582 = vmatpush.msrb.mxu1 %v9680_v48  ;;  %v9689_v47 = vld [vmem:[#allocation89_spill] sm:$0xff]  ;;  %v9690_v48 = vld [vmem:[#allocation92_spill] sm:$0xff] }
  0xa8   :  { %598 = vmatpush.msrb.mxu2 %v9673_v52  ;;  %622 = vmatpush.msrb.mxu3 %v9682_v49  ;;  %v9684_v52 = vld [vmem:[#allocation84_spill] sm:$0xff] }
  0xa9   :  { %563 = vmatpush.msrb.mxu0 %v9683_v51  ;;  %583 = vmatpush.msrb.mxu1 %v9684_v52  ;;  %v9691_v51 = vld [vmem:[#allocation93_spill] sm:$0xff]  ;;  %v9692_v52 = vld [vmem:[#allocation96_spill] sm:$0xff] }
  0xaa   :  { %599 = vmatpush.msrb.mxu2 %v9677_v46  ;;  %623 = vmatpush.msrb.mxu3 %v9686_v43  ;;  %v9688_v46 = vld [vmem:[#allocation88_spill] sm:$0xff]  ;;  %v6730_v43 = vld [vmem:[%s9088_s6 + $0x18] sm:$0xff] }
  0xab   :  { %564 = vmatpush.msrb.mxu0 %v9687_v44  ;;  %584 = vmatpush.msrb.mxu1 %v9688_v46  ;;  %v9693_v44 = vld [vmem:[#allocation97_spill] sm:$0xff]  ;;  %9696 = vst [vmem:[#allocation108_spill] sm:$0xff] %v6730_v43 }
  0xac   :  { %600 = vmatpush.msrb.mxu2 %v9681_v50  ;;  %624 = vmatpush.msrb.mxu3 %v9689_v47 }
  0xad   :  { %565 = vmatpush.msrb.mxu0 %v6534_v62  ;;  %585 = vmatpush.msrb.mxu1 %v9690_v48 }
  0xae   :  { %601 = vmatpush.msrb.mxu2 %v9685_v42  ;;  %625 = vmatpush.msrb.mxu3 %v9691_v51 }
  0xaf   :  { %566 = vmatpush.msrb.mxu0 %v6546_v57  ;;  %586 = vmatpush.msrb.mxu1 %v9692_v52 }
  0xb0   :  { %602 = vmatpush.msrb.mxu2 %v6542_v61  ;;  %626 = vmatpush.msrb.mxu3 %v9693_v44  ;;  %v6718_v44 = vld [vmem:[%s9088_s6] sm:$0xff] }
  0xb1   :  { %567 = vmatpush.msrb.mxu0 %v6558_v58  ;;  %587 = vmatpush.msrb.mxu1 %v6562_v59  ;;  %9694 = vst [vmem:[#allocation106_spill] sm:$0xff] %v6718_v44  ;;  %v6723_v59 = vld [vmem:[%s9088_s6 + $0x8] sm:$0xff] }
  0xb2   :  { %603 = vmatpush.msrb.mxu2 %v6554_v55  ;;  %627 = vmatpush.msrb.mxu3 %v6564_v60  ;;  %9695 = vst [vmem:[#allocation107_spill] sm:$0xff] %v6723_v59 }
  0xb4   :  { %604 = vmatpush.msrb.mxu2 %v6573_v63 }
  0xb6   :  { %605 = vmatpush.msrb.mxu2 %v6577_v53 }
  0xb8   :  { %606 = vmatpush.msrb.mxu2 %v6580_v56 }
  0xba   :  { %607 = vmatpush.msrb.mxu2 %v6586_v54 }
  0xde   :  { %v256_v51 = vpop.f32.mrf.mxu0  ;;  %v276_v57 = vpop.f32.mrf.mxu1 }
  0xe5   :  { %v316_v48 = vpop.f32.mrf.mxu3 }
  0xe7   :  { %v296_v63 = vpop.f32.mrf.mxu2 }
  0xf0   :  { %v336_v52 = vpop.f32.mrf.mxu0  ;;  %v356_v58 = vpop.f32.mrf.mxu1 }
  0xf1   :  { %v337_v60 = vadd.f32 %v336_v52, %v256_v51  ;;  %v357_v53 = vadd.f32 %v356_v58, %v276_v57 }
  0xf3   :  { %v403_v56 = vadd.f32 %v6718_v44, %v337_v60  ;;  %v404_v54 = vadd.f32 %v6723_v59, %v357_v53 }
  0xf5   :  { %v5366_v62 = vmul.f32 -1.442695, %v403_v56  ;;  %v5367_v47 = vmul.f32 -1.442695, %v404_v54  ;;  %v6736_v54 = vld [vmem:[%s9088_s6 + $0x10] sm:$0xff] }
  0xf6   :  { %9697 = vst [vmem:[#allocation109_spill] sm:$0xff] %v6736_v54 }
  0xf7   :  { %5475 = vpow2.f32 %v5366_v62  ;;  %v396_v46 = vpop.f32.mrf.mxu3 }
  0xf8   :  { %5477 = vpow2.f32 %v5367_v47  ;;  %v397_v55 = vadd.f32 %v396_v46, %v316_v48 }
  0xfa   :  { %v406_v49 = vadd.f32 %v6730_v43, %v397_v55 }
  0xfc   :  { %v5368_v51 = vmul.f32 -1.442695, %v406_v49 }
  0xfd   :  { %v5476_v57 = vpop.eup %5475 }
  0xfe   :  { %v5478_v58 = vpop.eup %5477  ;;  %v410_v60 = vadd.f32 1.0, %v5476_v57  ;;  %5479 = vpow2.f32 %v5368_v51  ;;  %v376_v56 = vpop.f32.mrf.mxu2 }
  0xff   :  { %v429_v53 = vadd.f32 1.0, %v5478_v58  ;;  %v377_v62 = vadd.f32 %v376_v56, %v296_v63 }
 0x100   :  { %5481 = vrcp.f32 %v410_v60  ;;  %v422_v43 = vand.u32 2147483648, %v410_v60  ;;  %v420_v56 = vand.u32 2147483647, %v410_v60  ;;  %vm416_vm2 = vweird.f32 %v410_v60 }
 0x101   :  { %5483 = vrcp.f32 %v429_v53  ;;  %v405_v48 = vadd.f32 %v6736_v54, %v377_v62  ;;  %v441_v59 = vand.u32 2147483648, %v429_v53  ;;  %v439_v61 = vand.u32 2147483647, %v429_v53 }
 0x102   :  { %vm435_vm3 = vweird.f32 %v429_v53  ;;  %v423_v54 = vor.u32 1.1754944e-38, %v422_v43  ;;  %vm421_vm5 = vcmp.eq.f32.partialorder %v420_v56, 8.507059e+37  ;;  %v9744_v56 = vld [vmem:[#allocation59_spill] sm:$0xff] }
 0x103   :  { %v442_v50 = vor.u32 1.1754944e-38, %v441_v59  ;;  %vm440_vm7 = vcmp.eq.f32.partialorder %v439_v61, 8.507059e+37 }
 0x104   :  { %v5480_v52 = vpop.eup %5479 }
 0x105   :  { %v449_v47 = vadd.f32 1.0, %v5480_v52 }
 0x106   :  { %v5482_v46 = vpop.eup %5481 }
 0x107   :  { %v5484_v49 = vpop.eup %5483  ;;  %v412_v55 = vmul.f32 %v5482_v46, %v410_v60  ;;  %5485 = vrcp.f32 %v449_v47  ;;  %vm417_vm0 = vweird.f32 %v5482_v46  ;;  %v461_v43 = vand.u32 2147483648, %v449_v47 }
 0x108   :  { %v431_v57 = vmul.f32 %v5484_v49, %v429_v53  ;;  %5487 = vtanh.f32 %v405_v48  ;;  %vm436_vm1 = vweird.f32 %v5484_v49  ;;  %vm418_vm4 = vmor %vm416_vm2, %vm417_vm0  ;;  %vm455_vm9 = vweird.f32 %v449_v47 }
 0x109   :  { %v413_v51 = vsub.f32 1.0, %v412_v55  ;;  %vm437_vm6 = vmor %vm435_vm3, %vm436_vm1  ;;  %v462_v53 = vor.u32 1.1754944e-38, %v461_v43  ;;  %v9753_v43 = vld [vmem:[#allocation68_spill] sm:$0xff] }
 0x10a   :  { %v432_v58 = vsub.f32 1.0, %v431_v57 }
 0x10b   :  { %v414_v63 = vmul.f32 %v5482_v46, %v413_v51 }
 0x10c   :  { %v433_v44 = vmul.f32 %v5484_v49, %v432_v58 }
 0x10d   :  { %v5486_v40 = vpop.eup %5485  ;;  %v415_v52 = vadd.f32 %v5482_v46, %v414_v63 }
 0x10e   :  { %v451_v62 = vmul.f32 %v5486_v40, %v449_v47  ;;  %v434_v42 = vadd.f32 %v5484_v49, %v433_v44  ;;  %v5488_v48 = vpop.eup %5487  ;;  %vm456_vm8 = vweird.f32 %v5486_v40  ;;  %v459_v44 = vand.u32 2147483647, %v449_v47  ;;  %v9741_v47 = vld [vmem:[#allocation56_spill] sm:$0xff] }
 0x10f   :  { %v419_v55 = vsel %vm418_vm4, %v5482_v46, %v415_v52  ;;  %vm457_vm10 = vmor %vm455_vm9, %vm456_vm8  ;;  %v9742_v46 = vld [vmem:[#allocation70_spill] sm:$0xff]  ;;  %v9745_v52 = vld [vmem:[#allocation60_spill] sm:$0xff] }
 0x110   :  { %v452_v57 = vsub.f32 1.0, %v451_v62  ;;  %v424_v51 = vsel %vm421_vm5, %v423_v54, %v419_v55  ;;  %v438_v39 = vsel %vm437_vm6, %v5484_v49, %v434_v42  ;;  %vm460_vm11 = vcmp.eq.f32.partialorder %v459_v44, 8.507059e+37  ;;  %v9743_v49 = vld [vmem:[#allocation57_spill] sm:$0xff]  ;;  %v9746_v62 = vld [vmem:[#allocation74_spill] sm:$0xff] }
 0x111   :  { %v443_v58 = vsel %vm440_vm7, %v442_v50, %v438_v39  ;;  %v466_v38 = vmul.f32 %v5488_v48, %v424_v51  ;;  %v9736_v39 = vld [vmem:[#allocation51_spill] sm:$0xff]  ;;  %v9747_v55 = vld [vmem:[#allocation61_spill] sm:$0xff]  ;;  %v9750_v51 = vld [vmem:[#allocation78_spill] sm:$0xff] }
 0x112   :  { %v465_v36 = vmul.f32 0.0, %v443_v58  ;;  %v453_v45 = vmul.f32 %v5486_v40, %v452_v57  ;;  %v9740_v50 = vld [vmem:[#allocation55_spill] sm:$0xff]  ;;  %v9749_v57 = vld [vmem:[#allocation64_spill] sm:$0xff]  ;;  %v9751_v58 = vld [vmem:[#allocation65_spill] sm:$0xff] }
 0x113   :  { %v9748_v48 = vld [vmem:[#allocation63_spill] sm:$0xff]  ;;  %v9754_v44 = vld [vmem:[#allocation82_spill] sm:$0xff] }
 0x114   :  { %v6739_v63 = vadd.f32 %v466_v38, %v465_v36  ;;  %v454_v60 = vadd.f32 %v5486_v40, %v453_v45  ;;  %v5369_v36 = vld [vmem:[%s9083_s1 + $0x8] sm:$0xff]  ;;  %v9735_v38 = vld [vmem:[#allocation49_spill] sm:$0xff] }
 0x115   :  { %v9739_v45 = vld [vmem:[#allocation53_spill] sm:$0xff] }
 0x116   :  { %5489 = vtanh.f32 %v6739_v63  ;;  %v458_v59 = vsel %vm457_vm10, %v5486_v40, %v454_v60  ;;  %v9737_v40 = vld [vmem:[#allocation52_spill] sm:$0xff]  ;;  %v9752_v60 = vld [vmem:[#allocation67_spill] sm:$0xff] }
 0x117   :  { %v463_v42 = vsel %vm460_vm11, %v462_v53, %v458_v59  ;;  %v9755_v59 = vld [vmem:[#allocation69_spill] sm:$0xff]  ;;  %v9756_v53 = vld [vmem:[#allocation71_spill] sm:$0xff] }
 0x11c   :  { %v5490_v54 = vpop.eup %5489 }
 0x11d   :  { %v469_v61 = vmul.f32 %v5490_v54, %v463_v42  ;;  %v9757_v54 = vld [vmem:[#allocation72_spill] sm:$0xff]  ;;  %v9758_v42 = vld [vmem:[#allocation86_spill] sm:$0xff] }
 0x11f   :  { %488 = vmatmul.f32.vlgmr.msra.gmra.mxu0 %v469_v61  ;;  %508 = vmatmul.f32.vlgmr.msra.gmra.mxu1 %v469_v61 }
 0x120   :  { %528 = vmatmul.f32.vlgmr.msra.gmra.mxu2 %v469_v61  ;;  %548 = vmatmul.f32.vlgmr.msra.gmra.mxu3 %v469_v61  ;;  %v9759_v61 = vld [vmem:[#allocation73_spill] sm:$0xff] }
 0x121   :  { %701 = vmatpush.msra.mxu0 %v6192_v0  ;;  %721 = vmatpush.msra.mxu1 %v6194_v1  ;;  %v9698_v0 = vld [vmem:[#allocation23_spill] sm:$0xff]  ;;  %v9699_v1 = vld [vmem:[#allocation16_spill] sm:$0xff] }
 0x122   :  { %741 = vmatpush.msra.mxu2 %v6220_v11  ;;  %761 = vmatpush.msra.mxu3 %v6196_v2  ;;  %v9700_v2 = vld [vmem:[#allocation17_spill] sm:$0xff] }
 0x123   :  { %702 = vmatpush.msra.mxu0 %v6200_v3  ;;  %722 = vmatpush.msra.mxu1 %v6202_v4  ;;  %v9701_v3 = vld [vmem:[#allocation18_spill] sm:$0xff]  ;;  %v9702_v4 = vld [vmem:[#allocation27_spill] sm:$0xff]  ;;  %v9709_v11 = vld [vmem:[#allocation25_spill] sm:$0xff] }
 0x124   :  { %742 = vmatpush.msra.mxu2 %v6226_v13  ;;  %762 = vmatpush.msra.mxu3 %v6204_v5  ;;  %v9703_v5 = vld [vmem:[#allocation19_spill] sm:$0xff]  ;;  %v9711_v13 = vld [vmem:[#allocation26_spill] sm:$0xff] }
 0x125   :  { %703 = vmatpush.msra.mxu0 %v6207_v6  ;;  %723 = vmatpush.msra.mxu1 %v6209_v7  ;;  %v9704_v6 = vld [vmem:[#allocation20_spill] sm:$0xff]  ;;  %v9705_v7 = vld [vmem:[#allocation21_spill] sm:$0xff] }
 0x126   :  { %743 = vmatpush.msra.mxu2 %v6238_v17  ;;  %763 = vmatpush.msra.mxu3 %v6213_v8  ;;  %v9706_v8 = vld [vmem:[#allocation31_spill] sm:$0xff]  ;;  %v9715_v17 = vld [vmem:[#allocation30_spill] sm:$0xff] }
 0x127   :  { %568 = vmatmul.f32.vlgmr.msrb.gmra.mxu0 %v5369_v36  ;;  %588 = vmatmul.f32.vlgmr.msrb.gmra.mxu1 %v5369_v36 }
 0x128   :  { %608 = vmatmul.f32.vlgmr.msrb.gmra.mxu2 %v5369_v36  ;;  %628 = vmatmul.f32.vlgmr.msrb.gmra.mxu3 %v5369_v36  ;;  %v9760_v36 = vld [vmem:[#allocation75_spill] sm:$0xff] }
 0x129   :  { %704 = vmatpush.msra.mxu0 %v6216_v9  ;;  %724 = vmatpush.msra.mxu1 %v6218_v10  ;;  %v9707_v9 = vld [vmem:[#allocation22_spill] sm:$0xff]  ;;  %v9708_v10 = vld [vmem:[#allocation24_spill] sm:$0xff] }
 0x12a   :  { %744 = vmatpush.msra.mxu2 %v6250_v21  ;;  %764 = vmatpush.msra.mxu3 %v6224_v12  ;;  %v9710_v12 = vld [vmem:[#allocation35_spill] sm:$0xff]  ;;  %v9719_v21 = vld [vmem:[#allocation34_spill] sm:$0xff] }
 0x12b   :  { %705 = vmatpush.msra.mxu0 %v6230_v14  ;;  %725 = vmatpush.msra.mxu1 %v6232_v15  ;;  %v9712_v14 = vld [vmem:[#allocation28_spill] sm:$0xff]  ;;  %v9713_v15 = vld [vmem:[#allocation29_spill] sm:$0xff] }
 0x12c   :  { %745 = vmatpush.msra.mxu2 %v6262_v25  ;;  %765 = vmatpush.msra.mxu3 %v6236_v16  ;;  %v9714_v16 = vld [vmem:[#allocation42_spill] sm:$0xff] }
 0x12d   :  { %706 = vmatpush.msra.mxu0 %v6242_v18  ;;  %726 = vmatpush.msra.mxu1 %v6244_v19  ;;  %v9716_v18 = vld [vmem:[#allocation32_spill] sm:$0xff]  ;;  %v9717_v19 = vld [vmem:[#allocation33_spill] sm:$0xff]  ;;  %v9723_v25 = vld [vmem:[#allocation38_spill] sm:$0xff] }
 0x12e   :  { %746 = vmatpush.msra.mxu2 %v6274_v29  ;;  %766 = vmatpush.msra.mxu3 %v6248_v20  ;;  %v9718_v20 = vld [vmem:[#allocation46_spill] sm:$0xff]  ;;  %v9727_v29 = vld [vmem:[#allocation41_spill] sm:$0xff] }
 0x12f   :  { %707 = vmatpush.msra.mxu0 %v6254_v22  ;;  %727 = vmatpush.msra.mxu1 %v6256_v23  ;;  %v9720_v22 = vld [vmem:[#allocation36_spill] sm:$0xff]  ;;  %v9721_v23 = vld [vmem:[#allocation37_spill] sm:$0xff] }
 0x130   :  { %747 = vmatpush.msra.mxu2 %v6286_v33  ;;  %767 = vmatpush.msra.mxu3 %v6260_v24  ;;  %v9722_v24 = vld [vmem:[#allocation50_spill] sm:$0xff]  ;;  %v9731_v33 = vld [vmem:[#allocation45_spill] sm:$0xff] }
 0x131   :  { %708 = vmatpush.msra.mxu0 %v6266_v26  ;;  %728 = vmatpush.msra.mxu1 %v6268_v27  ;;  %v9724_v26 = vld [vmem:[#allocation39_spill] sm:$0xff]  ;;  %v9725_v27 = vld [vmem:[#allocation40_spill] sm:$0xff] }
 0x132   :  { %748 = vmatpush.msra.mxu2 %v6298_v37  ;;  %768 = vmatpush.msra.mxu3 %v6272_v28  ;;  %v9726_v28 = vld [vmem:[#allocation54_spill] sm:$0xff] }
 0x133   :  { %709 = vmatpush.msra.mxu0 %v6278_v30  ;;  %729 = vmatpush.msra.mxu1 %v6280_v31  ;;  %v9728_v30 = vld [vmem:[#allocation43_spill] sm:$0xff]  ;;  %v9729_v31 = vld [vmem:[#allocation44_spill] sm:$0xff]  ;;  %v9734_v37 = vld [vmem:[#allocation62_spill] sm:$0xff] }
 0x134   :  { %749 = vmatpush.msra.mxu2 %v6310_v41  ;;  %769 = vmatpush.msra.mxu3 %v6284_v32  ;;  %v9730_v32 = vld [vmem:[#allocation58_spill] sm:$0xff] }
 0x135   :  { %710 = vmatpush.msra.mxu0 %v6290_v34  ;;  %730 = vmatpush.msra.mxu1 %v6292_v35  ;;  %v9732_v34 = vld [vmem:[#allocation47_spill] sm:$0xff]  ;;  %v9733_v35 = vld [vmem:[#allocation48_spill] sm:$0xff]  ;;  %v9738_v41 = vld [vmem:[#allocation66_spill] sm:$0xff] }
 0x136   :  { %750 = vmatpush.msra.mxu2 %v9698_v0  ;;  %770 = vmatpush.msra.mxu3 %v9699_v1  ;;  %v9761_v0 = vld [vmem:[#allocation76_spill] sm:$0xff]  ;;  %v9762_v1 = vld [vmem:[#allocation90_spill] sm:$0xff] }
 0x137   :  { %711 = vmatpush.msra.mxu0 %v9700_v2  ;;  %731 = vmatpush.msra.mxu1 %v9701_v3  ;;  %v9763_v2 = vld [vmem:[#allocation77_spill] sm:$0xff]  ;;  %v9764_v3 = vld [vmem:[#allocation79_spill] sm:$0xff] }
 0x138   :  { %751 = vmatpush.msra.mxu2 %v9702_v4  ;;  %771 = vmatpush.msra.mxu3 %v9703_v5  ;;  %v9765_v4 = vld [vmem:[#allocation80_spill] sm:$0xff]  ;;  %v9766_v5 = vld [vmem:[#allocation94_spill] sm:$0xff] }
 0x139   :  { %712 = vmatpush.msra.mxu0 %v9704_v6  ;;  %732 = vmatpush.msra.mxu1 %v9705_v7  ;;  %v9767_v6 = vld [vmem:[#allocation81_spill] sm:$0xff]  ;;  %v9768_v7 = vld [vmem:[#allocation83_spill] sm:$0xff] }
 0x13a   :  { %752 = vmatpush.msra.mxu2 %v9706_v8  ;;  %772 = vmatpush.msra.mxu3 %v9707_v9  ;;  %v9769_v8 = vld [vmem:[#allocation84_spill] sm:$0xff]  ;;  %v9770_v9 = vld [vmem:[#allocation98_spill] sm:$0xff] }
 0x13b   :  { %713 = vmatpush.msra.mxu0 %v9708_v10  ;;  %733 = vmatpush.msra.mxu1 %v9709_v11  ;;  %v9771_v10 = vld [vmem:[#allocation85_spill] sm:$0xff]  ;;  %v9772_v11 = vld [vmem:[#allocation87_spill] sm:$0xff] }
 0x13c   :  { %753 = vmatpush.msra.mxu2 %v9710_v12  ;;  %773 = vmatpush.msra.mxu3 %v9711_v13  ;;  %v9773_v12 = vld [vmem:[#allocation88_spill] sm:$0xff]  ;;  %v9774_v13 = vld [vmem:[#allocation102_spill] sm:$0xff] }
 0x13d   :  { %714 = vmatpush.msra.mxu0 %v9712_v14  ;;  %734 = vmatpush.msra.mxu1 %v9713_v15  ;;  %v9775_v14 = vld [vmem:[#allocation89_spill] sm:$0xff]  ;;  %v9776_v15 = vld [vmem:[#allocation91_spill] sm:$0xff] }
 0x13e   :  { %754 = vmatpush.msra.mxu2 %v9714_v16  ;;  %774 = vmatpush.msra.mxu3 %v9715_v17  ;;  %v9777_v16 = vld [vmem:[#allocation92_spill] sm:$0xff]  ;;  %v9778_v17 = vld [vmem:[#allocation103_spill] sm:$0xff] }
 0x13f   :  { %715 = vmatpush.msra.mxu0 %v9716_v18  ;;  %735 = vmatpush.msra.mxu1 %v9717_v19  ;;  %v9779_v18 = vld [vmem:[#allocation93_spill] sm:$0xff]  ;;  %v9780_v19 = vld [vmem:[#allocation95_spill] sm:$0xff] }
 0x140   :  { %755 = vmatpush.msra.mxu2 %v9718_v20  ;;  %775 = vmatpush.msra.mxu3 %v9719_v21  ;;  %v9781_v20 = vld [vmem:[#allocation96_spill] sm:$0xff] }
 0x141   :  { %716 = vmatpush.msra.mxu0 %v9720_v22  ;;  %736 = vmatpush.msra.mxu1 %v9721_v23  ;;  %v9782_v21 = vld [vmem:[#allocation104_spill] sm:$0xff]  ;;  %v9783_v22 = vld [vmem:[#allocation97_spill] sm:$0xff]  ;;  %v9784_v23 = vld [vmem:[#allocation99_spill] sm:$0xff] }
 0x142   :  { %756 = vmatpush.msra.mxu2 %v9722_v24  ;;  %776 = vmatpush.msra.mxu3 %v9723_v25  ;;  %v9785_v24 = vld [vmem:[#allocation100_spill] sm:$0xff]  ;;  %v9786_v25 = vld [vmem:[#allocation105_spill] sm:$0xff] }
 0x143   :  { %781 = vmatpush.msrb.mxu0 %v9724_v26  ;;  %801 = vmatpush.msrb.mxu1 %v9725_v27  ;;  %v9787_v26 = vld [vmem:[#allocation101_spill] sm:$0xff] }
 0x144   :  { %821 = vmatpush.msrb.mxu2 %v9726_v28  ;;  %841 = vmatpush.msrb.mxu3 %v9727_v29 }
 0x145   :  { %782 = vmatpush.msrb.mxu0 %v9728_v30  ;;  %802 = vmatpush.msrb.mxu1 %v9729_v31 }
 0x146   :  { %822 = vmatpush.msrb.mxu2 %v9730_v32  ;;  %842 = vmatpush.msrb.mxu3 %v9731_v33 }
 0x147   :  { %783 = vmatpush.msrb.mxu0 %v9732_v34  ;;  %803 = vmatpush.msrb.mxu1 %v9733_v35  ;;  %v9788_v34 = vld [vmem:[#allocation106_spill] sm:$0xff] }
 0x148   :  { %823 = vmatpush.msrb.mxu2 %v9734_v37  ;;  %843 = vmatpush.msrb.mxu3 %v9735_v38  ;;  %v9789_v37 = vld [vmem:[#allocation107_spill] sm:$0xff] }
 0x149   :  { %784 = vmatpush.msrb.mxu0 %v9736_v39  ;;  %804 = vmatpush.msrb.mxu1 %v9737_v40 }
 0x14a   :  { %824 = vmatpush.msrb.mxu2 %v9738_v41  ;;  %844 = vmatpush.msrb.mxu3 %v9739_v45 }
 0x14b   :  { %785 = vmatpush.msrb.mxu0 %v9740_v50  ;;  %805 = vmatpush.msrb.mxu1 %v9741_v47  ;;  %v9790_v47 = vld [vmem:[#allocation108_spill] sm:$0xff] }
 0x14c   :  { %825 = vmatpush.msrb.mxu2 %v9742_v46  ;;  %845 = vmatpush.msrb.mxu3 %v9743_v49 }
 0x14d   :  { %786 = vmatpush.msrb.mxu0 %v9744_v56  ;;  %806 = vmatpush.msrb.mxu1 %v9745_v52 }
 0x14e   :  { %826 = vmatpush.msrb.mxu2 %v9746_v62  ;;  %846 = vmatpush.msrb.mxu3 %v9747_v55 }
 0x14f   :  { %787 = vmatpush.msrb.mxu0 %v9748_v48  ;;  %807 = vmatpush.msrb.mxu1 %v9749_v57 }
 0x150   :  { %827 = vmatpush.msrb.mxu2 %v9750_v51  ;;  %847 = vmatpush.msrb.mxu3 %v9751_v58 }
 0x151   :  { %788 = vmatpush.msrb.mxu0 %v9752_v60  ;;  %808 = vmatpush.msrb.mxu1 %v9753_v43  ;;  %v9791_v43 = vld [vmem:[#allocation109_spill] sm:$0xff] }
 0x152   :  { %828 = vmatpush.msrb.mxu2 %v9754_v44  ;;  %848 = vmatpush.msrb.mxu3 %v9755_v59 }
 0x153   :  { %789 = vmatpush.msrb.mxu0 %v9756_v53  ;;  %809 = vmatpush.msrb.mxu1 %v9757_v54 }
 0x154   :  { %829 = vmatpush.msrb.mxu2 %v9758_v42  ;;  %849 = vmatpush.msrb.mxu3 %v9759_v61 }
 0x155   :  { %790 = vmatpush.msrb.mxu0 %v9760_v36  ;;  %810 = vmatpush.msrb.mxu1 %v9761_v0 }
 0x156   :  { %830 = vmatpush.msrb.mxu2 %v9762_v1  ;;  %850 = vmatpush.msrb.mxu3 %v9763_v2 }
 0x157   :  { %791 = vmatpush.msrb.mxu0 %v9764_v3  ;;  %811 = vmatpush.msrb.mxu1 %v9765_v4 }
 0x158   :  { %831 = vmatpush.msrb.mxu2 %v9766_v5  ;;  %851 = vmatpush.msrb.mxu3 %v9767_v6 }
 0x159   :  { %792 = vmatpush.msrb.mxu0 %v9768_v7  ;;  %812 = vmatpush.msrb.mxu1 %v9769_v8 }
 0x15a   :  { %832 = vmatpush.msrb.mxu2 %v9770_v9  ;;  %852 = vmatpush.msrb.mxu3 %v9771_v10 }
 0x15b   :  { %793 = vmatpush.msrb.mxu0 %v9772_v11  ;;  %813 = vmatpush.msrb.mxu1 %v9773_v12 }
 0x15c   :  { %833 = vmatpush.msrb.mxu2 %v9774_v13  ;;  %853 = vmatpush.msrb.mxu3 %v9775_v14 }
 0x15d   :  { %794 = vmatpush.msrb.mxu0 %v9776_v15  ;;  %814 = vmatpush.msrb.mxu1 %v9777_v16 }
 0x15e   :  { %834 = vmatpush.msrb.mxu2 %v9778_v17  ;;  %854 = vmatpush.msrb.mxu3 %v9779_v18 }
 0x15f   :  { %795 = vmatpush.msrb.mxu0 %v9780_v19  ;;  %815 = vmatpush.msrb.mxu1 %v9781_v20 }
 0x160   :  { %835 = vmatpush.msrb.mxu2 %v9782_v21  ;;  %855 = vmatpush.msrb.mxu3 %v9783_v22 }
 0x161   :  { %796 = vmatpush.msrb.mxu0 %v9784_v23  ;;  %816 = vmatpush.msrb.mxu1 %v9785_v24 }
 0x162   :  { %836 = vmatpush.msrb.mxu2 %v9786_v25  ;;  %856 = vmatpush.msrb.mxu3 %v9787_v26 }
 0x19c   :  { %v489_v27 = vpop.f32.mrf.mxu0  ;;  %v509_v28 = vpop.f32.mrf.mxu1 }
 0x1a3   :  { %v549_v29 = vpop.f32.mrf.mxu3  ;;  %v529_v39 = vpop.f32.mrf.mxu2 }
 0x1a4   :  { %v569_v30 = vpop.f32.mrf.mxu0  ;;  %v589_v31 = vpop.f32.mrf.mxu1 }
 0x1a5   :  { %v570_v32 = vadd.f32 %v569_v30, %v489_v27  ;;  %v590_v33 = vadd.f32 %v589_v31, %v509_v28  ;;  %v6887_v30 = vld [vmem:[#allocation7 + $0x1f0] sm:$0xff]  ;;  %v6890_v31 = vld [vmem:[#allocation7 + $0x1f8] sm:$0xff] }
 0x1a7   :  { %v632_v35 = vadd.f32 %v570_v32, %v9788_v34  ;;  %v633_v38 = vadd.f32 %v590_v33, %v9789_v37  ;;  %v6893_v32 = vld [vmem:[#allocation7 + $0x1c0] sm:$0xff]  ;;  %v6896_v33 = vld [vmem:[#allocation7 + $0x1c8] sm:$0xff] }
 0x1a9   :  { %v5370_v40 = vmul.f32 -1.442695, %v632_v35  ;;  %v5371_v41 = vmul.f32 -1.442695, %v633_v38  ;;  %v5373_v35 = vld [vmem:[%s9083_s1 + $0x10] sm:$0xff]  ;;  %v6902_v38 = vld [vmem:[#allocation7 + $0x1d0] sm:$0xff] }
 0x1ab   :  { %5491 = vpow2.f32 %v5370_v40  ;;  %v629_v45 = vpop.f32.mrf.mxu3  ;;  %v609_v48 = vpop.f32.mrf.mxu2  ;;  %v6908_v40 = vld [vmem:[#allocation7 + $0x1a0] sm:$0xff] }
 0x1ac   :  { %5493 = vpow2.f32 %v5371_v41  ;;  %v630_v50 = vadd.f32 %v629_v45, %v549_v29  ;;  %v610_v57 = vadd.f32 %v609_v48, %v529_v39  ;;  %v6884_v29 = vld [vmem:[#allocation7 + $0x1e8] sm:$0xff]  ;;  %v6905_v39 = vld [vmem:[#allocation7 + $0x1d8] sm:$0xff]  ;;  %v6914_v45 = vld [vmem:[#allocation7 + $0x1b0] sm:$0xff] }
 0x1ad   :  { %v6911_v41 = vld [vmem:[#allocation7 + $0x1a8] sm:$0xff]  ;;  %v6938_v48 = vld [vmem:[#allocation7 + $0x170] sm:$0xff] }
 0x1ae   :  { %v635_v46 = vadd.f32 %v630_v50, %v9790_v47  ;;  %v634_v44 = vadd.f32 %v610_v57, %v9791_v43  ;;  %v6917_v50 = vld [vmem:[#allocation7 + $0x1b8] sm:$0xff] }
 0x1af   :  { %v6941_v57 = vld [vmem:[#allocation7 + $0x178] sm:$0xff] }
 0x1b0   :  { %v5372_v49 = vmul.f32 -1.442695, %v635_v46  ;;  %v6920_v46 = vld [vmem:[#allocation7 + $0x180] sm:$0xff] }
 0x1b1   :  { %v5492_v56 = vpop.eup %5491 }
 0x1b2   :  { %v5494_v52 = vpop.eup %5493  ;;  %v639_v62 = vadd.f32 1.0, %v5492_v56  ;;  %5495 = vpow2.f32 %v5372_v49  ;;  %v6923_v49 = vld [vmem:[#allocation7 + $0x188] sm:$0xff]  ;;  %v6926_v56 = vld [vmem:[#allocation7 + $0x190] sm:$0xff] }
 0x1b3   :  { %v658_v55 = vadd.f32 1.0, %v5494_v52  ;;  %v6929_v52 = vld [vmem:[#allocation7 + $0x198] sm:$0xff] }
 0x1b4   :  { %5497 = vrcp.f32 %v639_v62  ;;  %v651_v36 = vand.u32 2147483648, %v639_v62  ;;  %v649_v2 = vand.u32 2147483647, %v639_v62  ;;  %vm645_vm14 = vweird.f32 %v639_v62 }
 0x1b5   :  { %5499 = vrcp.f32 %v658_v55  ;;  %v670_v0 = vand.u32 2147483648, %v658_v55  ;;  %v668_v4 = vand.u32 2147483647, %v658_v55  ;;  %vm664_vm15 = vweird.f32 %v658_v55 }
 0x1b6   :  { %v652_v7 = vor.u32 1.1754944e-38, %v651_v36  ;;  %vm650_vm2 = vcmp.eq.f32.partialorder %v649_v2, 8.507059e+37  ;;  %v6971_v36 = vld [vmem:[#allocation7 + $0x108] sm:$0xff]  ;;  %v6980_v2 = vld [vmem:[#allocation7 + $0xe0] sm:$0xff] }
 0x1b7   :  { %v671_v10 = vor.u32 1.1754944e-38, %v670_v0  ;;  %vm669_vm3 = vcmp.eq.f32.partialorder %v668_v4, 8.507059e+37  ;;  %v6974_v0 = vld [vmem:[#allocation7 + $0x110] sm:$0xff] }
 0x1b8   :  { %v5496_v51 = vpop.eup %5495  ;;  %v6986_v4 = vld [vmem:[#allocation7 + $0xf0] sm:$0xff] }
 0x1b9   :  { %v678_v58 = vadd.f32 1.0, %v5496_v51  ;;  %v6944_v51 = vld [vmem:[#allocation7 + $0x140] sm:$0xff] }
 0x1ba   :  { %v5498_v60 = vpop.eup %5497 }
 0x1bb   :  { %v5500_v59 = vpop.eup %5499  ;;  %v641_v53 = vmul.f32 %v5498_v60, %v639_v62  ;;  %5501 = vrcp.f32 %v678_v58  ;;  %vm646_vm12 = vweird.f32 %v5498_v60  ;;  %v690_v22 = vand.u32 2147483648, %v678_v58  ;;  %v6932_v62 = vld [vmem:[#allocation7 + $0x160] sm:$0xff] }
 0x1bc   :  { %v660_v54 = vmul.f32 %v5500_v59, %v658_v55  ;;  %5503 = vtanh.f32 %v634_v44  ;;  %vm665_vm13 = vweird.f32 %v5500_v59  ;;  %vm647_vm0 = vmor %vm645_vm14, %vm646_vm12  ;;  %vm684_vm5 = vweird.f32 %v678_v58  ;;  %v6935_v55 = vld [vmem:[#allocation7 + $0x168] sm:$0xff]  ;;  %v6953_v44 = vld [vmem:[#allocation7 + $0x158] sm:$0xff] }
 0x1bd   :  { %v642_v42 = vsub.f32 1.0, %v641_v53  ;;  %vm666_vm1 = vmor %vm664_vm15, %vm665_vm13  ;;  %v688_v23 = vand.u32 2147483647, %v678_v58  ;;  %v691_v25 = vor.u32 1.1754944e-38, %v690_v22  ;;  %v6959_v53 = vld [vmem:[#allocation7 + $0x128] sm:$0xff]  ;;  %v7037_v22 = vld [vmem:[#allocation7 + $0x78] sm:$0xff] }
 0x1be   :  { %v661_v61 = vsub.f32 1.0, %v660_v54  ;;  %v6962_v54 = vld [vmem:[#allocation7 + $0x130] sm:$0xff]  ;;  %9805 = vst [vmem:[#allocation26_spill] sm:$0xff] %v7037_v22 }
 0x1bf   :  { %v643_v1 = vmul.f32 %v5498_v60, %v642_v42  ;;  %vm689_vm7 = vcmp.eq.f32.partialorder %v688_v23, 8.507059e+37  ;;  %v6965_v42 = vld [vmem:[#allocation7 + $0x138] sm:$0xff]  ;;  %v7040_v23 = vld [vmem:[#allocation7 + $0x40] sm:$0xff] }
 0x1c0   :  { %v662_v3 = vmul.f32 %v5500_v59, %v661_v61  ;;  %v6968_v61 = vld [vmem:[#allocation7 + $0x100] sm:$0xff]  ;;  %9806 = vst [vmem:[#allocation28_spill] sm:$0xff] %v7040_v23 }
 0x1c1   :  { %v5502_v5 = vpop.eup %5501  ;;  %v644_v6 = vadd.f32 %v5498_v60, %v643_v1  ;;  %v6977_v1 = vld [vmem:[#allocation7 + $0x118] sm:$0xff] }
 0x1c2   :  { %v663_v8 = vadd.f32 %v5500_v59, %v662_v3  ;;  %v680_v9 = vmul.f32 %v5502_v5, %v678_v58  ;;  %v5504_v12 = vpop.eup %5503  ;;  %vm685_vm4 = vweird.f32 %v5502_v5  ;;  %v6947_v58 = vld [vmem:[#allocation7 + $0x148] sm:$0xff] }
 0x1c3   :  { %v648_v11 = vsel %vm647_vm0, %v5498_v60, %v644_v6  ;;  %vm686_vm6 = vmor %vm684_vm5, %vm685_vm4  ;;  %v6950_v60 = vld [vmem:[#allocation7 + $0x150] sm:$0xff]  ;;  %v6983_v3 = vld [vmem:[#allocation7 + $0xe8] sm:$0xff] }
 0x1c4   :  { %v653_v13 = vsel %vm650_vm2, %v652_v7, %v648_v11  ;;  %v667_v14 = vsel %vm666_vm1, %v5500_v59, %v663_v8  ;;  %v681_v15 = vsub.f32 1.0, %v680_v9  ;;  %v6956_v59 = vld [vmem:[#allocation7 + $0x120] sm:$0xff]  ;;  %v6995_v7 = vld [vmem:[#allocation7 + $0xc8] sm:$0xff]  ;;  %v6998_v8 = vld [vmem:[#allocation7 + $0xd0] sm:$0xff] }
 0x1c5   :  { %v672_v16 = vsel %vm669_vm3, %v671_v10, %v667_v14  ;;  %v695_v17 = vmul.f32 %v5504_v12, %v653_v13  ;;  %v6992_v6 = vld [vmem:[#allocation7 + $0xc0] sm:$0xff]  ;;  %9792 = vst [vmem:[#allocation23_spill] sm:$0xff] %v6998_v8  ;;  %v7001_v9 = vld [vmem:[#allocation7 + $0xd8] sm:$0xff]  ;;  %v7007_v11 = vld [vmem:[#allocation7 + $0xa8] sm:$0xff] }
 0x1c6   :  { %v694_v18 = vmul.f32 %v672_v16, %v6739_v63  ;;  %v682_v19 = vmul.f32 %v5502_v5, %v681_v15  ;;  %v6881_v63 = vld [vmem:[#allocation7 + $0x1e0] sm:$0xff]  ;;  %9793 = vst [vmem:[#allocation16_spill] sm:$0xff] %v7001_v9  ;;  %v7010_v12 = vld [vmem:[#allocation7 + $0xb0] sm:$0xff]  ;;  %v7013_v13 = vld [vmem:[#allocation7 + $0xb8] sm:$0xff] }
 0x1c7   :  { %v7004_v10 = vld [vmem:[#allocation7 + $0xa0] sm:$0xff]  ;;  %9795 = vst [vmem:[#allocation18_spill] sm:$0xff] %v7007_v11  ;;  %v7019_v15 = vld [vmem:[#allocation7 + $0x88] sm:$0xff]  ;;  %v7022_v16 = vld [vmem:[#allocation7 + $0x90] sm:$0xff] }
 0x1c8   :  { %v6878_v20 = vadd.f32 %v695_v17, %v694_v18  ;;  %v683_v21 = vadd.f32 %v5502_v5, %v682_v19  ;;  %9794 = vst [vmem:[#allocation17_spill] sm:$0xff] %v7004_v10  ;;  %v7016_v14 = vld [vmem:[#allocation7 + $0x80] sm:$0xff]  ;;  %v7025_v17 = vld [vmem:[#allocation7 + $0x98] sm:$0xff]  ;;  %v7031_v19 = vld [vmem:[#allocation7 + $0x68] sm:$0xff] }
 0x1c9   :  { %9796 = vst [vmem:[#allocation27_spill] sm:$0xff] %v7010_v12  ;;  %v7028_v18 = vld [vmem:[#allocation7 + $0x60] sm:$0xff] }
 0x1ca   :  { %5505 = vtanh.f32 %v6878_v20  ;;  %v687_v24 = vsel %vm686_vm6, %v5502_v5, %v683_v21  ;;  %v6989_v5 = vld [vmem:[#allocation7 + $0xf8] sm:$0xff]  ;;  %9797 = vst [vmem:[#allocation19_spill] sm:$0xff] %v7013_v13  ;;  %v7034_v21 = vld [vmem:[#allocation7 + $0x70] sm:$0xff] }
 0x1cb   :  { %v692_v27 = vsel %vm689_vm7, %v691_v25, %v687_v24  ;;  %9798 = vst [vmem:[#allocation20_spill] sm:$0xff] %v7016_v14  ;;  %v7043_v24 = vld [vmem:[#allocation7 + $0x48] sm:$0xff]  ;;  %v7046_v25 = vld [vmem:[#allocation7 + $0x50] sm:$0xff] }
 0x1cc   :  { %9799 = vst [vmem:[#allocation21_spill] sm:$0xff] %v7019_v15 }
 0x1cd   :  { %9800 = vst [vmem:[#allocation31_spill] sm:$0xff] %v7022_v16 }
 0x1ce   :  { %9801 = vst [vmem:[#allocation22_spill] sm:$0xff] %v7025_v17 }
 0x1cf   :  { %9802 = vst [vmem:[#allocation24_spill] sm:$0xff] %v7028_v18 }
 0x1d0   :  { %v5506_v26 = vpop.eup %5505  ;;  %9803 = vst [vmem:[#allocation25_spill] sm:$0xff] %v7031_v19 }
 0x1d1   :  { %v698_v28 = vmul.f32 %v5506_v26, %v692_v27  ;;  %9804 = vst [vmem:[#allocation35_spill] sm:$0xff] %v7034_v21  ;;  %v7049_v26 = vld [vmem:[#allocation7 + $0x58] sm:$0xff]  ;;  %v7052_v27 = vld [vmem:[#allocation7 + $0x20] sm:$0xff] }
 0x1d2   :  { %9807 = vst [vmem:[#allocation29_spill] sm:$0xff] %v7043_v24 }
 0x1d3   :  { %717 = vmatmul.f32.vlgmr.msra.gmra.mxu0 %v698_v28  ;;  %737 = vmatmul.f32.vlgmr.msra.gmra.mxu1 %v698_v28  ;;  %9808 = vst [vmem:[#allocation42_spill] sm:$0xff] %v7046_v25 }
 0x1d4   :  { %757 = vmatmul.f32.vlgmr.msra.gmra.mxu2 %v698_v28  ;;  %777 = vmatmul.f32.vlgmr.msra.gmra.mxu3 %v698_v28  ;;  %9809 = vst [vmem:[#allocation30_spill] sm:$0xff] %v7049_v26  ;;  %v7055_v28 = vld [vmem:[#allocation7 + $0x28] sm:$0xff] }
 0x1d5   :  { %930 = vmatpush.msra.mxu0 %v6881_v63  ;;  %950 = vmatpush.msra.mxu1 %v6884_v29  ;;  %9810 = vst [vmem:[#allocation32_spill] sm:$0xff] %v7052_v27 }
 0x1d6   :  { %970 = vmatpush.msra.mxu2 %v6887_v30  ;;  %990 = vmatpush.msra.mxu3 %v6890_v31  ;;  %9811 = vst [vmem:[#allocation33_spill] sm:$0xff] %v7055_v28 }
 0x1d7   :  { %931 = vmatpush.msra.mxu0 %v6893_v32  ;;  %951 = vmatpush.msra.mxu1 %v6896_v33 }
 0x1d8   :  { %971 = vmatpush.msra.mxu2 %v6902_v38  ;;  %991 = vmatpush.msra.mxu3 %v6905_v39 }
 0x1d9   :  { %932 = vmatpush.msra.mxu0 %v6908_v40  ;;  %952 = vmatpush.msra.mxu1 %v6911_v41 }
 0x1da   :  { %972 = vmatpush.msra.mxu2 %v6914_v45  ;;  %992 = vmatpush.msra.mxu3 %v6917_v50 }
 0x1db   :  { %797 = vmatmul.f32.vlgmr.msrb.gmra.mxu0 %v5373_v35  ;;  %817 = vmatmul.f32.vlgmr.msrb.gmra.mxu1 %v5373_v35 }
 0x1dc   :  { %837 = vmatmul.f32.vlgmr.msrb.gmra.mxu2 %v5373_v35  ;;  %857 = vmatmul.f32.vlgmr.msrb.gmra.mxu3 %v5373_v35  ;;  %v7058_v35 = vld [vmem:[#allocation7 + $0x30] sm:$0xff] }
 0x1dd   :  { %933 = vmatpush.msra.mxu0 %v6920_v46  ;;  %953 = vmatpush.msra.mxu1 %v6923_v49  ;;  %9812 = vst [vmem:[#allocation46_spill] sm:$0xff] %v7058_v35 }
 0x1de   :  { %973 = vmatpush.msra.mxu2 %v6926_v56  ;;  %993 = vmatpush.msra.mxu3 %v6929_v52 }
 0x1df   :  { %934 = vmatpush.msra.mxu0 %v6932_v62  ;;  %954 = vmatpush.msra.mxu1 %v6935_v55 }
 0x1e0   :  { %974 = vmatpush.msra.mxu2 %v6938_v48  ;;  %994 = vmatpush.msra.mxu3 %v6941_v57 }
 0x1e1   :  { %935 = vmatpush.msra.mxu0 %v6944_v51  ;;  %955 = vmatpush.msra.mxu1 %v6947_v58 }
 0x1e2   :  { %975 = vmatpush.msra.mxu2 %v6950_v60  ;;  %995 = vmatpush.msra.mxu3 %v6953_v44 }
 0x1e3   :  { %936 = vmatpush.msra.mxu0 %v6956_v59  ;;  %956 = vmatpush.msra.mxu1 %v6959_v53 }
 0x1e4   :  { %976 = vmatpush.msra.mxu2 %v6962_v54  ;;  %996 = vmatpush.msra.mxu3 %v6965_v42 }
 0x1e5   :  { %937 = vmatpush.msra.mxu0 %v6968_v61  ;;  %957 = vmatpush.msra.mxu1 %v6971_v36 }
 0x1e6   :  { %977 = vmatpush.msra.mxu2 %v6974_v0  ;;  %997 = vmatpush.msra.mxu3 %v6977_v1 }
 0x1e7   :  { %938 = vmatpush.msra.mxu0 %v6980_v2  ;;  %958 = vmatpush.msra.mxu1 %v6983_v3 }
 0x1e8   :  { %978 = vmatpush.msra.mxu2 %v6986_v4  ;;  %998 = vmatpush.msra.mxu3 %v6989_v5 }
 0x1e9   :  { %939 = vmatpush.msra.mxu0 %v6992_v6  ;;  %959 = vmatpush.msra.mxu1 %v6995_v7 }
 0x1ea   :  { %979 = vmatpush.msra.mxu2 %v6998_v8  ;;  %999 = vmatpush.msra.mxu3 %v7001_v9 }
 0x1eb   :  { %940 = vmatpush.msra.mxu0 %v7004_v10  ;;  %960 = vmatpush.msra.mxu1 %v7007_v11 }
 0x1ec   :  { %980 = vmatpush.msra.mxu2 %v7010_v12  ;;  %1000 = vmatpush.msra.mxu3 %v7013_v13 }
 0x1ed   :  { %941 = vmatpush.msra.mxu0 %v7016_v14  ;;  %961 = vmatpush.msra.mxu1 %v7019_v15 }
 0x1ee   :  { %981 = vmatpush.msra.mxu2 %v7022_v16  ;;  %1001 = vmatpush.msra.mxu3 %v7025_v17 }
 0x1ef   :  { %942 = vmatpush.msra.mxu0 %v7028_v18  ;;  %962 = vmatpush.msra.mxu1 %v7031_v19 }
 0x1f0   :  { %982 = vmatpush.msra.mxu2 %v7034_v21  ;;  %1002 = vmatpush.msra.mxu3 %v7037_v22 }
 0x1f1   :  { %943 = vmatpush.msra.mxu0 %v7040_v23  ;;  %963 = vmatpush.msra.mxu1 %v7043_v24  ;;  %v7061_v24 = vld [vmem:[#allocation7 + $0x38] sm:$0xff] }
 0x1f2   :  { %983 = vmatpush.msra.mxu2 %v7046_v25  ;;  %1003 = vmatpush.msra.mxu3 %v7049_v26  ;;  %9813 = vst [vmem:[#allocation34_spill] sm:$0xff] %v7061_v24  ;;  %v7064_v25 = vld [vmem:[#allocation7] sm:$0xff]  ;;  %v7067_v26 = vld [vmem:[#allocation7 + $0x8] sm:$0xff] }
 0x1f3   :  { %944 = vmatpush.msra.mxu0 %v7052_v27  ;;  %964 = vmatpush.msra.mxu1 %v7055_v28  ;;  %9814 = vst [vmem:[#allocation36_spill] sm:$0xff] %v7064_v25  ;;  %v7070_v27 = vld [vmem:[#allocation7 + $0x10] sm:$0xff]  ;;  %v7073_v28 = vld [vmem:[#allocation7 + $0x18] sm:$0xff] }
 0x1f4   :  { %984 = vmatpush.msra.mxu2 %v7058_v35  ;;  %1004 = vmatpush.msra.mxu3 %v7061_v24  ;;  %9815 = vst [vmem:[#allocation37_spill] sm:$0xff] %v7067_v26  ;;  %v7076_v35 = vld [vmem:[#allocation5 + $0x1e0] sm:$0xff]  ;;  %v7079_v24 = vld [vmem:[#allocation5 + $0x1e8] sm:$0xff] }
 0x1f5   :  { %945 = vmatpush.msra.mxu0 %v7064_v25  ;;  %965 = vmatpush.msra.mxu1 %v7067_v26  ;;  %9816 = vst [vmem:[#allocation50_spill] sm:$0xff] %v7070_v27  ;;  %v7082_v25 = vld [vmem:[#allocation5 + $0x1f0] sm:$0xff]  ;;  %v7085_v26 = vld [vmem:[#allocation5 + $0x1f8] sm:$0xff] }
 0x1f6   :  { %985 = vmatpush.msra.mxu2 %v7070_v27  ;;  %9817 = vst [vmem:[#allocation38_spill] sm:$0xff] %v7073_v28  ;;  %1005 = vmatpush.msra.mxu3 %v7073_v28  ;;  %v7088_v27 = vld [vmem:[#allocation5 + $0x1c0] sm:$0xff]  ;;  %v7091_v28 = vld [vmem:[#allocation5 + $0x1c8] sm:$0xff] }
 0x1f7   :  { %9818 = vst [vmem:[#allocation39_spill] sm:$0xff] %v7076_v35  ;;  %1010 = vmatpush.msrb.mxu0 %v7076_v35  ;;  %1030 = vmatpush.msrb.mxu1 %v7079_v24  ;;  %v7094_v35 = vld [vmem:[#allocation5 + $0x1d0] sm:$0xff] }
 0x1f8   :  { %9819 = vst [vmem:[#allocation40_spill] sm:$0xff] %v7079_v24  ;;  %1050 = vmatpush.msrb.mxu2 %v7082_v25  ;;  %1070 = vmatpush.msrb.mxu3 %v7085_v26  ;;  %v7097_v24 = vld [vmem:[#allocation5 + $0x1d8] sm:$0xff] }
 0x1f9   :  { %9820 = vst [vmem:[#allocation54_spill] sm:$0xff] %v7082_v25  ;;  %1011 = vmatpush.msrb.mxu0 %v7088_v27  ;;  %1031 = vmatpush.msrb.mxu1 %v7091_v28  ;;  %v7100_v25 = vld [vmem:[#allocation5 + $0x1a0] sm:$0xff] }
 0x1fa   :  { %9821 = vst [vmem:[#allocation41_spill] sm:$0xff] %v7085_v26  ;;  %1051 = vmatpush.msrb.mxu2 %v7094_v35  ;;  %1071 = vmatpush.msrb.mxu3 %v7097_v24  ;;  %v7103_v26 = vld [vmem:[#allocation5 + $0x1a8] sm:$0xff] }
 0x1fb   :  { %9822 = vst [vmem:[#allocation43_spill] sm:$0xff] %v7088_v27  ;;  %1012 = vmatpush.msrb.mxu0 %v7100_v25  ;;  %1032 = vmatpush.msrb.mxu1 %v7103_v26  ;;  %v7106_v27 = vld [vmem:[#allocation5 + $0x1b0] sm:$0xff] }
 0x1fc   :  { %9823 = vst [vmem:[#allocation44_spill] sm:$0xff] %v7091_v28  ;;  %1052 = vmatpush.msrb.mxu2 %v7106_v27  ;;  %v7109_v28 = vld [vmem:[#allocation5 + $0x1b8] sm:$0xff] }
 0x1fd   :  { %9824 = vst [vmem:[#allocation58_spill] sm:$0xff] %v7094_v35  ;;  %1072 = vmatpush.msrb.mxu3 %v7109_v28  ;;  %v7112_v35 = vld [vmem:[#allocation5 + $0x180] sm:$0xff] }
 0x1fe   :  { %9825 = vst [vmem:[#allocation45_spill] sm:$0xff] %v7097_v24  ;;  %1013 = vmatpush.msrb.mxu0 %v7112_v35  ;;  %v7115_v24 = vld [vmem:[#allocation5 + $0x188] sm:$0xff] }
 0x1ff   :  { %9826 = vst [vmem:[#allocation47_spill] sm:$0xff] %v7100_v25  ;;  %1033 = vmatpush.msrb.mxu1 %v7115_v24  ;;  %v7118_v25 = vld [vmem:[#allocation5 + $0x190] sm:$0xff] }
 0x200   :  { %9827 = vst [vmem:[#allocation48_spill] sm:$0xff] %v7103_v26  ;;  %1053 = vmatpush.msrb.mxu2 %v7118_v25  ;;  %v7121_v26 = vld [vmem:[#allocation5 + $0x198] sm:$0xff] }
 0x201   :  { %9828 = vst [vmem:[#allocation62_spill] sm:$0xff] %v7106_v27  ;;  %1073 = vmatpush.msrb.mxu3 %v7121_v26  ;;  %v7124_v27 = vld [vmem:[#allocation5 + $0x160] sm:$0xff] }
 0x202   :  { %9829 = vst [vmem:[#allocation49_spill] sm:$0xff] %v7109_v28  ;;  %1014 = vmatpush.msrb.mxu0 %v7124_v27  ;;  %v7127_v28 = vld [vmem:[#allocation5 + $0x168] sm:$0xff] }
 0x203   :  { %9830 = vst [vmem:[#allocation51_spill] sm:$0xff] %v7112_v35  ;;  %1034 = vmatpush.msrb.mxu1 %v7127_v28  ;;  %v7130_v35 = vld [vmem:[#allocation5 + $0x170] sm:$0xff] }
 0x204   :  { %9831 = vst [vmem:[#allocation52_spill] sm:$0xff] %v7115_v24  ;;  %1054 = vmatpush.msrb.mxu2 %v7130_v35  ;;  %v7133_v24 = vld [vmem:[#allocation5 + $0x178] sm:$0xff] }
 0x205   :  { %9832 = vst [vmem:[#allocation66_spill] sm:$0xff] %v7118_v25  ;;  %1074 = vmatpush.msrb.mxu3 %v7133_v24  ;;  %v7136_v25 = vld [vmem:[#allocation5 + $0x140] sm:$0xff] }
 0x206   :  { %9833 = vst [vmem:[#allocation53_spill] sm:$0xff] %v7121_v26  ;;  %1015 = vmatpush.msrb.mxu0 %v7136_v25  ;;  %v7139_v26 = vld [vmem:[#allocation5 + $0x148] sm:$0xff] }
 0x207   :  { %9834 = vst [vmem:[#allocation55_spill] sm:$0xff] %v7124_v27  ;;  %1035 = vmatpush.msrb.mxu1 %v7139_v26  ;;  %v7142_v27 = vld [vmem:[#allocation5 + $0x150] sm:$0xff] }
 0x208   :  { %9835 = vst [vmem:[#allocation56_spill] sm:$0xff] %v7127_v28  ;;  %1055 = vmatpush.msrb.mxu2 %v7142_v27  ;;  %v7145_v28 = vld [vmem:[#allocation5 + $0x158] sm:$0xff] }
 0x209   :  { %9836 = vst [vmem:[#allocation70_spill] sm:$0xff] %v7130_v35  ;;  %1075 = vmatpush.msrb.mxu3 %v7145_v28  ;;  %v7148_v35 = vld [vmem:[#allocation5 + $0x120] sm:$0xff] }
 0x20a   :  { %9837 = vst [vmem:[#allocation57_spill] sm:$0xff] %v7133_v24  ;;  %1016 = vmatpush.msrb.mxu0 %v7148_v35  ;;  %v7151_v24 = vld [vmem:[#allocation5 + $0x128] sm:$0xff] }
 0x20b   :  { %9838 = vst [vmem:[#allocation59_spill] sm:$0xff] %v7136_v25  ;;  %1036 = vmatpush.msrb.mxu1 %v7151_v24  ;;  %v7154_v25 = vld [vmem:[#allocation5 + $0x130] sm:$0xff] }
 0x20c   :  { %9839 = vst [vmem:[#allocation60_spill] sm:$0xff] %v7139_v26  ;;  %1056 = vmatpush.msrb.mxu2 %v7154_v25  ;;  %v7157_v26 = vld [vmem:[#allocation5 + $0x138] sm:$0xff] }
 0x20d   :  { %9840 = vst [vmem:[#allocation74_spill] sm:$0xff] %v7142_v27  ;;  %1076 = vmatpush.msrb.mxu3 %v7157_v26  ;;  %v7160_v27 = vld [vmem:[#allocation5 + $0x100] sm:$0xff] }
 0x20e   :  { %9841 = vst [vmem:[#allocation61_spill] sm:$0xff] %v7145_v28  ;;  %1017 = vmatpush.msrb.mxu0 %v7160_v27  ;;  %v7163_v28 = vld [vmem:[#allocation5 + $0x108] sm:$0xff] }
 0x20f   :  { %9842 = vst [vmem:[#allocation63_spill] sm:$0xff] %v7148_v35  ;;  %1037 = vmatpush.msrb.mxu1 %v7163_v28  ;;  %v7166_v35 = vld [vmem:[#allocation5 + $0x110] sm:$0xff] }
 0x210   :  { %9843 = vst [vmem:[#allocation64_spill] sm:$0xff] %v7151_v24  ;;  %1057 = vmatpush.msrb.mxu2 %v7166_v35  ;;  %v7169_v24 = vld [vmem:[#allocation5 + $0x118] sm:$0xff] }
 0x211   :  { %9844 = vst [vmem:[#allocation78_spill] sm:$0xff] %v7154_v25  ;;  %1077 = vmatpush.msrb.mxu3 %v7169_v24  ;;  %v7172_v25 = vld [vmem:[#allocation5 + $0xe0] sm:$0xff] }
 0x212   :  { %9845 = vst [vmem:[#allocation65_spill] sm:$0xff] %v7157_v26  ;;  %1018 = vmatpush.msrb.mxu0 %v7172_v25  ;;  %v7175_v26 = vld [vmem:[#allocation5 + $0xe8] sm:$0xff] }
 0x213   :  { %9846 = vst [vmem:[#allocation67_spill] sm:$0xff] %v7160_v27  ;;  %1038 = vmatpush.msrb.mxu1 %v7175_v26  ;;  %v7178_v27 = vld [vmem:[#allocation5 + $0xf0] sm:$0xff] }
 0x214   :  { %9847 = vst [vmem:[#allocation68_spill] sm:$0xff] %v7163_v28  ;;  %1058 = vmatpush.msrb.mxu2 %v7178_v27  ;;  %v7181_v28 = vld [vmem:[#allocation5 + $0xf8] sm:$0xff] }
 0x215   :  { %9848 = vst [vmem:[#allocation82_spill] sm:$0xff] %v7166_v35  ;;  %1078 = vmatpush.msrb.mxu3 %v7181_v28  ;;  %v7184_v35 = vld [vmem:[#allocation5 + $0xc0] sm:$0xff] }
 0x216   :  { %9849 = vst [vmem:[#allocation69_spill] sm:$0xff] %v7169_v24  ;;  %1019 = vmatpush.msrb.mxu0 %v7184_v35  ;;  %v7187_v24 = vld [vmem:[#allocation5 + $0xc8] sm:$0xff] }
 0x217   :  { %9850 = vst [vmem:[#allocation71_spill] sm:$0xff] %v7172_v25  ;;  %1039 = vmatpush.msrb.mxu1 %v7187_v24  ;;  %v7190_v25 = vld [vmem:[#allocation5 + $0xd0] sm:$0xff] }
 0x218   :  { %9851 = vst [vmem:[#allocation72_spill] sm:$0xff] %v7175_v26  ;;  %1059 = vmatpush.msrb.mxu2 %v7190_v25  ;;  %v7193_v26 = vld [vmem:[#allocation5 + $0xd8] sm:$0xff] }
 0x219   :  { %9852 = vst [vmem:[#allocation86_spill] sm:$0xff] %v7178_v27  ;;  %1079 = vmatpush.msrb.mxu3 %v7193_v26  ;;  %v7196_v27 = vld [vmem:[#allocation5 + $0xa0] sm:$0xff] }
 0x21a   :  { %9853 = vst [vmem:[#allocation73_spill] sm:$0xff] %v7181_v28  ;;  %1020 = vmatpush.msrb.mxu0 %v7196_v27  ;;  %v7199_v28 = vld [vmem:[#allocation5 + $0xa8] sm:$0xff] }
 0x21b   :  { %9854 = vst [vmem:[#allocation75_spill] sm:$0xff] %v7184_v35  ;;  %1040 = vmatpush.msrb.mxu1 %v7199_v28  ;;  %v7202_v35 = vld [vmem:[#allocation5 + $0xb0] sm:$0xff] }
 0x21c   :  { %9855 = vst [vmem:[#allocation76_spill] sm:$0xff] %v7187_v24  ;;  %1060 = vmatpush.msrb.mxu2 %v7202_v35  ;;  %v7205_v24 = vld [vmem:[#allocation5 + $0xb8] sm:$0xff] }
 0x21d   :  { %9856 = vst [vmem:[#allocation90_spill] sm:$0xff] %v7190_v25  ;;  %1080 = vmatpush.msrb.mxu3 %v7205_v24  ;;  %v7208_v25 = vld [vmem:[#allocation5 + $0x80] sm:$0xff] }
 0x21e   :  { %9857 = vst [vmem:[#allocation77_spill] sm:$0xff] %v7193_v26  ;;  %1021 = vmatpush.msrb.mxu0 %v7208_v25  ;;  %v7211_v26 = vld [vmem:[#allocation5 + $0x88] sm:$0xff] }
 0x21f   :  { %9858 = vst [vmem:[#allocation79_spill] sm:$0xff] %v7196_v27  ;;  %1041 = vmatpush.msrb.mxu1 %v7211_v26  ;;  %v7214_v27 = vld [vmem:[#allocation5 + $0x90] sm:$0xff] }
 0x220   :  { %9859 = vst [vmem:[#allocation80_spill] sm:$0xff] %v7199_v28  ;;  %1061 = vmatpush.msrb.mxu2 %v7214_v27  ;;  %v7217_v28 = vld [vmem:[#allocation5 + $0x98] sm:$0xff] }
 0x221   :  { %9860 = vst [vmem:[#allocation94_spill] sm:$0xff] %v7202_v35  ;;  %1081 = vmatpush.msrb.mxu3 %v7217_v28  ;;  %v7220_v35 = vld [vmem:[#allocation5 + $0x60] sm:$0xff] }
 0x222   :  { %9861 = vst [vmem:[#allocation81_spill] sm:$0xff] %v7205_v24  ;;  %1022 = vmatpush.msrb.mxu0 %v7220_v35  ;;  %v7223_v24 = vld [vmem:[#allocation5 + $0x68] sm:$0xff] }
 0x223   :  { %9862 = vst [vmem:[#allocation83_spill] sm:$0xff] %v7208_v25  ;;  %1042 = vmatpush.msrb.mxu1 %v7223_v24  ;;  %v7226_v25 = vld [vmem:[#allocation5 + $0x70] sm:$0xff] }
 0x224   :  { %9863 = vst [vmem:[#allocation84_spill] sm:$0xff] %v7211_v26  ;;  %1062 = vmatpush.msrb.mxu2 %v7226_v25  ;;  %v7229_v26 = vld [vmem:[#allocation5 + $0x78] sm:$0xff] }
 0x225   :  { %9864 = vst [vmem:[#allocation98_spill] sm:$0xff] %v7214_v27  ;;  %1082 = vmatpush.msrb.mxu3 %v7229_v26  ;;  %v7232_v27 = vld [vmem:[#allocation5 + $0x40] sm:$0xff] }
 0x226   :  { %9865 = vst [vmem:[#allocation85_spill] sm:$0xff] %v7217_v28  ;;  %1023 = vmatpush.msrb.mxu0 %v7232_v27  ;;  %v7235_v28 = vld [vmem:[#allocation5 + $0x48] sm:$0xff] }
 0x227   :  { %9866 = vst [vmem:[#allocation87_spill] sm:$0xff] %v7220_v35  ;;  %1043 = vmatpush.msrb.mxu1 %v7235_v28  ;;  %v7238_v35 = vld [vmem:[#allocation5 + $0x50] sm:$0xff] }
 0x228   :  { %9867 = vst [vmem:[#allocation88_spill] sm:$0xff] %v7223_v24  ;;  %1063 = vmatpush.msrb.mxu2 %v7238_v35  ;;  %v7241_v24 = vld [vmem:[#allocation5 + $0x58] sm:$0xff] }
 0x229   :  { %9868 = vst [vmem:[#allocation102_spill] sm:$0xff] %v7226_v25  ;;  %1083 = vmatpush.msrb.mxu3 %v7241_v24  ;;  %v7244_v25 = vld [vmem:[#allocation5 + $0x20] sm:$0xff] }
 0x22a   :  { %9869 = vst [vmem:[#allocation89_spill] sm:$0xff] %v7229_v26  ;;  %1024 = vmatpush.msrb.mxu0 %v7244_v25  ;;  %v7247_v26 = vld [vmem:[#allocation5 + $0x28] sm:$0xff] }
 0x22b   :  { %9870 = vst [vmem:[#allocation91_spill] sm:$0xff] %v7232_v27  ;;  %1044 = vmatpush.msrb.mxu1 %v7247_v26  ;;  %v7250_v27 = vld [vmem:[#allocation5 + $0x30] sm:$0xff] }
 0x22c   :  { %9871 = vst [vmem:[#allocation92_spill] sm:$0xff] %v7235_v28  ;;  %1064 = vmatpush.msrb.mxu2 %v7250_v27  ;;  %v7253_v28 = vld [vmem:[#allocation5 + $0x38] sm:$0xff] }
 0x22d   :  { %9872 = vst [vmem:[#allocation103_spill] sm:$0xff] %v7238_v35  ;;  %1084 = vmatpush.msrb.mxu3 %v7253_v28  ;;  %v7256_v35 = vld [vmem:[#allocation5] sm:$0xff] }
 0x22e   :  { %9873 = vst [vmem:[#allocation93_spill] sm:$0xff] %v7241_v24  ;;  %1025 = vmatpush.msrb.mxu0 %v7256_v35  ;;  %v7259_v24 = vld [vmem:[#allocation5 + $0x8] sm:$0xff] }
 0x22f   :  { %9874 = vst [vmem:[#allocation95_spill] sm:$0xff] %v7244_v25  ;;  %1045 = vmatpush.msrb.mxu1 %v7259_v24  ;;  %v7262_v25 = vld [vmem:[#allocation5 + $0x10] sm:$0xff] }
 0x230   :  { %9875 = vst [vmem:[#allocation96_spill] sm:$0xff] %v7247_v26  ;;  %1065 = vmatpush.msrb.mxu2 %v7262_v25  ;;  %v7265_v26 = vld [vmem:[#allocation5 + $0x18] sm:$0xff] }
 0x231   :  { %9876 = vst [vmem:[#allocation104_spill] sm:$0xff] %v7250_v27  ;;  %1085 = vmatpush.msrb.mxu3 %v7265_v26 }
 0x232   :  { %9877 = vst [vmem:[#allocation97_spill] sm:$0xff] %v7253_v28 }
 0x233   :  { %9878 = vst [vmem:[#allocation99_spill] sm:$0xff] %v7256_v35 }
 0x234   :  { %9879 = vst [vmem:[#allocation100_spill] sm:$0xff] %v7259_v24 }
 0x235   :  { %9880 = vst [vmem:[#allocation105_spill] sm:$0xff] %v7262_v25 }
 0x236   :  { %9881 = vst [vmem:[#allocation101_spill] sm:$0xff] %v7265_v26 }
 0x250   :  { %v718_v27 = vpop.f32.mrf.mxu0  ;;  %v738_v23 = vpop.f32.mrf.mxu1 }
 0x257   :  { %v778_v22 = vpop.f32.mrf.mxu3  ;;  %v758_v24 = vpop.f32.mrf.mxu2 }
 0x258   :  { %v798_v28 = vpop.f32.mrf.mxu0  ;;  %v818_v21 = vpop.f32.mrf.mxu1 }
 0x259   :  { %v799_v19 = vadd.f32 %v798_v28, %v718_v27  ;;  %v819_v18 = vadd.f32 %v818_v21, %v738_v23 }
 0x25b   :  { %v861_v35 = vadd.f32 %v799_v19, %v9788_v34  ;;  %v862_v17 = vadd.f32 %v819_v18, %v9789_v37 }
 0x25d   :  { %v5374_v16 = vmul.f32 -1.442695, %v861_v35  ;;  %v5375_v15 = vmul.f32 -1.442695, %v862_v17 }
 0x25f   :  { %5507 = vpow2.f32 %v5374_v16  ;;  %v858_v25 = vpop.f32.mrf.mxu3  ;;  %v838_v21 = vpop.f32.mrf.mxu2 }
 0x260   :  { %5509 = vpow2.f32 %v5375_v15  ;;  %v859_v14 = vadd.f32 %v858_v25, %v778_v22  ;;  %v839_v34 = vadd.f32 %v838_v21, %v758_v24 }
 0x262   :  { %v864_v26 = vadd.f32 %v859_v14, %v9790_v47  ;;  %v863_v16 = vadd.f32 %v839_v34, %v9791_v43 }
 0x264   :  { %v5376_v13 = vmul.f32 -1.442695, %v864_v26 }
 0x265   :  { %v5508_v12 = vpop.eup %5507 }
 0x266   :  { %v5510_v11 = vpop.eup %5509  ;;  %v868_v10 = vadd.f32 1.0, %v5508_v12  ;;  %5511 = vpow2.f32 %v5376_v13 }
 0x267   :  { %v887_v27 = vadd.f32 1.0, %v5510_v11 }
 0x268   :  { %5513 = vrcp.f32 %v868_v10  ;;  %v880_v23 = vand.u32 2147483648, %v868_v10  ;;  %v878_v11 = vand.u32 2147483647, %v868_v10  ;;  %vm874_vm10 = vweird.f32 %v868_v10 }
 0x269   :  { %5515 = vrcp.f32 %v887_v27  ;;  %v899_v12 = vand.u32 2147483648, %v887_v27  ;;  %v897_v24 = vand.u32 2147483647, %v887_v27  ;;  %vm893_vm11 = vweird.f32 %v887_v27 }
 0x26a   :  { %v881_v43 = vor.u32 1.1754944e-38, %v880_v23  ;;  %vm879_vm14 = vcmp.eq.f32.partialorder %v878_v11, 8.507059e+37 }
 0x26b   :  { %v900_v34 = vor.u32 1.1754944e-38, %v899_v12  ;;  %vm898_vm15 = vcmp.eq.f32.partialorder %v897_v24, 8.507059e+37 }
 0x26c   :  { %v5512_v37 = vpop.eup %5511 }
 0x26d   :  { %v907_v18 = vadd.f32 1.0, %v5512_v37 }
 0x26e   :  { %v5514_v19 = vpop.eup %5513 }
 0x26f   :  { %v5516_v17 = vpop.eup %5515  ;;  %v870_v15 = vmul.f32 %v5514_v19, %v868_v10  ;;  %5517 = vrcp.f32 %v907_v18  ;;  %vm875_vm8 = vweird.f32 %v5514_v19  ;;  %v919_v23 = vand.u32 2147483648, %v907_v18 }
 0x270   :  { %v889_v22 = vmul.f32 %v5516_v17, %v887_v27  ;;  %5519 = vtanh.f32 %v863_v16  ;;  %vm894_vm9 = vweird.f32 %v5516_v17  ;;  %vm876_vm12 = vmor %vm874_vm10, %vm875_vm8  ;;  %vm913_vm1 = vweird.f32 %v907_v18 }
 0x271   :  { %v871_v47 = vsub.f32 1.0, %v870_v15  ;;  %vm895_vm13 = vmor %vm893_vm11, %vm894_vm9  ;;  %v920_v11 = vor.u32 1.1754944e-38, %v919_v23  ;;  %v9899_v23 = vld [vmem:[#allocation30_spill] sm:$0xff] }
 0x272   :  { %v890_v14 = vsub.f32 1.0, %v889_v22 }
 0x273   :  { %v872_v13 = vmul.f32 %v5514_v19, %v871_v47 }
 0x274   :  { %v891_v25 = vmul.f32 %v5516_v17, %v890_v14 }
 0x275   :  { %v5518_v26 = vpop.eup %5517  ;;  %v873_v28 = vadd.f32 %v5514_v19, %v872_v13 }
 0x276   :  { %v892_v35 = vadd.f32 %v5516_v17, %v891_v25  ;;  %v909_v21 = vmul.f32 %v5518_v26, %v907_v18  ;;  %v5520_v16 = vpop.eup %5519  ;;  %vm914_vm0 = vweird.f32 %v5518_v26 }
 0x277   :  { %v877_v37 = vsel %vm876_vm12, %v5514_v19, %v873_v28  ;;  %v917_v19 = vand.u32 2147483647, %v907_v18  ;;  %vm915_vm2 = vmor %vm913_vm1, %vm914_vm0  ;;  %v9884_v18 = vld [vmem:[#allocation17_spill] sm:$0xff]  ;;  %v9886_v28 = vld [vmem:[#allocation27_spill] sm:$0xff] }
 0x278   :  { %v882_v15 = vsel %vm879_vm14, %v881_v43, %v877_v37  ;;  %v896_v22 = vsel %vm895_vm13, %v5516_v17, %v892_v35  ;;  %v910_v47 = vsub.f32 1.0, %v909_v21  ;;  %v9887_v43 = vld [vmem:[#allocation19_spill] sm:$0xff]  ;;  %v9888_v35 = vld [vmem:[#allocation20_spill] sm:$0xff]  ;;  %v9889_v21 = vld [vmem:[#allocation21_spill] sm:$0xff] }
 0x279   :  { %v901_v14 = vsel %vm898_vm15, %v900_v34, %v896_v22  ;;  %v924_v9 = vmul.f32 %v5520_v16, %v882_v15  ;;  %vm918_vm3 = vcmp.eq.f32.partialorder %v917_v19, 8.507059e+37  ;;  %v9890_v34 = vld [vmem:[#allocation31_spill] sm:$0xff]  ;;  %v9891_v37 = vld [vmem:[#allocation22_spill] sm:$0xff]  ;;  %v9892_v16 = vld [vmem:[#allocation24_spill] sm:$0xff] }
 0x27a   :  { %v923_v8 = vmul.f32 %v901_v14, %v6878_v20  ;;  %v911_v13 = vmul.f32 %v5518_v26, %v910_v47  ;;  %v5377_v20 = vld [vmem:[%s9083_s1 + $0x18] sm:$0xff]  ;;  %v9893_v15 = vld [vmem:[#allocation25_spill] sm:$0xff]  ;;  %v9894_v22 = vld [vmem:[#allocation35_spill] sm:$0xff] }
 0x27b   :  { %v9895_v47 = vld [vmem:[#allocation26_spill] sm:$0xff]  ;;  %v9896_v14 = vld [vmem:[#allocation28_spill] sm:$0xff] }
 0x27c   :  { %v7273_v10 = vadd.f32 %v924_v9, %v923_v8  ;;  %v912_v27 = vadd.f32 %v5518_v26, %v911_v13  ;;  %v9882_v8 = vld [vmem:[#allocation23_spill] sm:$0xff]  ;;  %v9883_v9 = vld [vmem:[#allocation16_spill] sm:$0xff]  ;;  %v9897_v13 = vld [vmem:[#allocation29_spill] sm:$0xff] }
 0x27d   :  { %v9900_v19 = vld [vmem:[#allocation32_spill] sm:$0xff] }
 0x27e   :  { %5521 = vtanh.f32 %v7273_v10  ;;  %v916_v12 = vsel %vm915_vm2, %v5518_v26, %v912_v27  ;;  %v9885_v26 = vld [vmem:[#allocation18_spill] sm:$0xff] }
 0x27f   :  { %v921_v25 = vsel %vm918_vm3, %v920_v11, %v916_v12  ;;  %v9898_v27 = vld [vmem:[#allocation42_spill] sm:$0xff]  ;;  %v9901_v12 = vld [vmem:[#allocation33_spill] sm:$0xff] }
 0x280   :  { %v9902_v11 = vld [vmem:[#allocation46_spill] sm:$0xff] }
 0x284   :  { %v5522_v17 = vpop.eup %5521 }
 0x285   :  { %v927_v24 = vmul.f32 %v5522_v17, %v921_v25  ;;  %v9903_v17 = vld [vmem:[#allocation34_spill] sm:$0xff]  ;;  %v9904_v25 = vld [vmem:[#allocation36_spill] sm:$0xff] }
 0x287   :  { %946 = vmatmul.f32.vlgmr.msra.gmra.mxu0 %v927_v24  ;;  %966 = vmatmul.f32.vlgmr.msra.gmra.mxu1 %v927_v24 }
 0x288   :  { %986 = vmatmul.f32.vlgmr.msra.gmra.mxu2 %v927_v24  ;;  %1006 = vmatmul.f32.vlgmr.msra.gmra.mxu3 %v927_v24  ;;  %v9905_v24 = vld [vmem:[#allocation37_spill] sm:$0xff] }
 0x289   :  { %1159 = vmatpush.msra.mxu0 %v6881_v63  ;;  %1179 = vmatpush.msra.mxu1 %v6884_v29 }
 0x28a   :  { %1199 = vmatpush.msra.mxu2 %v6887_v30  ;;  %1219 = vmatpush.msra.mxu3 %v6890_v31 }
 0x28b   :  { %1160 = vmatpush.msra.mxu0 %v6893_v32  ;;  %1180 = vmatpush.msra.mxu1 %v6896_v33 }
 0x28c   :  { %1200 = vmatpush.msra.mxu2 %v6902_v38  ;;  %1220 = vmatpush.msra.mxu3 %v6905_v39 }
 0x28d   :  { %1161 = vmatpush.msra.mxu0 %v6908_v40  ;;  %1181 = vmatpush.msra.mxu1 %v6911_v41 }
 0x28e   :  { %1201 = vmatpush.msra.mxu2 %v6914_v45  ;;  %1221 = vmatpush.msra.mxu3 %v6917_v50 }
 0x28f   :  { %1026 = vmatmul.f32.vlgmr.msrb.gmra.mxu0 %v5377_v20  ;;  %1046 = vmatmul.f32.vlgmr.msrb.gmra.mxu1 %v5377_v20 }
 0x290   :  { %1066 = vmatmul.f32.vlgmr.msrb.gmra.mxu2 %v5377_v20  ;;  %1086 = vmatmul.f32.vlgmr.msrb.gmra.mxu3 %v5377_v20  ;;  %v9906_v20 = vld [vmem:[#allocation50_spill] sm:$0xff] }
 0x291   :  { %1162 = vmatpush.msra.mxu0 %v6920_v46  ;;  %1182 = vmatpush.msra.mxu1 %v6923_v49 }
 0x292   :  { %1202 = vmatpush.msra.mxu2 %v6926_v56  ;;  %1222 = vmatpush.msra.mxu3 %v6929_v52 }
 0x293   :  { %1163 = vmatpush.msra.mxu0 %v6932_v62  ;;  %1183 = vmatpush.msra.mxu1 %v6935_v55 }
 0x294   :  { %1203 = vmatpush.msra.mxu2 %v6938_v48  ;;  %1223 = vmatpush.msra.mxu3 %v6941_v57 }
 0x295   :  { %1164 = vmatpush.msra.mxu0 %v6944_v51  ;;  %1184 = vmatpush.msra.mxu1 %v6947_v58 }
 0x296   :  { %1204 = vmatpush.msra.mxu2 %v6950_v60  ;;  %1224 = vmatpush.msra.mxu3 %v6953_v44 }
 0x297   :  { %1165 = vmatpush.msra.mxu0 %v6956_v59  ;;  %1185 = vmatpush.msra.mxu1 %v6959_v53 }
 0x298   :  { %1205 = vmatpush.msra.mxu2 %v6962_v54  ;;  %1225 = vmatpush.msra.mxu3 %v6965_v42 }
 0x299   :  { %1166 = vmatpush.msra.mxu0 %v6968_v61  ;;  %1186 = vmatpush.msra.mxu1 %v6971_v36 }
 0x29a   :  { %1206 = vmatpush.msra.mxu2 %v6974_v0  ;;  %1226 = vmatpush.msra.mxu3 %v6977_v1 }
 0x29b   :  { %1167 = vmatpush.msra.mxu0 %v6980_v2  ;;  %1187 = vmatpush.msra.mxu1 %v6983_v3 }
 0x29c   :  { %1207 = vmatpush.msra.mxu2 %v6986_v4  ;;  %1227 = vmatpush.msra.mxu3 %v6989_v5 }
 0x29d   :  { %1168 = vmatpush.msra.mxu0 %v6992_v6  ;;  %1188 = vmatpush.msra.mxu1 %v6995_v7 }
 0x29e   :  { %1208 = vmatpush.msra.mxu2 %v9882_v8  ;;  %1228 = vmatpush.msra.mxu3 %v9883_v9 }
 0x29f   :  { %1169 = vmatpush.msra.mxu0 %v9884_v18  ;;  %1189 = vmatpush.msra.mxu1 %v9885_v26 }
 0x2a0   :  { %1209 = vmatpush.msra.mxu2 %v9886_v28  ;;  %1229 = vmatpush.msra.mxu3 %v9887_v43 }
 0x2a1   :  { %1170 = vmatpush.msra.mxu0 %v9888_v35  ;;  %1190 = vmatpush.msra.mxu1 %v9889_v21 }
 0x2a2   :  { %1210 = vmatpush.msra.mxu2 %v9890_v34  ;;  %1230 = vmatpush.msra.mxu3 %v9891_v37 }
 0x2a3   :  { %1171 = vmatpush.msra.mxu0 %v9892_v16  ;;  %1191 = vmatpush.msra.mxu1 %v9893_v15 }
 0x2a4   :  { %1211 = vmatpush.msra.mxu2 %v9894_v22  ;;  %1231 = vmatpush.msra.mxu3 %v9895_v47 }
 0x2a5   :  { %1172 = vmatpush.msra.mxu0 %v9896_v14  ;;  %1192 = vmatpush.msra.mxu1 %v9897_v13  ;;  %v9907_v14 = vld [vmem:[#allocation38_spill] sm:$0xff]  ;;  %v9908_v13 = vld [vmem:[#allocation39_spill] sm:$0xff] }
 0x2a6   :  { %1212 = vmatpush.msra.mxu2 %v9898_v27  ;;  %1232 = vmatpush.msra.mxu3 %v9899_v23  ;;  %v9909_v27 = vld [vmem:[#allocation40_spill] sm:$0xff]  ;;  %v9910_v23 = vld [vmem:[#allocation54_spill] sm:$0xff] }
 0x2a7   :  { %1173 = vmatpush.msra.mxu0 %v9900_v19  ;;  %1193 = vmatpush.msra.mxu1 %v9901_v12  ;;  %v9911_v19 = vld [vmem:[#allocation41_spill] sm:$0xff]  ;;  %v9912_v12 = vld [vmem:[#allocation43_spill] sm:$0xff] }
 0x2a8   :  { %1213 = vmatpush.msra.mxu2 %v9902_v11  ;;  %1233 = vmatpush.msra.mxu3 %v9903_v17  ;;  %v9913_v11 = vld [vmem:[#allocation44_spill] sm:$0xff]  ;;  %v9914_v17 = vld [vmem:[#allocation58_spill] sm:$0xff] }
 0x2a9   :  { %1174 = vmatpush.msra.mxu0 %v9904_v25  ;;  %1194 = vmatpush.msra.mxu1 %v9905_v24  ;;  %v9915_v25 = vld [vmem:[#allocation45_spill] sm:$0xff]  ;;  %v9916_v24 = vld [vmem:[#allocation47_spill] sm:$0xff] }
 0x2aa   :  { %1214 = vmatpush.msra.mxu2 %v9906_v20  ;;  %1234 = vmatpush.msra.mxu3 %v9907_v14  ;;  %v9917_v20 = vld [vmem:[#allocation48_spill] sm:$0xff]  ;;  %v9918_v14 = vld [vmem:[#allocation62_spill] sm:$0xff] }
 0x2ab   :  { %1239 = vmatpush.msrb.mxu0 %v9908_v13  ;;  %1259 = vmatpush.msrb.mxu1 %v9909_v27  ;;  %v9919_v13 = vld [vmem:[#allocation49_spill] sm:$0xff]  ;;  %v9920_v27 = vld [vmem:[#allocation51_spill] sm:$0xff] }
 0x2ac   :  { %1279 = vmatpush.msrb.mxu2 %v9910_v23  ;;  %1299 = vmatpush.msrb.mxu3 %v9911_v19  ;;  %v9921_v23 = vld [vmem:[#allocation52_spill] sm:$0xff]  ;;  %v9922_v19 = vld [vmem:[#allocation66_spill] sm:$0xff] }
 0x2ad   :  { %1240 = vmatpush.msrb.mxu0 %v9912_v12  ;;  %1260 = vmatpush.msrb.mxu1 %v9913_v11  ;;  %v9923_v12 = vld [vmem:[#allocation53_spill] sm:$0xff]  ;;  %v9924_v11 = vld [vmem:[#allocation55_spill] sm:$0xff] }
 0x2ae   :  { %1280 = vmatpush.msrb.mxu2 %v9914_v17  ;;  %1300 = vmatpush.msrb.mxu3 %v9915_v25  ;;  %v9925_v17 = vld [vmem:[#allocation56_spill] sm:$0xff]  ;;  %v9926_v25 = vld [vmem:[#allocation70_spill] sm:$0xff] }
 0x2af   :  { %1241 = vmatpush.msrb.mxu0 %v9916_v24  ;;  %1261 = vmatpush.msrb.mxu1 %v9917_v20  ;;  %v9927_v24 = vld [vmem:[#allocation57_spill] sm:$0xff]  ;;  %v9928_v20 = vld [vmem:[#allocation59_spill] sm:$0xff] }
 0x2b0   :  { %1281 = vmatpush.msrb.mxu2 %v9918_v14  ;;  %1301 = vmatpush.msrb.mxu3 %v9919_v13  ;;  %v9929_v14 = vld [vmem:[#allocation60_spill] sm:$0xff]  ;;  %v9930_v13 = vld [vmem:[#allocation74_spill] sm:$0xff] }
 0x2b1   :  { %1242 = vmatpush.msrb.mxu0 %v9920_v27  ;;  %1262 = vmatpush.msrb.mxu1 %v9921_v23  ;;  %v9931_v27 = vld [vmem:[#allocation61_spill] sm:$0xff]  ;;  %v9932_v23 = vld [vmem:[#allocation63_spill] sm:$0xff] }
 0x2b2   :  { %1282 = vmatpush.msrb.mxu2 %v9922_v19  ;;  %1302 = vmatpush.msrb.mxu3 %v9923_v12  ;;  %v9933_v19 = vld [vmem:[#allocation64_spill] sm:$0xff]  ;;  %v9934_v12 = vld [vmem:[#allocation78_spill] sm:$0xff] }
 0x2b3   :  { %1243 = vmatpush.msrb.mxu0 %v9924_v11  ;;  %1263 = vmatpush.msrb.mxu1 %v9925_v17  ;;  %v9935_v11 = vld [vmem:[#allocation65_spill] sm:$0xff]  ;;  %v9936_v17 = vld [vmem:[#allocation67_spill] sm:$0xff] }
 0x2b4   :  { %1283 = vmatpush.msrb.mxu2 %v9926_v25  ;;  %1303 = vmatpush.msrb.mxu3 %v9927_v24  ;;  %v9937_v25 = vld [vmem:[#allocation68_spill] sm:$0xff]  ;;  %v9938_v24 = vld [vmem:[#allocation82_spill] sm:$0xff] }
 0x2b5   :  { %1244 = vmatpush.msrb.mxu0 %v9928_v20  ;;  %1264 = vmatpush.msrb.mxu1 %v9929_v14  ;;  %v9939_v20 = vld [vmem:[#allocation69_spill] sm:$0xff]  ;;  %v9940_v14 = vld [vmem:[#allocation71_spill] sm:$0xff] }
 0x2b6   :  { %1284 = vmatpush.msrb.mxu2 %v9930_v13  ;;  %1304 = vmatpush.msrb.mxu3 %v9931_v27  ;;  %v9941_v13 = vld [vmem:[#allocation72_spill] sm:$0xff]  ;;  %v9942_v27 = vld [vmem:[#allocation86_spill] sm:$0xff] }
 0x2b7   :  { %1245 = vmatpush.msrb.mxu0 %v9932_v23  ;;  %1265 = vmatpush.msrb.mxu1 %v9933_v19  ;;  %v9943_v23 = vld [vmem:[#allocation73_spill] sm:$0xff]  ;;  %v9944_v19 = vld [vmem:[#allocation75_spill] sm:$0xff] }
 0x2b8   :  { %1285 = vmatpush.msrb.mxu2 %v9934_v12  ;;  %1305 = vmatpush.msrb.mxu3 %v9935_v11  ;;  %v9945_v12 = vld [vmem:[#allocation76_spill] sm:$0xff]  ;;  %v9946_v11 = vld [vmem:[#allocation90_spill] sm:$0xff] }
 0x2b9   :  { %1246 = vmatpush.msrb.mxu0 %v9936_v17  ;;  %1266 = vmatpush.msrb.mxu1 %v9937_v25  ;;  %v9947_v17 = vld [vmem:[#allocation77_spill] sm:$0xff]  ;;  %v9948_v25 = vld [vmem:[#allocation79_spill] sm:$0xff] }
 0x2ba   :  { %1286 = vmatpush.msrb.mxu2 %v9938_v24  ;;  %1306 = vmatpush.msrb.mxu3 %v9939_v20  ;;  %v9949_v24 = vld [vmem:[#allocation80_spill] sm:$0xff]  ;;  %v9950_v20 = vld [vmem:[#allocation94_spill] sm:$0xff] }
 0x2bb   :  { %1247 = vmatpush.msrb.mxu0 %v9940_v14  ;;  %1267 = vmatpush.msrb.mxu1 %v9941_v13  ;;  %v9951_v14 = vld [vmem:[#allocation81_spill] sm:$0xff]  ;;  %v9952_v13 = vld [vmem:[#allocation83_spill] sm:$0xff] }
 0x2bc   :  { %1287 = vmatpush.msrb.mxu2 %v9942_v27  ;;  %1307 = vmatpush.msrb.mxu3 %v9943_v23  ;;  %v9953_v27 = vld [vmem:[#allocation84_spill] sm:$0xff]  ;;  %v9954_v23 = vld [vmem:[#allocation98_spill] sm:$0xff] }
 0x2bd   :  { %1248 = vmatpush.msrb.mxu0 %v9944_v19  ;;  %1268 = vmatpush.msrb.mxu1 %v9945_v12  ;;  %v9955_v19 = vld [vmem:[#allocation85_spill] sm:$0xff]  ;;  %v9956_v12 = vld [vmem:[#allocation87_spill] sm:$0xff] }
 0x2be   :  { %1288 = vmatpush.msrb.mxu2 %v9946_v11  ;;  %1308 = vmatpush.msrb.mxu3 %v9947_v17  ;;  %v9957_v11 = vld [vmem:[#allocation88_spill] sm:$0xff]  ;;  %v9958_v17 = vld [vmem:[#allocation102_spill] sm:$0xff] }
 0x2bf   :  { %1249 = vmatpush.msrb.mxu0 %v9948_v25  ;;  %1269 = vmatpush.msrb.mxu1 %v9949_v24  ;;  %v9959_v25 = vld [vmem:[#allocation89_spill] sm:$0xff]  ;;  %v9960_v24 = vld [vmem:[#allocation91_spill] sm:$0xff] }
 0x2c0   :  { %1289 = vmatpush.msrb.mxu2 %v9950_v20  ;;  %1309 = vmatpush.msrb.mxu3 %v9951_v14  ;;  %v9961_v20 = vld [vmem:[#allocation92_spill] sm:$0xff]  ;;  %v9962_v14 = vld [vmem:[#allocation103_spill] sm:$0xff] }
 0x2c1   :  { %1250 = vmatpush.msrb.mxu0 %v9952_v13  ;;  %1270 = vmatpush.msrb.mxu1 %v9953_v27  ;;  %v9963_v13 = vld [vmem:[#allocation93_spill] sm:$0xff]  ;;  %v9964_v27 = vld [vmem:[#allocation95_spill] sm:$0xff] }
 0x2c2   :  { %1290 = vmatpush.msrb.mxu2 %v9954_v23  ;;  %1310 = vmatpush.msrb.mxu3 %v9955_v19  ;;  %v9965_v23 = vld [vmem:[#allocation96_spill] sm:$0xff] }
 0x2c3   :  { %1251 = vmatpush.msrb.mxu0 %v9956_v12  ;;  %1271 = vmatpush.msrb.mxu1 %v9957_v11  ;;  %v9966_v19 = vld [vmem:[#allocation104_spill] sm:$0xff]  ;;  %v9967_v12 = vld [vmem:[#allocation97_spill] sm:$0xff]  ;;  %v9968_v11 = vld [vmem:[#allocation99_spill] sm:$0xff] }
 0x2c4   :  { %1291 = vmatpush.msrb.mxu2 %v9958_v17  ;;  %1311 = vmatpush.msrb.mxu3 %v9959_v25  ;;  %v9969_v17 = vld [vmem:[#allocation100_spill] sm:$0xff]  ;;  %v9970_v25 = vld [vmem:[#allocation105_spill] sm:$0xff] }
 0x2c5   :  { %1252 = vmatpush.msrb.mxu0 %v9960_v24  ;;  %1272 = vmatpush.msrb.mxu1 %v9961_v20  ;;  %v9971_v24 = vld [vmem:[#allocation101_spill] sm:$0xff] }
 0x2c6   :  { %1292 = vmatpush.msrb.mxu2 %v9962_v14  ;;  %1312 = vmatpush.msrb.mxu3 %v9963_v13 }
 0x2c7   :  { %1253 = vmatpush.msrb.mxu0 %v9964_v27  ;;  %1273 = vmatpush.msrb.mxu1 %v9965_v23 }
 0x2c8   :  { %1293 = vmatpush.msrb.mxu2 %v9966_v19  ;;  %1313 = vmatpush.msrb.mxu3 %v9967_v12  ;;  %v7410_v19 = vld [vmem:[%s9088_s6] sm:$0xff] }
 0x2c9   :  { %1254 = vmatpush.msrb.mxu0 %v9968_v11  ;;  %1274 = vmatpush.msrb.mxu1 %v9969_v17  ;;  %9972 = vst [vmem:[#allocation106_spill] sm:$0xff] %v7410_v19 }
 0x2ca   :  { %1294 = vmatpush.msrb.mxu2 %v9970_v25  ;;  %1314 = vmatpush.msrb.mxu3 %v9971_v24  ;;  %v7416_v25 = vld [vmem:[%s9088_s6 + $0x8] sm:$0xff] }
 0x2cb   :  { %9973 = vst [vmem:[#allocation107_spill] sm:$0xff] %v7416_v25 }
 0x304   :  { %v947_v20 = vpop.f32.mrf.mxu0  ;;  %v967_v14 = vpop.f32.mrf.mxu1 }
 0x30b   :  { %v1007_v47 = vpop.f32.mrf.mxu3  ;;  %v987_v17 = vpop.f32.mrf.mxu2 }
 0x30c   :  { %v1027_v13 = vpop.f32.mrf.mxu0  ;;  %v1047_v22 = vpop.f32.mrf.mxu1 }
 0x30d   :  { %v1028_v27 = vadd.f32 %v1027_v13, %v947_v20  ;;  %v1048_v15 = vadd.f32 %v1047_v22, %v967_v14  ;;  %v7422_v14 = vld [vmem:[%s9088_s6 + $0x18] sm:$0xff] }
 0x30e   :  { %9974 = vst [vmem:[#allocation108_spill] sm:$0xff] %v7422_v14 }
 0x30f   :  { %v1090_v11 = vadd.f32 %v7410_v19, %v1028_v27  ;;  %v1091_v24 = vadd.f32 %v7416_v25, %v1048_v15 }
 0x311   :  { %v5378_v12 = vmul.f32 -1.442695, %v1090_v11  ;;  %v5379_v23 = vmul.f32 -1.442695, %v1091_v24  ;;  %v7428_v24 = vld [vmem:[%s9088_s6 + $0x10] sm:$0xff] }
 0x312   :  { %9975 = vst [vmem:[#allocation109_spill] sm:$0xff] %v7428_v24 }
 0x313   :  { %5523 = vpow2.f32 %v5378_v12  ;;  %v1087_v13 = vpop.f32.mrf.mxu3  ;;  %v1067_v25 = vpop.f32.mrf.mxu2 }
 0x314   :  { %5525 = vpow2.f32 %v5379_v23  ;;  %v1088_v22 = vadd.f32 %v1087_v13, %v1007_v47  ;;  %v1068_v12 = vadd.f32 %v1067_v25, %v987_v17 }
 0x316   :  { %v1093_v27 = vadd.f32 %v7422_v14, %v1088_v22  ;;  %v1092_v13 = vadd.f32 %v7428_v24, %v1068_v12 }
 0x318   :  { %v5380_v20 = vmul.f32 -1.442695, %v1093_v27 }
 0x319   :  { %v5524_v19 = vpop.eup %5523 }
 0x31a   :  { %v5526_v16 = vpop.eup %5525  ;;  %v1097_v37 = vadd.f32 1.0, %v5524_v19  ;;  %5527 = vpow2.f32 %v5380_v20 }
 0x31b   :  { %v1116_v15 = vadd.f32 1.0, %v5526_v16 }
 0x31c   :  { %5529 = vrcp.f32 %v1097_v37  ;;  %v1109_v14 = vand.u32 2147483648, %v1097_v37  ;;  %v1107_v25 = vand.u32 2147483647, %v1097_v37  ;;  %vm1103_vm6 = vweird.f32 %v1097_v37 }
 0x31d   :  { %5531 = vrcp.f32 %v1116_v15  ;;  %v1128_v34 = vand.u32 2147483648, %v1116_v15  ;;  %v1126_v21 = vand.u32 2147483647, %v1116_v15  ;;  %vm1122_vm7 = vweird.f32 %v1116_v15 }
 0x31e   :  { %v1110_v12 = vor.u32 1.1754944e-38, %v1109_v14  ;;  %vm1108_vm10 = vcmp.eq.f32.partialorder %v1107_v25, 8.507059e+37  ;;  %v10021_v25 = vld [vmem:[#allocation57_spill] sm:$0xff] }
 0x31f   :  { %vm1127_vm11 = vcmp.eq.f32.partialorder %v1126_v21, 8.507059e+37 }
 0x320   :  { %v5528_v11 = vpop.eup %5527 }
 0x321   :  { %v1136_v23 = vadd.f32 1.0, %v5528_v11 }
 0x322   :  { %v5530_v47 = vpop.eup %5529 }
 0x323   :  { %v5532_v22 = vpop.eup %5531  ;;  %v1099_v27 = vmul.f32 %v5530_v47, %v1097_v37  ;;  %5533 = vrcp.f32 %v1136_v23  ;;  %vm1104_vm4 = vweird.f32 %v5530_v47  ;;  %v1148_v14 = vand.u32 2147483648, %v1136_v23 }
 0x324   :  { %v1118_v19 = vmul.f32 %v5532_v22, %v1116_v15  ;;  %5535 = vtanh.f32 %v1092_v13  ;;  %vm1123_vm5 = vweird.f32 %v5532_v22  ;;  %vm1105_vm8 = vmor %vm1103_vm6, %vm1104_vm4  ;;  %vm1142_vm13 = vweird.f32 %v1136_v23 }
 0x325   :  { %v1100_v20 = vsub.f32 1.0, %v1099_v27  ;;  %vm1124_vm9 = vmor %vm1122_vm7, %vm1123_vm5  ;;  %v1129_v27 = vor.u32 1.1754944e-38, %v1128_v34 }
 0x326   :  { %v1119_v16 = vsub.f32 1.0, %v1118_v19 }
 0x327   :  { %v1101_v17 = vmul.f32 %v5530_v47, %v1100_v20 }
 0x328   :  { %v1120_v11 = vmul.f32 %v5532_v22, %v1119_v16 }
 0x329   :  { %v5534_v35 = vpop.eup %5533  ;;  %v1102_v43 = vadd.f32 %v5530_v47, %v1101_v17 }
 0x32a   :  { %v1121_v24 = vadd.f32 %v5532_v22, %v1120_v11  ;;  %v1138_v28 = vmul.f32 %v5534_v35, %v1136_v23  ;;  %v5536_v13 = vpop.eup %5535  ;;  %vm1143_vm12 = vweird.f32 %v5534_v35  ;;  %v10022_v11 = vld [vmem:[#allocation59_spill] sm:$0xff] }
 0x32b   :  { %v1106_v19 = vsel %vm1105_vm8, %v5530_v47, %v1102_v43  ;;  %v1146_v43 = vand.u32 2147483647, %v1136_v23  ;;  %vm1144_vm14 = vmor %vm1142_vm13, %vm1143_vm12  ;;  %v1149_v47 = vor.u32 1.1754944e-38, %v1148_v14  ;;  %v10019_v23 = vld [vmem:[#allocation56_spill] sm:$0xff] }
 0x32c   :  { %v1111_v26 = vsel %vm1108_vm10, %v1110_v12, %v1106_v19  ;;  %v1125_v20 = vsel %vm1124_vm9, %v5532_v22, %v1121_v24  ;;  %v1139_v18 = vsub.f32 1.0, %v1138_v28  ;;  %v10020_v22 = vld [vmem:[#allocation70_spill] sm:$0xff]  ;;  %v10023_v12 = vld [vmem:[#allocation60_spill] sm:$0xff]  ;;  %v10025_v19 = vld [vmem:[#allocation61_spill] sm:$0xff] }
 0x32d   :  { %v1130_v16 = vsel %vm1127_vm11, %v1129_v27, %v1125_v20  ;;  %v1153_v9 = vmul.f32 %v5536_v13, %v1111_v26  ;;  %vm1147_vm15 = vcmp.eq.f32.partialorder %v1146_v43, 8.507059e+37  ;;  %v10017_v26 = vld [vmem:[#allocation53_spill] sm:$0xff]  ;;  %v10024_v27 = vld [vmem:[#allocation74_spill] sm:$0xff]  ;;  %v10026_v13 = vld [vmem:[#allocation63_spill] sm:$0xff] }
 0x32e   :  { %v1152_v8 = vmul.f32 %v1130_v16, %v7273_v10  ;;  %v1140_v17 = vmul.f32 %v5534_v35, %v1139_v18  ;;  %v5381_v10 = vld [vmem:[%s9083_s1 + $0x20] sm:$0xff]  ;;  %v10016_v18 = vld [vmem:[#allocation66_spill] sm:$0xff]  ;;  %v10027_v20 = vld [vmem:[#allocation64_spill] sm:$0xff] }
 0x32f   :  { %v10028_v16 = vld [vmem:[#allocation78_spill] sm:$0xff]  ;;  %v10031_v14 = vld [vmem:[#allocation68_spill] sm:$0xff] }
 0x330   :  { %v7432_v37 = vadd.f32 %v1153_v9, %v1152_v8  ;;  %v1141_v15 = vadd.f32 %v5534_v35, %v1140_v17  ;;  %v10014_v8 = vld [vmem:[#allocation51_spill] sm:$0xff]  ;;  %v10015_v9 = vld [vmem:[#allocation52_spill] sm:$0xff]  ;;  %v10029_v17 = vld [vmem:[#allocation65_spill] sm:$0xff] }
 0x331   :  { %v10032_v43 = vld [vmem:[#allocation82_spill] sm:$0xff] }
 0x332   :  { %5537 = vtanh.f32 %v7432_v37  ;;  %v1145_v34 = vsel %vm1144_vm14, %v5534_v35, %v1141_v15  ;;  %v10018_v35 = vld [vmem:[#allocation55_spill] sm:$0xff] }
 0x333   :  { %v1150_v28 = vsel %vm1147_vm15, %v1149_v47, %v1145_v34  ;;  %v10030_v15 = vld [vmem:[#allocation67_spill] sm:$0xff]  ;;  %v10033_v34 = vld [vmem:[#allocation69_spill] sm:$0xff] }
 0x334   :  { %v10034_v47 = vld [vmem:[#allocation71_spill] sm:$0xff] }
 0x338   :  { %v5538_v21 = vpop.eup %5537 }
 0x339   :  { %v1156_v24 = vmul.f32 %v5538_v21, %v1150_v28  ;;  %v10035_v21 = vld [vmem:[#allocation72_spill] sm:$0xff]  ;;  %v10036_v28 = vld [vmem:[#allocation86_spill] sm:$0xff] }
 0x33b   :  { %1175 = vmatmul.f32.vlgmr.msra.gmra.mxu0 %v1156_v24  ;;  %1195 = vmatmul.f32.vlgmr.msra.gmra.mxu1 %v1156_v24 }
 0x33c   :  { %1215 = vmatmul.f32.vlgmr.msra.gmra.mxu2 %v1156_v24  ;;  %1235 = vmatmul.f32.vlgmr.msra.gmra.mxu3 %v1156_v24  ;;  %v10037_v24 = vld [vmem:[#allocation73_spill] sm:$0xff] }
 0x33d   :  { %1388 = vmatpush.msra.mxu0 %v6881_v63  ;;  %1408 = vmatpush.msra.mxu1 %v6884_v29  ;;  %v9976_v63 = vld [vmem:[#allocation23_spill] sm:$0xff]  ;;  %v9977_v29 = vld [vmem:[#allocation16_spill] sm:$0xff] }
 0x33e   :  { %1428 = vmatpush.msra.mxu2 %v6887_v30  ;;  %1448 = vmatpush.msra.mxu3 %v6890_v31  ;;  %v9978_v30 = vld [vmem:[#allocation17_spill] sm:$0xff]  ;;  %v9979_v31 = vld [vmem:[#allocation18_spill] sm:$0xff] }
 0x33f   :  { %1389 = vmatpush.msra.mxu0 %v6893_v32  ;;  %1409 = vmatpush.msra.mxu1 %v6896_v33  ;;  %v9980_v32 = vld [vmem:[#allocation27_spill] sm:$0xff] }
 0x340   :  { %1429 = vmatpush.msra.mxu2 %v6902_v38  ;;  %1449 = vmatpush.msra.mxu3 %v6905_v39  ;;  %v9981_v33 = vld [vmem:[#allocation19_spill] sm:$0xff]  ;;  %v9982_v38 = vld [vmem:[#allocation20_spill] sm:$0xff]  ;;  %v9983_v39 = vld [vmem:[#allocation21_spill] sm:$0xff] }
 0x341   :  { %1390 = vmatpush.msra.mxu0 %v6908_v40  ;;  %1410 = vmatpush.msra.mxu1 %v6911_v41  ;;  %v9984_v40 = vld [vmem:[#allocation31_spill] sm:$0xff]  ;;  %v9985_v41 = vld [vmem:[#allocation22_spill] sm:$0xff] }
 0x342   :  { %1430 = vmatpush.msra.mxu2 %v6914_v45  ;;  %1450 = vmatpush.msra.mxu3 %v6917_v50  ;;  %v9986_v45 = vld [vmem:[#allocation24_spill] sm:$0xff]  ;;  %v9987_v50 = vld [vmem:[#allocation25_spill] sm:$0xff] }
 0x343   :  { %1255 = vmatmul.f32.vlgmr.msrb.gmra.mxu0 %v5381_v10  ;;  %1275 = vmatmul.f32.vlgmr.msrb.gmra.mxu1 %v5381_v10 }
 0x344   :  { %1295 = vmatmul.f32.vlgmr.msrb.gmra.mxu2 %v5381_v10  ;;  %1315 = vmatmul.f32.vlgmr.msrb.gmra.mxu3 %v5381_v10  ;;  %v10038_v10 = vld [vmem:[#allocation75_spill] sm:$0xff] }
 0x345   :  { %1391 = vmatpush.msra.mxu0 %v6920_v46  ;;  %1411 = vmatpush.msra.mxu1 %v6923_v49  ;;  %v9988_v46 = vld [vmem:[#allocation35_spill] sm:$0xff]  ;;  %v9989_v49 = vld [vmem:[#allocation26_spill] sm:$0xff] }
 0x346   :  { %1431 = vmatpush.msra.mxu2 %v6926_v56  ;;  %1451 = vmatpush.msra.mxu3 %v6929_v52  ;;  %v9990_v56 = vld [vmem:[#allocation28_spill] sm:$0xff]  ;;  %v9991_v52 = vld [vmem:[#allocation29_spill] sm:$0xff] }
 0x347   :  { %1392 = vmatpush.msra.mxu0 %v6932_v62  ;;  %1412 = vmatpush.msra.mxu1 %v6935_v55  ;;  %v9992_v62 = vld [vmem:[#allocation42_spill] sm:$0xff] }
 0x348   :  { %1432 = vmatpush.msra.mxu2 %v6938_v48  ;;  %1452 = vmatpush.msra.mxu3 %v6941_v57  ;;  %v9993_v55 = vld [vmem:[#allocation30_spill] sm:$0xff]  ;;  %v9994_v48 = vld [vmem:[#allocation32_spill] sm:$0xff]  ;;  %v9995_v57 = vld [vmem:[#allocation33_spill] sm:$0xff] }
 0x349   :  { %1393 = vmatpush.msra.mxu0 %v6944_v51  ;;  %1413 = vmatpush.msra.mxu1 %v6947_v58  ;;  %v9996_v51 = vld [vmem:[#allocation46_spill] sm:$0xff] }
 0x34a   :  { %1433 = vmatpush.msra.mxu2 %v6950_v60  ;;  %1453 = vmatpush.msra.mxu3 %v6953_v44  ;;  %v9997_v58 = vld [vmem:[#allocation34_spill] sm:$0xff]  ;;  %v9998_v60 = vld [vmem:[#allocation36_spill] sm:$0xff]  ;;  %v9999_v44 = vld [vmem:[#allocation37_spill] sm:$0xff] }
 0x34b   :  { %1394 = vmatpush.msra.mxu0 %v6956_v59  ;;  %1414 = vmatpush.msra.mxu1 %v6959_v53  ;;  %v10000_v59 = vld [vmem:[#allocation50_spill] sm:$0xff] }
 0x34c   :  { %1434 = vmatpush.msra.mxu2 %v6962_v54  ;;  %1454 = vmatpush.msra.mxu3 %v6965_v42  ;;  %v10001_v53 = vld [vmem:[#allocation38_spill] sm:$0xff]  ;;  %v10002_v54 = vld [vmem:[#allocation39_spill] sm:$0xff]  ;;  %v10003_v42 = vld [vmem:[#allocation40_spill] sm:$0xff] }
 0x34d   :  { %1395 = vmatpush.msra.mxu0 %v6968_v61  ;;  %1415 = vmatpush.msra.mxu1 %v6971_v36  ;;  %v10004_v61 = vld [vmem:[#allocation54_spill] sm:$0xff]  ;;  %v10005_v36 = vld [vmem:[#allocation41_spill] sm:$0xff] }
 0x34e   :  { %1435 = vmatpush.msra.mxu2 %v6974_v0  ;;  %1455 = vmatpush.msra.mxu3 %v6977_v1  ;;  %v10006_v0 = vld [vmem:[#allocation43_spill] sm:$0xff]  ;;  %v10007_v1 = vld [vmem:[#allocation44_spill] sm:$0xff] }
 0x34f   :  { %1396 = vmatpush.msra.mxu0 %v6980_v2  ;;  %1416 = vmatpush.msra.mxu1 %v6983_v3  ;;  %v10008_v2 = vld [vmem:[#allocation58_spill] sm:$0xff]  ;;  %v10009_v3 = vld [vmem:[#allocation45_spill] sm:$0xff] }
 0x350   :  { %1436 = vmatpush.msra.mxu2 %v6986_v4  ;;  %1456 = vmatpush.msra.mxu3 %v6989_v5  ;;  %v10010_v4 = vld [vmem:[#allocation47_spill] sm:$0xff]  ;;  %v10011_v5 = vld [vmem:[#allocation48_spill] sm:$0xff] }
 0x351   :  { %1397 = vmatpush.msra.mxu0 %v6992_v6  ;;  %1417 = vmatpush.msra.mxu1 %v6995_v7  ;;  %v10012_v6 = vld [vmem:[#allocation62_spill] sm:$0xff]  ;;  %v10013_v7 = vld [vmem:[#allocation49_spill] sm:$0xff] }
 0x352   :  { %1437 = vmatpush.msra.mxu2 %v9976_v63  ;;  %1457 = vmatpush.msra.mxu3 %v9977_v29  ;;  %v10039_v63 = vld [vmem:[#allocation76_spill] sm:$0xff]  ;;  %v10040_v29 = vld [vmem:[#allocation90_spill] sm:$0xff] }
 0x353   :  { %1398 = vmatpush.msra.mxu0 %v9978_v30  ;;  %1418 = vmatpush.msra.mxu1 %v9979_v31  ;;  %v10041_v30 = vld [vmem:[#allocation77_spill] sm:$0xff]  ;;  %v10042_v31 = vld [vmem:[#allocation79_spill] sm:$0xff] }
 0x354   :  { %1438 = vmatpush.msra.mxu2 %v9980_v32  ;;  %1458 = vmatpush.msra.mxu3 %v9981_v33  ;;  %v10043_v32 = vld [vmem:[#allocation80_spill] sm:$0xff]  ;;  %v10044_v33 = vld [vmem:[#allocation94_spill] sm:$0xff] }
 0x355   :  { %1399 = vmatpush.msra.mxu0 %v9982_v38  ;;  %1419 = vmatpush.msra.mxu1 %v9983_v39  ;;  %v10045_v38 = vld [vmem:[#allocation81_spill] sm:$0xff]  ;;  %v10046_v39 = vld [vmem:[#allocation83_spill] sm:$0xff] }
 0x356   :  { %1439 = vmatpush.msra.mxu2 %v9984_v40  ;;  %1459 = vmatpush.msra.mxu3 %v9985_v41  ;;  %v10047_v40 = vld [vmem:[#allocation84_spill] sm:$0xff]  ;;  %v10048_v41 = vld [vmem:[#allocation98_spill] sm:$0xff] }
 0x357   :  { %1400 = vmatpush.msra.mxu0 %v9986_v45  ;;  %1420 = vmatpush.msra.mxu1 %v9987_v50  ;;  %v10049_v45 = vld [vmem:[#allocation85_spill] sm:$0xff]  ;;  %v10050_v50 = vld [vmem:[#allocation87_spill] sm:$0xff] }
 0x358   :  { %1440 = vmatpush.msra.mxu2 %v9988_v46  ;;  %1460 = vmatpush.msra.mxu3 %v9989_v49  ;;  %v10051_v46 = vld [vmem:[#allocation88_spill] sm:$0xff]  ;;  %v10052_v49 = vld [vmem:[#allocation102_spill] sm:$0xff] }
 0x359   :  { %1401 = vmatpush.msra.mxu0 %v9990_v56  ;;  %1421 = vmatpush.msra.mxu1 %v9991_v52  ;;  %v10053_v56 = vld [vmem:[#allocation89_spill] sm:$0xff]  ;;  %v10054_v52 = vld [vmem:[#allocation91_spill] sm:$0xff] }
 0x35a   :  { %1441 = vmatpush.msra.mxu2 %v9992_v62  ;;  %1461 = vmatpush.msra.mxu3 %v9993_v55  ;;  %v10055_v62 = vld [vmem:[#allocation92_spill] sm:$0xff]  ;;  %v10056_v55 = vld [vmem:[#allocation103_spill] sm:$0xff] }
 0x35b   :  { %1402 = vmatpush.msra.mxu0 %v9994_v48  ;;  %1422 = vmatpush.msra.mxu1 %v9995_v57  ;;  %v10057_v48 = vld [vmem:[#allocation93_spill] sm:$0xff]  ;;  %v10058_v57 = vld [vmem:[#allocation95_spill] sm:$0xff] }
 0x35c   :  { %1442 = vmatpush.msra.mxu2 %v9996_v51  ;;  %1462 = vmatpush.msra.mxu3 %v9997_v58  ;;  %v10059_v51 = vld [vmem:[#allocation96_spill] sm:$0xff] }
 0x35d   :  { %1403 = vmatpush.msra.mxu0 %v9998_v60  ;;  %1423 = vmatpush.msra.mxu1 %v9999_v44  ;;  %v10060_v58 = vld [vmem:[#allocation104_spill] sm:$0xff]  ;;  %v10061_v60 = vld [vmem:[#allocation97_spill] sm:$0xff]  ;;  %v10062_v44 = vld [vmem:[#allocation99_spill] sm:$0xff] }
 0x35e   :  { %1443 = vmatpush.msra.mxu2 %v10000_v59  ;;  %1463 = vmatpush.msra.mxu3 %v10001_v53  ;;  %v10063_v59 = vld [vmem:[#allocation100_spill] sm:$0xff]  ;;  %v10064_v53 = vld [vmem:[#allocation105_spill] sm:$0xff] }
 0x35f   :  { %1468 = vmatpush.msrb.mxu0 %v10002_v54  ;;  %1488 = vmatpush.msrb.mxu1 %v10003_v42  ;;  %v10065_v54 = vld [vmem:[#allocation101_spill] sm:$0xff] }
 0x360   :  { %1508 = vmatpush.msrb.mxu2 %v10004_v61  ;;  %1528 = vmatpush.msrb.mxu3 %v10005_v36 }
 0x361   :  { %1469 = vmatpush.msrb.mxu0 %v10006_v0  ;;  %1489 = vmatpush.msrb.mxu1 %v10007_v1 }
 0x362   :  { %1509 = vmatpush.msrb.mxu2 %v10008_v2  ;;  %1529 = vmatpush.msrb.mxu3 %v10009_v3 }
 0x363   :  { %1470 = vmatpush.msrb.mxu0 %v10010_v4  ;;  %1490 = vmatpush.msrb.mxu1 %v10011_v5  ;;  %v10066_v4 = vld [vmem:[#allocation106_spill] sm:$0xff] }
 0x364   :  { %1510 = vmatpush.msrb.mxu2 %v10012_v6  ;;  %1530 = vmatpush.msrb.mxu3 %v10013_v7  ;;  %v10067_v6 = vld [vmem:[#allocation107_spill] sm:$0xff] }
 0x365   :  { %1471 = vmatpush.msrb.mxu0 %v10014_v8  ;;  %1491 = vmatpush.msrb.mxu1 %v10015_v9 }
 0x366   :  { %1511 = vmatpush.msrb.mxu2 %v10016_v18  ;;  %1531 = vmatpush.msrb.mxu3 %v10017_v26 }
 0x367   :  { %1472 = vmatpush.msrb.mxu0 %v10018_v35  ;;  %1492 = vmatpush.msrb.mxu1 %v10019_v23  ;;  %v10068_v23 = vld [vmem:[#allocation108_spill] sm:$0xff] }
 0x368   :  { %1512 = vmatpush.msrb.mxu2 %v10020_v22  ;;  %1532 = vmatpush.msrb.mxu3 %v10021_v25 }
 0x369   :  { %1473 = vmatpush.msrb.mxu0 %v10022_v11  ;;  %1493 = vmatpush.msrb.mxu1 %v10023_v12 }
 0x36a   :  { %1513 = vmatpush.msrb.mxu2 %v10024_v27  ;;  %1533 = vmatpush.msrb.mxu3 %v10025_v19 }
 0x36b   :  { %1474 = vmatpush.msrb.mxu0 %v10026_v13  ;;  %1494 = vmatpush.msrb.mxu1 %v10027_v20 }
 0x36c   :  { %1514 = vmatpush.msrb.mxu2 %v10028_v16  ;;  %1534 = vmatpush.msrb.mxu3 %v10029_v17 }
 0x36d   :  { %1475 = vmatpush.msrb.mxu0 %v10030_v15  ;;  %1495 = vmatpush.msrb.mxu1 %v10031_v14  ;;  %v10069_v14 = vld [vmem:[#allocation109_spill] sm:$0xff] }
 0x36e   :  { %1515 = vmatpush.msrb.mxu2 %v10032_v43  ;;  %1535 = vmatpush.msrb.mxu3 %v10033_v34 }
 0x36f   :  { %1476 = vmatpush.msrb.mxu0 %v10034_v47  ;;  %1496 = vmatpush.msrb.mxu1 %v10035_v21 }
 0x370   :  { %1516 = vmatpush.msrb.mxu2 %v10036_v28  ;;  %1536 = vmatpush.msrb.mxu3 %v10037_v24 }
 0x371   :  { %1477 = vmatpush.msrb.mxu0 %v10038_v10  ;;  %1497 = vmatpush.msrb.mxu1 %v10039_v63 }
 0x372   :  { %1517 = vmatpush.msrb.mxu2 %v10040_v29  ;;  %1537 = vmatpush.msrb.mxu3 %v10041_v30 }
 0x373   :  { %1478 = vmatpush.msrb.mxu0 %v10042_v31  ;;  %1498 = vmatpush.msrb.mxu1 %v10043_v32 }
 0x374   :  { %1518 = vmatpush.msrb.mxu2 %v10044_v33  ;;  %1538 = vmatpush.msrb.mxu3 %v10045_v38 }
 0x375   :  { %1479 = vmatpush.msrb.mxu0 %v10046_v39  ;;  %1499 = vmatpush.msrb.mxu1 %v10047_v40 }
 0x376   :  { %1519 = vmatpush.msrb.mxu2 %v10048_v41  ;;  %1539 = vmatpush.msrb.mxu3 %v10049_v45 }
 0x377   :  { %1480 = vmatpush.msrb.mxu0 %v10050_v50  ;;  %1500 = vmatpush.msrb.mxu1 %v10051_v46 }
 0x378   :  { %1520 = vmatpush.msrb.mxu2 %v10052_v49  ;;  %1540 = vmatpush.msrb.mxu3 %v10053_v56 }
 0x379   :  { %1481 = vmatpush.msrb.mxu0 %v10054_v52  ;;  %1501 = vmatpush.msrb.mxu1 %v10055_v62 }
 0x37a   :  { %1521 = vmatpush.msrb.mxu2 %v10056_v55  ;;  %1541 = vmatpush.msrb.mxu3 %v10057_v48 }
 0x37b   :  { %1482 = vmatpush.msrb.mxu0 %v10058_v57  ;;  %1502 = vmatpush.msrb.mxu1 %v10059_v51 }
 0x37c   :  { %1522 = vmatpush.msrb.mxu2 %v10060_v58  ;;  %1542 = vmatpush.msrb.mxu3 %v10061_v60 }
 0x37d   :  { %1483 = vmatpush.msrb.mxu0 %v10062_v44  ;;  %1503 = vmatpush.msrb.mxu1 %v10063_v59 }
 0x37e   :  { %1523 = vmatpush.msrb.mxu2 %v10064_v53  ;;  %1543 = vmatpush.msrb.mxu3 %v10065_v54 }
 0x3b8   :  { %v1176_v42 = vpop.f32.mrf.mxu0  ;;  %v1196_v61 = vpop.f32.mrf.mxu1 }
 0x3bf   :  { %v1236_v36 = vpop.f32.mrf.mxu3  ;;  %v1216_v8 = vpop.f32.mrf.mxu2 }
 0x3c0   :  { %v1256_v0 = vpop.f32.mrf.mxu0  ;;  %v1276_v1 = vpop.f32.mrf.mxu1 }
 0x3c1   :  { %v1257_v2 = vadd.f32 %v1256_v0, %v1176_v42  ;;  %v1277_v3 = vadd.f32 %v1276_v1, %v1196_v61  ;;  %v7580_v0 = vld [vmem:[#allocation7 + $0x1f0] sm:$0xff]  ;;  %v7583_v1 = vld [vmem:[#allocation7 + $0x1f8] sm:$0xff] }
 0x3c3   :  { %v1319_v5 = vadd.f32 %v10066_v4, %v1257_v2  ;;  %v1320_v7 = vadd.f32 %v10067_v6, %v1277_v3  ;;  %v7586_v2 = vld [vmem:[#allocation7 + $0x1c0] sm:$0xff]  ;;  %v7589_v3 = vld [vmem:[#allocation7 + $0x1c8] sm:$0xff] }
 0x3c5   :  { %v5382_v9 = vmul.f32 -1.442695, %v1319_v5  ;;  %v5383_v18 = vmul.f32 -1.442695, %v1320_v7  ;;  %v5385_v5 = vld [vmem:[%s9083_s1 + $0x28] sm:$0xff]  ;;  %v7595_v7 = vld [vmem:[#allocation7 + $0x1d0] sm:$0xff] }
 0x3c7   :  { %5539 = vpow2.f32 %v5382_v9  ;;  %v1316_v26 = vpop.f32.mrf.mxu3  ;;  %v1296_v13 = vpop.f32.mrf.mxu2  ;;  %v7601_v9 = vld [vmem:[#allocation7 + $0x1a0] sm:$0xff] }
 0x3c8   :  { %5541 = vpow2.f32 %v5383_v18  ;;  %v1317_v35 = vadd.f32 %v1316_v26, %v1236_v36  ;;  %v1297_v20 = vadd.f32 %v1296_v13, %v1216_v8  ;;  %v7577_v36 = vld [vmem:[#allocation7 + $0x1e8] sm:$0xff]  ;;  %v7598_v8 = vld [vmem:[#allocation7 + $0x1d8] sm:$0xff]  ;;  %v7607_v26 = vld [vmem:[#allocation7 + $0x1b0] sm:$0xff] }
 0x3c9   :  { %v7604_v18 = vld [vmem:[#allocation7 + $0x1a8] sm:$0xff]  ;;  %v7631_v13 = vld [vmem:[#allocation7 + $0x170] sm:$0xff] }
 0x3ca   :  { %v1322_v22 = vadd.f32 %v10068_v23, %v1317_v35  ;;  %v1321_v43 = vadd.f32 %v10069_v14, %v1297_v20  ;;  %v7610_v35 = vld [vmem:[#allocation7 + $0x1b8] sm:$0xff] }
 0x3cb   :  { %v7634_v20 = vld [vmem:[#allocation7 + $0x178] sm:$0xff] }
 0x3cc   :  { %v5384_v25 = vmul.f32 -1.442695, %v1322_v22  ;;  %v7613_v22 = vld [vmem:[#allocation7 + $0x180] sm:$0xff] }
 0x3cd   :  { %v5540_v11 = vpop.eup %5539 }
 0x3ce   :  { %v5542_v12 = vpop.eup %5541  ;;  %v1326_v27 = vadd.f32 1.0, %v5540_v11  ;;  %5543 = vpow2.f32 %v5384_v25  ;;  %v7616_v25 = vld [vmem:[#allocation7 + $0x188] sm:$0xff]  ;;  %v7619_v11 = vld [vmem:[#allocation7 + $0x190] sm:$0xff] }
 0x3cf   :  { %v1345_v19 = vadd.f32 1.0, %v5542_v12  ;;  %v7622_v12 = vld [vmem:[#allocation7 + $0x198] sm:$0xff] }
 0x3d0   :  { %5545 = vrcp.f32 %v1326_v27  ;;  %v1338_v10 = vand.u32 2147483648, %v1326_v27  ;;  %v1336_v30 = vand.u32 2147483647, %v1326_v27  ;;  %vm1332_vm2 = vweird.f32 %v1326_v27 }
 0x3d1   :  { %5547 = vrcp.f32 %v1345_v19  ;;  %v1357_v63 = vand.u32 2147483648, %v1345_v19  ;;  %v1355_v32 = vand.u32 2147483647, %v1345_v19  ;;  %vm1351_vm3 = vweird.f32 %v1345_v19 }
 0x3d2   :  { %v1339_v39 = vor.u32 1.1754944e-38, %v1338_v10  ;;  %vm1337_vm6 = vcmp.eq.f32.partialorder %v1336_v30, 8.507059e+37  ;;  %v7664_v10 = vld [vmem:[#allocation7 + $0x108] sm:$0xff]  ;;  %v7673_v30 = vld [vmem:[#allocation7 + $0xe0] sm:$0xff] }
 0x3d3   :  { %v1358_v45 = vor.u32 1.1754944e-38, %v1357_v63  ;;  %vm1356_vm7 = vcmp.eq.f32.partialorder %v1355_v32, 8.507059e+37  ;;  %v7667_v63 = vld [vmem:[#allocation7 + $0x110] sm:$0xff] }
 0x3d4   :  { %v5544_v16 = vpop.eup %5543  ;;  %v7679_v32 = vld [vmem:[#allocation7 + $0xf0] sm:$0xff] }
 0x3d5   :  { %v1365_v17 = vadd.f32 1.0, %v5544_v16  ;;  %v7637_v16 = vld [vmem:[#allocation7 + $0x140] sm:$0xff] }
 0x3d6   :  { %v5546_v15 = vpop.eup %5545 }
 0x3d7   :  { %v5548_v34 = vpop.eup %5547  ;;  %v1328_v47 = vmul.f32 %v5546_v15, %v1326_v27  ;;  %5549 = vrcp.f32 %v1365_v17  ;;  %vm1333_vm0 = vweird.f32 %v5546_v15  ;;  %v1377_v60 = vand.u32 2147483648, %v1365_v17  ;;  %v7625_v27 = vld [vmem:[#allocation7 + $0x160] sm:$0xff] }
 0x3d8   :  { %v1347_v21 = vmul.f32 %v5548_v34, %v1345_v19  ;;  %5551 = vtanh.f32 %v1321_v43  ;;  %vm1352_vm1 = vweird.f32 %v5548_v34  ;;  %vm1334_vm4 = vmor %vm1332_vm2, %vm1333_vm0  ;;  %vm1371_vm9 = vweird.f32 %v1365_v17  ;;  %v7628_v19 = vld [vmem:[#allocation7 + $0x168] sm:$0xff]  ;;  %v7646_v43 = vld [vmem:[#allocation7 + $0x158] sm:$0xff] }
 0x3d9   :  { %v1329_v28 = vsub.f32 1.0, %v1328_v47  ;;  %vm1353_vm5 = vmor %vm1351_vm3, %vm1352_vm1  ;;  %v1375_v44 = vand.u32 2147483647, %v1365_v17  ;;  %v1378_v53 = vor.u32 1.1754944e-38, %v1377_v60  ;;  %v7652_v47 = vld [vmem:[#allocation7 + $0x128] sm:$0xff]  ;;  %v7730_v60 = vld [vmem:[#allocation7 + $0x78] sm:$0xff] }
 0x3da   :  { %v1348_v24 = vsub.f32 1.0, %v1347_v21  ;;  %v7655_v21 = vld [vmem:[#allocation7 + $0x130] sm:$0xff]  ;;  %10083 = vst [vmem:[#allocation26_spill] sm:$0xff] %v7730_v60 }
 0x3db   :  { %v1330_v29 = vmul.f32 %v5546_v15, %v1329_v28  ;;  %vm1376_vm11 = vcmp.eq.f32.partialorder %v1375_v44, 8.507059e+37  ;;  %v7658_v28 = vld [vmem:[#allocation7 + $0x138] sm:$0xff]  ;;  %v7733_v44 = vld [vmem:[#allocation7 + $0x40] sm:$0xff] }
 0x3dc   :  { %v1349_v31 = vmul.f32 %v5548_v34, %v1348_v24  ;;  %v7661_v24 = vld [vmem:[#allocation7 + $0x100] sm:$0xff]  ;;  %10084 = vst [vmem:[#allocation28_spill] sm:$0xff] %v7733_v44 }
 0x3dd   :  { %v5550_v33 = vpop.eup %5549  ;;  %v1331_v38 = vadd.f32 %v5546_v15, %v1330_v29  ;;  %v7670_v29 = vld [vmem:[#allocation7 + $0x118] sm:$0xff] }
 0x3de   :  { %v1350_v40 = vadd.f32 %v5548_v34, %v1349_v31  ;;  %v1367_v41 = vmul.f32 %v5550_v33, %v1365_v17  ;;  %v5552_v46 = vpop.eup %5551  ;;  %vm1372_vm8 = vweird.f32 %v5550_v33  ;;  %v7640_v17 = vld [vmem:[#allocation7 + $0x148] sm:$0xff] }
 0x3df   :  { %v1335_v50 = vsel %vm1334_vm4, %v5546_v15, %v1331_v38  ;;  %vm1373_vm10 = vmor %vm1371_vm9, %vm1372_vm8  ;;  %v7643_v15 = vld [vmem:[#allocation7 + $0x150] sm:$0xff]  ;;  %v7676_v31 = vld [vmem:[#allocation7 + $0xe8] sm:$0xff] }
 0x3e0   :  { %v1340_v49 = vsel %vm1337_vm6, %v1339_v39, %v1335_v50  ;;  %v1354_v56 = vsel %vm1353_vm5, %v5548_v34, %v1350_v40  ;;  %v1368_v52 = vsub.f32 1.0, %v1367_v41  ;;  %v7649_v34 = vld [vmem:[#allocation7 + $0x120] sm:$0xff]  ;;  %v7688_v39 = vld [vmem:[#allocation7 + $0xc8] sm:$0xff]  ;;  %v7691_v40 = vld [vmem:[#allocation7 + $0xd0] sm:$0xff] }
 0x3e1   :  { %v1359_v62 = vsel %vm1356_vm7, %v1358_v45, %v1354_v56  ;;  %v1382_v55 = vmul.f32 %v5552_v46, %v1340_v49  ;;  %v7685_v38 = vld [vmem:[#allocation7 + $0xc0] sm:$0xff]  ;;  %10070 = vst [vmem:[#allocation23_spill] sm:$0xff] %v7691_v40  ;;  %v7694_v41 = vld [vmem:[#allocation7 + $0xd8] sm:$0xff]  ;;  %v7700_v50 = vld [vmem:[#allocation7 + $0xa8] sm:$0xff] }
 0x3e2   :  { %v1381_v48 = vmul.f32 %v1359_v62, %v7432_v37  ;;  %v1369_v57 = vmul.f32 %v5550_v33, %v1368_v52  ;;  %v7574_v37 = vld [vmem:[#allocation7 + $0x1e0] sm:$0xff]  ;;  %10071 = vst [vmem:[#allocation16_spill] sm:$0xff] %v7694_v41  ;;  %v7703_v46 = vld [vmem:[#allocation7 + $0xb0] sm:$0xff]  ;;  %v7706_v49 = vld [vmem:[#allocation7 + $0xb8] sm:$0xff] }
 0x3e3   :  { %v7697_v45 = vld [vmem:[#allocation7 + $0xa0] sm:$0xff]  ;;  %10073 = vst [vmem:[#allocation18_spill] sm:$0xff] %v7700_v50  ;;  %v7712_v52 = vld [vmem:[#allocation7 + $0x88] sm:$0xff]  ;;  %v7715_v62 = vld [vmem:[#allocation7 + $0x90] sm:$0xff] }
 0x3e4   :  { %v7571_v51 = vadd.f32 %v1382_v55, %v1381_v48  ;;  %v1370_v58 = vadd.f32 %v5550_v33, %v1369_v57  ;;  %10072 = vst [vmem:[#allocation17_spill] sm:$0xff] %v7697_v45  ;;  %v7709_v56 = vld [vmem:[#allocation7 + $0x80] sm:$0xff]  ;;  %v7718_v55 = vld [vmem:[#allocation7 + $0x98] sm:$0xff]  ;;  %v7724_v57 = vld [vmem:[#allocation7 + $0x68] sm:$0xff] }
 0x3e5   :  { %10074 = vst [vmem:[#allocation27_spill] sm:$0xff] %v7703_v46  ;;  %v7721_v48 = vld [vmem:[#allocation7 + $0x60] sm:$0xff] }
 0x3e6   :  { %5553 = vtanh.f32 %v7571_v51  ;;  %v1374_v59 = vsel %vm1373_vm10, %v5550_v33, %v1370_v58  ;;  %v7682_v33 = vld [vmem:[#allocation7 + $0xf8] sm:$0xff]  ;;  %10075 = vst [vmem:[#allocation19_spill] sm:$0xff] %v7706_v49  ;;  %v7727_v58 = vld [vmem:[#allocation7 + $0x70] sm:$0xff] }
 0x3e7   :  { %v1379_v42 = vsel %vm1376_vm11, %v1378_v53, %v1374_v59  ;;  %10076 = vst [vmem:[#allocation20_spill] sm:$0xff] %v7709_v56  ;;  %v7736_v59 = vld [vmem:[#allocation7 + $0x48] sm:$0xff]  ;;  %v7739_v53 = vld [vmem:[#allocation7 + $0x50] sm:$0xff] }
 0x3e8   :  { %10077 = vst [vmem:[#allocation21_spill] sm:$0xff] %v7712_v52 }
 0x3e9   :  { %10078 = vst [vmem:[#allocation31_spill] sm:$0xff] %v7715_v62 }
 0x3ea   :  { %10079 = vst [vmem:[#allocation22_spill] sm:$0xff] %v7718_v55 }
 0x3eb   :  { %10080 = vst [vmem:[#allocation24_spill] sm:$0xff] %v7721_v48 }
 0x3ec   :  { %v5554_v54 = vpop.eup %5553  ;;  %10081 = vst [vmem:[#allocation25_spill] sm:$0xff] %v7724_v57 }
 0x3ed   :  { %v1385_v61 = vmul.f32 %v5554_v54, %v1379_v42  ;;  %10082 = vst [vmem:[#allocation35_spill] sm:$0xff] %v7727_v58  ;;  %v7742_v54 = vld [vmem:[#allocation7 + $0x58] sm:$0xff]  ;;  %v7745_v42 = vld [vmem:[#allocation7 + $0x20] sm:$0xff] }
 0x3ee   :  { %10085 = vst [vmem:[#allocation29_spill] sm:$0xff] %v7736_v59 }
 0x3ef   :  { %1404 = vmatmul.f32.vlgmr.msra.gmra.mxu0 %v1385_v61  ;;  %1424 = vmatmul.f32.vlgmr.msra.gmra.mxu1 %v1385_v61  ;;  %10086 = vst [vmem:[#allocation42_spill] sm:$0xff] %v7739_v53 }
 0x3f0   :  { %1444 = vmatmul.f32.vlgmr.msra.gmra.mxu2 %v1385_v61  ;;  %1464 = vmatmul.f32.vlgmr.msra.gmra.mxu3 %v1385_v61  ;;  %10087 = vst [vmem:[#allocation30_spill] sm:$0xff] %v7742_v54  ;;  %v7748_v61 = vld [vmem:[#allocation7 + $0x28] sm:$0xff] }
 0x3f1   :  { %1617 = vmatpush.msra.mxu0 %v7574_v37  ;;  %1637 = vmatpush.msra.mxu1 %v7577_v36  ;;  %10088 = vst [vmem:[#allocation32_spill] sm:$0xff] %v7745_v42 }
 0x3f2   :  { %1657 = vmatpush.msra.mxu2 %v7580_v0  ;;  %1677 = vmatpush.msra.mxu3 %v7583_v1  ;;  %10089 = vst [vmem:[#allocation33_spill] sm:$0xff] %v7748_v61 }
 0x3f3   :  { %1618 = vmatpush.msra.mxu0 %v7586_v2  ;;  %1638 = vmatpush.msra.mxu1 %v7589_v3 }
 0x3f4   :  { %1658 = vmatpush.msra.mxu2 %v7595_v7  ;;  %1678 = vmatpush.msra.mxu3 %v7598_v8 }
 0x3f5   :  { %1619 = vmatpush.msra.mxu0 %v7601_v9  ;;  %1639 = vmatpush.msra.mxu1 %v7604_v18 }
 0x3f6   :  { %1659 = vmatpush.msra.mxu2 %v7607_v26  ;;  %1679 = vmatpush.msra.mxu3 %v7610_v35 }
 0x3f7   :  { %1484 = vmatmul.f32.vlgmr.msrb.gmra.mxu0 %v5385_v5  ;;  %1504 = vmatmul.f32.vlgmr.msrb.gmra.mxu1 %v5385_v5 }
 0x3f8   :  { %1524 = vmatmul.f32.vlgmr.msrb.gmra.mxu2 %v5385_v5  ;;  %1544 = vmatmul.f32.vlgmr.msrb.gmra.mxu3 %v5385_v5  ;;  %v7751_v5 = vld [vmem:[#allocation7 + $0x30] sm:$0xff] }
 0x3f9   :  { %1620 = vmatpush.msra.mxu0 %v7613_v22  ;;  %1640 = vmatpush.msra.mxu1 %v7616_v25  ;;  %10090 = vst [vmem:[#allocation46_spill] sm:$0xff] %v7751_v5 }
 0x3fa   :  { %1660 = vmatpush.msra.mxu2 %v7619_v11  ;;  %1680 = vmatpush.msra.mxu3 %v7622_v12 }
 0x3fb   :  { %1621 = vmatpush.msra.mxu0 %v7625_v27  ;;  %1641 = vmatpush.msra.mxu1 %v7628_v19 }
 0x3fc   :  { %1661 = vmatpush.msra.mxu2 %v7631_v13  ;;  %1681 = vmatpush.msra.mxu3 %v7634_v20 }
 0x3fd   :  { %1622 = vmatpush.msra.mxu0 %v7637_v16  ;;  %1642 = vmatpush.msra.mxu1 %v7640_v17 }
 0x3fe   :  { %1662 = vmatpush.msra.mxu2 %v7643_v15  ;;  %1682 = vmatpush.msra.mxu3 %v7646_v43 }
 0x3ff   :  { %1623 = vmatpush.msra.mxu0 %v7649_v34  ;;  %1643 = vmatpush.msra.mxu1 %v7652_v47 }
 0x400   :  { %1663 = vmatpush.msra.mxu2 %v7655_v21  ;;  %1683 = vmatpush.msra.mxu3 %v7658_v28 }
 0x401   :  { %1624 = vmatpush.msra.mxu0 %v7661_v24  ;;  %1644 = vmatpush.msra.mxu1 %v7664_v10 }
 0x402   :  { %1664 = vmatpush.msra.mxu2 %v7667_v63  ;;  %1684 = vmatpush.msra.mxu3 %v7670_v29 }
 0x403   :  { %1625 = vmatpush.msra.mxu0 %v7673_v30  ;;  %1645 = vmatpush.msra.mxu1 %v7676_v31 }
 0x404   :  { %1665 = vmatpush.msra.mxu2 %v7679_v32  ;;  %1685 = vmatpush.msra.mxu3 %v7682_v33 }
 0x405   :  { %1626 = vmatpush.msra.mxu0 %v7685_v38  ;;  %1646 = vmatpush.msra.mxu1 %v7688_v39 }
 0x406   :  { %1666 = vmatpush.msra.mxu2 %v7691_v40  ;;  %1686 = vmatpush.msra.mxu3 %v7694_v41 }
 0x407   :  { %1627 = vmatpush.msra.mxu0 %v7697_v45  ;;  %1647 = vmatpush.msra.mxu1 %v7700_v50 }
 0x408   :  { %1667 = vmatpush.msra.mxu2 %v7703_v46  ;;  %1687 = vmatpush.msra.mxu3 %v7706_v49 }
 0x409   :  { %1628 = vmatpush.msra.mxu0 %v7709_v56  ;;  %1648 = vmatpush.msra.mxu1 %v7712_v52 }
 0x40a   :  { %1668 = vmatpush.msra.mxu2 %v7715_v62  ;;  %1688 = vmatpush.msra.mxu3 %v7718_v55 }
 0x40b   :  { %1629 = vmatpush.msra.mxu0 %v7721_v48  ;;  %1649 = vmatpush.msra.mxu1 %v7724_v57 }
 0x40c   :  { %1669 = vmatpush.msra.mxu2 %v7727_v58  ;;  %1689 = vmatpush.msra.mxu3 %v7730_v60 }
 0x40d   :  { %1630 = vmatpush.msra.mxu0 %v7733_v44  ;;  %1650 = vmatpush.msra.mxu1 %v7736_v59  ;;  %v7754_v59 = vld [vmem:[#allocation7 + $0x38] sm:$0xff] }
 0x40e   :  { %1670 = vmatpush.msra.mxu2 %v7739_v53  ;;  %1690 = vmatpush.msra.mxu3 %v7742_v54  ;;  %10091 = vst [vmem:[#allocation34_spill] sm:$0xff] %v7754_v59  ;;  %v7757_v53 = vld [vmem:[#allocation7] sm:$0xff]  ;;  %v7760_v54 = vld [vmem:[#allocation7 + $0x8] sm:$0xff] }
 0x40f   :  { %1631 = vmatpush.msra.mxu0 %v7745_v42  ;;  %1651 = vmatpush.msra.mxu1 %v7748_v61  ;;  %10092 = vst [vmem:[#allocation36_spill] sm:$0xff] %v7757_v53  ;;  %v7763_v42 = vld [vmem:[#allocation7 + $0x10] sm:$0xff]  ;;  %v7766_v61 = vld [vmem:[#allocation7 + $0x18] sm:$0xff] }
 0x410   :  { %1671 = vmatpush.msra.mxu2 %v7751_v5  ;;  %1691 = vmatpush.msra.mxu3 %v7754_v59  ;;  %10093 = vst [vmem:[#allocation37_spill] sm:$0xff] %v7760_v54  ;;  %v7769_v5 = vld [vmem:[#allocation5 + $0x1e0] sm:$0xff]  ;;  %v7772_v59 = vld [vmem:[#allocation5 + $0x1e8] sm:$0xff] }
 0x411   :  { %1632 = vmatpush.msra.mxu0 %v7757_v53  ;;  %1652 = vmatpush.msra.mxu1 %v7760_v54  ;;  %10094 = vst [vmem:[#allocation50_spill] sm:$0xff] %v7763_v42  ;;  %v7775_v53 = vld [vmem:[#allocation5 + $0x1f0] sm:$0xff]  ;;  %v7778_v54 = vld [vmem:[#allocation5 + $0x1f8] sm:$0xff] }
 0x412   :  { %1672 = vmatpush.msra.mxu2 %v7763_v42  ;;  %10095 = vst [vmem:[#allocation38_spill] sm:$0xff] %v7766_v61  ;;  %1692 = vmatpush.msra.mxu3 %v7766_v61  ;;  %v7781_v42 = vld [vmem:[#allocation5 + $0x1c0] sm:$0xff]  ;;  %v7784_v61 = vld [vmem:[#allocation5 + $0x1c8] sm:$0xff] }
 0x413   :  { %10096 = vst [vmem:[#allocation39_spill] sm:$0xff] %v7769_v5  ;;  %1697 = vmatpush.msrb.mxu0 %v7769_v5  ;;  %1717 = vmatpush.msrb.mxu1 %v7772_v59  ;;  %v7787_v5 = vld [vmem:[#allocation5 + $0x1d0] sm:$0xff] }
 0x414   :  { %10097 = vst [vmem:[#allocation40_spill] sm:$0xff] %v7772_v59  ;;  %1737 = vmatpush.msrb.mxu2 %v7775_v53  ;;  %1757 = vmatpush.msrb.mxu3 %v7778_v54  ;;  %v7790_v59 = vld [vmem:[#allocation5 + $0x1d8] sm:$0xff] }
 0x415   :  { %10098 = vst [vmem:[#allocation54_spill] sm:$0xff] %v7775_v53  ;;  %1698 = vmatpush.msrb.mxu0 %v7781_v42  ;;  %1718 = vmatpush.msrb.mxu1 %v7784_v61  ;;  %v7793_v53 = vld [vmem:[#allocation5 + $0x1a0] sm:$0xff] }
 0x416   :  { %10099 = vst [vmem:[#allocation41_spill] sm:$0xff] %v7778_v54  ;;  %1738 = vmatpush.msrb.mxu2 %v7787_v5  ;;  %1758 = vmatpush.msrb.mxu3 %v7790_v59  ;;  %v7796_v54 = vld [vmem:[#allocation5 + $0x1a8] sm:$0xff] }
 0x417   :  { %10100 = vst [vmem:[#allocation43_spill] sm:$0xff] %v7781_v42  ;;  %1699 = vmatpush.msrb.mxu0 %v7793_v53  ;;  %1719 = vmatpush.msrb.mxu1 %v7796_v54  ;;  %v7799_v42 = vld [vmem:[#allocation5 + $0x1b0] sm:$0xff] }
 0x418   :  { %10101 = vst [vmem:[#allocation44_spill] sm:$0xff] %v7784_v61  ;;  %1739 = vmatpush.msrb.mxu2 %v7799_v42  ;;  %v7802_v61 = vld [vmem:[#allocation5 + $0x1b8] sm:$0xff] }
 0x419   :  { %10102 = vst [vmem:[#allocation58_spill] sm:$0xff] %v7787_v5  ;;  %1759 = vmatpush.msrb.mxu3 %v7802_v61  ;;  %v7805_v5 = vld [vmem:[#allocation5 + $0x180] sm:$0xff] }
 0x41a   :  { %10103 = vst [vmem:[#allocation45_spill] sm:$0xff] %v7790_v59  ;;  %1700 = vmatpush.msrb.mxu0 %v7805_v5  ;;  %v7808_v59 = vld [vmem:[#allocation5 + $0x188] sm:$0xff] }
 0x41b   :  { %10104 = vst [vmem:[#allocation47_spill] sm:$0xff] %v7793_v53  ;;  %1720 = vmatpush.msrb.mxu1 %v7808_v59  ;;  %v7811_v53 = vld [vmem:[#allocation5 + $0x190] sm:$0xff] }
 0x41c   :  { %10105 = vst [vmem:[#allocation48_spill] sm:$0xff] %v7796_v54  ;;  %1740 = vmatpush.msrb.mxu2 %v7811_v53  ;;  %v7814_v54 = vld [vmem:[#allocation5 + $0x198] sm:$0xff] }
 0x41d   :  { %10106 = vst [vmem:[#allocation62_spill] sm:$0xff] %v7799_v42  ;;  %1760 = vmatpush.msrb.mxu3 %v7814_v54  ;;  %v7817_v42 = vld [vmem:[#allocation5 + $0x160] sm:$0xff] }
 0x41e   :  { %10107 = vst [vmem:[#allocation49_spill] sm:$0xff] %v7802_v61  ;;  %1701 = vmatpush.msrb.mxu0 %v7817_v42  ;;  %v7820_v61 = vld [vmem:[#allocation5 + $0x168] sm:$0xff] }
 0x41f   :  { %10108 = vst [vmem:[#allocation51_spill] sm:$0xff] %v7805_v5  ;;  %1721 = vmatpush.msrb.mxu1 %v7820_v61  ;;  %v7823_v5 = vld [vmem:[#allocation5 + $0x170] sm:$0xff] }
 0x420   :  { %10109 = vst [vmem:[#allocation52_spill] sm:$0xff] %v7808_v59  ;;  %1741 = vmatpush.msrb.mxu2 %v7823_v5  ;;  %v7826_v59 = vld [vmem:[#allocation5 + $0x178] sm:$0xff] }
 0x421   :  { %10110 = vst [vmem:[#allocation66_spill] sm:$0xff] %v7811_v53  ;;  %1761 = vmatpush.msrb.mxu3 %v7826_v59  ;;  %v7829_v53 = vld [vmem:[#allocation5 + $0x140] sm:$0xff] }
 0x422   :  { %10111 = vst [vmem:[#allocation53_spill] sm:$0xff] %v7814_v54  ;;  %1702 = vmatpush.msrb.mxu0 %v7829_v53  ;;  %v7832_v54 = vld [vmem:[#allocation5 + $0x148] sm:$0xff] }
 0x423   :  { %10112 = vst [vmem:[#allocation55_spill] sm:$0xff] %v7817_v42  ;;  %1722 = vmatpush.msrb.mxu1 %v7832_v54  ;;  %v7835_v42 = vld [vmem:[#allocation5 + $0x150] sm:$0xff] }
 0x424   :  { %10113 = vst [vmem:[#allocation56_spill] sm:$0xff] %v7820_v61  ;;  %1742 = vmatpush.msrb.mxu2 %v7835_v42  ;;  %v7838_v61 = vld [vmem:[#allocation5 + $0x158] sm:$0xff] }
 0x425   :  { %10114 = vst [vmem:[#allocation70_spill] sm:$0xff] %v7823_v5  ;;  %1762 = vmatpush.msrb.mxu3 %v7838_v61  ;;  %v7841_v5 = vld [vmem:[#allocation5 + $0x120] sm:$0xff] }
 0x426   :  { %10115 = vst [vmem:[#allocation57_spill] sm:$0xff] %v7826_v59  ;;  %1703 = vmatpush.msrb.mxu0 %v7841_v5  ;;  %v7844_v59 = vld [vmem:[#allocation5 + $0x128] sm:$0xff] }
 0x427   :  { %10116 = vst [vmem:[#allocation59_spill] sm:$0xff] %v7829_v53  ;;  %1723 = vmatpush.msrb.mxu1 %v7844_v59  ;;  %v7847_v53 = vld [vmem:[#allocation5 + $0x130] sm:$0xff] }
 0x428   :  { %10117 = vst [vmem:[#allocation60_spill] sm:$0xff] %v7832_v54  ;;  %1743 = vmatpush.msrb.mxu2 %v7847_v53  ;;  %v7850_v54 = vld [vmem:[#allocation5 + $0x138] sm:$0xff] }
 0x429   :  { %10118 = vst [vmem:[#allocation74_spill] sm:$0xff] %v7835_v42  ;;  %1763 = vmatpush.msrb.mxu3 %v7850_v54  ;;  %v7853_v42 = vld [vmem:[#allocation5 + $0x100] sm:$0xff] }
 0x42a   :  { %10119 = vst [vmem:[#allocation61_spill] sm:$0xff] %v7838_v61  ;;  %1704 = vmatpush.msrb.mxu0 %v7853_v42  ;;  %v7856_v61 = vld [vmem:[#allocation5 + $0x108] sm:$0xff] }
 0x42b   :  { %10120 = vst [vmem:[#allocation63_spill] sm:$0xff] %v7841_v5  ;;  %1724 = vmatpush.msrb.mxu1 %v7856_v61  ;;  %v7859_v5 = vld [vmem:[#allocation5 + $0x110] sm:$0xff] }
 0x42c   :  { %10121 = vst [vmem:[#allocation64_spill] sm:$0xff] %v7844_v59  ;;  %1744 = vmatpush.msrb.mxu2 %v7859_v5  ;;  %v7862_v59 = vld [vmem:[#allocation5 + $0x118] sm:$0xff] }
 0x42d   :  { %10122 = vst [vmem:[#allocation78_spill] sm:$0xff] %v7847_v53  ;;  %1764 = vmatpush.msrb.mxu3 %v7862_v59  ;;  %v7865_v53 = vld [vmem:[#allocation5 + $0xe0] sm:$0xff] }
 0x42e   :  { %10123 = vst [vmem:[#allocation65_spill] sm:$0xff] %v7850_v54  ;;  %1705 = vmatpush.msrb.mxu0 %v7865_v53  ;;  %v7868_v54 = vld [vmem:[#allocation5 + $0xe8] sm:$0xff] }
 0x42f   :  { %10124 = vst [vmem:[#allocation67_spill] sm:$0xff] %v7853_v42  ;;  %1725 = vmatpush.msrb.mxu1 %v7868_v54  ;;  %v7871_v42 = vld [vmem:[#allocation5 + $0xf0] sm:$0xff] }
 0x430   :  { %10125 = vst [vmem:[#allocation68_spill] sm:$0xff] %v7856_v61  ;;  %1745 = vmatpush.msrb.mxu2 %v7871_v42  ;;  %v7874_v61 = vld [vmem:[#allocation5 + $0xf8] sm:$0xff] }
 0x431   :  { %10126 = vst [vmem:[#allocation82_spill] sm:$0xff] %v7859_v5  ;;  %1765 = vmatpush.msrb.mxu3 %v7874_v61  ;;  %v7877_v5 = vld [vmem:[#allocation5 + $0xc0] sm:$0xff] }
 0x432   :  { %10127 = vst [vmem:[#allocation69_spill] sm:$0xff] %v7862_v59  ;;  %1706 = vmatpush.msrb.mxu0 %v7877_v5  ;;  %v7880_v59 = vld [vmem:[#allocation5 + $0xc8] sm:$0xff] }
 0x433   :  { %10128 = vst [vmem:[#allocation71_spill] sm:$0xff] %v7865_v53  ;;  %1726 = vmatpush.msrb.mxu1 %v7880_v59  ;;  %v7883_v53 = vld [vmem:[#allocation5 + $0xd0] sm:$0xff] }
 0x434   :  { %10129 = vst [vmem:[#allocation72_spill] sm:$0xff] %v7868_v54  ;;  %1746 = vmatpush.msrb.mxu2 %v7883_v53  ;;  %v7886_v54 = vld [vmem:[#allocation5 + $0xd8] sm:$0xff] }
 0x435   :  { %10130 = vst [vmem:[#allocation86_spill] sm:$0xff] %v7871_v42  ;;  %1766 = vmatpush.msrb.mxu3 %v7886_v54  ;;  %v7889_v42 = vld [vmem:[#allocation5 + $0xa0] sm:$0xff] }
 0x436   :  { %10131 = vst [vmem:[#allocation73_spill] sm:$0xff] %v7874_v61  ;;  %1707 = vmatpush.msrb.mxu0 %v7889_v42  ;;  %v7892_v61 = vld [vmem:[#allocation5 + $0xa8] sm:$0xff] }
 0x437   :  { %10132 = vst [vmem:[#allocation75_spill] sm:$0xff] %v7877_v5  ;;  %1727 = vmatpush.msrb.mxu1 %v7892_v61  ;;  %v7895_v5 = vld [vmem:[#allocation5 + $0xb0] sm:$0xff] }
 0x438   :  { %10133 = vst [vmem:[#allocation76_spill] sm:$0xff] %v7880_v59  ;;  %1747 = vmatpush.msrb.mxu2 %v7895_v5  ;;  %v7898_v59 = vld [vmem:[#allocation5 + $0xb8] sm:$0xff] }
 0x439   :  { %10134 = vst [vmem:[#allocation90_spill] sm:$0xff] %v7883_v53  ;;  %1767 = vmatpush.msrb.mxu3 %v7898_v59  ;;  %v7901_v53 = vld [vmem:[#allocation5 + $0x80] sm:$0xff] }
 0x43a   :  { %10135 = vst [vmem:[#allocation77_spill] sm:$0xff] %v7886_v54  ;;  %1708 = vmatpush.msrb.mxu0 %v7901_v53  ;;  %v7904_v54 = vld [vmem:[#allocation5 + $0x88] sm:$0xff] }
 0x43b   :  { %10136 = vst [vmem:[#allocation79_spill] sm:$0xff] %v7889_v42  ;;  %1728 = vmatpush.msrb.mxu1 %v7904_v54  ;;  %v7907_v42 = vld [vmem:[#allocation5 + $0x90] sm:$0xff] }
 0x43c   :  { %10137 = vst [vmem:[#allocation80_spill] sm:$0xff] %v7892_v61  ;;  %1748 = vmatpush.msrb.mxu2 %v7907_v42  ;;  %v7910_v61 = vld [vmem:[#allocation5 + $0x98] sm:$0xff] }
 0x43d   :  { %10138 = vst [vmem:[#allocation94_spill] sm:$0xff] %v7895_v5  ;;  %1768 = vmatpush.msrb.mxu3 %v7910_v61  ;;  %v7913_v5 = vld [vmem:[#allocation5 + $0x60] sm:$0xff] }
 0x43e   :  { %10139 = vst [vmem:[#allocation81_spill] sm:$0xff] %v7898_v59  ;;  %1709 = vmatpush.msrb.mxu0 %v7913_v5  ;;  %v7916_v59 = vld [vmem:[#allocation5 + $0x68] sm:$0xff] }
 0x43f   :  { %10140 = vst [vmem:[#allocation83_spill] sm:$0xff] %v7901_v53  ;;  %1729 = vmatpush.msrb.mxu1 %v7916_v59  ;;  %v7919_v53 = vld [vmem:[#allocation5 + $0x70] sm:$0xff] }
 0x440   :  { %10141 = vst [vmem:[#allocation84_spill] sm:$0xff] %v7904_v54  ;;  %1749 = vmatpush.msrb.mxu2 %v7919_v53  ;;  %v7922_v54 = vld [vmem:[#allocation5 + $0x78] sm:$0xff] }
 0x441   :  { %10142 = vst [vmem:[#allocation98_spill] sm:$0xff] %v7907_v42  ;;  %1769 = vmatpush.msrb.mxu3 %v7922_v54  ;;  %v7925_v42 = vld [vmem:[#allocation5 + $0x40] sm:$0xff] }
 0x442   :  { %10143 = vst [vmem:[#allocation85_spill] sm:$0xff] %v7910_v61  ;;  %1710 = vmatpush.msrb.mxu0 %v7925_v42  ;;  %v7928_v61 = vld [vmem:[#allocation5 + $0x48] sm:$0xff] }
 0x443   :  { %10144 = vst [vmem:[#allocation87_spill] sm:$0xff] %v7913_v5  ;;  %1730 = vmatpush.msrb.mxu1 %v7928_v61  ;;  %v7931_v5 = vld [vmem:[#allocation5 + $0x50] sm:$0xff] }
 0x444   :  { %10145 = vst [vmem:[#allocation88_spill] sm:$0xff] %v7916_v59  ;;  %1750 = vmatpush.msrb.mxu2 %v7931_v5  ;;  %v7934_v59 = vld [vmem:[#allocation5 + $0x58] sm:$0xff] }
 0x445   :  { %10146 = vst [vmem:[#allocation102_spill] sm:$0xff] %v7919_v53  ;;  %1770 = vmatpush.msrb.mxu3 %v7934_v59  ;;  %v7937_v53 = vld [vmem:[#allocation5 + $0x20] sm:$0xff] }
 0x446   :  { %10147 = vst [vmem:[#allocation89_spill] sm:$0xff] %v7922_v54  ;;  %1711 = vmatpush.msrb.mxu0 %v7937_v53  ;;  %v7940_v54 = vld [vmem:[#allocation5 + $0x28] sm:$0xff] }
 0x447   :  { %10148 = vst [vmem:[#allocation91_spill] sm:$0xff] %v7925_v42  ;;  %1731 = vmatpush.msrb.mxu1 %v7940_v54  ;;  %v7943_v42 = vld [vmem:[#allocation5 + $0x30] sm:$0xff] }
 0x448   :  { %10149 = vst [vmem:[#allocation92_spill] sm:$0xff] %v7928_v61  ;;  %1751 = vmatpush.msrb.mxu2 %v7943_v42  ;;  %v7946_v61 = vld [vmem:[#allocation5 + $0x38] sm:$0xff] }
 0x449   :  { %10150 = vst [vmem:[#allocation103_spill] sm:$0xff] %v7931_v5  ;;  %1771 = vmatpush.msrb.mxu3 %v7946_v61  ;;  %v7949_v5 = vld [vmem:[#allocation5] sm:$0xff] }
 0x44a   :  { %10151 = vst [vmem:[#allocation93_spill] sm:$0xff] %v7934_v59  ;;  %1712 = vmatpush.msrb.mxu0 %v7949_v5  ;;  %v7952_v59 = vld [vmem:[#allocation5 + $0x8] sm:$0xff] }
 0x44b   :  { %10152 = vst [vmem:[#allocation95_spill] sm:$0xff] %v7937_v53  ;;  %1732 = vmatpush.msrb.mxu1 %v7952_v59  ;;  %v7955_v53 = vld [vmem:[#allocation5 + $0x10] sm:$0xff] }
 0x44c   :  { %10153 = vst [vmem:[#allocation96_spill] sm:$0xff] %v7940_v54  ;;  %1752 = vmatpush.msrb.mxu2 %v7955_v53  ;;  %v7958_v54 = vld [vmem:[#allocation5 + $0x18] sm:$0xff] }
 0x44d   :  { %10154 = vst [vmem:[#allocation104_spill] sm:$0xff] %v7943_v42  ;;  %1772 = vmatpush.msrb.mxu3 %v7958_v54 }
 0x44e   :  { %10155 = vst [vmem:[#allocation97_spill] sm:$0xff] %v7946_v61 }
 0x44f   :  { %10156 = vst [vmem:[#allocation99_spill] sm:$0xff] %v7949_v5 }
 0x450   :  { %10157 = vst [vmem:[#allocation100_spill] sm:$0xff] %v7952_v59 }
 0x451   :  { %10158 = vst [vmem:[#allocation105_spill] sm:$0xff] %v7955_v53 }
 0x452   :  { %10159 = vst [vmem:[#allocation101_spill] sm:$0xff] %v7958_v54 }
 0x46c   :  { %v1405_v42 = vpop.f32.mrf.mxu0  ;;  %v1425_v44 = vpop.f32.mrf.mxu1 }
 0x473   :  { %v1465_v60 = vpop.f32.mrf.mxu3  ;;  %v1445_v59 = vpop.f32.mrf.mxu2 }
 0x474   :  { %v1485_v61 = vpop.f32.mrf.mxu0  ;;  %v1505_v58 = vpop.f32.mrf.mxu1 }
 0x475   :  { %v1486_v57 = vadd.f32 %v1485_v61, %v1405_v42  ;;  %v1506_v48 = vadd.f32 %v1505_v58, %v1425_v44 }
 0x477   :  { %v1548_v5 = vadd.f32 %v10066_v4, %v1486_v57  ;;  %v1549_v55 = vadd.f32 %v10067_v6, %v1506_v48 }
 0x479   :  { %v5386_v62 = vmul.f32 -1.442695, %v1548_v5  ;;  %v5387_v52 = vmul.f32 -1.442695, %v1549_v55 }
 0x47b   :  { %5555 = vpow2.f32 %v5386_v62  ;;  %v1545_v53 = vpop.f32.mrf.mxu3  ;;  %v1525_v58 = vpop.f32.mrf.mxu2 }
 0x47c   :  { %5557 = vpow2.f32 %v5387_v52  ;;  %v1546_v56 = vadd.f32 %v1545_v53, %v1465_v60  ;;  %v1526_v4 = vadd.f32 %v1525_v58, %v1445_v59 }
 0x47e   :  { %v1551_v54 = vadd.f32 %v10068_v23, %v1546_v56  ;;  %v1550_v62 = vadd.f32 %v10069_v14, %v1526_v4 }
 0x480   :  { %v5388_v49 = vmul.f32 -1.442695, %v1551_v54 }
 0x481   :  { %v5556_v46 = vpop.eup %5555 }
 0x482   :  { %v5558_v50 = vpop.eup %5557  ;;  %v1555_v45 = vadd.f32 1.0, %v5556_v46  ;;  %5559 = vpow2.f32 %v5388_v49 }
 0x483   :  { %v1574_v42 = vadd.f32 1.0, %v5558_v50 }
 0x484   :  { %5561 = vrcp.f32 %v1555_v45  ;;  %v1567_v44 = vand.u32 2147483648, %v1555_v45  ;;  %v1565_v50 = vand.u32 2147483647, %v1555_v45  ;;  %vm1561_vm14 = vweird.f32 %v1555_v45 }
 0x485   :  { %5563 = vrcp.f32 %v1574_v42  ;;  %v1586_v46 = vand.u32 2147483648, %v1574_v42  ;;  %v1584_v59 = vand.u32 2147483647, %v1574_v42  ;;  %vm1580_vm15 = vweird.f32 %v1574_v42 }
 0x486   :  { %v1568_v14 = vor.u32 1.1754944e-38, %v1567_v44  ;;  %vm1566_vm2 = vcmp.eq.f32.partialorder %v1565_v50, 8.507059e+37 }
 0x487   :  { %v1587_v4 = vor.u32 1.1754944e-38, %v1586_v46  ;;  %vm1585_vm3 = vcmp.eq.f32.partialorder %v1584_v59, 8.507059e+37 }
 0x488   :  { %v5560_v6 = vpop.eup %5559 }
 0x489   :  { %v1594_v48 = vadd.f32 1.0, %v5560_v6 }
 0x48a   :  { %v5562_v57 = vpop.eup %5561 }
 0x48b   :  { %v5564_v55 = vpop.eup %5563  ;;  %v1557_v52 = vmul.f32 %v5562_v57, %v1555_v45  ;;  %5565 = vrcp.f32 %v1594_v48  ;;  %vm1562_vm12 = vweird.f32 %v5562_v57  ;;  %v1606_v44 = vand.u32 2147483648, %v1594_v48 }
 0x48c   :  { %v1576_v60 = vmul.f32 %v5564_v55, %v1574_v42  ;;  %5567 = vtanh.f32 %v1550_v62  ;;  %vm1581_vm13 = vweird.f32 %v5564_v55  ;;  %vm1563_vm0 = vmor %vm1561_vm14, %vm1562_vm12  ;;  %vm1600_vm5 = vweird.f32 %v1594_v48 }
 0x48d   :  { %v1558_v23 = vsub.f32 1.0, %v1557_v52  ;;  %vm1582_vm1 = vmor %vm1580_vm15, %vm1581_vm13  ;;  %v1607_v50 = vor.u32 1.1754944e-38, %v1606_v44  ;;  %v10215_v44 = vld [vmem:[#allocation68_spill] sm:$0xff] }
 0x48e   :  { %v1577_v56 = vsub.f32 1.0, %v1576_v60 }
 0x48f   :  { %v1559_v49 = vmul.f32 %v5562_v57, %v1558_v23 }
 0x490   :  { %v1578_v53 = vmul.f32 %v5564_v55, %v1577_v56 }
 0x491   :  { %v5566_v54 = vpop.eup %5565  ;;  %v1560_v61 = vadd.f32 %v5562_v57, %v1559_v49 }
 0x492   :  { %v1579_v5 = vadd.f32 %v5564_v55, %v1578_v53  ;;  %v1596_v58 = vmul.f32 %v5566_v54, %v1594_v48  ;;  %v5568_v62 = vpop.eup %5567  ;;  %vm1601_vm4 = vweird.f32 %v5566_v54 }
 0x493   :  { %v1564_v6 = vsel %vm1563_vm0, %v5562_v57, %v1560_v61  ;;  %v1604_v57 = vand.u32 2147483647, %v1594_v48  ;;  %vm1602_vm6 = vmor %vm1600_vm5, %vm1601_vm4  ;;  %v10200_v48 = vld [vmem:[#allocation66_spill] sm:$0xff]  ;;  %v10202_v61 = vld [vmem:[#allocation55_spill] sm:$0xff] }
 0x494   :  { %v1569_v52 = vsel %vm1566_vm2, %v1568_v14, %v1564_v6  ;;  %v1583_v60 = vsel %vm1582_vm1, %v5564_v55, %v1579_v5  ;;  %v1597_v23 = vsub.f32 1.0, %v1596_v58  ;;  %v10203_v14 = vld [vmem:[#allocation56_spill] sm:$0xff]  ;;  %v10204_v5 = vld [vmem:[#allocation70_spill] sm:$0xff]  ;;  %v10205_v58 = vld [vmem:[#allocation57_spill] sm:$0xff] }
 0x495   :  { %v1588_v56 = vsel %vm1585_vm3, %v1587_v4, %v1583_v60  ;;  %v1611_v41 = vmul.f32 %v5568_v62, %v1569_v52  ;;  %vm1605_vm7 = vcmp.eq.f32.partialorder %v1604_v57, 8.507059e+37  ;;  %v10206_v4 = vld [vmem:[#allocation59_spill] sm:$0xff]  ;;  %v10207_v6 = vld [vmem:[#allocation60_spill] sm:$0xff]  ;;  %v10208_v62 = vld [vmem:[#allocation74_spill] sm:$0xff] }
 0x496   :  { %v1610_v40 = vmul.f32 %v1588_v56, %v7571_v51  ;;  %v1598_v49 = vmul.f32 %v5566_v54, %v1597_v23  ;;  %v5389_v51 = vld [vmem:[%s9083_s1 + $0x30] sm:$0xff]  ;;  %v10210_v60 = vld [vmem:[#allocation63_spill] sm:$0xff]  ;;  %v10211_v23 = vld [vmem:[#allocation64_spill] sm:$0xff] }
 0x497   :  { %v10209_v52 = vld [vmem:[#allocation61_spill] sm:$0xff]  ;;  %v10212_v56 = vld [vmem:[#allocation78_spill] sm:$0xff] }
 0x498   :  { %v7966_v45 = vadd.f32 %v1611_v41, %v1610_v40  ;;  %v1599_v42 = vadd.f32 %v5566_v54, %v1598_v49  ;;  %v10198_v40 = vld [vmem:[#allocation51_spill] sm:$0xff]  ;;  %v10199_v41 = vld [vmem:[#allocation52_spill] sm:$0xff]  ;;  %v10213_v49 = vld [vmem:[#allocation65_spill] sm:$0xff] }
 0x499   :  { %v10216_v57 = vld [vmem:[#allocation82_spill] sm:$0xff] }
 0x49a   :  { %5569 = vtanh.f32 %v7966_v45  ;;  %v1603_v46 = vsel %vm1602_vm6, %v5566_v54, %v1599_v42  ;;  %v10201_v54 = vld [vmem:[#allocation53_spill] sm:$0xff]  ;;  %v10214_v42 = vld [vmem:[#allocation67_spill] sm:$0xff] }
 0x49b   :  { %v1608_v53 = vsel %vm1605_vm7, %v1607_v50, %v1603_v46  ;;  %v10217_v46 = vld [vmem:[#allocation69_spill] sm:$0xff]  ;;  %v10218_v50 = vld [vmem:[#allocation71_spill] sm:$0xff] }
 0x4a0   :  { %v5570_v55 = vpop.eup %5569 }
 0x4a1   :  { %v1614_v59 = vmul.f32 %v5570_v55, %v1608_v53  ;;  %v10219_v55 = vld [vmem:[#allocation72_spill] sm:$0xff]  ;;  %v10220_v53 = vld [vmem:[#allocation86_spill] sm:$0xff] }
 0x4a3   :  { %1633 = vmatmul.f32.vlgmr.msra.gmra.mxu0 %v1614_v59  ;;  %1653 = vmatmul.f32.vlgmr.msra.gmra.mxu1 %v1614_v59 }
 0x4a4   :  { %1673 = vmatmul.f32.vlgmr.msra.gmra.mxu2 %v1614_v59  ;;  %1693 = vmatmul.f32.vlgmr.msra.gmra.mxu3 %v1614_v59  ;;  %v10221_v59 = vld [vmem:[#allocation73_spill] sm:$0xff] }
 0x4a5   :  { %1846 = vmatpush.msra.mxu0 %v7574_v37  ;;  %1866 = vmatpush.msra.mxu1 %v7577_v36  ;;  %v10160_v37 = vld [vmem:[#allocation23_spill] sm:$0xff]  ;;  %v10161_v36 = vld [vmem:[#allocation16_spill] sm:$0xff] }
 0x4a6   :  { %1886 = vmatpush.msra.mxu2 %v7580_v0  ;;  %1906 = vmatpush.msra.mxu3 %v7583_v1  ;;  %v10162_v0 = vld [vmem:[#allocation17_spill] sm:$0xff]  ;;  %v10163_v1 = vld [vmem:[#allocation18_spill] sm:$0xff] }
 0x4a7   :  { %1847 = vmatpush.msra.mxu0 %v7586_v2  ;;  %1867 = vmatpush.msra.mxu1 %v7589_v3  ;;  %v10164_v2 = vld [vmem:[#allocation27_spill] sm:$0xff] }
 0x4a8   :  { %1887 = vmatpush.msra.mxu2 %v7595_v7  ;;  %1907 = vmatpush.msra.mxu3 %v7598_v8  ;;  %v10165_v3 = vld [vmem:[#allocation19_spill] sm:$0xff]  ;;  %v10166_v7 = vld [vmem:[#allocation20_spill] sm:$0xff]  ;;  %v10167_v8 = vld [vmem:[#allocation21_spill] sm:$0xff] }
 0x4a9   :  { %1848 = vmatpush.msra.mxu0 %v7601_v9  ;;  %1868 = vmatpush.msra.mxu1 %v7604_v18  ;;  %v10168_v9 = vld [vmem:[#allocation31_spill] sm:$0xff]  ;;  %v10169_v18 = vld [vmem:[#allocation22_spill] sm:$0xff] }
 0x4aa   :  { %1888 = vmatpush.msra.mxu2 %v7607_v26  ;;  %1908 = vmatpush.msra.mxu3 %v7610_v35  ;;  %v10170_v26 = vld [vmem:[#allocation24_spill] sm:$0xff]  ;;  %v10171_v35 = vld [vmem:[#allocation25_spill] sm:$0xff] }
 0x4ab   :  { %1713 = vmatmul.f32.vlgmr.msrb.gmra.mxu0 %v5389_v51  ;;  %1733 = vmatmul.f32.vlgmr.msrb.gmra.mxu1 %v5389_v51 }
 0x4ac   :  { %1753 = vmatmul.f32.vlgmr.msrb.gmra.mxu2 %v5389_v51  ;;  %1773 = vmatmul.f32.vlgmr.msrb.gmra.mxu3 %v5389_v51  ;;  %v10222_v51 = vld [vmem:[#allocation75_spill] sm:$0xff] }
 0x4ad   :  { %1849 = vmatpush.msra.mxu0 %v7613_v22  ;;  %1869 = vmatpush.msra.mxu1 %v7616_v25  ;;  %v10172_v22 = vld [vmem:[#allocation35_spill] sm:$0xff]  ;;  %v10173_v25 = vld [vmem:[#allocation26_spill] sm:$0xff] }
 0x4ae   :  { %1889 = vmatpush.msra.mxu2 %v7619_v11  ;;  %1909 = vmatpush.msra.mxu3 %v7622_v12  ;;  %v10174_v11 = vld [vmem:[#allocation28_spill] sm:$0xff]  ;;  %v10175_v12 = vld [vmem:[#allocation29_spill] sm:$0xff] }
 0x4af   :  { %1850 = vmatpush.msra.mxu0 %v7625_v27  ;;  %1870 = vmatpush.msra.mxu1 %v7628_v19  ;;  %v10176_v27 = vld [vmem:[#allocation42_spill] sm:$0xff] }
 0x4b0   :  { %1890 = vmatpush.msra.mxu2 %v7631_v13  ;;  %1910 = vmatpush.msra.mxu3 %v7634_v20  ;;  %v10177_v19 = vld [vmem:[#allocation30_spill] sm:$0xff]  ;;  %v10178_v13 = vld [vmem:[#allocation32_spill] sm:$0xff]  ;;  %v10179_v20 = vld [vmem:[#allocation33_spill] sm:$0xff] }
 0x4b1   :  { %1851 = vmatpush.msra.mxu0 %v7637_v16  ;;  %1871 = vmatpush.msra.mxu1 %v7640_v17  ;;  %v10180_v16 = vld [vmem:[#allocation46_spill] sm:$0xff] }
 0x4b2   :  { %1891 = vmatpush.msra.mxu2 %v7643_v15  ;;  %1911 = vmatpush.msra.mxu3 %v7646_v43  ;;  %v10181_v17 = vld [vmem:[#allocation34_spill] sm:$0xff]  ;;  %v10182_v15 = vld [vmem:[#allocation36_spill] sm:$0xff]  ;;  %v10183_v43 = vld [vmem:[#allocation37_spill] sm:$0xff] }
 0x4b3   :  { %1852 = vmatpush.msra.mxu0 %v7649_v34  ;;  %1872 = vmatpush.msra.mxu1 %v7652_v47  ;;  %v10184_v34 = vld [vmem:[#allocation50_spill] sm:$0xff] }
 0x4b4   :  { %1892 = vmatpush.msra.mxu2 %v7655_v21  ;;  %1912 = vmatpush.msra.mxu3 %v7658_v28  ;;  %v10185_v47 = vld [vmem:[#allocation38_spill] sm:$0xff]  ;;  %v10186_v21 = vld [vmem:[#allocation39_spill] sm:$0xff]  ;;  %v10187_v28 = vld [vmem:[#allocation40_spill] sm:$0xff] }
 0x4b5   :  { %1853 = vmatpush.msra.mxu0 %v7661_v24  ;;  %1873 = vmatpush.msra.mxu1 %v7664_v10  ;;  %v10188_v24 = vld [vmem:[#allocation54_spill] sm:$0xff]  ;;  %v10189_v10 = vld [vmem:[#allocation41_spill] sm:$0xff] }
 0x4b6   :  { %1893 = vmatpush.msra.mxu2 %v7667_v63  ;;  %1913 = vmatpush.msra.mxu3 %v7670_v29  ;;  %v10190_v63 = vld [vmem:[#allocation43_spill] sm:$0xff]  ;;  %v10191_v29 = vld [vmem:[#allocation44_spill] sm:$0xff] }
 0x4b7   :  { %1854 = vmatpush.msra.mxu0 %v7673_v30  ;;  %1874 = vmatpush.msra.mxu1 %v7676_v31  ;;  %v10192_v30 = vld [vmem:[#allocation58_spill] sm:$0xff]  ;;  %v10193_v31 = vld [vmem:[#allocation45_spill] sm:$0xff] }
 0x4b8   :  { %1894 = vmatpush.msra.mxu2 %v7679_v32  ;;  %1914 = vmatpush.msra.mxu3 %v7682_v33  ;;  %v10194_v32 = vld [vmem:[#allocation47_spill] sm:$0xff]  ;;  %v10195_v33 = vld [vmem:[#allocation48_spill] sm:$0xff] }
 0x4b9   :  { %1855 = vmatpush.msra.mxu0 %v7685_v38  ;;  %1875 = vmatpush.msra.mxu1 %v7688_v39  ;;  %v10196_v38 = vld [vmem:[#allocation62_spill] sm:$0xff]  ;;  %v10197_v39 = vld [vmem:[#allocation49_spill] sm:$0xff] }
 0x4ba   :  { %1895 = vmatpush.msra.mxu2 %v10160_v37  ;;  %1915 = vmatpush.msra.mxu3 %v10161_v36  ;;  %v10223_v37 = vld [vmem:[#allocation76_spill] sm:$0xff]  ;;  %v10224_v36 = vld [vmem:[#allocation90_spill] sm:$0xff] }
 0x4bb   :  { %1856 = vmatpush.msra.mxu0 %v10162_v0  ;;  %1876 = vmatpush.msra.mxu1 %v10163_v1  ;;  %v10225_v0 = vld [vmem:[#allocation77_spill] sm:$0xff]  ;;  %v10226_v1 = vld [vmem:[#allocation79_spill] sm:$0xff] }
 0x4bc   :  { %1896 = vmatpush.msra.mxu2 %v10164_v2  ;;  %1916 = vmatpush.msra.mxu3 %v10165_v3  ;;  %v10227_v2 = vld [vmem:[#allocation80_spill] sm:$0xff]  ;;  %v10228_v3 = vld [vmem:[#allocation94_spill] sm:$0xff] }
 0x4bd   :  { %1857 = vmatpush.msra.mxu0 %v10166_v7  ;;  %1877 = vmatpush.msra.mxu1 %v10167_v8  ;;  %v10229_v7 = vld [vmem:[#allocation81_spill] sm:$0xff]  ;;  %v10230_v8 = vld [vmem:[#allocation83_spill] sm:$0xff] }
 0x4be   :  { %1897 = vmatpush.msra.mxu2 %v10168_v9  ;;  %1917 = vmatpush.msra.mxu3 %v10169_v18  ;;  %v10231_v9 = vld [vmem:[#allocation84_spill] sm:$0xff]  ;;  %v10232_v18 = vld [vmem:[#allocation98_spill] sm:$0xff] }
 0x4bf   :  { %1858 = vmatpush.msra.mxu0 %v10170_v26  ;;  %1878 = vmatpush.msra.mxu1 %v10171_v35  ;;  %v10233_v26 = vld [vmem:[#allocation85_spill] sm:$0xff]  ;;  %v10234_v35 = vld [vmem:[#allocation87_spill] sm:$0xff] }
 0x4c0   :  { %1898 = vmatpush.msra.mxu2 %v10172_v22  ;;  %1918 = vmatpush.msra.mxu3 %v10173_v25  ;;  %v10235_v22 = vld [vmem:[#allocation88_spill] sm:$0xff]  ;;  %v10236_v25 = vld [vmem:[#allocation102_spill] sm:$0xff] }
 0x4c1   :  { %1859 = vmatpush.msra.mxu0 %v10174_v11  ;;  %1879 = vmatpush.msra.mxu1 %v10175_v12  ;;  %v10237_v11 = vld [vmem:[#allocation89_spill] sm:$0xff]  ;;  %v10238_v12 = vld [vmem:[#allocation91_spill] sm:$0xff] }
 0x4c2   :  { %1899 = vmatpush.msra.mxu2 %v10176_v27  ;;  %1919 = vmatpush.msra.mxu3 %v10177_v19  ;;  %v10239_v27 = vld [vmem:[#allocation92_spill] sm:$0xff]  ;;  %v10240_v19 = vld [vmem:[#allocation103_spill] sm:$0xff] }
 0x4c3   :  { %1860 = vmatpush.msra.mxu0 %v10178_v13  ;;  %1880 = vmatpush.msra.mxu1 %v10179_v20  ;;  %v10241_v13 = vld [vmem:[#allocation93_spill] sm:$0xff]  ;;  %v10242_v20 = vld [vmem:[#allocation95_spill] sm:$0xff] }
 0x4c4   :  { %1900 = vmatpush.msra.mxu2 %v10180_v16  ;;  %1920 = vmatpush.msra.mxu3 %v10181_v17  ;;  %v10243_v16 = vld [vmem:[#allocation96_spill] sm:$0xff] }
 0x4c5   :  { %1861 = vmatpush.msra.mxu0 %v10182_v15  ;;  %1881 = vmatpush.msra.mxu1 %v10183_v43  ;;  %v10244_v17 = vld [vmem:[#allocation104_spill] sm:$0xff]  ;;  %v10245_v15 = vld [vmem:[#allocation97_spill] sm:$0xff]  ;;  %v10246_v43 = vld [vmem:[#allocation99_spill] sm:$0xff] }
 0x4c6   :  { %1901 = vmatpush.msra.mxu2 %v10184_v34  ;;  %1921 = vmatpush.msra.mxu3 %v10185_v47  ;;  %v10247_v34 = vld [vmem:[#allocation100_spill] sm:$0xff]  ;;  %v10248_v47 = vld [vmem:[#allocation105_spill] sm:$0xff] }
 0x4c7   :  { %1926 = vmatpush.msrb.mxu0 %v10186_v21  ;;  %1946 = vmatpush.msrb.mxu1 %v10187_v28  ;;  %v10249_v21 = vld [vmem:[#allocation101_spill] sm:$0xff] }
 0x4c8   :  { %1966 = vmatpush.msrb.mxu2 %v10188_v24  ;;  %1986 = vmatpush.msrb.mxu3 %v10189_v10 }
 0x4c9   :  { %1927 = vmatpush.msrb.mxu0 %v10190_v63  ;;  %1947 = vmatpush.msrb.mxu1 %v10191_v29 }
 0x4ca   :  { %1967 = vmatpush.msrb.mxu2 %v10192_v30  ;;  %1987 = vmatpush.msrb.mxu3 %v10193_v31 }
 0x4cb   :  { %1928 = vmatpush.msrb.mxu0 %v10194_v32  ;;  %1948 = vmatpush.msrb.mxu1 %v10195_v33  ;;  %v8103_v32 = vld [vmem:[%s9088_s6] sm:$0xff] }
 0x4cc   :  { %1968 = vmatpush.msrb.mxu2 %v10196_v38  ;;  %1988 = vmatpush.msrb.mxu3 %v10197_v39  ;;  %v8109_v38 = vld [vmem:[%s9088_s6 + $0x8] sm:$0xff] }
 0x4cd   :  { %1929 = vmatpush.msrb.mxu0 %v10198_v40  ;;  %1949 = vmatpush.msrb.mxu1 %v10199_v41 }
 0x4ce   :  { %1969 = vmatpush.msrb.mxu2 %v10200_v48  ;;  %1989 = vmatpush.msrb.mxu3 %v10201_v54 }
 0x4cf   :  { %1930 = vmatpush.msrb.mxu0 %v10202_v61  ;;  %1950 = vmatpush.msrb.mxu1 %v10203_v14  ;;  %v8115_v14 = vld [vmem:[%s9088_s6 + $0x18] sm:$0xff] }
 0x4d0   :  { %1970 = vmatpush.msrb.mxu2 %v10204_v5  ;;  %1990 = vmatpush.msrb.mxu3 %v10205_v58 }
 0x4d1   :  { %1931 = vmatpush.msrb.mxu0 %v10206_v4  ;;  %1951 = vmatpush.msrb.mxu1 %v10207_v6 }
 0x4d2   :  { %1971 = vmatpush.msrb.mxu2 %v10208_v62  ;;  %1991 = vmatpush.msrb.mxu3 %v10209_v52 }
 0x4d3   :  { %1932 = vmatpush.msrb.mxu0 %v10210_v60  ;;  %1952 = vmatpush.msrb.mxu1 %v10211_v23 }
 0x4d4   :  { %1972 = vmatpush.msrb.mxu2 %v10212_v56  ;;  %1992 = vmatpush.msrb.mxu3 %v10213_v49 }
 0x4d5   :  { %1933 = vmatpush.msrb.mxu0 %v10214_v42  ;;  %1953 = vmatpush.msrb.mxu1 %v10215_v44  ;;  %v8121_v44 = vld [vmem:[%s9088_s6 + $0x10] sm:$0xff] }
 0x4d6   :  { %1973 = vmatpush.msrb.mxu2 %v10216_v57  ;;  %1993 = vmatpush.msrb.mxu3 %v10217_v46 }
 0x4d7   :  { %1934 = vmatpush.msrb.mxu0 %v10218_v50  ;;  %1954 = vmatpush.msrb.mxu1 %v10219_v55 }
 0x4d8   :  { %1974 = vmatpush.msrb.mxu2 %v10220_v53  ;;  %1994 = vmatpush.msrb.mxu3 %v10221_v59 }
 0x4d9   :  { %1935 = vmatpush.msrb.mxu0 %v10222_v51  ;;  %1955 = vmatpush.msrb.mxu1 %v10223_v37 }
 0x4da   :  { %1975 = vmatpush.msrb.mxu2 %v10224_v36  ;;  %1995 = vmatpush.msrb.mxu3 %v10225_v0 }
 0x4db   :  { %1936 = vmatpush.msrb.mxu0 %v10226_v1  ;;  %1956 = vmatpush.msrb.mxu1 %v10227_v2 }
 0x4dc   :  { %1976 = vmatpush.msrb.mxu2 %v10228_v3  ;;  %1996 = vmatpush.msrb.mxu3 %v10229_v7 }
 0x4dd   :  { %1937 = vmatpush.msrb.mxu0 %v10230_v8  ;;  %1957 = vmatpush.msrb.mxu1 %v10231_v9 }
 0x4de   :  { %1977 = vmatpush.msrb.mxu2 %v10232_v18  ;;  %1997 = vmatpush.msrb.mxu3 %v10233_v26 }
 0x4df   :  { %1938 = vmatpush.msrb.mxu0 %v10234_v35  ;;  %1958 = vmatpush.msrb.mxu1 %v10235_v22 }
 0x4e0   :  { %1978 = vmatpush.msrb.mxu2 %v10236_v25  ;;  %1998 = vmatpush.msrb.mxu3 %v10237_v11 }
 0x4e1   :  { %1939 = vmatpush.msrb.mxu0 %v10238_v12  ;;  %1959 = vmatpush.msrb.mxu1 %v10239_v27 }
 0x4e2   :  { %1979 = vmatpush.msrb.mxu2 %v10240_v19  ;;  %1999 = vmatpush.msrb.mxu3 %v10241_v13 }
 0x4e3   :  { %1940 = vmatpush.msrb.mxu0 %v10242_v20  ;;  %1960 = vmatpush.msrb.mxu1 %v10243_v16 }
 0x4e4   :  { %1980 = vmatpush.msrb.mxu2 %v10244_v17  ;;  %2000 = vmatpush.msrb.mxu3 %v10245_v15 }
 0x4e5   :  { %1941 = vmatpush.msrb.mxu0 %v10246_v43  ;;  %1961 = vmatpush.msrb.mxu1 %v10247_v34 }
 0x4e6   :  { %1981 = vmatpush.msrb.mxu2 %v10248_v47  ;;  %2001 = vmatpush.msrb.mxu3 %v10249_v21 }
 0x520   :  { %v1634_v28 = vpop.f32.mrf.mxu0  ;;  %v1654_v24 = vpop.f32.mrf.mxu1 }
 0x527   :  { %v1694_v10 = vpop.f32.mrf.mxu3  ;;  %v1674_v40 = vpop.f32.mrf.mxu2 }
 0x528   :  { %v1714_v63 = vpop.f32.mrf.mxu0  ;;  %v1734_v29 = vpop.f32.mrf.mxu1 }
 0x529   :  { %v1715_v30 = vadd.f32 %v1714_v63, %v1634_v28  ;;  %v1735_v31 = vadd.f32 %v1734_v29, %v1654_v24  ;;  %v2202_v63 = vld [vmem:[#allocation10 + $0x1e8] sm:$0xff]  ;;  %v2203_v29 = vld [vmem:[#allocation10 + $0x1f0] sm:$0xff] }
 0x52b   :  { %v1777_v33 = vadd.f32 %v8103_v32, %v1715_v30  ;;  %v1778_v39 = vadd.f32 %v8109_v38, %v1735_v31  ;;  %v2204_v30 = vld [vmem:[#allocation10 + $0x1f8] sm:$0xff]  ;;  %v2197_v31 = vld [vmem:[#allocation10 + $0x1c0] sm:$0xff] }
 0x52d   :  { %v5390_v41 = vmul.f32 -1.442695, %v1777_v33  ;;  %v5391_v48 = vmul.f32 -1.442695, %v1778_v39  ;;  %v2198_v33 = vld [vmem:[#allocation10 + $0x1c8] sm:$0xff]  ;;  %v2199_v39 = vld [vmem:[#allocation10 + $0x1d0] sm:$0xff] }
 0x52f   :  { %5571 = vpow2.f32 %v5390_v41  ;;  %v1774_v54 = vpop.f32.mrf.mxu3  ;;  %v1754_v60 = vpop.f32.mrf.mxu2  ;;  %v2193_v41 = vld [vmem:[#allocation10 + $0x1a0] sm:$0xff] }
 0x530   :  { %5573 = vpow2.f32 %v5391_v48  ;;  %v1775_v61 = vadd.f32 %v1774_v54, %v1694_v10  ;;  %v1755_v23 = vadd.f32 %v1754_v60, %v1674_v40  ;;  %v2201_v10 = vld [vmem:[#allocation10 + $0x1e0] sm:$0xff]  ;;  %v2200_v40 = vld [vmem:[#allocation10 + $0x1d8] sm:$0xff]  ;;  %v2194_v48 = vld [vmem:[#allocation10 + $0x1a8] sm:$0xff] }
 0x531   :  { %v2195_v54 = vld [vmem:[#allocation10 + $0x1b0] sm:$0xff] }
 0x532   :  { %v1780_v5 = vadd.f32 %v8115_v14, %v1775_v61  ;;  %v1779_v57 = vadd.f32 %v8121_v44, %v1755_v23  ;;  %v2196_v61 = vld [vmem:[#allocation10 + $0x1b8] sm:$0xff]  ;;  %v2187_v60 = vld [vmem:[#allocation10 + $0x170] sm:$0xff] }
 0x533   :  { %v2188_v23 = vld [vmem:[#allocation10 + $0x178] sm:$0xff] }
 0x534   :  { %v5392_v58 = vmul.f32 -1.442695, %v1780_v5  ;;  %v2189_v5 = vld [vmem:[#allocation10 + $0x180] sm:$0xff] }
 0x535   :  { %v5572_v4 = vpop.eup %5571 }
 0x536   :  { %v5574_v6 = vpop.eup %5573  ;;  %v1784_v62 = vadd.f32 1.0, %v5572_v4  ;;  %5575 = vpow2.f32 %v5392_v58  ;;  %v2190_v58 = vld [vmem:[#allocation10 + $0x188] sm:$0xff]  ;;  %v2191_v4 = vld [vmem:[#allocation10 + $0x190] sm:$0xff] }
 0x537   :  { %v1803_v52 = vadd.f32 1.0, %v5574_v6  ;;  %v2192_v6 = vld [vmem:[#allocation10 + $0x198] sm:$0xff] }
 0x538   :  { %5577 = vrcp.f32 %v1784_v62  ;;  %v1796_v51 = vand.u32 2147483648, %v1784_v62  ;;  %v1794_v0 = vand.u32 2147483647, %v1784_v62  ;;  %vm1790_vm10 = vweird.f32 %v1784_v62 }
 0x539   :  { %5579 = vrcp.f32 %v1803_v52  ;;  %v1815_v37 = vand.u32 2147483648, %v1803_v52  ;;  %v1813_v2 = vand.u32 2147483647, %v1803_v52  ;;  %vm1809_vm11 = vweird.f32 %v1803_v52 }
 0x53a   :  { %v1797_v8 = vor.u32 1.1754944e-38, %v1796_v51  ;;  %vm1795_vm14 = vcmp.eq.f32.partialorder %v1794_v0, 8.507059e+37  ;;  %v2174_v51 = vld [vmem:[#allocation10 + $0x108] sm:$0xff]  ;;  %v2169_v0 = vld [vmem:[#allocation10 + $0xe0] sm:$0xff] }
 0x53b   :  { %v1816_v26 = vor.u32 1.1754944e-38, %v1815_v37  ;;  %vm1814_vm15 = vcmp.eq.f32.partialorder %v1813_v2, 8.507059e+37  ;;  %v2175_v37 = vld [vmem:[#allocation10 + $0x110] sm:$0xff] }
 0x53c   :  { %v5576_v56 = vpop.eup %5575  ;;  %v2171_v2 = vld [vmem:[#allocation10 + $0xf0] sm:$0xff] }
 0x53d   :  { %v1823_v49 = vadd.f32 1.0, %v5576_v56  ;;  %v2181_v56 = vld [vmem:[#allocation10 + $0x140] sm:$0xff] }
 0x53e   :  { %v5578_v42 = vpop.eup %5577 }
 0x53f   :  { %v5580_v46 = vpop.eup %5579  ;;  %v1786_v50 = vmul.f32 %v5578_v42, %v1784_v62  ;;  %5581 = vrcp.f32 %v1823_v49  ;;  %vm1791_vm8 = vweird.f32 %v5578_v42  ;;  %v1835_v15 = vand.u32 2147483648, %v1823_v49  ;;  %v2185_v62 = vld [vmem:[#allocation10 + $0x160] sm:$0xff] }
 0x540   :  { %v1805_v55 = vmul.f32 %v5580_v46, %v1803_v52  ;;  %5583 = vtanh.f32 %v1779_v57  ;;  %vm1810_vm9 = vweird.f32 %v5580_v46  ;;  %vm1792_vm12 = vmor %vm1790_vm10, %vm1791_vm8  ;;  %vm1829_vm1 = vweird.f32 %v1823_v49  ;;  %v2186_v52 = vld [vmem:[#allocation10 + $0x168] sm:$0xff]  ;;  %v2184_v57 = vld [vmem:[#allocation10 + $0x158] sm:$0xff] }
 0x541   :  { %v1787_v53 = vsub.f32 1.0, %v1786_v50  ;;  %vm1811_vm13 = vmor %vm1809_vm11, %vm1810_vm9  ;;  %v1833_v43 = vand.u32 2147483647, %v1823_v49  ;;  %v1836_v47 = vor.u32 1.1754944e-38, %v1835_v15  ;;  %v2178_v50 = vld [vmem:[#allocation10 + $0x128] sm:$0xff]  ;;  %v2156_v15 = vld [vmem:[#allocation10 + $0x78] sm:$0xff] }
 0x542   :  { %v1806_v59 = vsub.f32 1.0, %v1805_v55  ;;  %v2179_v55 = vld [vmem:[#allocation10 + $0x130] sm:$0xff] }
 0x543   :  { %v1788_v36 = vmul.f32 %v5578_v42, %v1787_v53  ;;  %vm1834_vm3 = vcmp.eq.f32.partialorder %v1833_v43, 8.507059e+37  ;;  %v2180_v53 = vld [vmem:[#allocation10 + $0x138] sm:$0xff]  ;;  %v2149_v43 = vld [vmem:[#allocation10 + $0x40] sm:$0xff] }
 0x544   :  { %v1807_v1 = vmul.f32 %v5580_v46, %v1806_v59  ;;  %v2173_v59 = vld [vmem:[#allocation10 + $0x100] sm:$0xff] }
 0x545   :  { %v5582_v3 = vpop.eup %5581  ;;  %v1789_v7 = vadd.f32 %v5578_v42, %v1788_v36  ;;  %v2176_v36 = vld [vmem:[#allocation10 + $0x118] sm:$0xff] }
 0x546   :  { %v1808_v9 = vadd.f32 %v5580_v46, %v1807_v1  ;;  %v1825_v18 = vmul.f32 %v5582_v3, %v1823_v49  ;;  %v5584_v22 = vpop.eup %5583  ;;  %vm1830_vm0 = vweird.f32 %v5582_v3  ;;  %v2182_v49 = vld [vmem:[#allocation10 + $0x148] sm:$0xff] }
 0x547   :  { %v1793_v35 = vsel %vm1792_vm12, %v5578_v42, %v1789_v7  ;;  %vm1831_vm2 = vmor %vm1829_vm1, %vm1830_vm0  ;;  %v2183_v42 = vld [vmem:[#allocation10 + $0x150] sm:$0xff]  ;;  %v2170_v1 = vld [vmem:[#allocation10 + $0xe8] sm:$0xff] }
 0x548   :  { %v1798_v25 = vsel %vm1795_vm14, %v1797_v8, %v1793_v35  ;;  %v1812_v11 = vsel %vm1811_vm13, %v5580_v46, %v1808_v9  ;;  %v1826_v12 = vsub.f32 1.0, %v1825_v18  ;;  %v2177_v46 = vld [vmem:[#allocation10 + $0x120] sm:$0xff]  ;;  %v2166_v8 = vld [vmem:[#allocation10 + $0xc8] sm:$0xff]  ;;  %v2167_v9 = vld [vmem:[#allocation10 + $0xd0] sm:$0xff] }
 0x549   :  { %v1817_v27 = vsel %vm1814_vm15, %v1816_v26, %v1812_v11  ;;  %v1840_v19 = vmul.f32 %v5584_v22, %v1798_v25  ;;  %v2165_v7 = vld [vmem:[#allocation10 + $0xc0] sm:$0xff]  ;;  %v2168_v18 = vld [vmem:[#allocation10 + $0xd8] sm:$0xff]  ;;  %v2162_v35 = vld [vmem:[#allocation10 + $0xa8] sm:$0xff] }
 0x54a   :  { %v1839_v13 = vmul.f32 %v1817_v27, %v7966_v45  ;;  %v1827_v20 = vmul.f32 %v5582_v3, %v1826_v12  ;;  %v5393_v45 = vld [vmem:[%s9083_s1 + $0x38] sm:$0xff]  ;;  %v2161_v26 = vld [vmem:[#allocation10 + $0xa0] sm:$0xff]  ;;  %v2164_v25 = vld [vmem:[#allocation10 + $0xb8] sm:$0xff] }
 0x54b   :  { %v2163_v22 = vld [vmem:[#allocation10 + $0xb0] sm:$0xff]  ;;  %v2157_v11 = vld [vmem:[#allocation10 + $0x80] sm:$0xff]  ;;  %v2158_v12 = vld [vmem:[#allocation10 + $0x88] sm:$0xff] }
 0x54c   :  { %v8125_v16 = vadd.f32 %v1840_v19, %v1839_v13  ;;  %v1828_v17 = vadd.f32 %v5582_v3, %v1827_v20  ;;  %v2159_v27 = vld [vmem:[#allocation10 + $0x90] sm:$0xff]  ;;  %v2160_v19 = vld [vmem:[#allocation10 + $0x98] sm:$0xff]  ;;  %v2153_v13 = vld [vmem:[#allocation10 + $0x60] sm:$0xff] }
 0x54d   :  { %v2154_v20 = vld [vmem:[#allocation10 + $0x68] sm:$0xff] }
 0x54e   :  { %5585 = vtanh.f32 %v8125_v16  ;;  %v1832_v34 = vsel %vm1831_vm2, %v5582_v3, %v1828_v17  ;;  %v2172_v3 = vld [vmem:[#allocation10 + $0xf8] sm:$0xff]  ;;  %v2155_v17 = vld [vmem:[#allocation10 + $0x70] sm:$0xff] }
 0x54f   :  { %v1837_v28 = vsel %vm1834_vm3, %v1836_v47, %v1832_v34  ;;  %v2150_v34 = vld [vmem:[#allocation10 + $0x48] sm:$0xff]  ;;  %v2151_v47 = vld [vmem:[#allocation10 + $0x50] sm:$0xff] }
 0x554   :  { %v5586_v21 = vpop.eup %5585 }
 0x555   :  { %v1843_v24 = vmul.f32 %v5586_v21, %v1837_v28  ;;  %v2152_v21 = vld [vmem:[#allocation10 + $0x58] sm:$0xff]  ;;  %v2145_v28 = vld [vmem:[#allocation10 + $0x20] sm:$0xff] }
 0x557   :  { %1862 = vmatmul.f32.vlgmr.msra.gmra.mxu0 %v1843_v24  ;;  %1882 = vmatmul.f32.vlgmr.msra.gmra.mxu1 %v1843_v24 }
 0x558   :  { %1902 = vmatmul.f32.vlgmr.msra.gmra.mxu2 %v1843_v24  ;;  %1922 = vmatmul.f32.vlgmr.msra.gmra.mxu3 %v1843_v24  ;;  %v2146_v24 = vld [vmem:[#allocation10 + $0x28] sm:$0xff] }
 0x559   :  { %2205 = vmatpush.msra.mxu0 %v2201_v10  ;;  %2225 = vmatpush.msra.mxu1 %v2202_v63  ;;  %v2148_v10 = vld [vmem:[#allocation10 + $0x38] sm:$0xff]  ;;  %v2141_v63 = vld [vmem:[#allocation10] sm:$0xff] }
 0x55a   :  { %2245 = vmatpush.msra.mxu2 %v2203_v29  ;;  %2265 = vmatpush.msra.mxu3 %v2204_v30  ;;  %v2142_v29 = vld [vmem:[#allocation10 + $0x8] sm:$0xff]  ;;  %v2143_v30 = vld [vmem:[#allocation10 + $0x10] sm:$0xff] }
 0x55b   :  { %2206 = vmatpush.msra.mxu0 %v2197_v31  ;;  %2226 = vmatpush.msra.mxu1 %v2198_v33  ;;  %v2144_v31 = vld [vmem:[#allocation10 + $0x18] sm:$0xff]  ;;  %v2137_v33 = vld [vmem:[#allocation9 + $0x1e0] sm:$0xff] }
 0x55c   :  { %2246 = vmatpush.msra.mxu2 %v2199_v39  ;;  %2266 = vmatpush.msra.mxu3 %v2200_v40  ;;  %v2138_v39 = vld [vmem:[#allocation9 + $0x1e8] sm:$0xff] }
 0x55d   :  { %2207 = vmatpush.msra.mxu0 %v2193_v41  ;;  %2227 = vmatpush.msra.mxu1 %v2194_v48  ;;  %v2139_v48 = vld [vmem:[#allocation9 + $0x1f0] sm:$0xff] }
 0x55e   :  { %2247 = vmatpush.msra.mxu2 %v2195_v54  ;;  %2267 = vmatpush.msra.mxu3 %v2196_v61  ;;  %v2140_v54 = vld [vmem:[#allocation9 + $0x1f8] sm:$0xff]  ;;  %v2133_v61 = vld [vmem:[#allocation9 + $0x1c0] sm:$0xff] }
 0x55f   :  { %1942 = vmatmul.f32.vlgmr.msrb.gmra.mxu0 %v5393_v45  ;;  %1962 = vmatmul.f32.vlgmr.msrb.gmra.mxu1 %v5393_v45 }
 0x560   :  { %1982 = vmatmul.f32.vlgmr.msrb.gmra.mxu2 %v5393_v45  ;;  %2002 = vmatmul.f32.vlgmr.msrb.gmra.mxu3 %v5393_v45  ;;  %v2147_v45 = vld [vmem:[#allocation10 + $0x30] sm:$0xff] }
 0x561   :  { %2208 = vmatpush.msra.mxu0 %v2189_v5  ;;  %2228 = vmatpush.msra.mxu1 %v2190_v58  ;;  %v2134_v5 = vld [vmem:[#allocation9 + $0x1c8] sm:$0xff]  ;;  %v2135_v58 = vld [vmem:[#allocation9 + $0x1d0] sm:$0xff] }
 0x562   :  { %2248 = vmatpush.msra.mxu2 %v2191_v4  ;;  %2268 = vmatpush.msra.mxu3 %v2192_v6  ;;  %v2136_v4 = vld [vmem:[#allocation9 + $0x1d8] sm:$0xff]  ;;  %v2129_v6 = vld [vmem:[#allocation9 + $0x1a0] sm:$0xff] }
 0x563   :  { %2209 = vmatpush.msra.mxu0 %v2185_v62  ;;  %2229 = vmatpush.msra.mxu1 %v2186_v52  ;;  %v2130_v62 = vld [vmem:[#allocation9 + $0x1a8] sm:$0xff]  ;;  %v2131_v52 = vld [vmem:[#allocation9 + $0x1b0] sm:$0xff] }
 0x564   :  { %2249 = vmatpush.msra.mxu2 %v2187_v60  ;;  %2269 = vmatpush.msra.mxu3 %v2188_v23  ;;  %v2132_v60 = vld [vmem:[#allocation9 + $0x1b8] sm:$0xff]  ;;  %v2125_v23 = vld [vmem:[#allocation9 + $0x180] sm:$0xff] }
 0x565   :  { %2210 = vmatpush.msra.mxu0 %v2181_v56  ;;  %2230 = vmatpush.msra.mxu1 %v2182_v49  ;;  %v2126_v56 = vld [vmem:[#allocation9 + $0x188] sm:$0xff]  ;;  %v2127_v49 = vld [vmem:[#allocation9 + $0x190] sm:$0xff] }
 0x566   :  { %2250 = vmatpush.msra.mxu2 %v2183_v42  ;;  %2270 = vmatpush.msra.mxu3 %v2184_v57  ;;  %v2128_v42 = vld [vmem:[#allocation9 + $0x198] sm:$0xff] }
 0x567   :  { %2211 = vmatpush.msra.mxu0 %v2177_v46  ;;  %2231 = vmatpush.msra.mxu1 %v2178_v50  ;;  %v2121_v46 = vld [vmem:[#allocation9 + $0x160] sm:$0xff]  ;;  %v2122_v50 = vld [vmem:[#allocation9 + $0x168] sm:$0xff] }
 0x568   :  { %2251 = vmatpush.msra.mxu2 %v2179_v55  ;;  %2271 = vmatpush.msra.mxu3 %v2180_v53  ;;  %v2123_v55 = vld [vmem:[#allocation9 + $0x170] sm:$0xff] }
 0x569   :  { %2212 = vmatpush.msra.mxu0 %v2173_v59  ;;  %2232 = vmatpush.msra.mxu1 %v2174_v51  ;;  %v2124_v51 = vld [vmem:[#allocation9 + $0x178] sm:$0xff] }
 0x56a   :  { %2252 = vmatpush.msra.mxu2 %v2175_v37  ;;  %2272 = vmatpush.msra.mxu3 %v2176_v36 }
 0x56b   :  { %2213 = vmatpush.msra.mxu0 %v2169_v0  ;;  %2233 = vmatpush.msra.mxu1 %v2170_v1  ;;  %v2117_v0 = vld [vmem:[#allocation9 + $0x140] sm:$0xff]  ;;  %v2118_v1 = vld [vmem:[#allocation9 + $0x148] sm:$0xff] }
 0x56c   :  { %2253 = vmatpush.msra.mxu2 %v2171_v2  ;;  %2273 = vmatpush.msra.mxu3 %v2172_v3  ;;  %v2119_v2 = vld [vmem:[#allocation9 + $0x150] sm:$0xff]  ;;  %v2120_v3 = vld [vmem:[#allocation9 + $0x158] sm:$0xff] }
 0x56d   :  { %2214 = vmatpush.msra.mxu0 %v2165_v7  ;;  %2234 = vmatpush.msra.mxu1 %v2166_v8 }
 0x56e   :  { %2254 = vmatpush.msra.mxu2 %v2167_v9  ;;  %2274 = vmatpush.msra.mxu3 %v2168_v18  ;;  %v2113_v9 = vld [vmem:[#allocation9 + $0x120] sm:$0xff]  ;;  %v2114_v18 = vld [vmem:[#allocation9 + $0x128] sm:$0xff] }
 0x56f   :  { %2215 = vmatpush.msra.mxu0 %v2161_v26  ;;  %2235 = vmatpush.msra.mxu1 %v2162_v35  ;;  %v2115_v26 = vld [vmem:[#allocation9 + $0x130] sm:$0xff]  ;;  %v2116_v35 = vld [vmem:[#allocation9 + $0x138] sm:$0xff] }
 0x570   :  { %2255 = vmatpush.msra.mxu2 %v2163_v22  ;;  %2275 = vmatpush.msra.mxu3 %v2164_v25 }
 0x571   :  { %2216 = vmatpush.msra.mxu0 %v2157_v11  ;;  %2236 = vmatpush.msra.mxu1 %v2158_v12  ;;  %v2109_v12 = vld [vmem:[#allocation9 + $0x100] sm:$0xff] }
 0x572   :  { %2256 = vmatpush.msra.mxu2 %v2159_v27  ;;  %2276 = vmatpush.msra.mxu3 %v2160_v19  ;;  %v2110_v27 = vld [vmem:[#allocation9 + $0x108] sm:$0xff]  ;;  %v2105_v19 = vld [vmem:[#allocation9 + $0xe0] sm:$0xff] }
 0x573   :  { %2217 = vmatpush.msra.mxu0 %v2153_v13  ;;  %2237 = vmatpush.msra.mxu1 %v2154_v20  ;;  %v2106_v20 = vld [vmem:[#allocation9 + $0xe8] sm:$0xff] }
 0x574   :  { %2257 = vmatpush.msra.mxu2 %v2155_v17  ;;  %2277 = vmatpush.msra.mxu3 %v2156_v15  ;;  %v2107_v17 = vld [vmem:[#allocation9 + $0xf0] sm:$0xff]  ;;  %v2108_v15 = vld [vmem:[#allocation9 + $0xf8] sm:$0xff] }
 0x575   :  { %2218 = vmatpush.msra.mxu0 %v2149_v43  ;;  %2238 = vmatpush.msra.mxu1 %v2150_v34  ;;  %v2101_v34 = vld [vmem:[#allocation9 + $0xc0] sm:$0xff] }
 0x576   :  { %2258 = vmatpush.msra.mxu2 %v2151_v47  ;;  %2278 = vmatpush.msra.mxu3 %v2152_v21  ;;  %v2102_v47 = vld [vmem:[#allocation9 + $0xc8] sm:$0xff]  ;;  %v2103_v21 = vld [vmem:[#allocation9 + $0xd0] sm:$0xff] }
 0x577   :  { %2219 = vmatpush.msra.mxu0 %v2145_v28  ;;  %2239 = vmatpush.msra.mxu1 %v2146_v24  ;;  %v2104_v28 = vld [vmem:[#allocation9 + $0xd8] sm:$0xff] }
 0x578   :  { %2259 = vmatpush.msra.mxu2 %v2147_v45  ;;  %2279 = vmatpush.msra.mxu3 %v2148_v10  ;;  %v2097_v45 = vld [vmem:[#allocation9 + $0xa0] sm:$0xff]  ;;  %v2098_v10 = vld [vmem:[#allocation9 + $0xa8] sm:$0xff] }
 0x579   :  { %2220 = vmatpush.msra.mxu0 %v2141_v63  ;;  %2240 = vmatpush.msra.mxu1 %v2142_v29  ;;  %v2099_v63 = vld [vmem:[#allocation9 + $0xb0] sm:$0xff]  ;;  %v2100_v29 = vld [vmem:[#allocation9 + $0xb8] sm:$0xff] }
 0x57a   :  { %2260 = vmatpush.msra.mxu2 %v2143_v30  ;;  %2280 = vmatpush.msra.mxu3 %v2144_v31  ;;  %v2093_v31 = vld [vmem:[#allocation9 + $0x80] sm:$0xff] }
 0x57b   :  { %2285 = vmatpush.msrb.mxu0 %v2137_v33  ;;  %2305 = vmatpush.msrb.mxu1 %v2138_v39  ;;  %v2094_v33 = vld [vmem:[#allocation9 + $0x88] sm:$0xff] }
 0x57c   :  { %2325 = vmatpush.msrb.mxu2 %v2139_v48  ;;  %2345 = vmatpush.msrb.mxu3 %v2140_v54 }
 0x57d   :  { %2286 = vmatpush.msrb.mxu0 %v2133_v61  ;;  %2306 = vmatpush.msrb.mxu1 %v2134_v5  ;;  %v2089_v5 = vld [vmem:[#allocation9 + $0x60] sm:$0xff] }
 0x57e   :  { %2326 = vmatpush.msrb.mxu2 %v2135_v58  ;;  %2346 = vmatpush.msrb.mxu3 %v2136_v4  ;;  %v2090_v58 = vld [vmem:[#allocation9 + $0x68] sm:$0xff]  ;;  %v2091_v4 = vld [vmem:[#allocation9 + $0x70] sm:$0xff] }
 0x57f   :  { %2287 = vmatpush.msrb.mxu0 %v2129_v6  ;;  %2307 = vmatpush.msrb.mxu1 %v2130_v62  ;;  %v2092_v6 = vld [vmem:[#allocation9 + $0x78] sm:$0xff]  ;;  %v2085_v62 = vld [vmem:[#allocation9 + $0x40] sm:$0xff] }
 0x580   :  { %2327 = vmatpush.msrb.mxu2 %v2131_v52  ;;  %2347 = vmatpush.msrb.mxu3 %v2132_v60  ;;  %v2086_v52 = vld [vmem:[#allocation9 + $0x48] sm:$0xff] }
 0x581   :  { %2288 = vmatpush.msrb.mxu0 %v2125_v23  ;;  %2308 = vmatpush.msrb.mxu1 %v2126_v56  ;;  %v2087_v23 = vld [vmem:[#allocation9 + $0x50] sm:$0xff]  ;;  %v2088_v56 = vld [vmem:[#allocation9 + $0x58] sm:$0xff] }
 0x582   :  { %2328 = vmatpush.msrb.mxu2 %v2127_v49  ;;  %2348 = vmatpush.msrb.mxu3 %v2128_v42  ;;  %v2081_v49 = vld [vmem:[#allocation9 + $0x20] sm:$0xff]  ;;  %v2082_v42 = vld [vmem:[#allocation9 + $0x28] sm:$0xff] }
 0x583   :  { %2289 = vmatpush.msrb.mxu0 %v2121_v46  ;;  %2309 = vmatpush.msrb.mxu1 %v2122_v50  ;;  %v2084_v46 = vld [vmem:[#allocation9 + $0x38] sm:$0xff] }
 0x584   :  { %2329 = vmatpush.msrb.mxu2 %v2123_v55  ;;  %2349 = vmatpush.msrb.mxu3 %v2124_v51  ;;  %v2077_v55 = vld [vmem:[#allocation9] sm:$0xff]  ;;  %v2079_v51 = vld [vmem:[#allocation9 + $0x10] sm:$0xff] }
 0x585   :  { %2290 = vmatpush.msrb.mxu0 %v2117_v0  ;;  %2310 = vmatpush.msrb.mxu1 %v2118_v1 }
 0x586   :  { %2330 = vmatpush.msrb.mxu2 %v2119_v2  ;;  %2350 = vmatpush.msrb.mxu3 %v2120_v3  ;;  %v5401_v3 = vld [vmem:[%s9084_s2 + $0x8] sm:$0xff] }
 0x587   :  { %2291 = vmatpush.msrb.mxu0 %v2113_v9  ;;  %2311 = vmatpush.msrb.mxu1 %v2114_v18  ;;  %2477 = vst [vmem:[#allocation2] sm:$0xff] %v5401_v3  ;;  %v2438_v3 = vld [vmem:[%s9092_s10 + $0x10] sm:$0xff] }
 0x588   :  { %2331 = vmatpush.msrb.mxu2 %v2115_v26  ;;  %2351 = vmatpush.msrb.mxu3 %v2116_v35 }
 0x589   :  { %2292 = vmatpush.msrb.mxu0 %v2109_v12  ;;  %2312 = vmatpush.msrb.mxu1 %v2110_v27 }
 0x58b   :  { %2293 = vmatpush.msrb.mxu0 %v2105_v19  ;;  %2313 = vmatpush.msrb.mxu1 %v2106_v20 }
 0x58d   :  { %2294 = vmatpush.msrb.mxu0 %v2101_v34  ;;  %2314 = vmatpush.msrb.mxu1 %v2102_v47 }
 0x58f   :  { %2295 = vmatpush.msrb.mxu0 %v2097_v45  ;;  %2315 = vmatpush.msrb.mxu1 %v2098_v10 }
 0x591   :  { %2296 = vmatpush.msrb.mxu0 %v2093_v31  ;;  %2316 = vmatpush.msrb.mxu1 %v2094_v33 }
 0x593   :  { %2297 = vmatpush.msrb.mxu0 %v2089_v5  ;;  %2317 = vmatpush.msrb.mxu1 %v2090_v58  ;;  %v2446_v58 = vld [vmem:[%s9092_s10 + $0x50] sm:$0xff] }
 0x595   :  { %2298 = vmatpush.msrb.mxu0 %v2085_v62  ;;  %2318 = vmatpush.msrb.mxu1 %v2086_v52  ;;  %v2443_v52 = vld [vmem:[%s9092_s10 + $0x38] sm:$0xff] }
 0x597   :  { %2299 = vmatpush.msrb.mxu0 %v2081_v49  ;;  %2319 = vmatpush.msrb.mxu1 %v2082_v42  ;;  %v2366_v49 = vld [vmem:[%s9091_s9 + $0x8] sm:$0xff] }
 0x599   :  { %2300 = vmatpush.msrb.mxu0 %v2077_v55 }
 0x5d4   :  { %v1863_v40 = vpop.f32.mrf.mxu0  ;;  %v1883_v41 = vpop.f32.mrf.mxu1 }
 0x5db   :  { %v1923_v57 = vpop.f32.mrf.mxu3  ;;  %v8133_v22 = vpop.f32.mrf.mxu2 }
 0x5dc   :  { %v1943_v53 = vpop.f32.mrf.mxu0  ;;  %v1963_v59 = vpop.f32.mrf.mxu1 }
 0x5dd   :  { %v1944_v37 = vadd.f32 %v1943_v53, %v1863_v40  ;;  %v1964_v36 = vadd.f32 %v1963_v59, %v1883_v41  ;;  %v2095_v40 = vld [vmem:[#allocation9 + $0x90] sm:$0xff]  ;;  %v2096_v41 = vld [vmem:[#allocation9 + $0x98] sm:$0xff]  ;;  %v2078_v53 = vld [vmem:[#allocation9 + $0x8] sm:$0xff] }
 0x5de   :  { %2320 = vmatpush.msrb.mxu1 %v2078_v53  ;;  %v2441_v53 = vld [vmem:[%s9092_s10 + $0x28] sm:$0xff] }
 0x5df   :  { %v2006_v7 = vadd.f32 %v8103_v32, %v1944_v37  ;;  %v2007_v8 = vadd.f32 %v8109_v38, %v1964_v36  ;;  %v2111_v32 = vld [vmem:[#allocation9 + $0x110] sm:$0xff]  ;;  %v2112_v38 = vld [vmem:[#allocation9 + $0x118] sm:$0xff] }
 0x5e0   :  { %2332 = vmatpush.msrb.mxu2 %v2111_v32  ;;  %2352 = vmatpush.msrb.mxu3 %v2112_v38  ;;  %v2080_v37 = vld [vmem:[#allocation9 + $0x18] sm:$0xff] }
 0x5e1   :  { %v5394_v25 = vmul.f32 -1.442695, %v2006_v7  ;;  %v5395_v11 = vmul.f32 -1.442695, %v2007_v8 }
 0x5e2   :  { %2333 = vmatpush.msrb.mxu2 %v2107_v17  ;;  %2353 = vmatpush.msrb.mxu3 %v2108_v15 }
 0x5e3   :  { %5587 = vpow2.f32 %v5394_v25  ;;  %v2003_v13 = vpop.f32.mrf.mxu3  ;;  %v1983_v61 = vpop.f32.mrf.mxu2 }
 0x5e4   :  { %5589 = vpow2.f32 %v5395_v11  ;;  %v2004_v43 = vadd.f32 %v2003_v13, %v1923_v57  ;;  %2334 = vmatpush.msrb.mxu2 %v2103_v21  ;;  %2354 = vmatpush.msrb.mxu3 %v2104_v28  ;;  %v1984_v60 = vadd.f32 %v1983_v61, %v8133_v22  ;;  %v2083_v57 = vld [vmem:[#allocation9 + $0x30] sm:$0xff] }
 0x5e6   :  { %v2009_v24 = vadd.f32 %v8115_v14, %v2004_v43  ;;  %2335 = vmatpush.msrb.mxu2 %v2099_v63  ;;  %2355 = vmatpush.msrb.mxu3 %v2100_v29  ;;  %v2008_v0 = vadd.f32 %v8121_v44, %v1984_v60 }
 0x5e8   :  { %v5396_v30 = vmul.f32 -1.442695, %v2009_v24  ;;  %2336 = vmatpush.msrb.mxu2 %v2095_v40  ;;  %2356 = vmatpush.msrb.mxu3 %v2096_v41  ;;  %v2451_v40 = vld [vmem:[%s9092_s10 + $0x78] sm:$0xff]  ;;  %v2450_v41 = vld [vmem:[%s9092_s10 + $0x70] sm:$0xff] }
 0x5e9   :  { %v5588_v39 = vpop.eup %5587 }
 0x5ea   :  { %v5590_v48 = vpop.eup %5589  ;;  %v8136_v14 = vadd.f32 1.0, %v5588_v39  ;;  %5591 = vpow2.f32 %v5396_v30  ;;  %2337 = vmatpush.msrb.mxu2 %v2091_v4  ;;  %2357 = vmatpush.msrb.mxu3 %v2092_v6  ;;  %v2445_v4 = vld [vmem:[%s9092_s10 + $0x48] sm:$0xff]  ;;  %v2444_v6 = vld [vmem:[%s9092_s10 + $0x40] sm:$0xff] }
 0x5eb   :  { %v8138_v54 = vadd.f32 1.0, %v5590_v48  ;;  %v2449_v48 = vld [vmem:[%s9092_s10 + $0x68] sm:$0xff] }
 0x5ec   :  { %5593 = vrcp.f32 %v8136_v14  ;;  %2338 = vmatpush.msrb.mxu2 %v2087_v23  ;;  %2358 = vmatpush.msrb.mxu3 %v2088_v56  ;;  %v2025_v44 = vand.u32 2147483648, %v8136_v14  ;;  %v2023_v35 = vand.u32 2147483647, %v8136_v14  ;;  %vm2019_vm6 = vweird.f32 %v8136_v14  ;;  %v2365_v23 = vld [vmem:[%s9091_s9] sm:$0xff] }
 0x5ed   :  { %5595 = vrcp.f32 %v8138_v54  ;;  %v2044_v18 = vand.u32 2147483648, %v8138_v54  ;;  %v2042_v25 = vand.u32 2147483647, %v8138_v54  ;;  %vm2038_vm7 = vweird.f32 %v8138_v54 }
 0x5ee   :  { %2339 = vmatpush.msrb.mxu2 %v2083_v57  ;;  %2359 = vmatpush.msrb.mxu3 %v2084_v46  ;;  %v2026_v27 = vor.u32 1.1754944e-38, %v2025_v44  ;;  %vm2024_vm10 = vcmp.eq.f32.partialorder %v2023_v35, 8.507059e+37  ;;  %v2442_v46 = vld [vmem:[%s9092_s10 + $0x30] sm:$0xff]  ;;  %v2436_v44 = vld [vmem:[%s9092_s10] sm:$0xff] }
 0x5ef   :  { %v2045_v19 = vor.u32 1.1754944e-38, %v2044_v18  ;;  %vm2043_vm11 = vcmp.eq.f32.partialorder %v2042_v25, 8.507059e+37 }
 0x5f0   :  { %v5592_v50 = vpop.eup %5591  ;;  %2340 = vmatpush.msrb.mxu2 %v2079_v51  ;;  %2360 = vmatpush.msrb.mxu3 %v2080_v37 }
 0x5f1   :  { %v2052_v59 = vadd.f32 1.0, %v5592_v50 }
 0x5f2   :  { %v5594_v36 = vpop.eup %5593 }
 0x5f3   :  { %v5596_v1 = vpop.eup %5595  ;;  %v2015_v2 = vmul.f32 %v5594_v36, %v8136_v14  ;;  %5597 = vrcp.f32 %v2052_v59  ;;  %vm2020_vm4 = vweird.f32 %v5594_v36  ;;  %v2064_v10 = vand.u32 2147483648, %v2052_v59  ;;  %v2448_v14 = vld [vmem:[%s9092_s10 + $0x60] sm:$0xff] }
 0x5f4   :  { %v2034_v7 = vmul.f32 %v5596_v1, %v8138_v54  ;;  %5599 = vtanh.f32 %v2008_v0  ;;  %vm2039_vm5 = vweird.f32 %v5596_v1  ;;  %vm2021_vm8 = vmor %vm2019_vm6, %vm2020_vm4  ;;  %vm2058_vm13 = vweird.f32 %v2052_v59  ;;  %v2447_v54 = vld [vmem:[%s9092_s10 + $0x58] sm:$0xff] }
 0x5f5   :  { %v2016_v8 = vsub.f32 1.0, %v2015_v2  ;;  %vm2040_vm9 = vmor %vm2038_vm7, %vm2039_vm5  ;;  %v2062_v63 = vand.u32 2147483647, %v2052_v59  ;;  %v2065_v30 = vor.u32 1.1754944e-38, %v2064_v10  ;;  %v2439_v0 = vld [vmem:[%s9092_s10 + $0x18] sm:$0xff] }
 0x5f6   :  { %v2035_v9 = vsub.f32 1.0, %v2034_v7  ;;  %v2368_v2 = vld [vmem:[%s9091_s9 + $0x18] sm:$0xff] }
 0x5f7   :  { %v2017_v26 = vmul.f32 %v5594_v36, %v2016_v8  ;;  %vm2063_vm15 = vcmp.eq.f32.partialorder %v2062_v63, 8.507059e+37  ;;  %v2437_v8 = vld [vmem:[%s9092_s10 + $0x8] sm:$0xff] }
 0x5f8   :  { %v2036_v22 = vmul.f32 %v5596_v1, %v2035_v9 }
 0x5f9   :  { %v5598_v11 = vpop.eup %5597  ;;  %v2018_v12 = vadd.f32 %v5594_v36, %v2017_v26 }
 0x5fa   :  { %v2037_v32 = vadd.f32 %v5596_v1, %v2036_v22  ;;  %v2054_v38 = vmul.f32 %v5598_v11, %v2052_v59  ;;  %v5600_v20 = vpop.eup %5599  ;;  %vm2059_vm12 = vweird.f32 %v5598_v11 }
 0x5fb   :  { %v2022_v13 = vsel %vm2021_vm8, %v5594_v36, %v2018_v12  ;;  %vm2060_vm14 = vmor %vm2058_vm13, %vm2059_vm12  ;;  %v2440_v36 = vld [vmem:[%s9092_s10 + $0x20] sm:$0xff] }
 0x5fc   :  { %v2027_v17 = vsel %vm2024_vm10, %v2026_v27, %v2022_v13  ;;  %v2041_v15 = vsel %vm2040_vm9, %v5596_v1, %v2037_v32  ;;  %v2055_v43 = vsub.f32 1.0, %v2054_v38  ;;  %v2367_v27 = vld [vmem:[%s9091_s9 + $0x10] sm:$0xff] }
 0x5fd   :  { %v2046_v34 = vsel %vm2043_vm11, %v2045_v19, %v2041_v15  ;;  %v2069_v47 = vmul.f32 %v5600_v20, %v2027_v17 }
 0x5fe   :  { %v2068_v21 = vmul.f32 %v2046_v34, %v8125_v16  ;;  %v2056_v28 = vmul.f32 %v5598_v11, %v2055_v43  ;;  %v2074_v16 = vld [vmem:[%s9084_s2] sm:$0xff] }
 0x600   :  { %v8156_v24 = vadd.f32 %v2069_v47, %v2068_v21  ;;  %v2057_v45 = vadd.f32 %v5598_v11, %v2056_v28 }
 0x602   :  { %5601 = vtanh.f32 %v8156_v24  ;;  %v2061_v29 = vsel %vm2060_vm14, %v5598_v11, %v2057_v45 }
 0x603   :  { %v2066_v33 = vsel %vm2063_vm15, %v2065_v30, %v2061_v29 }
 0x608   :  { %v5602_v31 = vpop.eup %5601 }
 0x609   :  { %v2072_v39 = vmul.f32 %v5602_v31, %v2066_v33 }
 0x60b   :  { %2221 = vmatmul.f32.vlgmr.msra.gmra.mxu0 %v2072_v39  ;;  %2241 = vmatmul.f32.vlgmr.msra.gmra.mxu1 %v2072_v39 }
 0x60c   :  { %2261 = vmatmul.f32.vlgmr.msra.gmra.mxu2 %v2072_v39  ;;  %2281 = vmatmul.f32.vlgmr.msra.gmra.mxu3 %v2072_v39 }
 0x60d   :  { %2453 = vmatpush.msra.mxu0 %v2451_v40 }
 0x60f   :  { %2454 = vmatpush.msra.mxu0 %v2450_v41 }
 0x611   :  { %2455 = vmatpush.msra.mxu0 %v2449_v48 }
 0x613   :  { %2301 = vmatmul.f32.vlgmr.msrb.gmra.mxu0 %v2074_v16  ;;  %2321 = vmatmul.f32.vlgmr.msrb.gmra.mxu1 %v2074_v16 }
 0x614   :  { %2341 = vmatmul.f32.vlgmr.msrb.gmra.mxu2 %v2074_v16  ;;  %2361 = vmatmul.f32.vlgmr.msrb.gmra.mxu3 %v2074_v16 }
 0x615   :  { %2456 = vmatpush.msra.mxu0 %v2448_v14 }
 0x617   :  { %2457 = vmatpush.msra.mxu0 %v2447_v54 }
 0x619   :  { %2458 = vmatpush.msra.mxu0 %v2446_v58 }
 0x61b   :  { %2459 = vmatpush.msra.mxu0 %v2445_v4 }
 0x61d   :  { %2460 = vmatpush.msra.mxu0 %v2444_v6 }
 0x61f   :  { %2461 = vmatpush.msra.mxu0 %v2443_v52 }
 0x621   :  { %2462 = vmatpush.msra.mxu0 %v2442_v46 }
 0x623   :  { %2463 = vmatpush.msra.mxu0 %v2441_v53 }
 0x625   :  { %2464 = vmatpush.msra.mxu0 %v2440_v36 }
 0x627   :  { %2465 = vmatpush.msra.mxu0 %v2439_v0 }
 0x629   :  { %2466 = vmatpush.msra.mxu0 %v2438_v3 }
 0x62b   :  { %2467 = vmatpush.msra.mxu0 %v2437_v8 }
 0x62d   :  { %2468 = vmatpush.msra.mxu0 %v2436_v44 }
 0x688   :  { %v2222_v61 = vpop.f32.mrf.mxu0  ;;  %v2242_v5 = vpop.f32.mrf.mxu1 }
 0x68f   :  { %v2282_v62 = vpop.f32.mrf.mxu3  ;;  %v2262_v59 = vpop.f32.mrf.mxu2 }
 0x690   :  { %v2302_v60 = vpop.f32.mrf.mxu0  ;;  %v2322_v56 = vpop.f32.mrf.mxu1 }
 0x691   :  { %v2303_v42 = vadd.f32 %v2302_v60, %v2222_v61  ;;  %v2323_v57 = vadd.f32 %v2322_v56, %v2242_v5 }
 0x693   :  { %v2369_v50 = vadd.f32 %v2365_v23, %v2303_v42  ;;  %v2370_v55 = vadd.f32 %v2366_v49, %v2323_v57 }
 0x695   :  { %v5397_v51 = vmul.f32 -1.442695, %v2369_v50  ;;  %v5398_v37 = vmul.f32 -1.442695, %v2370_v55 }
 0x697   :  { %5603 = vpow2.f32 %v5397_v51  ;;  %v2362_v1 = vpop.f32.mrf.mxu3  ;;  %v2342_v11 = vpop.f32.mrf.mxu2 }
 0x698   :  { %5605 = vpow2.f32 %v5398_v37  ;;  %v2363_v7 = vadd.f32 %v2362_v1, %v2282_v62  ;;  %v2343_v12 = vadd.f32 %v2342_v11, %v2262_v59 }
 0x69a   :  { %v2372_v9 = vadd.f32 %v2368_v2, %v2363_v7  ;;  %v2371_v13 = vadd.f32 %v2367_v27, %v2343_v12 }
 0x69c   :  { %v5399_v18 = vmul.f32 -1.442695, %v2372_v9 }
 0x69d   :  { %v5604_v26 = vpop.eup %5603 }
 0x69e   :  { %v5606_v35 = vpop.eup %5605  ;;  %v2376_v22 = vadd.f32 1.0, %v5604_v26  ;;  %5607 = vpow2.f32 %v5399_v18 }
 0x69f   :  { %v2395_v25 = vadd.f32 1.0, %v5606_v35 }
 0x6a0   :  { %5609 = vrcp.f32 %v2376_v22  ;;  %v2388_v47 = vand.u32 2147483648, %v2376_v22  ;;  %v2386_v45 = vand.u32 2147483647, %v2376_v22  ;;  %vm2382_vm2 = vweird.f32 %v2376_v22 }
 0x6a1   :  { %5611 = vrcp.f32 %v2395_v25  ;;  %v2407_v21 = vand.u32 2147483648, %v2395_v25  ;;  %v2405_v63 = vand.u32 2147483647, %v2395_v25  ;;  %vm2401_vm3 = vweird.f32 %v2395_v25 }
 0x6a2   :  { %v2389_v31 = vor.u32 1.1754944e-38, %v2388_v47  ;;  %vm2387_vm6 = vcmp.eq.f32.partialorder %v2386_v45, 8.507059e+37 }
 0x6a3   :  { %v2408_v16 = vor.u32 1.1754944e-38, %v2407_v21  ;;  %vm2406_vm7 = vcmp.eq.f32.partialorder %v2405_v63, 8.507059e+37 }
 0x6a4   :  { %v5608_v32 = vpop.eup %5607 }
 0x6a5   :  { %v2415_v38 = vadd.f32 1.0, %v5608_v32 }
 0x6a6   :  { %v5610_v19 = vpop.eup %5609 }
 0x6a7   :  { %v5612_v20 = vpop.eup %5611  ;;  %v2378_v17 = vmul.f32 %v5610_v19, %v2376_v22  ;;  %5613 = vrcp.f32 %v2415_v38  ;;  %vm2383_vm0 = vweird.f32 %v5610_v19  ;;  %v2427_v52 = vand.u32 2147483648, %v2415_v38 }
 0x6a8   :  { %v2397_v15 = vmul.f32 %v5612_v20, %v2395_v25  ;;  %5615 = vtanh.f32 %v2371_v13  ;;  %vm2402_vm1 = vweird.f32 %v5612_v20  ;;  %vm2384_vm4 = vmor %vm2382_vm2, %vm2383_vm0  ;;  %vm2421_vm9 = vweird.f32 %v2415_v38 }
 0x6a9   :  { %v2379_v43 = vsub.f32 1.0, %v2378_v17  ;;  %vm2403_vm5 = vmor %vm2401_vm3, %vm2402_vm1  ;;  %v2425_v60 = vand.u32 2147483647, %v2415_v38  ;;  %v2428_v56 = vor.u32 1.1754944e-38, %v2427_v52 }
 0x6aa   :  { %v2398_v34 = vsub.f32 1.0, %v2397_v15 }
 0x6ab   :  { %v2380_v28 = vmul.f32 %v5610_v19, %v2379_v43  ;;  %vm2426_vm11 = vcmp.eq.f32.partialorder %v2425_v60, 8.507059e+37 }
 0x6ac   :  { %v2399_v10 = vmul.f32 %v5612_v20, %v2398_v34 }
 0x6ad   :  { %v5614_v29 = vpop.eup %5613  ;;  %v2381_v30 = vadd.f32 %v5610_v19, %v2380_v28 }
 0x6ae   :  { %v2400_v33 = vadd.f32 %v5612_v20, %v2399_v10  ;;  %v2417_v39 = vmul.f32 %v5614_v29, %v2415_v38  ;;  %v5616_v41 = vpop.eup %5615  ;;  %vm2422_vm8 = vweird.f32 %v5614_v29 }
 0x6af   :  { %v2385_v40 = vsel %vm2384_vm4, %v5610_v19, %v2381_v30  ;;  %vm2423_vm10 = vmor %vm2421_vm9, %vm2422_vm8 }
 0x6b0   :  { %v2390_v48 = vsel %vm2387_vm6, %v2389_v31, %v2385_v40  ;;  %v2404_v14 = vsel %vm2403_vm5, %v5612_v20, %v2400_v33  ;;  %v2418_v54 = vsub.f32 1.0, %v2417_v39 }
 0x6b1   :  { %v2409_v61 = vsel %vm2406_vm7, %v2408_v16, %v2404_v14  ;;  %v2432_v5 = vmul.f32 %v5616_v41, %v2390_v48 }
 0x6b2   :  { %v2431_v58 = vmul.f32 %v2409_v61, %v8156_v24  ;;  %v2419_v4 = vmul.f32 %v5614_v29, %v2418_v54  ;;  %v2452_v24 = vld [vmem:[%s9093_s11] sm:$0xff] }
 0x6b4   :  { %v8223_v6 = vadd.f32 %v2432_v5, %v2431_v58  ;;  %v2420_v62 = vadd.f32 %v5614_v29, %v2419_v4 }
 0x6b6   :  { %5617 = vtanh.f32 %v8223_v6  ;;  %v2424_v23 = vsel %vm2423_vm10, %v5614_v29, %v2420_v62 }
 0x6b7   :  { %v2429_v42 = vsel %vm2426_vm11, %v2428_v56, %v2424_v23 }
 0x6bc   :  { %v5618_v49 = vpop.eup %5617 }
 0x6bd   :  { %v8226_v57 = vmul.f32 %v5618_v49, %v2429_v42 }
 0x6bf   :  { %2469 = vmatmul.f32.vlgmr.msra.gmra.mxu0 %v8226_v57 }
 0x73b   :  { %2482 = sbr.rel (%p5403_p0) target bundleno = 2350 (0x92e), region = 65 }
 0x73c   :  { %v2470_v46 = vpop.f32.mrf.mxu0 }
 0x73d   :  { %v2471_v50 = vadd.f32 %v2470_v46, %v2452_v24 }
 0x73f   :  { %5400 = vst [vmem:[%s9094_s12 + $0x8] sm:$0xff] %v2471_v50 }
 0x740   :  { %v2483_v55 = vlaneseq  ;;  %v2523_v1 = vld [vmem:[%s9085_s3 + $0x78] sm:$0xff]  ;;  %v2522_v2 = vld [vmem:[%s9085_s3 + $0x70] sm:$0xff]  ;;  %v2521_v3 = vld [vmem:[%s9085_s3 + $0x68] sm:$0xff]  ;;  %v6103_v21 = vmov 1.0  }
 0x741   :  { %2524 = vmatpush.msra.mxu0 %v2523_v1  ;;  %v2520_v7 = vld [vmem:[%s9085_s3 + $0x60] sm:$0xff]  ;;  %v2519_v8 = vld [vmem:[%s9085_s3 + $0x58] sm:$0xff]  ;;  %v2518_v9 = vld [vmem:[%s9085_s3 + $0x50] sm:$0xff] }
 0x742   :  { %v2484_v53 = vand.u32 127, %v2483_v55  ;;  %v2517_v44 = vld [vmem:[%s9085_s3 + $0x48] sm:$0xff]  ;;  %v2516_v18 = vld [vmem:[%s9085_s3 + $0x40] sm:$0xff]  ;;  %v2515_v26 = vld [vmem:[%s9085_s3 + $0x38] sm:$0xff] }
 0x743   :  { %2525 = vmatpush.msra.mxu0 %v2522_v2  ;;  %v2514_v35 = vld [vmem:[%s9085_s3 + $0x30] sm:$0xff]  ;;  %v2513_v22 = vld [vmem:[%s9085_s3 + $0x28] sm:$0xff]  ;;  %v2512_v25 = vld [vmem:[%s9085_s3 + $0x20] sm:$0xff] }
 0x744   :  { %vm2485_vm12 = vcmp.lt.s32.totalorder %v2484_v53, 16  ;;  %v2511_v11 = vld [vmem:[%s9085_s3 + $0x18] sm:$0xff]  ;;  %v2510_v19 = vld [vmem:[%s9085_s3 + $0x10] sm:$0xff]  ;;  %v2509_v13 = vld [vmem:[%s9085_s3 + $0x8] sm:$0xff] }
 0x745   :  { %v2486_v59 = vsel %vm2485_vm12, %v2471_v50, -1e+30  ;;  %2526 = vmatpush.msra.mxu0 %v2521_v3  ;;  %v2508_v20 = vld [vmem:[%s9085_s3] sm:$0xff] }
 0x746   :  { %2487 = vmax.xlane.f32.xlu0 %v2486_v59 }
 0x747   :  { %2527 = vmatpush.msra.mxu0 %v2520_v7 }
 0x749   :  { %2528 = vmatpush.msra.mxu0 %v2519_v8 }
 0x74b   :  { %2529 = vmatpush.msra.mxu0 %v2518_v9 }
 0x74d   :  { %2530 = vmatpush.msra.mxu0 %v2517_v44 }
 0x74f   :  { %2531 = vmatpush.msra.mxu0 %v2516_v18 }
 0x751   :  { %2532 = vmatpush.msra.mxu0 %v2515_v26 }
 0x753   :  { %2533 = vmatpush.msra.mxu0 %v2514_v35 }
 0x755   :  { %2534 = vmatpush.msra.mxu0 %v2513_v22 }
 0x757   :  { %2535 = vmatpush.msra.mxu0 %v2512_v25 }
 0x759   :  { %2536 = vmatpush.msra.mxu0 %v2511_v11 }
 0x75b   :  { %2537 = vmatpush.msra.mxu0 %v2510_v19 }
 0x75d   :  { %2538 = vmatpush.msra.mxu0 %v2509_v13 }
 0x75f   :  { %2539 = vmatpush.msra.mxu0 %v2508_v20 }
 0x7b9   :  { %v2488_v51 = vpop.xlane.xlu0 %2487 }
 0x7ba   :  { %vm2489_vm13 = vcmp.eq.f32.partialorder %v2486_v59, %v2488_v51 }
 0x7bb   :  { %v2490_v37 = vsel %vm2489_vm13, %v2484_v53, 128 }
 0x7bc   :  { %v2492_v36 = vshra.s32 %v2490_v37, 16  ;;  %v2491_v12 = vand.u32 65535, %v2490_v37 }
 0x7be   :  { %v2494_v0 = vcvt.s32.f32 %v2492_v36  ;;  %v2493_v32 = vcvt.s32.f32 %v2491_v12 }
 0x7c0   :  { %2495 = vmin.xlane.f32.xlu0 %v2494_v0 }
 0x833   :  { %v2496_v27 = vpop.xlane.xlu0 %2495 }
 0x834   :  { %vm2497_vm14 = vcmp.eq.f32.partialorder %v2494_v0, %v2496_v27  ;;  %v2502_v17 = vcvt.f32.s32 %v2496_v27 }
 0x835   :  { %v2498_v38 = vsel %vm2497_vm14, %v2493_v32, inf }
 0x836   :  { %2499 = vmin.xlane.f32.xlu1 %v2498_v38  ;;  %v2503_v43 = vshll.u32 %v2502_v17, 16 }
 0x8a9   :  { %v2500_v15 = vpop.xlane.xlu1 %2499 }
 0x8aa   :  { %v2501_v34 = vcvt.f32.s32 %v2500_v15 }
 0x8ac   :  { %v2504_v47 = vadd.s32 %v2503_v43, %v2501_v34 }
 0x8ae   :  { %vm2505_vm15 = vcmp.eq.s32.totalorder %v2484_v53, %v2504_v47 }
 0x8af   :  { %5405 = vmatmul.msk.f32.vlgmr.msra.gmra.mxu0 %vm2505_vm15, %v6103_v21 }
 0x92c   :  { %v2541_v28 = vpop.f32.mrf.mxu0 }
 0x92d   :  { %2544 = vst [vmem:[#allocation2] sm:$0xff] %v2541_v28 }
 0x92e PF:  { %v2670_v45 = vld [vmem:[#allocation10 + $0x1e0] sm:$0xff]  ;;  %v2671_v10 = vld [vmem:[#allocation10 + $0x1e8] sm:$0xff]  ;;  %v2673_v63 = vld [vmem:[#allocation10 + $0x1f8] sm:$0xff]  ;;  %s5411_s23 = sld [smem:[#allocation4 + $0x2]] }
 0x92f   :  { %2674 = vmatpush.msra.mxu0 %v2670_v45  ;;  %2694 = vmatpush.msra.mxu1 %v2671_v10  ;;  %v2666_v29 = vld [vmem:[#allocation10 + $0x1c0] sm:$0xff]  ;;  %v2667_v30 = vld [vmem:[#allocation10 + $0x1c8] sm:$0xff]  ;;  %v2669_v31 = vld [vmem:[#allocation10 + $0x1d8] sm:$0xff] }
 0x930   :  { %2734 = vmatpush.msra.mxu3 %v2673_v63  ;;  %v2662_v33 = vld [vmem:[#allocation10 + $0x1a0] sm:$0xff]  ;;  %v2663_v39 = vld [vmem:[#allocation10 + $0x1a8] sm:$0xff]  ;;  %v2665_v16 = vld [vmem:[#allocation10 + $0x1b8] sm:$0xff] }
 0x931   :  { %2675 = vmatpush.msra.mxu0 %v2666_v29  ;;  %2695 = vmatpush.msra.mxu1 %v2667_v30  ;;  %v2658_v40 = vld [vmem:[#allocation10 + $0x180] sm:$0xff]  ;;  %v2659_v41 = vld [vmem:[#allocation10 + $0x188] sm:$0xff]  ;;  %v2672_v48 = vld [vmem:[#allocation10 + $0x1f0] sm:$0xff] }
 0x932   :  { %2735 = vmatpush.msra.mxu3 %v2669_v31  ;;  %v2661_v14 = vld [vmem:[#allocation10 + $0x198] sm:$0xff]  ;;  %v2668_v54 = vld [vmem:[#allocation10 + $0x1d0] sm:$0xff]  ;;  %2714 = vmatpush.msra.mxu2 %v2672_v48  ;;  %v2654_v61 = vld [vmem:[#allocation10 + $0x160] sm:$0xff] }
 0x933   :  { %2676 = vmatpush.msra.mxu0 %v2662_v33  ;;  %2696 = vmatpush.msra.mxu1 %v2663_v39  ;;  %v2655_v5 = vld [vmem:[#allocation10 + $0x168] sm:$0xff]  ;;  %v2657_v58 = vld [vmem:[#allocation10 + $0x178] sm:$0xff]  ;;  %v2664_v4 = vld [vmem:[#allocation10 + $0x1b0] sm:$0xff] }
 0x934   :  { %2736 = vmatpush.msra.mxu3 %v2665_v16  ;;  %2715 = vmatpush.msra.mxu2 %v2668_v54  ;;  %v2650_v62 = vld [vmem:[#allocation10 + $0x140] sm:$0xff]  ;;  %v2651_v52 = vld [vmem:[#allocation10 + $0x148] sm:$0xff]  ;;  %v2653_v60 = vld [vmem:[#allocation10 + $0x158] sm:$0xff]  ;;  %p5412_p1 = scmp.ne.s32.totalorder %s5411_s23, 0 }
 0x935   :  { %2677 = vmatpush.msra.mxu0 %v2658_v40  ;;  %2697 = vmatpush.msra.mxu1 %v2659_v41  ;;  %v2660_v23 = vld [vmem:[#allocation10 + $0x190] sm:$0xff]  ;;  %v2646_v56 = vld [vmem:[#allocation10 + $0x120] sm:$0xff]  ;;  %v2647_v49 = vld [vmem:[#allocation10 + $0x128] sm:$0xff] }
 0x936   :  { %2737 = vmatpush.msra.mxu3 %v2661_v14  ;;  %2716 = vmatpush.msra.mxu2 %v2664_v4  ;;  %v2649_v42 = vld [vmem:[#allocation10 + $0x138] sm:$0xff]  ;;  %v2656_v24 = vld [vmem:[#allocation10 + $0x170] sm:$0xff]  ;;  %v2642_v46 = vld [vmem:[#allocation10 + $0x100] sm:$0xff] }
 0x937   :  { %2678 = vmatpush.msra.mxu0 %v2654_v61  ;;  %2698 = vmatpush.msra.mxu1 %v2655_v5  ;;  %v2643_v50 = vld [vmem:[#allocation10 + $0x108] sm:$0xff]  ;;  %v2645_v55 = vld [vmem:[#allocation10 + $0x118] sm:$0xff]  ;;  %v2652_v53 = vld [vmem:[#allocation10 + $0x150] sm:$0xff] }
 0x938   :  { %2738 = vmatpush.msra.mxu3 %v2657_v58  ;;  %2717 = vmatpush.msra.mxu2 %v2660_v23  ;;  %v2638_v59 = vld [vmem:[#allocation10 + $0xe0] sm:$0xff]  ;;  %v2639_v51 = vld [vmem:[#allocation10 + $0xe8] sm:$0xff]  ;;  %v2641_v37 = vld [vmem:[#allocation10 + $0xf8] sm:$0xff] }
 0x939   :  { %2679 = vmatpush.msra.mxu0 %v2650_v62  ;;  %2699 = vmatpush.msra.mxu1 %v2651_v52  ;;  %v2648_v36 = vld [vmem:[#allocation10 + $0x130] sm:$0xff]  ;;  %v2634_v0 = vld [vmem:[#allocation10 + $0xc0] sm:$0xff]  ;;  %v2635_v1 = vld [vmem:[#allocation10 + $0xc8] sm:$0xff] }
 0x93a   :  { %2739 = vmatpush.msra.mxu3 %v2653_v60  ;;  %2718 = vmatpush.msra.mxu2 %v2656_v24  ;;  %v2637_v2 = vld [vmem:[#allocation10 + $0xd8] sm:$0xff]  ;;  %v2644_v3 = vld [vmem:[#allocation10 + $0x110] sm:$0xff]  ;;  %v2630_v7 = vld [vmem:[#allocation10 + $0xa0] sm:$0xff] }
 0x93b   :  { %2680 = vmatpush.msra.mxu0 %v2646_v56  ;;  %2700 = vmatpush.msra.mxu1 %v2647_v49  ;;  %v2631_v8 = vld [vmem:[#allocation10 + $0xa8] sm:$0xff]  ;;  %v2633_v9 = vld [vmem:[#allocation10 + $0xb8] sm:$0xff]  ;;  %v2640_v44 = vld [vmem:[#allocation10 + $0xf0] sm:$0xff] }
 0x93c   :  { %2740 = vmatpush.msra.mxu3 %v2649_v42  ;;  %2719 = vmatpush.msra.mxu2 %v2652_v53  ;;  %v2626_v18 = vld [vmem:[#allocation10 + $0x80] sm:$0xff]  ;;  %v2627_v26 = vld [vmem:[#allocation10 + $0x88] sm:$0xff]  ;;  %v2629_v35 = vld [vmem:[#allocation10 + $0x98] sm:$0xff] }
 0x93d   :  { %2681 = vmatpush.msra.mxu0 %v2642_v46  ;;  %2701 = vmatpush.msra.mxu1 %v2643_v50  ;;  %v2636_v22 = vld [vmem:[#allocation10 + $0xd0] sm:$0xff]  ;;  %v2622_v25 = vld [vmem:[#allocation10 + $0x60] sm:$0xff]  ;;  %v2623_v11 = vld [vmem:[#allocation10 + $0x68] sm:$0xff] }
 0x93e   :  { %2741 = vmatpush.msra.mxu3 %v2645_v55  ;;  %2720 = vmatpush.msra.mxu2 %v2648_v36  ;;  %v2625_v12 = vld [vmem:[#allocation10 + $0x78] sm:$0xff]  ;;  %v2632_v27 = vld [vmem:[#allocation10 + $0xb0] sm:$0xff]  ;;  %v2618_v32 = vld [vmem:[#allocation10 + $0x40] sm:$0xff] }
 0x93f   :  { %2682 = vmatpush.msra.mxu0 %v2638_v59  ;;  %2702 = vmatpush.msra.mxu1 %v2639_v51  ;;  %v2619_v38 = vld [vmem:[#allocation10 + $0x48] sm:$0xff]  ;;  %v2621_v19 = vld [vmem:[#allocation10 + $0x58] sm:$0xff]  ;;  %v2628_v13 = vld [vmem:[#allocation10 + $0x90] sm:$0xff] }
 0x940   :  { %2742 = vmatpush.msra.mxu3 %v2641_v37  ;;  %2721 = vmatpush.msra.mxu2 %v2644_v3  ;;  %v2614_v20 = vld [vmem:[#allocation10 + $0x20] sm:$0xff]  ;;  %v2615_v17 = vld [vmem:[#allocation10 + $0x28] sm:$0xff]  ;;  %v2617_v15 = vld [vmem:[#allocation10 + $0x38] sm:$0xff] }
 0x941   :  { %2683 = vmatpush.msra.mxu0 %v2634_v0  ;;  %2703 = vmatpush.msra.mxu1 %v2635_v1  ;;  %v2624_v43 = vld [vmem:[#allocation10 + $0x70] sm:$0xff]  ;;  %v2610_v34 = vld [vmem:[#allocation10] sm:$0xff]  ;;  %v2611_v47 = vld [vmem:[#allocation10 + $0x8] sm:$0xff] }
 0x942   :  { %2743 = vmatpush.msra.mxu3 %v2637_v2  ;;  %2722 = vmatpush.msra.mxu2 %v2640_v44  ;;  %v2613_v21 = vld [vmem:[#allocation10 + $0x18] sm:$0xff]  ;;  %v2606_v28 = vld [vmem:[#allocation9 + $0x1e0] sm:$0xff]  ;;  %v2607_v45 = vld [vmem:[#allocation9 + $0x1e8] sm:$0xff] }
 0x943   :  { %2684 = vmatpush.msra.mxu0 %v2630_v7  ;;  %2704 = vmatpush.msra.mxu1 %v2631_v8  ;;  %v2609_v10 = vld [vmem:[#allocation9 + $0x1f8] sm:$0xff]  ;;  %v2620_v63 = vld [vmem:[#allocation10 + $0x50] sm:$0xff]  ;;  %v2602_v29 = vld [vmem:[#allocation9 + $0x1c0] sm:$0xff] }
 0x944   :  { %2744 = vmatpush.msra.mxu3 %v2633_v9  ;;  %2723 = vmatpush.msra.mxu2 %v2636_v22  ;;  %v2603_v30 = vld [vmem:[#allocation9 + $0x1c8] sm:$0xff]  ;;  %v2605_v31 = vld [vmem:[#allocation9 + $0x1d8] sm:$0xff]  ;;  %v2616_v33 = vld [vmem:[#allocation10 + $0x30] sm:$0xff] }
 0x945   :  { %2685 = vmatpush.msra.mxu0 %v2626_v18  ;;  %2705 = vmatpush.msra.mxu1 %v2627_v26  ;;  %v2598_v39 = vld [vmem:[#allocation9 + $0x1a0] sm:$0xff]  ;;  %v2599_v16 = vld [vmem:[#allocation9 + $0x1a8] sm:$0xff]  ;;  %v2601_v40 = vld [vmem:[#allocation9 + $0x1b8] sm:$0xff] }
 0x946   :  { %2745 = vmatpush.msra.mxu3 %v2629_v35  ;;  %2724 = vmatpush.msra.mxu2 %v2632_v27  ;;  %v2612_v41 = vld [vmem:[#allocation10 + $0x10] sm:$0xff]  ;;  %v2594_v48 = vld [vmem:[#allocation9 + $0x180] sm:$0xff]  ;;  %v2595_v14 = vld [vmem:[#allocation9 + $0x188] sm:$0xff] }
 0x947   :  { %2686 = vmatpush.msra.mxu0 %v2622_v25  ;;  %2706 = vmatpush.msra.mxu1 %v2623_v11  ;;  %v2597_v54 = vld [vmem:[#allocation9 + $0x198] sm:$0xff]  ;;  %v2608_v61 = vld [vmem:[#allocation9 + $0x1f0] sm:$0xff]  ;;  %v2590_v5 = vld [vmem:[#allocation9 + $0x160] sm:$0xff] }
 0x948   :  { %2746 = vmatpush.msra.mxu3 %v2625_v12  ;;  %2725 = vmatpush.msra.mxu2 %v2628_v13  ;;  %v2591_v58 = vld [vmem:[#allocation9 + $0x168] sm:$0xff]  ;;  %v2593_v4 = vld [vmem:[#allocation9 + $0x178] sm:$0xff]  ;;  %v2604_v62 = vld [vmem:[#allocation9 + $0x1d0] sm:$0xff] }
 0x949   :  { %2687 = vmatpush.msra.mxu0 %v2618_v32  ;;  %2707 = vmatpush.msra.mxu1 %v2619_v38  ;;  %v2586_v52 = vld [vmem:[#allocation9 + $0x140] sm:$0xff]  ;;  %v2587_v60 = vld [vmem:[#allocation9 + $0x148] sm:$0xff]  ;;  %v2589_v23 = vld [vmem:[#allocation9 + $0x158] sm:$0xff] }
 0x94a   :  { %2747 = vmatpush.msra.mxu3 %v2621_v19  ;;  %2726 = vmatpush.msra.mxu2 %v2624_v43  ;;  %v2600_v56 = vld [vmem:[#allocation9 + $0x1b0] sm:$0xff]  ;;  %v2582_v49 = vld [vmem:[#allocation9 + $0x120] sm:$0xff]  ;;  %v8284_v42 = vld [vmem:[#allocation2] sm:$0xff] }
 0x94b   :  { %2688 = vmatpush.msra.mxu0 %v2614_v20  ;;  %2708 = vmatpush.msra.mxu1 %v2615_v17  ;;  %v5410_v24 = vld [vmem:[%s9084_s2 + $0x10] sm:$0xff]  ;;  %v2585_v50 = vld [vmem:[#allocation9 + $0x138] sm:$0xff]  ;;  %v2596_v55 = vld [vmem:[#allocation9 + $0x190] sm:$0xff] }
 0x94c   :  { %2748 = vmatpush.msra.mxu3 %v2617_v15  ;;  %2727 = vmatpush.msra.mxu2 %v2620_v63  ;;  %v2583_v46 = vld [vmem:[#allocation9 + $0x128] sm:$0xff]  ;;  %2946 = vst [vmem:[#allocation2] sm:$0xff] %v5410_v24  ;;  %v2578_v53 = vld [vmem:[#allocation9 + $0x100] sm:$0xff]  ;;  %v2581_v51 = vld [vmem:[#allocation9 + $0x118] sm:$0xff] }
 0x94d   :  { %2689 = vmatpush.msra.mxu0 %v2610_v34  ;;  %2709 = vmatpush.msra.mxu1 %v2611_v47  ;;  %v2579_v59 = vld [vmem:[#allocation9 + $0x108] sm:$0xff]  ;;  %v2592_v37 = vld [vmem:[#allocation9 + $0x170] sm:$0xff]  ;;  %v2574_v36 = vld [vmem:[#allocation9 + $0xe0] sm:$0xff] }
 0x94e   :  { %2749 = vmatpush.msra.mxu3 %v2613_v21  ;;  %2728 = vmatpush.msra.mxu2 %v2616_v33  ;;  %v2575_v0 = vld [vmem:[#allocation9 + $0xe8] sm:$0xff]  ;;  %v2577_v1 = vld [vmem:[#allocation9 + $0xf8] sm:$0xff]  ;;  %v2588_v2 = vld [vmem:[#allocation9 + $0x150] sm:$0xff] }
 0x94f   :  { %2754 = vmatpush.msrb.mxu0 %v2606_v28  ;;  %2774 = vmatpush.msrb.mxu1 %v2607_v45  ;;  %v2570_v3 = vld [vmem:[#allocation9 + $0xc0] sm:$0xff]  ;;  %v2571_v7 = vld [vmem:[#allocation9 + $0xc8] sm:$0xff]  ;;  %v2573_v8 = vld [vmem:[#allocation9 + $0xd8] sm:$0xff] }
 0x950   :  { %2814 = vmatpush.msrb.mxu3 %v2609_v10  ;;  %2729 = vmatpush.msra.mxu2 %v2612_v41  ;;  %v2584_v9 = vld [vmem:[#allocation9 + $0x130] sm:$0xff]  ;;  %v2566_v44 = vld [vmem:[#allocation9 + $0xa0] sm:$0xff]  ;;  %v2567_v18 = vld [vmem:[#allocation9 + $0xa8] sm:$0xff] }
 0x951   :  { %2755 = vmatpush.msrb.mxu0 %v2602_v29  ;;  %2775 = vmatpush.msrb.mxu1 %v2603_v30  ;;  %v2569_v26 = vld [vmem:[#allocation9 + $0xb8] sm:$0xff]  ;;  %v2580_v35 = vld [vmem:[#allocation9 + $0x110] sm:$0xff]  ;;  %v2562_v22 = vld [vmem:[#allocation9 + $0x80] sm:$0xff] }
 0x952   :  { %2815 = vmatpush.msrb.mxu3 %v2605_v31  ;;  %2794 = vmatpush.msrb.mxu2 %v2608_v61  ;;  %v2563_v25 = vld [vmem:[#allocation9 + $0x88] sm:$0xff]  ;;  %v2565_v11 = vld [vmem:[#allocation9 + $0x98] sm:$0xff]  ;;  %v2576_v12 = vld [vmem:[#allocation9 + $0xf0] sm:$0xff] }
 0x953   :  { %2756 = vmatpush.msrb.mxu0 %v2598_v39  ;;  %2776 = vmatpush.msrb.mxu1 %v2599_v16  ;;  %v2558_v27 = vld [vmem:[#allocation9 + $0x60] sm:$0xff]  ;;  %v2559_v32 = vld [vmem:[#allocation9 + $0x68] sm:$0xff]  ;;  %v2561_v38 = vld [vmem:[#allocation9 + $0x78] sm:$0xff] }
 0x954   :  { %2816 = vmatpush.msrb.mxu3 %v2601_v40  ;;  %2795 = vmatpush.msrb.mxu2 %v2604_v62  ;;  %v2572_v19 = vld [vmem:[#allocation9 + $0xd0] sm:$0xff]  ;;  %v2554_v13 = vld [vmem:[#allocation9 + $0x40] sm:$0xff]  ;;  %v2555_v20 = vld [vmem:[#allocation9 + $0x48] sm:$0xff] }
 0x955   :  { %2757 = vmatpush.msrb.mxu0 %v2594_v48  ;;  %2777 = vmatpush.msrb.mxu1 %v2595_v14  ;;  %v2557_v17 = vld [vmem:[#allocation9 + $0x58] sm:$0xff]  ;;  %v2568_v15 = vld [vmem:[#allocation9 + $0xb0] sm:$0xff]  ;;  %v2550_v43 = vld [vmem:[#allocation9 + $0x20] sm:$0xff] }
 0x956   :  { %2817 = vmatpush.msrb.mxu3 %v2597_v54  ;;  %2796 = vmatpush.msrb.mxu2 %v2600_v56  ;;  %v2551_v34 = vld [vmem:[#allocation9 + $0x28] sm:$0xff]  ;;  %v2553_v47 = vld [vmem:[#allocation9 + $0x38] sm:$0xff]  ;;  %v2564_v21 = vld [vmem:[#allocation9 + $0x90] sm:$0xff] }
 0x957   :  { %2758 = vmatpush.msrb.mxu0 %v2590_v5  ;;  %2778 = vmatpush.msrb.mxu1 %v2591_v58  ;;  %v2546_v28 = vld [vmem:[#allocation9] sm:$0xff]  ;;  %v2547_v45 = vld [vmem:[#allocation9 + $0x8] sm:$0xff]  ;;  %v2549_v10 = vld [vmem:[#allocation9 + $0x18] sm:$0xff] }
 0x958   :  { %2818 = vmatpush.msrb.mxu3 %v2593_v4  ;;  %2797 = vmatpush.msrb.mxu2 %v2596_v55  ;;  %v2560_v63 = vld [vmem:[#allocation9 + $0x70] sm:$0xff]  ;;  %v2919_v33 = vld [vmem:[%s9092_s10 + $0x70] sm:$0xff]  ;;  %v2918_v39 = vld [vmem:[%s9092_s10 + $0x68] sm:$0xff] }
 0x959   :  { %2759 = vmatpush.msrb.mxu0 %v2586_v52  ;;  %2779 = vmatpush.msrb.mxu1 %v2587_v60  ;;  %v2556_v29 = vld [vmem:[#allocation9 + $0x50] sm:$0xff]  ;;  %v2917_v41 = vld [vmem:[%s9092_s10 + $0x60] sm:$0xff]  ;;  %v2915_v14 = vld [vmem:[%s9092_s10 + $0x50] sm:$0xff] }
 0x95a   :  { %2819 = vmatpush.msrb.mxu3 %v2589_v23  ;;  %2798 = vmatpush.msrb.mxu2 %v2592_v37  ;;  %v2552_v30 = vld [vmem:[#allocation9 + $0x30] sm:$0xff]  ;;  %v2914_v54 = vld [vmem:[%s9092_s10 + $0x48] sm:$0xff]  ;;  %v2913_v5 = vld [vmem:[%s9092_s10 + $0x40] sm:$0xff] }
 0x95b   :  { %2760 = vmatpush.msrb.mxu0 %v2582_v49  ;;  %2780 = vmatpush.msrb.mxu1 %v2583_v46  ;;  %v2548_v31 = vld [vmem:[#allocation9 + $0x10] sm:$0xff]  ;;  %v2834_v4 = vld [vmem:[%s9091_s9] sm:$0xff]  ;;  %v2835_v52 = vld [vmem:[%s9091_s9 + $0x8] sm:$0xff] }
 0x95c   :  { %2820 = vmatpush.msrb.mxu3 %v2585_v50  ;;  %2799 = vmatpush.msrb.mxu2 %v2588_v2  ;;  %v2916_v48 = vld [vmem:[%s9092_s10 + $0x58] sm:$0xff]  ;;  %v2911_v49 = vld [vmem:[%s9092_s10 + $0x30] sm:$0xff]  ;;  %v2910_v46 = vld [vmem:[%s9092_s10 + $0x28] sm:$0xff] }
 0x95d   :  { %2761 = vmatpush.msrb.mxu0 %v2578_v53  ;;  %2781 = vmatpush.msrb.mxu1 %v2579_v59  ;;  %v2912_v60 = vld [vmem:[%s9092_s10 + $0x38] sm:$0xff]  ;;  %v2909_v59 = vld [vmem:[%s9092_s10 + $0x20] sm:$0xff] }
 0x95e   :  { %2821 = vmatpush.msrb.mxu3 %v2581_v51  ;;  %2800 = vmatpush.msrb.mxu2 %v2584_v9  ;;  %v2908_v51 = vld [vmem:[%s9092_s10 + $0x18] sm:$0xff] }
 0x95f   :  { %2762 = vmatpush.msrb.mxu0 %v2574_v36  ;;  %2782 = vmatpush.msrb.mxu1 %v2575_v0  ;;  %v2837_v36 = vld [vmem:[%s9091_s9 + $0x18] sm:$0xff] }
 0x960   :  { %2822 = vmatpush.msrb.mxu3 %v2577_v1  ;;  %2801 = vmatpush.msrb.mxu2 %v2580_v35  ;;  %v2907_v1 = vld [vmem:[%s9092_s10 + $0x10] sm:$0xff] }
 0x961   :  { %2763 = vmatpush.msrb.mxu0 %v2570_v3  ;;  %2783 = vmatpush.msrb.mxu1 %v2571_v7  ;;  %v2906_v3 = vld [vmem:[%s9092_s10 + $0x8] sm:$0xff] }
 0x962   :  { %2823 = vmatpush.msrb.mxu3 %v2573_v8  ;;  %2690 = vmatmul.f32.vlgmr.msra.gmra.mxu0 %v8226_v57  ;;  %v2905_v8 = vld [vmem:[%s9092_s10] sm:$0xff] }
 0x963   :  { %2764 = vmatpush.msrb.mxu0 %v2566_v44  ;;  %2784 = vmatpush.msrb.mxu1 %v2567_v18 }
 0x964   :  { %2824 = vmatpush.msrb.mxu3 %v2569_v26  ;;  %2710 = vmatmul.f32.vlgmr.msra.gmra.mxu1 %v8226_v57 }
 0x965   :  { %2765 = vmatpush.msrb.mxu0 %v2562_v22  ;;  %2785 = vmatpush.msrb.mxu1 %v2563_v25  ;;  %v2836_v25 = vld [vmem:[%s9091_s9 + $0x10] sm:$0xff] }
 0x966   :  { %2825 = vmatpush.msrb.mxu3 %v2565_v11  ;;  %2802 = vmatpush.msrb.mxu2 %v2576_v12 }
 0x967   :  { %2750 = vmatmul.f32.vlgmr.msra.gmra.mxu3 %v8226_v57  ;;  %2766 = vmatpush.msrb.mxu0 %v2558_v27 }
 0x968   :  { %2786 = vmatpush.msrb.mxu1 %v2559_v32  ;;  %2826 = vmatpush.msrb.mxu3 %v2561_v38 }
 0x969   :  { %2803 = vmatpush.msrb.mxu2 %v2572_v19  ;;  %2767 = vmatpush.msrb.mxu0 %v2554_v13 }
 0x96a   :  { %2787 = vmatpush.msrb.mxu1 %v2555_v20  ;;  %2827 = vmatpush.msrb.mxu3 %v2557_v17 }
 0x96b   :  { %2804 = vmatpush.msrb.mxu2 %v2568_v15  ;;  %2768 = vmatpush.msrb.mxu0 %v2550_v43 }
 0x96c   :  { %2788 = vmatpush.msrb.mxu1 %v2551_v34  ;;  %2828 = vmatpush.msrb.mxu3 %v2553_v47 }
 0x96d   :  { %2805 = vmatpush.msrb.mxu2 %v2564_v21  ;;  %2769 = vmatpush.msrb.mxu0 %v2546_v28 }
 0x96e   :  { %2730 = vmatmul.f32.vlgmr.msra.gmra.mxu2 %v8226_v57  ;;  %2789 = vmatpush.msrb.mxu1 %v2547_v45  ;;  %v2920_v57 = vld [vmem:[%s9092_s10 + $0x78] sm:$0xff] }
 0x96f   :  { %2829 = vmatpush.msrb.mxu3 %v2549_v10  ;;  %2770 = vmatmul.f32.vlgmr.msrb.gmra.mxu0 %v8284_v42 }
 0x970   :  { %2790 = vmatmul.f32.vlgmr.msrb.gmra.mxu1 %v8284_v42  ;;  %2806 = vmatpush.msrb.mxu2 %v2560_v63 }
 0x971   :  { %2830 = vmatmul.f32.vlgmr.msrb.gmra.mxu3 %v8284_v42  ;;  %2922 = vmatpush.msra.mxu0 %v2920_v57 }
 0x972   :  { %2807 = vmatpush.msrb.mxu2 %v2556_v29 }
 0x973   :  { %2923 = vmatpush.msra.mxu0 %v2919_v33 }
 0x974   :  { %2808 = vmatpush.msrb.mxu2 %v2552_v30 }
 0x975   :  { %2924 = vmatpush.msra.mxu0 %v2918_v39 }
 0x976   :  { %2809 = vmatpush.msrb.mxu2 %v2548_v31 }
 0x977   :  { %2810 = vmatmul.f32.vlgmr.msrb.gmra.mxu2 %v8284_v42  ;;  %2925 = vmatpush.msra.mxu0 %v2917_v41 }
 0x979   :  { %2926 = vmatpush.msra.mxu0 %v2916_v48 }
 0x97b   :  { %2927 = vmatpush.msra.mxu0 %v2915_v14 }
 0x97d   :  { %2928 = vmatpush.msra.mxu0 %v2914_v54 }
 0x97f   :  { %2929 = vmatpush.msra.mxu0 %v2913_v5 }
 0x981   :  { %2930 = vmatpush.msra.mxu0 %v2912_v60 }
 0x983   :  { %2931 = vmatpush.msra.mxu0 %v2911_v49 }
 0x985   :  { %2932 = vmatpush.msra.mxu0 %v2910_v46 }
 0x987   :  { %2933 = vmatpush.msra.mxu0 %v2909_v59 }
 0x989   :  { %2934 = vmatpush.msra.mxu0 %v2908_v51 }
 0x98b   :  { %2935 = vmatpush.msra.mxu0 %v2907_v1 }
 0x98d   :  { %2936 = vmatpush.msra.mxu0 %v2906_v3 }
 0x98f   :  { %2937 = vmatpush.msra.mxu0 %v2905_v8 }
 0x9df   :  { %v2691_v16 = vpop.f32.mrf.mxu0 }
 0x9e1   :  { %v2711_v40 = vpop.f32.mrf.mxu1 }
 0x9ea   :  { %v2751_v61 = vpop.f32.mrf.mxu3 }
 0x9ec   :  { %v2771_v58 = vpop.f32.mrf.mxu0 }
 0x9ed   :  { %v2791_v62 = vpop.f32.mrf.mxu1  ;;  %v2772_v23 = vadd.f32 %v2771_v58, %v2691_v16 }
 0x9ee   :  { %v2792_v56 = vadd.f32 %v2791_v62, %v2711_v40 }
 0x9ef   :  { %v2838_v42 = vadd.f32 %v2834_v4, %v2772_v23 }
 0x9f0   :  { %v2839_v24 = vadd.f32 %v2835_v52, %v2792_v56 }
 0x9f1   :  { %v5406_v50 = vmul.f32 -1.442695, %v2838_v42  ;;  %v2731_v53 = vpop.f32.mrf.mxu2 }
 0x9f2   :  { %v5407_v55 = vmul.f32 -1.442695, %v2839_v24 }
 0x9f3   :  { %5883 = vpow2.f32 %v5406_v50 }
 0x9f4   :  { %v2831_v37 = vpop.f32.mrf.mxu3  ;;  %5885 = vpow2.f32 %v5407_v55 }
 0x9f5   :  { %v2832_v0 = vadd.f32 %v2831_v37, %v2751_v61 }
 0x9f7   :  { %v2841_v2 = vadd.f32 %v2837_v36, %v2832_v0 }
 0x9f9   :  { %v5408_v7 = vmul.f32 -1.442695, %v2841_v2  ;;  %v5884_v9 = vpop.eup %5883 }
 0x9fa   :  { %v5886_v44 = vpop.eup %5885  ;;  %v2845_v18 = vadd.f32 1.0, %v5884_v9  ;;  %v2811_v35 = vpop.f32.mrf.mxu2 }
 0x9fb   :  { %5887 = vpow2.f32 %v5408_v7  ;;  %v2864_v26 = vadd.f32 1.0, %v5886_v44  ;;  %v2812_v22 = vadd.f32 %v2811_v35, %v2731_v53 }
 0x9fc   :  { %5889 = vrcp.f32 %v2845_v18  ;;  %v2857_v15 = vand.u32 2147483648, %v2845_v18  ;;  %v2855_v47 = vand.u32 2147483647, %v2845_v18  ;;  %vm2851_vm2 = vweird.f32 %v2845_v18 }
 0x9fd   :  { %5891 = vrcp.f32 %v2864_v26  ;;  %v2840_v32 = vadd.f32 %v2836_v25, %v2812_v22  ;;  %v2876_v43 = vand.u32 2147483648, %v2864_v26  ;;  %v2874_v28 = vand.u32 2147483647, %v2864_v26 }
 0x9fe   :  { %vm2870_vm3 = vweird.f32 %v2864_v26  ;;  %v2858_v29 = vor.u32 1.1754944e-38, %v2857_v15  ;;  %vm2856_vm5 = vcmp.eq.f32.partialorder %v2855_v47, 8.507059e+37 }
 0x9ff   :  { %v2877_v31 = vor.u32 1.1754944e-38, %v2876_v43  ;;  %vm2875_vm7 = vcmp.eq.f32.partialorder %v2874_v28, 8.507059e+37 }
 0xa01   :  { %v5888_v11 = vpop.eup %5887 }
 0xa02   :  { %v2884_v12 = vadd.f32 1.0, %v5888_v11  ;;  %v5890_v27 = vpop.eup %5889 }
 0xa03   :  { %v5892_v38 = vpop.eup %5891  ;;  %v2847_v19 = vmul.f32 %v5890_v27, %v2845_v18  ;;  %vm2852_vm0 = vweird.f32 %v5890_v27 }
 0xa04   :  { %5893 = vrcp.f32 %v2884_v12  ;;  %v2866_v13 = vmul.f32 %v5892_v38, %v2864_v26  ;;  %vm2871_vm1 = vweird.f32 %v5892_v38  ;;  %vm2853_vm4 = vmor %vm2851_vm2, %vm2852_vm0  ;;  %v2896_v58 = vand.u32 2147483648, %v2884_v12 }
 0xa05   :  { %v2848_v20 = vsub.f32 1.0, %v2847_v19  ;;  %5895 = vtanh.f32 %v2840_v32  ;;  %vm2872_vm6 = vmor %vm2870_vm3, %vm2871_vm1  ;;  %vm2890_vm9 = vweird.f32 %v2884_v12  ;;  %v2894_v4 = vand.u32 2147483647, %v2884_v12 }
 0xa06   :  { %v2867_v17 = vsub.f32 1.0, %v2866_v13  ;;  %v2897_v52 = vor.u32 1.1754944e-38, %v2896_v58 }
 0xa07   :  { %v2849_v34 = vmul.f32 %v5890_v27, %v2848_v20  ;;  %vm2895_vm11 = vcmp.eq.f32.partialorder %v2894_v4, 8.507059e+37 }
 0xa08   :  { %v2868_v21 = vmul.f32 %v5892_v38, %v2867_v17 }
 0xa09   :  { %v2850_v10 = vadd.f32 %v5890_v27, %v2849_v34 }
 0xa0a   :  { %v5894_v45 = vpop.eup %5893  ;;  %v2869_v30 = vadd.f32 %v5892_v38, %v2868_v21 }
 0xa0b   :  { %v2886_v63 = vmul.f32 %v5894_v45, %v2884_v12  ;;  %v2854_v57 = vsel %vm2853_vm4, %v5890_v27, %v2850_v10  ;;  %v5896_v33 = vpop.eup %5895  ;;  %vm2891_vm8 = vweird.f32 %v5894_v45 }
 0xa0c   :  { %v2859_v16 = vsel %vm2856_vm5, %v2858_v29, %v2854_v57  ;;  %v2873_v40 = vsel %vm2872_vm6, %v5892_v38, %v2869_v30  ;;  %vm2892_vm10 = vmor %vm2890_vm9, %vm2891_vm8 }
 0xa0d   :  { %v2887_v39 = vsub.f32 1.0, %v2886_v63  ;;  %v2878_v41 = vsel %vm2875_vm7, %v2877_v31, %v2873_v40  ;;  %v2901_v48 = vmul.f32 %v5896_v33, %v2859_v16 }
 0xa0e   :  { %v2900_v14 = vmul.f32 %v2878_v41, %v8223_v6  ;;  %v2921_v6 = vld [vmem:[%s9093_s11] sm:$0xff] }
 0xa0f   :  { %v2888_v54 = vmul.f32 %v5894_v45, %v2887_v39 }
 0xa10   :  { %v8358_v61 = vadd.f32 %v2901_v48, %v2900_v14 }
 0xa11   :  { %v2889_v5 = vadd.f32 %v5894_v45, %v2888_v54 }
 0xa12   :  { %5897 = vtanh.f32 %v8358_v61 }
 0xa13   :  { %v2893_v62 = vsel %vm2892_vm10, %v5894_v45, %v2889_v5 }
 0xa14   :  { %v2898_v23 = vsel %vm2895_vm11, %v2897_v52, %v2893_v62 }
 0xa18   :  { %v5898_v60 = vpop.eup %5897 }
 0xa19   :  { %v8361_v56 = vmul.f32 %v5898_v60, %v2898_v23 }
 0xa1b   :  { %2938 = vmatmul.f32.vlgmr.msra.gmra.mxu0 %v8361_v56 }
 0xa97   :  { %2951 = sbr.rel (%p5412_p1) target bundleno = 3210 (0xc8a), region = 69 }
 0xa98   :  { %v2939_v49 = vpop.f32.mrf.mxu0 }
 0xa99   :  { %v2940_v42 = vadd.f32 %v2939_v49, %v2921_v6 }
 0xa9b   :  { %5409 = vst [vmem:[%s9094_s12 + $0x10] sm:$0xff] %v2940_v42 }
 0xa9c   :  { %v2952_v24 = vlaneseq  ;;  %v2992_v37 = vld [vmem:[%s9085_s3 + $0x78] sm:$0xff]  ;;  %v2991_v36 = vld [vmem:[%s9085_s3 + $0x70] sm:$0xff]  ;;  %v2990_v0 = vld [vmem:[%s9085_s3 + $0x68] sm:$0xff]  ;;  %v6104_v43 = vmov 1.0  }
 0xa9d   :  { %2993 = vmatpush.msra.mxu0 %v2992_v37  ;;  %v2989_v1 = vld [vmem:[%s9085_s3 + $0x60] sm:$0xff]  ;;  %v2988_v2 = vld [vmem:[%s9085_s3 + $0x58] sm:$0xff]  ;;  %v2987_v3 = vld [vmem:[%s9085_s3 + $0x50] sm:$0xff] }
 0xa9e   :  { %v2953_v46 = vand.u32 127, %v2952_v24  ;;  %v2986_v7 = vld [vmem:[%s9085_s3 + $0x48] sm:$0xff]  ;;  %v2985_v8 = vld [vmem:[%s9085_s3 + $0x40] sm:$0xff]  ;;  %v2984_v9 = vld [vmem:[%s9085_s3 + $0x38] sm:$0xff] }
 0xa9f   :  { %2994 = vmatpush.msra.mxu0 %v2991_v36  ;;  %v2983_v44 = vld [vmem:[%s9085_s3 + $0x30] sm:$0xff]  ;;  %v2982_v18 = vld [vmem:[%s9085_s3 + $0x28] sm:$0xff]  ;;  %v2981_v26 = vld [vmem:[%s9085_s3 + $0x20] sm:$0xff] }
 0xaa0   :  { %vm2954_vm12 = vcmp.lt.s32.totalorder %v2953_v46, 16  ;;  %v2980_v35 = vld [vmem:[%s9085_s3 + $0x18] sm:$0xff]  ;;  %v2979_v27 = vld [vmem:[%s9085_s3 + $0x10] sm:$0xff]  ;;  %v2978_v32 = vld [vmem:[%s9085_s3 + $0x8] sm:$0xff] }
 0xaa1   :  { %v2955_v50 = vsel %vm2954_vm12, %v2940_v42, -1e+30  ;;  %2995 = vmatpush.msra.mxu0 %v2990_v0  ;;  %v2977_v38 = vld [vmem:[%s9085_s3] sm:$0xff] }
 0xaa2   :  { %2956 = vmax.xlane.f32.xlu0 %v2955_v50 }
 0xaa3   :  { %2996 = vmatpush.msra.mxu0 %v2989_v1 }
 0xaa5   :  { %2997 = vmatpush.msra.mxu0 %v2988_v2 }
 0xaa7   :  { %2998 = vmatpush.msra.mxu0 %v2987_v3 }
 0xaa9   :  { %2999 = vmatpush.msra.mxu0 %v2986_v7 }
 0xaab   :  { %3000 = vmatpush.msra.mxu0 %v2985_v8 }
 0xaad   :  { %3001 = vmatpush.msra.mxu0 %v2984_v9 }
 0xaaf   :  { %3002 = vmatpush.msra.mxu0 %v2983_v44 }
 0xab1   :  { %3003 = vmatpush.msra.mxu0 %v2982_v18 }
 0xab3   :  { %3004 = vmatpush.msra.mxu0 %v2981_v26 }
 0xab5   :  { %3005 = vmatpush.msra.mxu0 %v2980_v35 }
 0xab7   :  { %3006 = vmatpush.msra.mxu0 %v2979_v27 }
 0xab9   :  { %3007 = vmatpush.msra.mxu0 %v2978_v32 }
 0xabb   :  { %3008 = vmatpush.msra.mxu0 %v2977_v38 }
 0xb15   :  { %v2957_v55 = vpop.xlane.xlu0 %2956 }
 0xb16   :  { %vm2958_vm13 = vcmp.eq.f32.partialorder %v2955_v50, %v2957_v55 }
 0xb17   :  { %v2959_v53 = vsel %vm2958_vm13, %v2953_v46, 128 }
 0xb18   :  { %v2961_v59 = vshra.s32 %v2959_v53, 16  ;;  %v2960_v22 = vand.u32 65535, %v2959_v53 }
 0xb1a   :  { %v2963_v51 = vcvt.s32.f32 %v2961_v59  ;;  %v2962_v11 = vcvt.s32.f32 %v2960_v22 }
 0xb1c   :  { %2964 = vmin.xlane.f32.xlu0 %v2963_v51 }
 0xb8f   :  { %v2965_v25 = vpop.xlane.xlu0 %2964 }
 0xb90   :  { %vm2966_vm14 = vcmp.eq.f32.partialorder %v2963_v51, %v2965_v25  ;;  %v2971_v19 = vcvt.f32.s32 %v2965_v25 }
 0xb91   :  { %v2967_v12 = vsel %vm2966_vm14, %v2962_v11, inf }
 0xb92   :  { %2968 = vmin.xlane.f32.xlu1 %v2967_v12  ;;  %v2972_v20 = vshll.u32 %v2971_v19, 16 }
 0xc05   :  { %v2969_v13 = vpop.xlane.xlu1 %2968 }
 0xc06   :  { %v2970_v17 = vcvt.f32.s32 %v2969_v13 }
 0xc08   :  { %v2973_v15 = vadd.s32 %v2972_v20, %v2970_v17 }
 0xc0a   :  { %vm2974_vm15 = vcmp.eq.s32.totalorder %v2953_v46, %v2973_v15 }
 0xc0b   :  { %5414 = vmatmul.msk.f32.vlgmr.msra.gmra.mxu0 %vm2974_vm15, %v6104_v43 }
 0xc88   :  { %v3010_v34 = vpop.f32.mrf.mxu0 }
 0xc89   :  { %3013 = vst [vmem:[#allocation2] sm:$0xff] %v3010_v34 }
 0xc8a PF:  { %v3139_v47 = vld [vmem:[#allocation10 + $0x1e0] sm:$0xff]  ;;  %v3140_v21 = vld [vmem:[#allocation10 + $0x1e8] sm:$0xff]  ;;  %v3142_v28 = vld [vmem:[#allocation10 + $0x1f8] sm:$0xff]  ;;  %s5420_s25 = sld [smem:[#allocation4 + $0x3]] }
 0xc8b   :  { %3143 = vmatpush.msra.mxu0 %v3139_v47  ;;  %3163 = vmatpush.msra.mxu1 %v3140_v21  ;;  %v3135_v45 = vld [vmem:[#allocation10 + $0x1c0] sm:$0xff]  ;;  %v3136_v10 = vld [vmem:[#allocation10 + $0x1c8] sm:$0xff]  ;;  %v3138_v63 = vld [vmem:[#allocation10 + $0x1d8] sm:$0xff] }
 0xc8c   :  { %3203 = vmatpush.msra.mxu3 %v3142_v28  ;;  %v3131_v29 = vld [vmem:[#allocation10 + $0x1a0] sm:$0xff]  ;;  %v3132_v30 = vld [vmem:[#allocation10 + $0x1a8] sm:$0xff]  ;;  %v3134_v31 = vld [vmem:[#allocation10 + $0x1b8] sm:$0xff] }
 0xc8d   :  { %3144 = vmatpush.msra.mxu0 %v3135_v45  ;;  %3164 = vmatpush.msra.mxu1 %v3136_v10  ;;  %v3127_v57 = vld [vmem:[#allocation10 + $0x180] sm:$0xff]  ;;  %v3128_v33 = vld [vmem:[#allocation10 + $0x188] sm:$0xff]  ;;  %v3141_v39 = vld [vmem:[#allocation10 + $0x1f0] sm:$0xff] }
 0xc8e   :  { %3204 = vmatpush.msra.mxu3 %v3138_v63  ;;  %v3130_v16 = vld [vmem:[#allocation10 + $0x198] sm:$0xff]  ;;  %v3137_v40 = vld [vmem:[#allocation10 + $0x1d0] sm:$0xff]  ;;  %3183 = vmatpush.msra.mxu2 %v3141_v39  ;;  %v3123_v41 = vld [vmem:[#allocation10 + $0x160] sm:$0xff] }
 0xc8f   :  { %3145 = vmatpush.msra.mxu0 %v3131_v29  ;;  %3165 = vmatpush.msra.mxu1 %v3132_v30  ;;  %v3124_v48 = vld [vmem:[#allocation10 + $0x168] sm:$0xff]  ;;  %v3126_v14 = vld [vmem:[#allocation10 + $0x178] sm:$0xff]  ;;  %v3133_v54 = vld [vmem:[#allocation10 + $0x1b0] sm:$0xff] }
 0xc90   :  { %3205 = vmatpush.msra.mxu3 %v3134_v31  ;;  %3184 = vmatpush.msra.mxu2 %v3137_v40  ;;  %v3119_v5 = vld [vmem:[#allocation10 + $0x140] sm:$0xff]  ;;  %v3120_v58 = vld [vmem:[#allocation10 + $0x148] sm:$0xff]  ;;  %v3122_v4 = vld [vmem:[#allocation10 + $0x158] sm:$0xff]  ;;  %p5421_p2 = scmp.ne.s32.totalorder %s5420_s25, 0 }
 0xc91   :  { %3146 = vmatpush.msra.mxu0 %v3127_v57  ;;  %3166 = vmatpush.msra.mxu1 %v3128_v33  ;;  %v3129_v62 = vld [vmem:[#allocation10 + $0x190] sm:$0xff]  ;;  %v3115_v52 = vld [vmem:[#allocation10 + $0x120] sm:$0xff]  ;;  %v3116_v60 = vld [vmem:[#allocation10 + $0x128] sm:$0xff] }
 0xc92   :  { %3206 = vmatpush.msra.mxu3 %v3130_v16  ;;  %3185 = vmatpush.msra.mxu2 %v3133_v54  ;;  %v3118_v23 = vld [vmem:[#allocation10 + $0x138] sm:$0xff]  ;;  %v3125_v6 = vld [vmem:[#allocation10 + $0x170] sm:$0xff]  ;;  %v3111_v49 = vld [vmem:[#allocation10 + $0x100] sm:$0xff] }
 0xc93   :  { %3147 = vmatpush.msra.mxu0 %v3123_v41  ;;  %3167 = vmatpush.msra.mxu1 %v3124_v48  ;;  %v3112_v42 = vld [vmem:[#allocation10 + $0x108] sm:$0xff]  ;;  %v3114_v24 = vld [vmem:[#allocation10 + $0x118] sm:$0xff]  ;;  %v3121_v46 = vld [vmem:[#allocation10 + $0x150] sm:$0xff] }
 0xc94   :  { %3207 = vmatpush.msra.mxu3 %v3126_v14  ;;  %3186 = vmatpush.msra.mxu2 %v3129_v62  ;;  %v3107_v50 = vld [vmem:[#allocation10 + $0xe0] sm:$0xff]  ;;  %v3108_v55 = vld [vmem:[#allocation10 + $0xe8] sm:$0xff]  ;;  %v3110_v53 = vld [vmem:[#allocation10 + $0xf8] sm:$0xff] }
 0xc95   :  { %3148 = vmatpush.msra.mxu0 %v3119_v5  ;;  %3168 = vmatpush.msra.mxu1 %v3120_v58  ;;  %v3117_v59 = vld [vmem:[#allocation10 + $0x130] sm:$0xff]  ;;  %v3103_v51 = vld [vmem:[#allocation10 + $0xc0] sm:$0xff]  ;;  %v3104_v37 = vld [vmem:[#allocation10 + $0xc8] sm:$0xff] }
 0xc96   :  { %3208 = vmatpush.msra.mxu3 %v3122_v4  ;;  %3187 = vmatpush.msra.mxu2 %v3125_v6  ;;  %v3106_v36 = vld [vmem:[#allocation10 + $0xd8] sm:$0xff]  ;;  %v3113_v0 = vld [vmem:[#allocation10 + $0x110] sm:$0xff]  ;;  %v3099_v1 = vld [vmem:[#allocation10 + $0xa0] sm:$0xff] }
 0xc97   :  { %3149 = vmatpush.msra.mxu0 %v3115_v52  ;;  %3169 = vmatpush.msra.mxu1 %v3116_v60  ;;  %v3100_v2 = vld [vmem:[#allocation10 + $0xa8] sm:$0xff]  ;;  %v3102_v3 = vld [vmem:[#allocation10 + $0xb8] sm:$0xff]  ;;  %v3109_v7 = vld [vmem:[#allocation10 + $0xf0] sm:$0xff] }
 0xc98   :  { %3209 = vmatpush.msra.mxu3 %v3118_v23  ;;  %3188 = vmatpush.msra.mxu2 %v3121_v46  ;;  %v3095_v8 = vld [vmem:[#allocation10 + $0x80] sm:$0xff]  ;;  %v3096_v9 = vld [vmem:[#allocation10 + $0x88] sm:$0xff]  ;;  %v3098_v44 = vld [vmem:[#allocation10 + $0x98] sm:$0xff] }
 0xc99   :  { %3150 = vmatpush.msra.mxu0 %v3111_v49  ;;  %3170 = vmatpush.msra.mxu1 %v3112_v42  ;;  %v3105_v18 = vld [vmem:[#allocation10 + $0xd0] sm:$0xff]  ;;  %v3091_v26 = vld [vmem:[#allocation10 + $0x60] sm:$0xff]  ;;  %v3092_v35 = vld [vmem:[#allocation10 + $0x68] sm:$0xff] }
 0xc9a   :  { %3210 = vmatpush.msra.mxu3 %v3114_v24  ;;  %3189 = vmatpush.msra.mxu2 %v3117_v59  ;;  %v3094_v22 = vld [vmem:[#allocation10 + $0x78] sm:$0xff]  ;;  %v3101_v25 = vld [vmem:[#allocation10 + $0xb0] sm:$0xff]  ;;  %v3087_v11 = vld [vmem:[#allocation10 + $0x40] sm:$0xff] }
 0xc9b   :  { %3151 = vmatpush.msra.mxu0 %v3107_v50  ;;  %3171 = vmatpush.msra.mxu1 %v3108_v55  ;;  %v3088_v12 = vld [vmem:[#allocation10 + $0x48] sm:$0xff]  ;;  %v3090_v27 = vld [vmem:[#allocation10 + $0x58] sm:$0xff]  ;;  %v3097_v32 = vld [vmem:[#allocation10 + $0x90] sm:$0xff] }
 0xc9c   :  { %3211 = vmatpush.msra.mxu3 %v3110_v53  ;;  %3190 = vmatpush.msra.mxu2 %v3113_v0  ;;  %v3083_v38 = vld [vmem:[#allocation10 + $0x20] sm:$0xff]  ;;  %v3084_v19 = vld [vmem:[#allocation10 + $0x28] sm:$0xff]  ;;  %v3086_v13 = vld [vmem:[#allocation10 + $0x38] sm:$0xff] }
 0xc9d   :  { %3152 = vmatpush.msra.mxu0 %v3103_v51  ;;  %3172 = vmatpush.msra.mxu1 %v3104_v37  ;;  %v3093_v20 = vld [vmem:[#allocation10 + $0x70] sm:$0xff]  ;;  %v3079_v17 = vld [vmem:[#allocation10] sm:$0xff]  ;;  %v3080_v15 = vld [vmem:[#allocation10 + $0x8] sm:$0xff] }
 0xc9e   :  { %3212 = vmatpush.msra.mxu3 %v3106_v36  ;;  %3191 = vmatpush.msra.mxu2 %v3109_v7  ;;  %v3082_v43 = vld [vmem:[#allocation10 + $0x18] sm:$0xff]  ;;  %v3075_v34 = vld [vmem:[#allocation9 + $0x1e0] sm:$0xff]  ;;  %v3076_v47 = vld [vmem:[#allocation9 + $0x1e8] sm:$0xff] }
 0xc9f   :  { %3153 = vmatpush.msra.mxu0 %v3099_v1  ;;  %3173 = vmatpush.msra.mxu1 %v3100_v2  ;;  %v3078_v21 = vld [vmem:[#allocation9 + $0x1f8] sm:$0xff]  ;;  %v3089_v28 = vld [vmem:[#allocation10 + $0x50] sm:$0xff]  ;;  %v3071_v45 = vld [vmem:[#allocation9 + $0x1c0] sm:$0xff] }
 0xca0   :  { %3213 = vmatpush.msra.mxu3 %v3102_v3  ;;  %3192 = vmatpush.msra.mxu2 %v3105_v18  ;;  %v3072_v10 = vld [vmem:[#allocation9 + $0x1c8] sm:$0xff]  ;;  %v3074_v63 = vld [vmem:[#allocation9 + $0x1d8] sm:$0xff]  ;;  %v3085_v29 = vld [vmem:[#allocation10 + $0x30] sm:$0xff] }
 0xca1   :  { %3154 = vmatpush.msra.mxu0 %v3095_v8  ;;  %3174 = vmatpush.msra.mxu1 %v3096_v9  ;;  %v3067_v30 = vld [vmem:[#allocation9 + $0x1a0] sm:$0xff]  ;;  %v3068_v31 = vld [vmem:[#allocation9 + $0x1a8] sm:$0xff]  ;;  %v3070_v57 = vld [vmem:[#allocation9 + $0x1b8] sm:$0xff] }
 0xca2   :  { %3214 = vmatpush.msra.mxu3 %v3098_v44  ;;  %3193 = vmatpush.msra.mxu2 %v3101_v25  ;;  %v3081_v33 = vld [vmem:[#allocation10 + $0x10] sm:$0xff]  ;;  %v3063_v39 = vld [vmem:[#allocation9 + $0x180] sm:$0xff]  ;;  %v3064_v16 = vld [vmem:[#allocation9 + $0x188] sm:$0xff] }
 0xca3   :  { %3155 = vmatpush.msra.mxu0 %v3091_v26  ;;  %3175 = vmatpush.msra.mxu1 %v3092_v35  ;;  %v3066_v40 = vld [vmem:[#allocation9 + $0x198] sm:$0xff]  ;;  %v3077_v41 = vld [vmem:[#allocation9 + $0x1f0] sm:$0xff]  ;;  %v3059_v48 = vld [vmem:[#allocation9 + $0x160] sm:$0xff] }
 0xca4   :  { %3215 = vmatpush.msra.mxu3 %v3094_v22  ;;  %3194 = vmatpush.msra.mxu2 %v3097_v32  ;;  %v3060_v14 = vld [vmem:[#allocation9 + $0x168] sm:$0xff]  ;;  %v3062_v54 = vld [vmem:[#allocation9 + $0x178] sm:$0xff]  ;;  %v3073_v5 = vld [vmem:[#allocation9 + $0x1d0] sm:$0xff] }
 0xca5   :  { %3156 = vmatpush.msra.mxu0 %v3087_v11  ;;  %3176 = vmatpush.msra.mxu1 %v3088_v12  ;;  %v3055_v58 = vld [vmem:[#allocation9 + $0x140] sm:$0xff]  ;;  %v3056_v4 = vld [vmem:[#allocation9 + $0x148] sm:$0xff]  ;;  %v3058_v62 = vld [vmem:[#allocation9 + $0x158] sm:$0xff] }
 0xca6   :  { %3216 = vmatpush.msra.mxu3 %v3090_v27  ;;  %3195 = vmatpush.msra.mxu2 %v3093_v20  ;;  %v3069_v52 = vld [vmem:[#allocation9 + $0x1b0] sm:$0xff]  ;;  %v3051_v60 = vld [vmem:[#allocation9 + $0x120] sm:$0xff]  ;;  %v8418_v23 = vld [vmem:[#allocation2] sm:$0xff] }
 0xca7   :  { %3157 = vmatpush.msra.mxu0 %v3083_v38  ;;  %3177 = vmatpush.msra.mxu1 %v3084_v19  ;;  %v5419_v6 = vld [vmem:[%s9084_s2 + $0x18] sm:$0xff]  ;;  %v3052_v49 = vld [vmem:[#allocation9 + $0x128] sm:$0xff]  ;;  %v3054_v42 = vld [vmem:[#allocation9 + $0x138] sm:$0xff] }
 0xca8   :  { %3217 = vmatpush.msra.mxu3 %v3086_v13  ;;  %3196 = vmatpush.msra.mxu2 %v3089_v28  ;;  %3415 = vst [vmem:[#allocation2] sm:$0xff] %v5419_v6  ;;  %v3065_v24 = vld [vmem:[#allocation9 + $0x190] sm:$0xff]  ;;  %v3047_v46 = vld [vmem:[#allocation9 + $0x100] sm:$0xff]  ;;  %v3048_v50 = vld [vmem:[#allocation9 + $0x108] sm:$0xff] }
 0xca9   :  { %3158 = vmatpush.msra.mxu0 %v3079_v17  ;;  %3178 = vmatpush.msra.mxu1 %v3080_v15  ;;  %v3050_v55 = vld [vmem:[#allocation9 + $0x118] sm:$0xff]  ;;  %v3061_v53 = vld [vmem:[#allocation9 + $0x170] sm:$0xff]  ;;  %v3043_v59 = vld [vmem:[#allocation9 + $0xe0] sm:$0xff] }
 0xcaa   :  { %3218 = vmatpush.msra.mxu3 %v3082_v43  ;;  %3197 = vmatpush.msra.mxu2 %v3085_v29  ;;  %v3044_v51 = vld [vmem:[#allocation9 + $0xe8] sm:$0xff]  ;;  %v3046_v37 = vld [vmem:[#allocation9 + $0xf8] sm:$0xff]  ;;  %v3057_v36 = vld [vmem:[#allocation9 + $0x150] sm:$0xff] }
 0xcab   :  { %3223 = vmatpush.msrb.mxu0 %v3075_v34  ;;  %3243 = vmatpush.msrb.mxu1 %v3076_v47  ;;  %v3039_v0 = vld [vmem:[#allocation9 + $0xc0] sm:$0xff]  ;;  %v3040_v1 = vld [vmem:[#allocation9 + $0xc8] sm:$0xff]  ;;  %v3042_v2 = vld [vmem:[#allocation9 + $0xd8] sm:$0xff] }
 0xcac   :  { %3283 = vmatpush.msrb.mxu3 %v3078_v21  ;;  %3198 = vmatpush.msra.mxu2 %v3081_v33  ;;  %v3053_v3 = vld [vmem:[#allocation9 + $0x130] sm:$0xff]  ;;  %v3035_v7 = vld [vmem:[#allocation9 + $0xa0] sm:$0xff]  ;;  %v3036_v8 = vld [vmem:[#allocation9 + $0xa8] sm:$0xff] }
 0xcad   :  { %3224 = vmatpush.msrb.mxu0 %v3071_v45  ;;  %3244 = vmatpush.msrb.mxu1 %v3072_v10  ;;  %v3038_v9 = vld [vmem:[#allocation9 + $0xb8] sm:$0xff]  ;;  %v3049_v44 = vld [vmem:[#allocation9 + $0x110] sm:$0xff]  ;;  %v3031_v18 = vld [vmem:[#allocation9 + $0x80] sm:$0xff] }
 0xcae   :  { %3284 = vmatpush.msrb.mxu3 %v3074_v63  ;;  %3263 = vmatpush.msrb.mxu2 %v3077_v41  ;;  %v3032_v26 = vld [vmem:[#allocation9 + $0x88] sm:$0xff]  ;;  %v3034_v35 = vld [vmem:[#allocation9 + $0x98] sm:$0xff]  ;;  %v3045_v22 = vld [vmem:[#allocation9 + $0xf0] sm:$0xff] }
 0xcaf   :  { %3225 = vmatpush.msrb.mxu0 %v3067_v30  ;;  %3245 = vmatpush.msrb.mxu1 %v3068_v31  ;;  %v3027_v25 = vld [vmem:[#allocation9 + $0x60] sm:$0xff]  ;;  %v3028_v11 = vld [vmem:[#allocation9 + $0x68] sm:$0xff]  ;;  %v3030_v12 = vld [vmem:[#allocation9 + $0x78] sm:$0xff] }
 0xcb0   :  { %3285 = vmatpush.msrb.mxu3 %v3070_v57  ;;  %3264 = vmatpush.msrb.mxu2 %v3073_v5  ;;  %v3041_v27 = vld [vmem:[#allocation9 + $0xd0] sm:$0xff]  ;;  %v3023_v32 = vld [vmem:[#allocation9 + $0x40] sm:$0xff]  ;;  %v3024_v38 = vld [vmem:[#allocation9 + $0x48] sm:$0xff] }
 0xcb1   :  { %3226 = vmatpush.msrb.mxu0 %v3063_v39  ;;  %3246 = vmatpush.msrb.mxu1 %v3064_v16  ;;  %v3026_v19 = vld [vmem:[#allocation9 + $0x58] sm:$0xff]  ;;  %v3037_v13 = vld [vmem:[#allocation9 + $0xb0] sm:$0xff]  ;;  %v3019_v20 = vld [vmem:[#allocation9 + $0x20] sm:$0xff] }
 0xcb2   :  { %3286 = vmatpush.msrb.mxu3 %v3066_v40  ;;  %3265 = vmatpush.msrb.mxu2 %v3069_v52  ;;  %v3020_v17 = vld [vmem:[#allocation9 + $0x28] sm:$0xff]  ;;  %v3022_v15 = vld [vmem:[#allocation9 + $0x38] sm:$0xff]  ;;  %v3033_v43 = vld [vmem:[#allocation9 + $0x90] sm:$0xff] }
 0xcb3   :  { %3227 = vmatpush.msrb.mxu0 %v3059_v48  ;;  %3247 = vmatpush.msrb.mxu1 %v3060_v14  ;;  %v3015_v34 = vld [vmem:[#allocation9] sm:$0xff]  ;;  %v3016_v47 = vld [vmem:[#allocation9 + $0x8] sm:$0xff]  ;;  %v3018_v21 = vld [vmem:[#allocation9 + $0x18] sm:$0xff] }
 0xcb4   :  { %3287 = vmatpush.msrb.mxu3 %v3062_v54  ;;  %3266 = vmatpush.msrb.mxu2 %v3065_v24  ;;  %v3029_v28 = vld [vmem:[#allocation9 + $0x70] sm:$0xff]  ;;  %v3388_v29 = vld [vmem:[%s9092_s10 + $0x70] sm:$0xff]  ;;  %v3387_v30 = vld [vmem:[%s9092_s10 + $0x68] sm:$0xff] }
 0xcb5   :  { %3228 = vmatpush.msrb.mxu0 %v3055_v58  ;;  %3248 = vmatpush.msrb.mxu1 %v3056_v4  ;;  %v3025_v45 = vld [vmem:[#allocation9 + $0x50] sm:$0xff]  ;;  %v3386_v33 = vld [vmem:[%s9092_s10 + $0x60] sm:$0xff]  ;;  %v3384_v16 = vld [vmem:[%s9092_s10 + $0x50] sm:$0xff] }
 0xcb6   :  { %3288 = vmatpush.msrb.mxu3 %v3058_v62  ;;  %3267 = vmatpush.msrb.mxu2 %v3061_v53  ;;  %v3021_v10 = vld [vmem:[#allocation9 + $0x30] sm:$0xff]  ;;  %v3383_v40 = vld [vmem:[%s9092_s10 + $0x48] sm:$0xff]  ;;  %v3382_v48 = vld [vmem:[%s9092_s10 + $0x40] sm:$0xff] }
 0xcb7   :  { %3229 = vmatpush.msrb.mxu0 %v3051_v60  ;;  %3249 = vmatpush.msrb.mxu1 %v3052_v49  ;;  %v3017_v63 = vld [vmem:[#allocation9 + $0x10] sm:$0xff]  ;;  %v3303_v54 = vld [vmem:[%s9091_s9] sm:$0xff]  ;;  %v3304_v58 = vld [vmem:[%s9091_s9 + $0x8] sm:$0xff] }
 0xcb8   :  { %3289 = vmatpush.msrb.mxu3 %v3054_v42  ;;  %3268 = vmatpush.msrb.mxu2 %v3057_v36  ;;  %v3385_v39 = vld [vmem:[%s9092_s10 + $0x58] sm:$0xff]  ;;  %v3380_v60 = vld [vmem:[%s9092_s10 + $0x30] sm:$0xff]  ;;  %v3379_v49 = vld [vmem:[%s9092_s10 + $0x28] sm:$0xff] }
 0xcb9   :  { %3230 = vmatpush.msrb.mxu0 %v3047_v46  ;;  %3250 = vmatpush.msrb.mxu1 %v3048_v50  ;;  %v3381_v4 = vld [vmem:[%s9092_s10 + $0x38] sm:$0xff]  ;;  %v3378_v50 = vld [vmem:[%s9092_s10 + $0x20] sm:$0xff] }
 0xcba   :  { %3290 = vmatpush.msrb.mxu3 %v3050_v55  ;;  %3269 = vmatpush.msrb.mxu2 %v3053_v3  ;;  %v3377_v55 = vld [vmem:[%s9092_s10 + $0x18] sm:$0xff] }
 0xcbb   :  { %3231 = vmatpush.msrb.mxu0 %v3043_v59  ;;  %3251 = vmatpush.msrb.mxu1 %v3044_v51  ;;  %v3306_v59 = vld [vmem:[%s9091_s9 + $0x18] sm:$0xff] }
 0xcbc   :  { %3291 = vmatpush.msrb.mxu3 %v3046_v37  ;;  %3270 = vmatpush.msrb.mxu2 %v3049_v44  ;;  %v3376_v37 = vld [vmem:[%s9092_s10 + $0x10] sm:$0xff] }
 0xcbd   :  { %3232 = vmatpush.msrb.mxu0 %v3039_v0  ;;  %3252 = vmatpush.msrb.mxu1 %v3040_v1  ;;  %v3375_v0 = vld [vmem:[%s9092_s10 + $0x8] sm:$0xff] }
 0xcbe   :  { %3292 = vmatpush.msrb.mxu3 %v3042_v2  ;;  %3159 = vmatmul.f32.vlgmr.msra.gmra.mxu0 %v8361_v56  ;;  %v3374_v2 = vld [vmem:[%s9092_s10] sm:$0xff] }
 0xcbf   :  { %3233 = vmatpush.msrb.mxu0 %v3035_v7  ;;  %3253 = vmatpush.msrb.mxu1 %v3036_v8 }
 0xcc0   :  { %3293 = vmatpush.msrb.mxu3 %v3038_v9  ;;  %3179 = vmatmul.f32.vlgmr.msra.gmra.mxu1 %v8361_v56 }
 0xcc1   :  { %3234 = vmatpush.msrb.mxu0 %v3031_v18  ;;  %3254 = vmatpush.msrb.mxu1 %v3032_v26  ;;  %v3305_v26 = vld [vmem:[%s9091_s9 + $0x10] sm:$0xff] }
 0xcc2   :  { %3294 = vmatpush.msrb.mxu3 %v3034_v35  ;;  %3271 = vmatpush.msrb.mxu2 %v3045_v22 }
 0xcc3   :  { %3219 = vmatmul.f32.vlgmr.msra.gmra.mxu3 %v8361_v56  ;;  %3235 = vmatpush.msrb.mxu0 %v3027_v25 }
 0xcc4   :  { %3255 = vmatpush.msrb.mxu1 %v3028_v11  ;;  %3295 = vmatpush.msrb.mxu3 %v3030_v12 }
 0xcc5   :  { %3272 = vmatpush.msrb.mxu2 %v3041_v27  ;;  %3236 = vmatpush.msrb.mxu0 %v3023_v32 }
 0xcc6   :  { %3256 = vmatpush.msrb.mxu1 %v3024_v38  ;;  %3296 = vmatpush.msrb.mxu3 %v3026_v19 }
 0xcc7   :  { %3273 = vmatpush.msrb.mxu2 %v3037_v13  ;;  %3237 = vmatpush.msrb.mxu0 %v3019_v20 }
 0xcc8   :  { %3257 = vmatpush.msrb.mxu1 %v3020_v17  ;;  %3297 = vmatpush.msrb.mxu3 %v3022_v15 }
 0xcc9   :  { %3274 = vmatpush.msrb.mxu2 %v3033_v43  ;;  %3238 = vmatpush.msrb.mxu0 %v3015_v34 }
 0xcca   :  { %3199 = vmatmul.f32.vlgmr.msra.gmra.mxu2 %v8361_v56  ;;  %3258 = vmatpush.msrb.mxu1 %v3016_v47  ;;  %v3389_v56 = vld [vmem:[%s9092_s10 + $0x78] sm:$0xff] }
 0xccb   :  { %3298 = vmatpush.msrb.mxu3 %v3018_v21  ;;  %3239 = vmatmul.f32.vlgmr.msrb.gmra.mxu0 %v8418_v23 }
 0xccc   :  { %3259 = vmatmul.f32.vlgmr.msrb.gmra.mxu1 %v8418_v23  ;;  %3275 = vmatpush.msrb.mxu2 %v3029_v28 }
 0xccd   :  { %3299 = vmatmul.f32.vlgmr.msrb.gmra.mxu3 %v8418_v23  ;;  %3391 = vmatpush.msra.mxu0 %v3389_v56 }
 0xcce   :  { %3276 = vmatpush.msrb.mxu2 %v3025_v45 }
 0xccf   :  { %3392 = vmatpush.msra.mxu0 %v3388_v29 }
 0xcd0   :  { %3277 = vmatpush.msrb.mxu2 %v3021_v10 }
 0xcd1   :  { %3393 = vmatpush.msra.mxu0 %v3387_v30 }
 0xcd2   :  { %3278 = vmatpush.msrb.mxu2 %v3017_v63 }
 0xcd3   :  { %3279 = vmatmul.f32.vlgmr.msrb.gmra.mxu2 %v8418_v23  ;;  %3394 = vmatpush.msra.mxu0 %v3386_v33 }
 0xcd5   :  { %3395 = vmatpush.msra.mxu0 %v3385_v39 }
 0xcd7   :  { %3396 = vmatpush.msra.mxu0 %v3384_v16 }
 0xcd9   :  { %3397 = vmatpush.msra.mxu0 %v3383_v40 }
 0xcdb   :  { %3398 = vmatpush.msra.mxu0 %v3382_v48 }
 0xcdd   :  { %3399 = vmatpush.msra.mxu0 %v3381_v4 }
 0xcdf   :  { %3400 = vmatpush.msra.mxu0 %v3380_v60 }
 0xce1   :  { %3401 = vmatpush.msra.mxu0 %v3379_v49 }
 0xce3   :  { %3402 = vmatpush.msra.mxu0 %v3378_v50 }
 0xce5   :  { %3403 = vmatpush.msra.mxu0 %v3377_v55 }
 0xce7   :  { %3404 = vmatpush.msra.mxu0 %v3376_v37 }
 0xce9   :  { %3405 = vmatpush.msra.mxu0 %v3375_v0 }
 0xceb   :  { %3406 = vmatpush.msra.mxu0 %v3374_v2 }
 0xd3b   :  { %v3160_v31 = vpop.f32.mrf.mxu0 }
 0xd3d   :  { %v3180_v57 = vpop.f32.mrf.mxu1 }
 0xd46   :  { %v3220_v41 = vpop.f32.mrf.mxu3 }
 0xd48   :  { %v3240_v14 = vpop.f32.mrf.mxu0 }
 0xd49   :  { %v3260_v5 = vpop.f32.mrf.mxu1  ;;  %v3241_v62 = vadd.f32 %v3240_v14, %v3160_v31 }
 0xd4a   :  { %v3261_v52 = vadd.f32 %v3260_v5, %v3180_v57 }
 0xd4b   :  { %v3307_v23 = vadd.f32 %v3303_v54, %v3241_v62 }
 0xd4c   :  { %v3308_v6 = vadd.f32 %v3304_v58, %v3261_v52 }
 0xd4d   :  { %v5415_v42 = vmul.f32 -1.442695, %v3307_v23  ;;  %v3200_v46 = vpop.f32.mrf.mxu2 }
 0xd4e   :  { %v5416_v24 = vmul.f32 -1.442695, %v3308_v6 }
 0xd4f   :  { %5899 = vpow2.f32 %v5415_v42 }
 0xd50   :  { %v3300_v53 = vpop.f32.mrf.mxu3  ;;  %5901 = vpow2.f32 %v5416_v24 }
 0xd51   :  { %v3301_v51 = vadd.f32 %v3300_v53, %v3220_v41 }
 0xd53   :  { %v3310_v36 = vadd.f32 %v3306_v59, %v3301_v51 }
 0xd55   :  { %v5417_v1 = vmul.f32 -1.442695, %v3310_v36  ;;  %v5900_v3 = vpop.eup %5899 }
 0xd56   :  { %v5902_v7 = vpop.eup %5901  ;;  %v3314_v8 = vadd.f32 1.0, %v5900_v3  ;;  %v3280_v44 = vpop.f32.mrf.mxu2 }
 0xd57   :  { %5903 = vpow2.f32 %v5417_v1  ;;  %v3333_v9 = vadd.f32 1.0, %v5902_v7  ;;  %v3281_v18 = vadd.f32 %v3280_v44, %v3200_v46 }
 0xd58   :  { %5905 = vrcp.f32 %v3314_v8  ;;  %v3326_v13 = vand.u32 2147483648, %v3314_v8  ;;  %v3324_v15 = vand.u32 2147483647, %v3314_v8  ;;  %vm3320_vm2 = vweird.f32 %v3314_v8 }
 0xd59   :  { %5907 = vrcp.f32 %v3333_v9  ;;  %v3309_v11 = vadd.f32 %v3305_v26, %v3281_v18  ;;  %v3345_v20 = vand.u32 2147483648, %v3333_v9  ;;  %v3343_v34 = vand.u32 2147483647, %v3333_v9 }
 0xd5a   :  { %vm3339_vm3 = vweird.f32 %v3333_v9  ;;  %v3327_v45 = vor.u32 1.1754944e-38, %v3326_v13  ;;  %vm3325_vm5 = vcmp.eq.f32.partialorder %v3324_v15, 8.507059e+37 }
 0xd5b   :  { %v3346_v63 = vor.u32 1.1754944e-38, %v3345_v20  ;;  %vm3344_vm7 = vcmp.eq.f32.partialorder %v3343_v34, 8.507059e+37 }
 0xd5d   :  { %v5904_v35 = vpop.eup %5903 }
 0xd5e   :  { %v3353_v22 = vadd.f32 1.0, %v5904_v35  ;;  %v5906_v25 = vpop.eup %5905 }
 0xd5f   :  { %v5908_v12 = vpop.eup %5907  ;;  %v3316_v27 = vmul.f32 %v5906_v25, %v3314_v8  ;;  %vm3321_vm0 = vweird.f32 %v5906_v25 }
 0xd60   :  { %5909 = vrcp.f32 %v3353_v22  ;;  %v3335_v32 = vmul.f32 %v5908_v12, %v3333_v9  ;;  %vm3340_vm1 = vweird.f32 %v5908_v12  ;;  %vm3322_vm4 = vmor %vm3320_vm2, %vm3321_vm0  ;;  %v3365_v14 = vand.u32 2147483648, %v3353_v22 }
 0xd61   :  { %v3317_v38 = vsub.f32 1.0, %v3316_v27  ;;  %5911 = vtanh.f32 %v3309_v11  ;;  %vm3341_vm6 = vmor %vm3339_vm3, %vm3340_vm1  ;;  %vm3359_vm9 = vweird.f32 %v3353_v22  ;;  %v3363_v54 = vand.u32 2147483647, %v3353_v22 }
 0xd62   :  { %v3336_v19 = vsub.f32 1.0, %v3335_v32  ;;  %v3366_v58 = vor.u32 1.1754944e-38, %v3365_v14 }
 0xd63   :  { %v3318_v17 = vmul.f32 %v5906_v25, %v3317_v38  ;;  %vm3364_vm11 = vcmp.eq.f32.partialorder %v3363_v54, 8.507059e+37 }
 0xd64   :  { %v3337_v43 = vmul.f32 %v5908_v12, %v3336_v19 }
 0xd65   :  { %v3319_v21 = vadd.f32 %v5906_v25, %v3318_v17 }
 0xd66   :  { %v5910_v47 = vpop.eup %5909  ;;  %v3338_v10 = vadd.f32 %v5908_v12, %v3337_v43 }
 0xd67   :  { %v3355_v28 = vmul.f32 %v5910_v47, %v3353_v22  ;;  %v3323_v56 = vsel %vm3322_vm4, %v5906_v25, %v3319_v21  ;;  %v5912_v29 = vpop.eup %5911  ;;  %vm3360_vm8 = vweird.f32 %v5910_v47 }
 0xd68   :  { %v3328_v31 = vsel %vm3325_vm5, %v3327_v45, %v3323_v56  ;;  %v3342_v57 = vsel %vm3341_vm6, %v5908_v12, %v3338_v10  ;;  %vm3361_vm10 = vmor %vm3359_vm9, %vm3360_vm8 }
 0xd69   :  { %v3356_v30 = vsub.f32 1.0, %v3355_v28  ;;  %v3347_v33 = vsel %vm3344_vm7, %v3346_v63, %v3342_v57  ;;  %v3370_v39 = vmul.f32 %v5912_v29, %v3328_v31 }
 0xd6a   :  { %v3369_v16 = vmul.f32 %v3347_v33, %v8358_v61  ;;  %v3390_v61 = vld [vmem:[%s9093_s11] sm:$0xff] }
 0xd6b   :  { %v3357_v40 = vmul.f32 %v5910_v47, %v3356_v30 }
 0xd6c   :  { %v8492_v41 = vadd.f32 %v3370_v39, %v3369_v16 }
 0xd6d   :  { %v3358_v48 = vadd.f32 %v5910_v47, %v3357_v40 }
 0xd6e   :  { %5913 = vtanh.f32 %v8492_v41 }
 0xd6f   :  { %v3362_v5 = vsel %vm3361_vm10, %v5910_v47, %v3358_v48 }
 0xd70   :  { %v3367_v62 = vsel %vm3364_vm11, %v3366_v58, %v3362_v5 }
 0xd74   :  { %v5914_v4 = vpop.eup %5913 }
 0xd75   :  { %v8495_v52 = vmul.f32 %v5914_v4, %v3367_v62 }
 0xd77   :  { %3407 = vmatmul.f32.vlgmr.msra.gmra.mxu0 %v8495_v52 }
 0xdf3   :  { %3420 = sbr.rel (%p5421_p2) target bundleno = 4070 (0xfe6), region = 73 }
 0xdf4   :  { %v3408_v60 = vpop.f32.mrf.mxu0 }
 0xdf5   :  { %v3409_v23 = vadd.f32 %v3408_v60, %v3390_v61 }
 0xdf7   :  { %5418 = vst [vmem:[%s9094_s12 + $0x18] sm:$0xff] %v3409_v23 }
 0xdf8   :  { %v3421_v6 = vlaneseq  ;;  %v3461_v53 = vld [vmem:[%s9085_s3 + $0x78] sm:$0xff]  ;;  %v3460_v59 = vld [vmem:[%s9085_s3 + $0x70] sm:$0xff]  ;;  %v3459_v51 = vld [vmem:[%s9085_s3 + $0x68] sm:$0xff]  ;;  %v6105_v20 = vmov 1.0  }
 0xdf9   :  { %3462 = vmatpush.msra.mxu0 %v3461_v53  ;;  %v3458_v37 = vld [vmem:[%s9085_s3 + $0x60] sm:$0xff]  ;;  %v3457_v36 = vld [vmem:[%s9085_s3 + $0x58] sm:$0xff]  ;;  %v3456_v0 = vld [vmem:[%s9085_s3 + $0x50] sm:$0xff] }
 0xdfa   :  { %v3422_v49 = vand.u32 127, %v3421_v6  ;;  %v3455_v1 = vld [vmem:[%s9085_s3 + $0x48] sm:$0xff]  ;;  %v3454_v2 = vld [vmem:[%s9085_s3 + $0x40] sm:$0xff]  ;;  %v3453_v3 = vld [vmem:[%s9085_s3 + $0x38] sm:$0xff] }
 0xdfb   :  { %3463 = vmatpush.msra.mxu0 %v3460_v59  ;;  %v3452_v7 = vld [vmem:[%s9085_s3 + $0x30] sm:$0xff]  ;;  %v3451_v8 = vld [vmem:[%s9085_s3 + $0x28] sm:$0xff]  ;;  %v3450_v9 = vld [vmem:[%s9085_s3 + $0x20] sm:$0xff] }
 0xdfc   :  { %vm3423_vm12 = vcmp.lt.s32.totalorder %v3422_v49, 16  ;;  %v3449_v44 = vld [vmem:[%s9085_s3 + $0x18] sm:$0xff]  ;;  %v3448_v25 = vld [vmem:[%s9085_s3 + $0x10] sm:$0xff]  ;;  %v3447_v11 = vld [vmem:[%s9085_s3 + $0x8] sm:$0xff] }
 0xdfd   :  { %v3424_v42 = vsel %vm3423_vm12, %v3409_v23, -1e+30  ;;  %3464 = vmatpush.msra.mxu0 %v3459_v51  ;;  %v3446_v12 = vld [vmem:[%s9085_s3] sm:$0xff] }
 0xdfe   :  { %3425 = vmax.xlane.f32.xlu0 %v3424_v42 }
 0xdff   :  { %3465 = vmatpush.msra.mxu0 %v3458_v37 }
 0xe01   :  { %3466 = vmatpush.msra.mxu0 %v3457_v36 }
 0xe03   :  { %3467 = vmatpush.msra.mxu0 %v3456_v0 }
 0xe05   :  { %3468 = vmatpush.msra.mxu0 %v3455_v1 }
 0xe07   :  { %3469 = vmatpush.msra.mxu0 %v3454_v2 }
 0xe09   :  { %3470 = vmatpush.msra.mxu0 %v3453_v3 }
 0xe0b   :  { %3471 = vmatpush.msra.mxu0 %v3452_v7 }
 0xe0d   :  { %3472 = vmatpush.msra.mxu0 %v3451_v8 }
 0xe0f   :  { %3473 = vmatpush.msra.mxu0 %v3450_v9 }
 0xe11   :  { %3474 = vmatpush.msra.mxu0 %v3449_v44 }
 0xe13   :  { %3475 = vmatpush.msra.mxu0 %v3448_v25 }
 0xe15   :  { %3476 = vmatpush.msra.mxu0 %v3447_v11 }
 0xe17   :  { %3477 = vmatpush.msra.mxu0 %v3446_v12 }
 0xe71   :  { %v3426_v24 = vpop.xlane.xlu0 %3425 }
 0xe72   :  { %vm3427_vm13 = vcmp.eq.f32.partialorder %v3424_v42, %v3426_v24 }
 0xe73   :  { %v3428_v46 = vsel %vm3427_vm13, %v3422_v49, 128 }
 0xe74   :  { %v3430_v50 = vshra.s32 %v3428_v46, 16  ;;  %v3429_v18 = vand.u32 65535, %v3428_v46 }
 0xe76   :  { %v3432_v55 = vcvt.s32.f32 %v3430_v50  ;;  %v3431_v35 = vcvt.s32.f32 %v3429_v18 }
 0xe78   :  { %3433 = vmin.xlane.f32.xlu0 %v3432_v55 }
 0xeeb   :  { %v3434_v26 = vpop.xlane.xlu0 %3433 }
 0xeec   :  { %vm3435_vm14 = vcmp.eq.f32.partialorder %v3432_v55, %v3434_v26  ;;  %v3440_v27 = vcvt.f32.s32 %v3434_v26 }
 0xeed   :  { %v3436_v22 = vsel %vm3435_vm14, %v3431_v35, inf }
 0xeee   :  { %3437 = vmin.xlane.f32.xlu1 %v3436_v22  ;;  %v3441_v38 = vshll.u32 %v3440_v27, 16 }
 0xf61   :  { %v3438_v32 = vpop.xlane.xlu1 %3437 }
 0xf62   :  { %v3439_v19 = vcvt.f32.s32 %v3438_v32 }
 0xf64   :  { %v3442_v13 = vadd.s32 %v3441_v38, %v3439_v19 }
 0xf66   :  { %vm3443_vm15 = vcmp.eq.s32.totalorder %v3422_v49, %v3442_v13 }
 0xf67   :  { %5423 = vmatmul.msk.f32.vlgmr.msra.gmra.mxu0 %vm3443_vm15, %v6105_v20 }
 0xfe4   :  { %v3479_v17 = vpop.f32.mrf.mxu0 }
 0xfe5   :  { %3482 = vst [vmem:[#allocation2] sm:$0xff] %v3479_v17 }
 0xfe6 PF:  { %v3608_v15 = vld [vmem:[#allocation10 + $0x1e0] sm:$0xff]  ;;  %v3609_v43 = vld [vmem:[#allocation10 + $0x1e8] sm:$0xff]  ;;  %v3611_v34 = vld [vmem:[#allocation10 + $0x1f8] sm:$0xff]  ;;  %s5429_s27 = sld [smem:[#allocation4 + $0x4]] }
 0xfe7   :  { %3612 = vmatpush.msra.mxu0 %v3608_v15  ;;  %3632 = vmatpush.msra.mxu1 %v3609_v43  ;;  %v3604_v47 = vld [vmem:[#allocation10 + $0x1c0] sm:$0xff]  ;;  %v3605_v21 = vld [vmem:[#allocation10 + $0x1c8] sm:$0xff]  ;;  %v3607_v28 = vld [vmem:[#allocation10 + $0x1d8] sm:$0xff] }
 0xfe8   :  { %3672 = vmatpush.msra.mxu3 %v3611_v34  ;;  %v3600_v45 = vld [vmem:[#allocation10 + $0x1a0] sm:$0xff]  ;;  %v3601_v10 = vld [vmem:[#allocation10 + $0x1a8] sm:$0xff]  ;;  %v3603_v63 = vld [vmem:[#allocation10 + $0x1b8] sm:$0xff] }
 0xfe9   :  { %3613 = vmatpush.msra.mxu0 %v3604_v47  ;;  %3633 = vmatpush.msra.mxu1 %v3605_v21  ;;  %v3596_v56 = vld [vmem:[#allocation10 + $0x180] sm:$0xff]  ;;  %v3597_v29 = vld [vmem:[#allocation10 + $0x188] sm:$0xff]  ;;  %v3610_v30 = vld [vmem:[#allocation10 + $0x1f0] sm:$0xff] }
 0xfea   :  { %3673 = vmatpush.msra.mxu3 %v3607_v28  ;;  %v3599_v31 = vld [vmem:[#allocation10 + $0x198] sm:$0xff]  ;;  %v3606_v57 = vld [vmem:[#allocation10 + $0x1d0] sm:$0xff]  ;;  %3652 = vmatpush.msra.mxu2 %v3610_v30  ;;  %v3592_v33 = vld [vmem:[#allocation10 + $0x160] sm:$0xff] }
 0xfeb   :  { %3614 = vmatpush.msra.mxu0 %v3600_v45  ;;  %3634 = vmatpush.msra.mxu1 %v3601_v10  ;;  %v3593_v39 = vld [vmem:[#allocation10 + $0x168] sm:$0xff]  ;;  %v3595_v16 = vld [vmem:[#allocation10 + $0x178] sm:$0xff]  ;;  %v3602_v40 = vld [vmem:[#allocation10 + $0x1b0] sm:$0xff] }
 0xfec   :  { %3674 = vmatpush.msra.mxu3 %v3603_v63  ;;  %3653 = vmatpush.msra.mxu2 %v3606_v57  ;;  %v3588_v48 = vld [vmem:[#allocation10 + $0x140] sm:$0xff]  ;;  %v3589_v14 = vld [vmem:[#allocation10 + $0x148] sm:$0xff]  ;;  %v3591_v54 = vld [vmem:[#allocation10 + $0x158] sm:$0xff]  ;;  %p5430_p3 = scmp.ne.s32.totalorder %s5429_s27, 0 }
 0xfed   :  { %3615 = vmatpush.msra.mxu0 %v3596_v56  ;;  %3635 = vmatpush.msra.mxu1 %v3597_v29  ;;  %v3598_v5 = vld [vmem:[#allocation10 + $0x190] sm:$0xff]  ;;  %v3584_v58 = vld [vmem:[#allocation10 + $0x120] sm:$0xff]  ;;  %v3585_v4 = vld [vmem:[#allocation10 + $0x128] sm:$0xff] }
 0xfee   :  { %3675 = vmatpush.msra.mxu3 %v3599_v31  ;;  %3654 = vmatpush.msra.mxu2 %v3602_v40  ;;  %v3587_v62 = vld [vmem:[#allocation10 + $0x138] sm:$0xff]  ;;  %v3594_v61 = vld [vmem:[#allocation10 + $0x170] sm:$0xff]  ;;  %v3580_v60 = vld [vmem:[#allocation10 + $0x100] sm:$0xff] }
 0xfef   :  { %3616 = vmatpush.msra.mxu0 %v3592_v33  ;;  %3636 = vmatpush.msra.mxu1 %v3593_v39  ;;  %v3581_v23 = vld [vmem:[#allocation10 + $0x108] sm:$0xff]  ;;  %v3583_v6 = vld [vmem:[#allocation10 + $0x118] sm:$0xff]  ;;  %v3590_v49 = vld [vmem:[#allocation10 + $0x150] sm:$0xff] }
 0xff0   :  { %3676 = vmatpush.msra.mxu3 %v3595_v16  ;;  %3655 = vmatpush.msra.mxu2 %v3598_v5  ;;  %v3576_v42 = vld [vmem:[#allocation10 + $0xe0] sm:$0xff]  ;;  %v3577_v24 = vld [vmem:[#allocation10 + $0xe8] sm:$0xff]  ;;  %v3579_v46 = vld [vmem:[#allocation10 + $0xf8] sm:$0xff] }
 0xff1   :  { %3617 = vmatpush.msra.mxu0 %v3588_v48  ;;  %3637 = vmatpush.msra.mxu1 %v3589_v14  ;;  %v3586_v50 = vld [vmem:[#allocation10 + $0x130] sm:$0xff]  ;;  %v3572_v55 = vld [vmem:[#allocation10 + $0xc0] sm:$0xff]  ;;  %v3573_v53 = vld [vmem:[#allocation10 + $0xc8] sm:$0xff] }
 0xff2   :  { %3677 = vmatpush.msra.mxu3 %v3591_v54  ;;  %3656 = vmatpush.msra.mxu2 %v3594_v61  ;;  %v3575_v59 = vld [vmem:[#allocation10 + $0xd8] sm:$0xff]  ;;  %v3582_v51 = vld [vmem:[#allocation10 + $0x110] sm:$0xff]  ;;  %v3568_v37 = vld [vmem:[#allocation10 + $0xa0] sm:$0xff] }
 0xff3   :  { %3618 = vmatpush.msra.mxu0 %v3584_v58  ;;  %3638 = vmatpush.msra.mxu1 %v3585_v4  ;;  %v3569_v36 = vld [vmem:[#allocation10 + $0xa8] sm:$0xff]  ;;  %v3571_v0 = vld [vmem:[#allocation10 + $0xb8] sm:$0xff]  ;;  %v3578_v1 = vld [vmem:[#allocation10 + $0xf0] sm:$0xff] }
 0xff4   :  { %3678 = vmatpush.msra.mxu3 %v3587_v62  ;;  %3657 = vmatpush.msra.mxu2 %v3590_v49  ;;  %v3564_v2 = vld [vmem:[#allocation10 + $0x80] sm:$0xff]  ;;  %v3565_v3 = vld [vmem:[#allocation10 + $0x88] sm:$0xff]  ;;  %v3567_v7 = vld [vmem:[#allocation10 + $0x98] sm:$0xff] }
 0xff5   :  { %3619 = vmatpush.msra.mxu0 %v3580_v60  ;;  %3639 = vmatpush.msra.mxu1 %v3581_v23  ;;  %v3574_v8 = vld [vmem:[#allocation10 + $0xd0] sm:$0xff]  ;;  %v3560_v9 = vld [vmem:[#allocation10 + $0x60] sm:$0xff]  ;;  %v3561_v44 = vld [vmem:[#allocation10 + $0x68] sm:$0xff] }
 0xff6   :  { %3679 = vmatpush.msra.mxu3 %v3583_v6  ;;  %3658 = vmatpush.msra.mxu2 %v3586_v50  ;;  %v3563_v18 = vld [vmem:[#allocation10 + $0x78] sm:$0xff]  ;;  %v3570_v26 = vld [vmem:[#allocation10 + $0xb0] sm:$0xff]  ;;  %v3556_v35 = vld [vmem:[#allocation10 + $0x40] sm:$0xff] }
 0xff7   :  { %3620 = vmatpush.msra.mxu0 %v3576_v42  ;;  %3640 = vmatpush.msra.mxu1 %v3577_v24  ;;  %v3557_v22 = vld [vmem:[#allocation10 + $0x48] sm:$0xff]  ;;  %v3559_v25 = vld [vmem:[#allocation10 + $0x58] sm:$0xff]  ;;  %v3566_v11 = vld [vmem:[#allocation10 + $0x90] sm:$0xff] }
 0xff8   :  { %3680 = vmatpush.msra.mxu3 %v3579_v46  ;;  %3659 = vmatpush.msra.mxu2 %v3582_v51  ;;  %v3552_v12 = vld [vmem:[#allocation10 + $0x20] sm:$0xff]  ;;  %v3553_v27 = vld [vmem:[#allocation10 + $0x28] sm:$0xff]  ;;  %v3555_v32 = vld [vmem:[#allocation10 + $0x38] sm:$0xff] }
 0xff9   :  { %3621 = vmatpush.msra.mxu0 %v3572_v55  ;;  %3641 = vmatpush.msra.mxu1 %v3573_v53  ;;  %v3562_v38 = vld [vmem:[#allocation10 + $0x70] sm:$0xff]  ;;  %v3548_v19 = vld [vmem:[#allocation10] sm:$0xff]  ;;  %v3549_v13 = vld [vmem:[#allocation10 + $0x8] sm:$0xff] }
 0xffa   :  { %3681 = vmatpush.msra.mxu3 %v3575_v59  ;;  %3660 = vmatpush.msra.mxu2 %v3578_v1  ;;  %v3551_v20 = vld [vmem:[#allocation10 + $0x18] sm:$0xff]  ;;  %v3544_v17 = vld [vmem:[#allocation9 + $0x1e0] sm:$0xff]  ;;  %v3545_v15 = vld [vmem:[#allocation9 + $0x1e8] sm:$0xff] }
 0xffb   :  { %3622 = vmatpush.msra.mxu0 %v3568_v37  ;;  %3642 = vmatpush.msra.mxu1 %v3569_v36  ;;  %v3547_v43 = vld [vmem:[#allocation9 + $0x1f8] sm:$0xff]  ;;  %v3558_v34 = vld [vmem:[#allocation10 + $0x50] sm:$0xff]  ;;  %v3540_v47 = vld [vmem:[#allocation9 + $0x1c0] sm:$0xff] }
 0xffc   :  { %3682 = vmatpush.msra.mxu3 %v3571_v0  ;;  %3661 = vmatpush.msra.mxu2 %v3574_v8  ;;  %v3541_v21 = vld [vmem:[#allocation9 + $0x1c8] sm:$0xff]  ;;  %v3543_v28 = vld [vmem:[#allocation9 + $0x1d8] sm:$0xff]  ;;  %v3554_v45 = vld [vmem:[#allocation10 + $0x30] sm:$0xff] }
 0xffd   :  { %3623 = vmatpush.msra.mxu0 %v3564_v2  ;;  %3643 = vmatpush.msra.mxu1 %v3565_v3  ;;  %v3536_v10 = vld [vmem:[#allocation9 + $0x1a0] sm:$0xff]  ;;  %v3537_v63 = vld [vmem:[#allocation9 + $0x1a8] sm:$0xff]  ;;  %v3539_v56 = vld [vmem:[#allocation9 + $0x1b8] sm:$0xff] }
 0xffe   :  { %3683 = vmatpush.msra.mxu3 %v3567_v7  ;;  %3662 = vmatpush.msra.mxu2 %v3570_v26  ;;  %v3550_v29 = vld [vmem:[#allocation10 + $0x10] sm:$0xff]  ;;  %v3532_v30 = vld [vmem:[#allocation9 + $0x180] sm:$0xff]  ;;  %v3533_v31 = vld [vmem:[#allocation9 + $0x188] sm:$0xff] }
 0xfff   :  { %3624 = vmatpush.msra.mxu0 %v3560_v9  ;;  %3644 = vmatpush.msra.mxu1 %v3561_v44  ;;  %v3535_v57 = vld [vmem:[#allocation9 + $0x198] sm:$0xff]  ;;  %v3546_v33 = vld [vmem:[#allocation9 + $0x1f0] sm:$0xff]  ;;  %v3528_v39 = vld [vmem:[#allocation9 + $0x160] sm:$0xff] }
0x1000   :  { %3684 = vmatpush.msra.mxu3 %v3563_v18  ;;  %3663 = vmatpush.msra.mxu2 %v3566_v11  ;;  %v3529_v16 = vld [vmem:[#allocation9 + $0x168] sm:$0xff]  ;;  %v3531_v40 = vld [vmem:[#allocation9 + $0x178] sm:$0xff]  ;;  %v3542_v48 = vld [vmem:[#allocation9 + $0x1d0] sm:$0xff] }
0x1001   :  { %3625 = vmatpush.msra.mxu0 %v3556_v35  ;;  %3645 = vmatpush.msra.mxu1 %v3557_v22  ;;  %v3524_v14 = vld [vmem:[#allocation9 + $0x140] sm:$0xff]  ;;  %v3525_v54 = vld [vmem:[#allocation9 + $0x148] sm:$0xff]  ;;  %v3527_v5 = vld [vmem:[#allocation9 + $0x158] sm:$0xff] }
0x1002   :  { %3685 = vmatpush.msra.mxu3 %v3559_v25  ;;  %3664 = vmatpush.msra.mxu2 %v3562_v38  ;;  %v3538_v58 = vld [vmem:[#allocation9 + $0x1b0] sm:$0xff]  ;;  %v3520_v4 = vld [vmem:[#allocation9 + $0x120] sm:$0xff]  ;;  %v8552_v62 = vld [vmem:[#allocation2] sm:$0xff] }
0x1003   :  { %3626 = vmatpush.msra.mxu0 %v3552_v12  ;;  %3646 = vmatpush.msra.mxu1 %v3553_v27  ;;  %v5428_v61 = vld [vmem:[%s9084_s2 + $0x20] sm:$0xff]  ;;  %v3521_v60 = vld [vmem:[#allocation9 + $0x128] sm:$0xff]  ;;  %v3534_v6 = vld [vmem:[#allocation9 + $0x190] sm:$0xff] }
0x1004   :  { %3686 = vmatpush.msra.mxu3 %v3555_v32  ;;  %3665 = vmatpush.msra.mxu2 %v3558_v34  ;;  %v3523_v23 = vld [vmem:[#allocation9 + $0x138] sm:$0xff]  ;;  %3884 = vst [vmem:[#allocation2] sm:$0xff] %v5428_v61  ;;  %v3516_v49 = vld [vmem:[#allocation9 + $0x100] sm:$0xff]  ;;  %v3517_v42 = vld [vmem:[#allocation9 + $0x108] sm:$0xff] }
0x1005   :  { %3627 = vmatpush.msra.mxu0 %v3548_v19  ;;  %3647 = vmatpush.msra.mxu1 %v3549_v13  ;;  %v3519_v24 = vld [vmem:[#allocation9 + $0x118] sm:$0xff]  ;;  %v3530_v46 = vld [vmem:[#allocation9 + $0x170] sm:$0xff]  ;;  %v3512_v50 = vld [vmem:[#allocation9 + $0xe0] sm:$0xff] }
0x1006   :  { %3687 = vmatpush.msra.mxu3 %v3551_v20  ;;  %3666 = vmatpush.msra.mxu2 %v3554_v45  ;;  %v3513_v55 = vld [vmem:[#allocation9 + $0xe8] sm:$0xff]  ;;  %v3515_v53 = vld [vmem:[#allocation9 + $0xf8] sm:$0xff]  ;;  %v3526_v59 = vld [vmem:[#allocation9 + $0x150] sm:$0xff] }
0x1007   :  { %3692 = vmatpush.msrb.mxu0 %v3544_v17  ;;  %3712 = vmatpush.msrb.mxu1 %v3545_v15  ;;  %v3508_v51 = vld [vmem:[#allocation9 + $0xc0] sm:$0xff]  ;;  %v3509_v37 = vld [vmem:[#allocation9 + $0xc8] sm:$0xff]  ;;  %v3511_v36 = vld [vmem:[#allocation9 + $0xd8] sm:$0xff] }
0x1008   :  { %3752 = vmatpush.msrb.mxu3 %v3547_v43  ;;  %3667 = vmatpush.msra.mxu2 %v3550_v29  ;;  %v3522_v0 = vld [vmem:[#allocation9 + $0x130] sm:$0xff]  ;;  %v3504_v1 = vld [vmem:[#allocation9 + $0xa0] sm:$0xff]  ;;  %v3505_v2 = vld [vmem:[#allocation9 + $0xa8] sm:$0xff] }
0x1009   :  { %3693 = vmatpush.msrb.mxu0 %v3540_v47  ;;  %3713 = vmatpush.msrb.mxu1 %v3541_v21  ;;  %v3507_v3 = vld [vmem:[#allocation9 + $0xb8] sm:$0xff]  ;;  %v3518_v7 = vld [vmem:[#allocation9 + $0x110] sm:$0xff]  ;;  %v3500_v8 = vld [vmem:[#allocation9 + $0x80] sm:$0xff] }
0x100a   :  { %3753 = vmatpush.msrb.mxu3 %v3543_v28  ;;  %3732 = vmatpush.msrb.mxu2 %v3546_v33  ;;  %v3501_v9 = vld [vmem:[#allocation9 + $0x88] sm:$0xff]  ;;  %v3503_v44 = vld [vmem:[#allocation9 + $0x98] sm:$0xff]  ;;  %v3514_v18 = vld [vmem:[#allocation9 + $0xf0] sm:$0xff] }
0x100b   :  { %3694 = vmatpush.msrb.mxu0 %v3536_v10  ;;  %3714 = vmatpush.msrb.mxu1 %v3537_v63  ;;  %v3496_v26 = vld [vmem:[#allocation9 + $0x60] sm:$0xff]  ;;  %v3497_v35 = vld [vmem:[#allocation9 + $0x68] sm:$0xff]  ;;  %v3499_v22 = vld [vmem:[#allocation9 + $0x78] sm:$0xff] }
0x100c   :  { %3754 = vmatpush.msrb.mxu3 %v3539_v56  ;;  %3733 = vmatpush.msrb.mxu2 %v3542_v48  ;;  %v3510_v25 = vld [vmem:[#allocation9 + $0xd0] sm:$0xff]  ;;  %v3492_v11 = vld [vmem:[#allocation9 + $0x40] sm:$0xff]  ;;  %v3493_v12 = vld [vmem:[#allocation9 + $0x48] sm:$0xff] }
0x100d   :  { %3695 = vmatpush.msrb.mxu0 %v3532_v30  ;;  %3715 = vmatpush.msrb.mxu1 %v3533_v31  ;;  %v3495_v27 = vld [vmem:[#allocation9 + $0x58] sm:$0xff]  ;;  %v3506_v32 = vld [vmem:[#allocation9 + $0xb0] sm:$0xff]  ;;  %v3488_v38 = vld [vmem:[#allocation9 + $0x20] sm:$0xff] }
0x100e   :  { %3755 = vmatpush.msrb.mxu3 %v3535_v57  ;;  %3734 = vmatpush.msrb.mxu2 %v3538_v58  ;;  %v3489_v19 = vld [vmem:[#allocation9 + $0x28] sm:$0xff]  ;;  %v3491_v13 = vld [vmem:[#allocation9 + $0x38] sm:$0xff]  ;;  %v3502_v20 = vld [vmem:[#allocation9 + $0x90] sm:$0xff] }
0x100f   :  { %3696 = vmatpush.msrb.mxu0 %v3528_v39  ;;  %3716 = vmatpush.msrb.mxu1 %v3529_v16  ;;  %v3484_v17 = vld [vmem:[#allocation9] sm:$0xff]  ;;  %v3485_v15 = vld [vmem:[#allocation9 + $0x8] sm:$0xff]  ;;  %v3487_v43 = vld [vmem:[#allocation9 + $0x18] sm:$0xff] }
0x1010   :  { %3756 = vmatpush.msrb.mxu3 %v3531_v40  ;;  %3735 = vmatpush.msrb.mxu2 %v3534_v6  ;;  %v3498_v34 = vld [vmem:[#allocation9 + $0x70] sm:$0xff]  ;;  %v3857_v45 = vld [vmem:[%s9092_s10 + $0x70] sm:$0xff]  ;;  %v3856_v10 = vld [vmem:[%s9092_s10 + $0x68] sm:$0xff] }
0x1011   :  { %3697 = vmatpush.msrb.mxu0 %v3524_v14  ;;  %3717 = vmatpush.msrb.mxu1 %v3525_v54  ;;  %v3494_v47 = vld [vmem:[#allocation9 + $0x50] sm:$0xff]  ;;  %v3855_v29 = vld [vmem:[%s9092_s10 + $0x60] sm:$0xff]  ;;  %v3853_v31 = vld [vmem:[%s9092_s10 + $0x50] sm:$0xff] }
0x1012   :  { %3757 = vmatpush.msrb.mxu3 %v3527_v5  ;;  %3736 = vmatpush.msrb.mxu2 %v3530_v46  ;;  %v3490_v21 = vld [vmem:[#allocation9 + $0x30] sm:$0xff]  ;;  %v3852_v57 = vld [vmem:[%s9092_s10 + $0x48] sm:$0xff]  ;;  %v3851_v39 = vld [vmem:[%s9092_s10 + $0x40] sm:$0xff] }
0x1013   :  { %3698 = vmatpush.msrb.mxu0 %v3520_v4  ;;  %3718 = vmatpush.msrb.mxu1 %v3521_v60  ;;  %v3486_v28 = vld [vmem:[#allocation9 + $0x10] sm:$0xff]  ;;  %v3772_v40 = vld [vmem:[%s9091_s9] sm:$0xff]  ;;  %v3773_v14 = vld [vmem:[%s9091_s9 + $0x8] sm:$0xff] }
0x1014   :  { %3758 = vmatpush.msrb.mxu3 %v3523_v23  ;;  %3737 = vmatpush.msrb.mxu2 %v3526_v59  ;;  %v3854_v30 = vld [vmem:[%s9092_s10 + $0x58] sm:$0xff]  ;;  %v3849_v4 = vld [vmem:[%s9092_s10 + $0x30] sm:$0xff]  ;;  %v3848_v60 = vld [vmem:[%s9092_s10 + $0x28] sm:$0xff] }
0x1015   :  { %3699 = vmatpush.msrb.mxu0 %v3516_v49  ;;  %3719 = vmatpush.msrb.mxu1 %v3517_v42  ;;  %v3850_v54 = vld [vmem:[%s9092_s10 + $0x38] sm:$0xff]  ;;  %v3847_v42 = vld [vmem:[%s9092_s10 + $0x20] sm:$0xff] }
0x1016   :  { %3759 = vmatpush.msrb.mxu3 %v3519_v24  ;;  %3738 = vmatpush.msrb.mxu2 %v3522_v0  ;;  %v3846_v24 = vld [vmem:[%s9092_s10 + $0x18] sm:$0xff] }
0x1017   :  { %3700 = vmatpush.msrb.mxu0 %v3512_v50  ;;  %3720 = vmatpush.msrb.mxu1 %v3513_v55  ;;  %v3775_v50 = vld [vmem:[%s9091_s9 + $0x18] sm:$0xff] }
0x1018   :  { %3760 = vmatpush.msrb.mxu3 %v3515_v53  ;;  %3739 = vmatpush.msrb.mxu2 %v3518_v7  ;;  %v3845_v53 = vld [vmem:[%s9092_s10 + $0x10] sm:$0xff] }
0x1019   :  { %3701 = vmatpush.msrb.mxu0 %v3508_v51  ;;  %3721 = vmatpush.msrb.mxu1 %v3509_v37  ;;  %v3844_v51 = vld [vmem:[%s9092_s10 + $0x8] sm:$0xff] }
0x101a   :  { %3761 = vmatpush.msrb.mxu3 %v3511_v36  ;;  %3628 = vmatmul.f32.vlgmr.msra.gmra.mxu0 %v8495_v52  ;;  %v3843_v36 = vld [vmem:[%s9092_s10] sm:$0xff] }
0x101b   :  { %3702 = vmatpush.msrb.mxu0 %v3504_v1  ;;  %3722 = vmatpush.msrb.mxu1 %v3505_v2 }
0x101c   :  { %3762 = vmatpush.msrb.mxu3 %v3507_v3  ;;  %3648 = vmatmul.f32.vlgmr.msra.gmra.mxu1 %v8495_v52 }
0x101d   :  { %3703 = vmatpush.msrb.mxu0 %v3500_v8  ;;  %3723 = vmatpush.msrb.mxu1 %v3501_v9  ;;  %v3774_v9 = vld [vmem:[%s9091_s9 + $0x10] sm:$0xff] }
0x101e   :  { %3763 = vmatpush.msrb.mxu3 %v3503_v44  ;;  %3740 = vmatpush.msrb.mxu2 %v3514_v18 }
0x101f   :  { %3688 = vmatmul.f32.vlgmr.msra.gmra.mxu3 %v8495_v52  ;;  %3704 = vmatpush.msrb.mxu0 %v3496_v26 }
0x1020   :  { %3724 = vmatpush.msrb.mxu1 %v3497_v35  ;;  %3764 = vmatpush.msrb.mxu3 %v3499_v22 }
0x1021   :  { %3741 = vmatpush.msrb.mxu2 %v3510_v25  ;;  %3705 = vmatpush.msrb.mxu0 %v3492_v11 }
0x1022   :  { %3725 = vmatpush.msrb.mxu1 %v3493_v12  ;;  %3765 = vmatpush.msrb.mxu3 %v3495_v27 }
0x1023   :  { %3742 = vmatpush.msrb.mxu2 %v3506_v32  ;;  %3706 = vmatpush.msrb.mxu0 %v3488_v38 }
0x1024   :  { %3726 = vmatpush.msrb.mxu1 %v3489_v19  ;;  %3766 = vmatpush.msrb.mxu3 %v3491_v13 }
0x1025   :  { %3743 = vmatpush.msrb.mxu2 %v3502_v20  ;;  %3707 = vmatpush.msrb.mxu0 %v3484_v17 }
0x1026   :  { %3668 = vmatmul.f32.vlgmr.msra.gmra.mxu2 %v8495_v52  ;;  %3727 = vmatpush.msrb.mxu1 %v3485_v15  ;;  %v3858_v52 = vld [vmem:[%s9092_s10 + $0x78] sm:$0xff] }
0x1027   :  { %3767 = vmatpush.msrb.mxu3 %v3487_v43  ;;  %3708 = vmatmul.f32.vlgmr.msrb.gmra.mxu0 %v8552_v62 }
0x1028   :  { %3728 = vmatmul.f32.vlgmr.msrb.gmra.mxu1 %v8552_v62  ;;  %3744 = vmatpush.msrb.mxu2 %v3498_v34 }
0x1029   :  { %3768 = vmatmul.f32.vlgmr.msrb.gmra.mxu3 %v8552_v62  ;;  %3860 = vmatpush.msra.mxu0 %v3858_v52 }
0x102a   :  { %3745 = vmatpush.msrb.mxu2 %v3494_v47 }
0x102b   :  { %3861 = vmatpush.msra.mxu0 %v3857_v45 }
0x102c   :  { %3746 = vmatpush.msrb.mxu2 %v3490_v21 }
0x102d   :  { %3862 = vmatpush.msra.mxu0 %v3856_v10 }
0x102e   :  { %3747 = vmatpush.msrb.mxu2 %v3486_v28 }
0x102f   :  { %3748 = vmatmul.f32.vlgmr.msrb.gmra.mxu2 %v8552_v62  ;;  %3863 = vmatpush.msra.mxu0 %v3855_v29 }
0x1031   :  { %3864 = vmatpush.msra.mxu0 %v3854_v30 }
0x1033   :  { %3865 = vmatpush.msra.mxu0 %v3853_v31 }
0x1035   :  { %3866 = vmatpush.msra.mxu0 %v3852_v57 }
0x1037   :  { %3867 = vmatpush.msra.mxu0 %v3851_v39 }
0x1039   :  { %3868 = vmatpush.msra.mxu0 %v3850_v54 }
0x103b   :  { %3869 = vmatpush.msra.mxu0 %v3849_v4 }
0x103d   :  { %3870 = vmatpush.msra.mxu0 %v3848_v60 }
0x103f   :  { %3871 = vmatpush.msra.mxu0 %v3847_v42 }
0x1041   :  { %3872 = vmatpush.msra.mxu0 %v3846_v24 }
0x1043   :  { %3873 = vmatpush.msra.mxu0 %v3845_v53 }
0x1045   :  { %3874 = vmatpush.msra.mxu0 %v3844_v51 }
0x1047   :  { %3875 = vmatpush.msra.mxu0 %v3843_v36 }
0x1097   :  { %v3629_v63 = vpop.f32.mrf.mxu0 }
0x1099   :  { %v3649_v56 = vpop.f32.mrf.mxu1 }
0x10a2   :  { %v3689_v33 = vpop.f32.mrf.mxu3 }
0x10a4   :  { %v3709_v16 = vpop.f32.mrf.mxu0 }
0x10a5   :  { %v3729_v48 = vpop.f32.mrf.mxu1  ;;  %v3710_v5 = vadd.f32 %v3709_v16, %v3629_v63 }
0x10a6   :  { %v3730_v58 = vadd.f32 %v3729_v48, %v3649_v56 }
0x10a7   :  { %v3776_v62 = vadd.f32 %v3772_v40, %v3710_v5 }
0x10a8   :  { %v3777_v61 = vadd.f32 %v3773_v14, %v3730_v58 }
0x10a9   :  { %v5424_v23 = vmul.f32 -1.442695, %v3776_v62  ;;  %v3669_v49 = vpop.f32.mrf.mxu2 }
0x10aa   :  { %v5425_v6 = vmul.f32 -1.442695, %v3777_v61 }
0x10ab   :  { %5915 = vpow2.f32 %v5424_v23 }
0x10ac   :  { %v3769_v46 = vpop.f32.mrf.mxu3  ;;  %5917 = vpow2.f32 %v5425_v6 }
0x10ad   :  { %v3770_v55 = vadd.f32 %v3769_v46, %v3689_v33 }
0x10af   :  { %v3779_v59 = vadd.f32 %v3775_v50, %v3770_v55 }
0x10b1   :  { %v5426_v37 = vmul.f32 -1.442695, %v3779_v59  ;;  %v5916_v0 = vpop.eup %5915 }
0x10b2   :  { %v5918_v1 = vpop.eup %5917  ;;  %v3783_v2 = vadd.f32 1.0, %v5916_v0  ;;  %v3749_v7 = vpop.f32.mrf.mxu2 }
0x10b3   :  { %5919 = vpow2.f32 %v5426_v37  ;;  %v3802_v3 = vadd.f32 1.0, %v5918_v1  ;;  %v3750_v8 = vadd.f32 %v3749_v7, %v3669_v49 }
0x10b4   :  { %5921 = vrcp.f32 %v3783_v2  ;;  %v3795_v32 = vand.u32 2147483648, %v3783_v2  ;;  %v3793_v13 = vand.u32 2147483647, %v3783_v2  ;;  %vm3789_vm2 = vweird.f32 %v3783_v2 }
0x10b5   :  { %5923 = vrcp.f32 %v3802_v3  ;;  %v3778_v35 = vadd.f32 %v3774_v9, %v3750_v8  ;;  %v3814_v38 = vand.u32 2147483648, %v3802_v3  ;;  %v3812_v17 = vand.u32 2147483647, %v3802_v3 }
0x10b6   :  { %vm3808_vm3 = vweird.f32 %v3802_v3  ;;  %v3796_v47 = vor.u32 1.1754944e-38, %v3795_v32  ;;  %vm3794_vm5 = vcmp.eq.f32.partialorder %v3793_v13, 8.507059e+37 }
0x10b7   :  { %v3815_v28 = vor.u32 1.1754944e-38, %v3814_v38  ;;  %vm3813_vm7 = vcmp.eq.f32.partialorder %v3812_v17, 8.507059e+37 }
0x10b9   :  { %v5920_v44 = vpop.eup %5919 }
0x10ba   :  { %v3822_v18 = vadd.f32 1.0, %v5920_v44  ;;  %v5922_v26 = vpop.eup %5921 }
0x10bb   :  { %v5924_v22 = vpop.eup %5923  ;;  %v3785_v25 = vmul.f32 %v5922_v26, %v3783_v2  ;;  %vm3790_vm0 = vweird.f32 %v5922_v26 }
0x10bc   :  { %5925 = vrcp.f32 %v3822_v18  ;;  %v3804_v11 = vmul.f32 %v5924_v22, %v3802_v3  ;;  %vm3809_vm1 = vweird.f32 %v5924_v22  ;;  %vm3791_vm4 = vmor %vm3789_vm2, %vm3790_vm0  ;;  %v3834_v16 = vand.u32 2147483648, %v3822_v18 }
0x10bd   :  { %v3786_v12 = vsub.f32 1.0, %v3785_v25  ;;  %5927 = vtanh.f32 %v3778_v35  ;;  %vm3810_vm6 = vmor %vm3808_vm3, %vm3809_vm1  ;;  %vm3828_vm9 = vweird.f32 %v3822_v18  ;;  %v3832_v40 = vand.u32 2147483647, %v3822_v18 }
0x10be   :  { %v3805_v27 = vsub.f32 1.0, %v3804_v11  ;;  %v3835_v14 = vor.u32 1.1754944e-38, %v3834_v16 }
0x10bf   :  { %v3787_v19 = vmul.f32 %v5922_v26, %v3786_v12  ;;  %vm3833_vm11 = vcmp.eq.f32.partialorder %v3832_v40, 8.507059e+37 }
0x10c0   :  { %v3806_v20 = vmul.f32 %v5924_v22, %v3805_v27 }
0x10c1   :  { %v3788_v43 = vadd.f32 %v5922_v26, %v3787_v19 }
0x10c2   :  { %v5926_v15 = vpop.eup %5925  ;;  %v3807_v21 = vadd.f32 %v5924_v22, %v3806_v20 }
0x10c3   :  { %v3824_v34 = vmul.f32 %v5926_v15, %v3822_v18  ;;  %v3792_v52 = vsel %vm3791_vm4, %v5922_v26, %v3788_v43  ;;  %v5928_v45 = vpop.eup %5927  ;;  %vm3829_vm8 = vweird.f32 %v5926_v15 }
0x10c4   :  { %v3797_v63 = vsel %vm3794_vm5, %v3796_v47, %v3792_v52  ;;  %v3811_v56 = vsel %vm3810_vm6, %v5924_v22, %v3807_v21  ;;  %vm3830_vm10 = vmor %vm3828_vm9, %vm3829_vm8 }
0x10c5   :  { %v3825_v10 = vsub.f32 1.0, %v3824_v34  ;;  %v3816_v29 = vsel %vm3813_vm7, %v3815_v28, %v3811_v56  ;;  %v3839_v30 = vmul.f32 %v5928_v45, %v3797_v63 }
0x10c6   :  { %v3838_v31 = vmul.f32 %v3816_v29, %v8492_v41  ;;  %v3859_v41 = vld [vmem:[%s9093_s11] sm:$0xff] }
0x10c7   :  { %v3826_v57 = vmul.f32 %v5926_v15, %v3825_v10 }
0x10c8   :  { %v8626_v33 = vadd.f32 %v3839_v30, %v3838_v31 }
0x10c9   :  { %v3827_v39 = vadd.f32 %v5926_v15, %v3826_v57 }
0x10ca   :  { %5929 = vtanh.f32 %v8626_v33 }
0x10cb   :  { %v3831_v48 = vsel %vm3830_vm10, %v5926_v15, %v3827_v39 }
0x10cc   :  { %v3836_v5 = vsel %vm3833_vm11, %v3835_v14, %v3831_v48 }
0x10d0   :  { %v5930_v54 = vpop.eup %5929 }
0x10d1   :  { %v8629_v58 = vmul.f32 %v5930_v54, %v3836_v5 }
0x10d3   :  { %3876 = vmatmul.f32.vlgmr.msra.gmra.mxu0 %v8629_v58 }
0x114f   :  { %3889 = sbr.rel (%p5430_p3) target bundleno = 4930 (0x1342), region = 77 }
0x1150   :  { %v3877_v4 = vpop.f32.mrf.mxu0 }
0x1151   :  { %v3878_v62 = vadd.f32 %v3877_v4, %v3859_v41 }
0x1153   :  { %5427 = vst [vmem:[%s9094_s12 + $0x20] sm:$0xff] %v3878_v62 }
0x1154   :  { %v3890_v61 = vlaneseq  ;;  %v3930_v46 = vld [vmem:[%s9085_s3 + $0x78] sm:$0xff]  ;;  %v3929_v50 = vld [vmem:[%s9085_s3 + $0x70] sm:$0xff]  ;;  %v3928_v55 = vld [vmem:[%s9085_s3 + $0x68] sm:$0xff]  ;;  %v6106_v38 = vmov 1.0  }
0x1155   :  { %3931 = vmatpush.msra.mxu0 %v3930_v46  ;;  %v3927_v53 = vld [vmem:[%s9085_s3 + $0x60] sm:$0xff]  ;;  %v3926_v59 = vld [vmem:[%s9085_s3 + $0x58] sm:$0xff]  ;;  %v3925_v51 = vld [vmem:[%s9085_s3 + $0x50] sm:$0xff] }
0x1156   :  { %v3891_v60 = vand.u32 127, %v3890_v61  ;;  %v3924_v37 = vld [vmem:[%s9085_s3 + $0x48] sm:$0xff]  ;;  %v3923_v36 = vld [vmem:[%s9085_s3 + $0x40] sm:$0xff]  ;;  %v3922_v0 = vld [vmem:[%s9085_s3 + $0x38] sm:$0xff] }
0x1157   :  { %3932 = vmatpush.msra.mxu0 %v3929_v50  ;;  %v3921_v1 = vld [vmem:[%s9085_s3 + $0x30] sm:$0xff]  ;;  %v3920_v2 = vld [vmem:[%s9085_s3 + $0x28] sm:$0xff]  ;;  %v3919_v3 = vld [vmem:[%s9085_s3 + $0x20] sm:$0xff] }
0x1158   :  { %vm3892_vm12 = vcmp.lt.s32.totalorder %v3891_v60, 16  ;;  %v3918_v7 = vld [vmem:[%s9085_s3 + $0x18] sm:$0xff]  ;;  %v3917_v26 = vld [vmem:[%s9085_s3 + $0x10] sm:$0xff]  ;;  %v3916_v35 = vld [vmem:[%s9085_s3 + $0x8] sm:$0xff] }
0x1159   :  { %v3893_v23 = vsel %vm3892_vm12, %v3878_v62, -1e+30  ;;  %3933 = vmatpush.msra.mxu0 %v3928_v55  ;;  %v3915_v22 = vld [vmem:[%s9085_s3] sm:$0xff] }
0x115a   :  { %3894 = vmax.xlane.f32.xlu0 %v3893_v23 }
0x115b   :  { %3934 = vmatpush.msra.mxu0 %v3927_v53 }
0x115d   :  { %3935 = vmatpush.msra.mxu0 %v3926_v59 }
0x115f   :  { %3936 = vmatpush.msra.mxu0 %v3925_v51 }
0x1161   :  { %3937 = vmatpush.msra.mxu0 %v3924_v37 }
0x1163   :  { %3938 = vmatpush.msra.mxu0 %v3923_v36 }
0x1165   :  { %3939 = vmatpush.msra.mxu0 %v3922_v0 }
0x1167   :  { %3940 = vmatpush.msra.mxu0 %v3921_v1 }
0x1169   :  { %3941 = vmatpush.msra.mxu0 %v3920_v2 }
0x116b   :  { %3942 = vmatpush.msra.mxu0 %v3919_v3 }
0x116d   :  { %3943 = vmatpush.msra.mxu0 %v3918_v7 }
0x116f   :  { %3944 = vmatpush.msra.mxu0 %v3917_v26 }
0x1171   :  { %3945 = vmatpush.msra.mxu0 %v3916_v35 }
0x1173   :  { %3946 = vmatpush.msra.mxu0 %v3915_v22 }
0x11cd   :  { %v3895_v6 = vpop.xlane.xlu0 %3894 }
0x11ce   :  { %vm3896_vm13 = vcmp.eq.f32.partialorder %v3893_v23, %v3895_v6 }
0x11cf   :  { %v3897_v49 = vsel %vm3896_vm13, %v3891_v60, 128 }
0x11d0   :  { %v3899_v42 = vshra.s32 %v3897_v49, 16  ;;  %v3898_v8 = vand.u32 65535, %v3897_v49 }
0x11d2   :  { %v3901_v24 = vcvt.s32.f32 %v3899_v42  ;;  %v3900_v44 = vcvt.s32.f32 %v3898_v8 }
0x11d4   :  { %3902 = vmin.xlane.f32.xlu0 %v3901_v24 }
0x1247   :  { %v3903_v9 = vpop.xlane.xlu0 %3902 }
0x1248   :  { %vm3904_vm14 = vcmp.eq.f32.partialorder %v3901_v24, %v3903_v9  ;;  %v3909_v25 = vcvt.f32.s32 %v3903_v9 }
0x1249   :  { %v3905_v18 = vsel %vm3904_vm14, %v3900_v44, inf }
0x124a   :  { %3906 = vmin.xlane.f32.xlu1 %v3905_v18  ;;  %v3910_v12 = vshll.u32 %v3909_v25, 16 }
0x12bd   :  { %v3907_v11 = vpop.xlane.xlu1 %3906 }
0x12be   :  { %v3908_v27 = vcvt.f32.s32 %v3907_v11 }
0x12c0   :  { %v3911_v32 = vadd.s32 %v3910_v12, %v3908_v27 }
0x12c2   :  { %vm3912_vm15 = vcmp.eq.s32.totalorder %v3891_v60, %v3911_v32 }
0x12c3   :  { %5432 = vmatmul.msk.f32.vlgmr.msra.gmra.mxu0 %vm3912_vm15, %v6106_v38 }
0x1340   :  { %v3948_v19 = vpop.f32.mrf.mxu0 }
0x1341   :  { %3951 = vst [vmem:[#allocation2] sm:$0xff] %v3948_v19 }
0x1342 PF:  { %v4077_v13 = vld [vmem:[#allocation10 + $0x1e0] sm:$0xff]  ;;  %v4078_v20 = vld [vmem:[#allocation10 + $0x1e8] sm:$0xff]  ;;  %v4080_v17 = vld [vmem:[#allocation10 + $0x1f8] sm:$0xff]  ;;  %s5438_s13 = sld [smem:[#allocation4 + $0x5]] }
0x1343   :  { %4081 = vmatpush.msra.mxu0 %v4077_v13  ;;  %4101 = vmatpush.msra.mxu1 %v4078_v20  ;;  %v4073_v15 = vld [vmem:[#allocation10 + $0x1c0] sm:$0xff]  ;;  %v4074_v43 = vld [vmem:[#allocation10 + $0x1c8] sm:$0xff]  ;;  %v4076_v34 = vld [vmem:[#allocation10 + $0x1d8] sm:$0xff] }
0x1344   :  { %4141 = vmatpush.msra.mxu3 %v4080_v17  ;;  %v4069_v47 = vld [vmem:[#allocation10 + $0x1a0] sm:$0xff]  ;;  %v4070_v21 = vld [vmem:[#allocation10 + $0x1a8] sm:$0xff]  ;;  %v4072_v28 = vld [vmem:[#allocation10 + $0x1b8] sm:$0xff] }
0x1345   :  { %4082 = vmatpush.msra.mxu0 %v4073_v15  ;;  %4102 = vmatpush.msra.mxu1 %v4074_v43  ;;  %v4065_v52 = vld [vmem:[#allocation10 + $0x180] sm:$0xff]  ;;  %v4066_v45 = vld [vmem:[#allocation10 + $0x188] sm:$0xff]  ;;  %v4079_v10 = vld [vmem:[#allocation10 + $0x1f0] sm:$0xff] }
0x1346   :  { %4142 = vmatpush.msra.mxu3 %v4076_v34  ;;  %v4068_v63 = vld [vmem:[#allocation10 + $0x198] sm:$0xff]  ;;  %v4075_v56 = vld [vmem:[#allocation10 + $0x1d0] sm:$0xff]  ;;  %4121 = vmatpush.msra.mxu2 %v4079_v10  ;;  %v4061_v29 = vld [vmem:[#allocation10 + $0x160] sm:$0xff] }
0x1347   :  { %4083 = vmatpush.msra.mxu0 %v4069_v47  ;;  %4103 = vmatpush.msra.mxu1 %v4070_v21  ;;  %v4062_v30 = vld [vmem:[#allocation10 + $0x168] sm:$0xff]  ;;  %v4064_v31 = vld [vmem:[#allocation10 + $0x178] sm:$0xff]  ;;  %v4071_v57 = vld [vmem:[#allocation10 + $0x1b0] sm:$0xff] }
0x1348   :  { %4143 = vmatpush.msra.mxu3 %v4072_v28  ;;  %4122 = vmatpush.msra.mxu2 %v4075_v56  ;;  %v4057_v39 = vld [vmem:[#allocation10 + $0x140] sm:$0xff]  ;;  %v4058_v16 = vld [vmem:[#allocation10 + $0x148] sm:$0xff]  ;;  %v4060_v40 = vld [vmem:[#allocation10 + $0x158] sm:$0xff]  ;;  %p5439_p4 = scmp.ne.s32.totalorder %s5438_s13, 0 }
0x1349   :  { %4084 = vmatpush.msra.mxu0 %v4065_v52  ;;  %4104 = vmatpush.msra.mxu1 %v4066_v45  ;;  %v4067_v48 = vld [vmem:[#allocation10 + $0x190] sm:$0xff]  ;;  %v4053_v14 = vld [vmem:[#allocation10 + $0x120] sm:$0xff]  ;;  %v4054_v54 = vld [vmem:[#allocation10 + $0x128] sm:$0xff] }
0x134a   :  { %4144 = vmatpush.msra.mxu3 %v4068_v63  ;;  %4123 = vmatpush.msra.mxu2 %v4071_v57  ;;  %v4056_v5 = vld [vmem:[#allocation10 + $0x138] sm:$0xff]  ;;  %v4063_v41 = vld [vmem:[#allocation10 + $0x170] sm:$0xff]  ;;  %v4049_v4 = vld [vmem:[#allocation10 + $0x100] sm:$0xff] }
0x134b   :  { %4085 = vmatpush.msra.mxu0 %v4061_v29  ;;  %4105 = vmatpush.msra.mxu1 %v4062_v30  ;;  %v4050_v62 = vld [vmem:[#allocation10 + $0x108] sm:$0xff]  ;;  %v4052_v61 = vld [vmem:[#allocation10 + $0x118] sm:$0xff]  ;;  %v4059_v60 = vld [vmem:[#allocation10 + $0x150] sm:$0xff] }
0x134c   :  { %4145 = vmatpush.msra.mxu3 %v4064_v31  ;;  %4124 = vmatpush.msra.mxu2 %v4067_v48  ;;  %v4045_v23 = vld [vmem:[#allocation10 + $0xe0] sm:$0xff]  ;;  %v4046_v6 = vld [vmem:[#allocation10 + $0xe8] sm:$0xff]  ;;  %v4048_v49 = vld [vmem:[#allocation10 + $0xf8] sm:$0xff] }
0x134d   :  { %4086 = vmatpush.msra.mxu0 %v4057_v39  ;;  %4106 = vmatpush.msra.mxu1 %v4058_v16  ;;  %v4055_v42 = vld [vmem:[#allocation10 + $0x130] sm:$0xff]  ;;  %v4041_v24 = vld [vmem:[#allocation10 + $0xc0] sm:$0xff]  ;;  %v4042_v46 = vld [vmem:[#allocation10 + $0xc8] sm:$0xff] }
0x134e   :  { %4146 = vmatpush.msra.mxu3 %v4060_v40  ;;  %4125 = vmatpush.msra.mxu2 %v4063_v41  ;;  %v4044_v50 = vld [vmem:[#allocation10 + $0xd8] sm:$0xff]  ;;  %v4051_v55 = vld [vmem:[#allocation10 + $0x110] sm:$0xff]  ;;  %v4037_v53 = vld [vmem:[#allocation10 + $0xa0] sm:$0xff] }
0x134f   :  { %4087 = vmatpush.msra.mxu0 %v4053_v14  ;;  %4107 = vmatpush.msra.mxu1 %v4054_v54  ;;  %v4038_v59 = vld [vmem:[#allocation10 + $0xa8] sm:$0xff]  ;;  %v4040_v51 = vld [vmem:[#allocation10 + $0xb8] sm:$0xff]  ;;  %v4047_v37 = vld [vmem:[#allocation10 + $0xf0] sm:$0xff] }
0x1350   :  { %4147 = vmatpush.msra.mxu3 %v4056_v5  ;;  %4126 = vmatpush.msra.mxu2 %v4059_v60  ;;  %v4033_v36 = vld [vmem:[#allocation10 + $0x80] sm:$0xff]  ;;  %v4034_v0 = vld [vmem:[#allocation10 + $0x88] sm:$0xff]  ;;  %v4036_v1 = vld [vmem:[#allocation10 + $0x98] sm:$0xff] }
0x1351   :  { %4088 = vmatpush.msra.mxu0 %v4049_v4  ;;  %4108 = vmatpush.msra.mxu1 %v4050_v62  ;;  %v4043_v2 = vld [vmem:[#allocation10 + $0xd0] sm:$0xff]  ;;  %v4029_v3 = vld [vmem:[#allocation10 + $0x60] sm:$0xff]  ;;  %v4030_v7 = vld [vmem:[#allocation10 + $0x68] sm:$0xff] }
0x1352   :  { %4148 = vmatpush.msra.mxu3 %v4052_v61  ;;  %4127 = vmatpush.msra.mxu2 %v4055_v42  ;;  %v4032_v8 = vld [vmem:[#allocation10 + $0x78] sm:$0xff]  ;;  %v4039_v9 = vld [vmem:[#allocation10 + $0xb0] sm:$0xff]  ;;  %v4025_v44 = vld [vmem:[#allocation10 + $0x40] sm:$0xff] }
0x1353   :  { %4089 = vmatpush.msra.mxu0 %v4045_v23  ;;  %4109 = vmatpush.msra.mxu1 %v4046_v6  ;;  %v4026_v18 = vld [vmem:[#allocation10 + $0x48] sm:$0xff]  ;;  %v4028_v26 = vld [vmem:[#allocation10 + $0x58] sm:$0xff]  ;;  %v4035_v35 = vld [vmem:[#allocation10 + $0x90] sm:$0xff] }
0x1354   :  { %4149 = vmatpush.msra.mxu3 %v4048_v49  ;;  %4128 = vmatpush.msra.mxu2 %v4051_v55  ;;  %v4021_v22 = vld [vmem:[#allocation10 + $0x20] sm:$0xff]  ;;  %v4022_v25 = vld [vmem:[#allocation10 + $0x28] sm:$0xff]  ;;  %v4024_v11 = vld [vmem:[#allocation10 + $0x38] sm:$0xff] }
0x1355   :  { %4090 = vmatpush.msra.mxu0 %v4041_v24  ;;  %4110 = vmatpush.msra.mxu1 %v4042_v46  ;;  %v4031_v12 = vld [vmem:[#allocation10 + $0x70] sm:$0xff]  ;;  %v4017_v27 = vld [vmem:[#allocation10] sm:$0xff]  ;;  %v4018_v32 = vld [vmem:[#allocation10 + $0x8] sm:$0xff] }
0x1356   :  { %4150 = vmatpush.msra.mxu3 %v4044_v50  ;;  %4129 = vmatpush.msra.mxu2 %v4047_v37  ;;  %v4020_v38 = vld [vmem:[#allocation10 + $0x18] sm:$0xff]  ;;  %v4013_v19 = vld [vmem:[#allocation9 + $0x1e0] sm:$0xff]  ;;  %v4014_v13 = vld [vmem:[#allocation9 + $0x1e8] sm:$0xff] }
0x1357   :  { %4091 = vmatpush.msra.mxu0 %v4037_v53  ;;  %4111 = vmatpush.msra.mxu1 %v4038_v59  ;;  %v4016_v20 = vld [vmem:[#allocation9 + $0x1f8] sm:$0xff]  ;;  %v4027_v17 = vld [vmem:[#allocation10 + $0x50] sm:$0xff]  ;;  %v4009_v15 = vld [vmem:[#allocation9 + $0x1c0] sm:$0xff] }
0x1358   :  { %4151 = vmatpush.msra.mxu3 %v4040_v51  ;;  %4130 = vmatpush.msra.mxu2 %v4043_v2  ;;  %v4010_v43 = vld [vmem:[#allocation9 + $0x1c8] sm:$0xff]  ;;  %v4012_v34 = vld [vmem:[#allocation9 + $0x1d8] sm:$0xff]  ;;  %v4023_v47 = vld [vmem:[#allocation10 + $0x30] sm:$0xff] }
0x1359   :  { %4092 = vmatpush.msra.mxu0 %v4033_v36  ;;  %4112 = vmatpush.msra.mxu1 %v4034_v0  ;;  %v4005_v21 = vld [vmem:[#allocation9 + $0x1a0] sm:$0xff]  ;;  %v4006_v28 = vld [vmem:[#allocation9 + $0x1a8] sm:$0xff]  ;;  %v4008_v52 = vld [vmem:[#allocation9 + $0x1b8] sm:$0xff] }
0x135a   :  { %4152 = vmatpush.msra.mxu3 %v4036_v1  ;;  %4131 = vmatpush.msra.mxu2 %v4039_v9  ;;  %v4019_v45 = vld [vmem:[#allocation10 + $0x10] sm:$0xff]  ;;  %v4001_v10 = vld [vmem:[#allocation9 + $0x180] sm:$0xff]  ;;  %v4002_v63 = vld [vmem:[#allocation9 + $0x188] sm:$0xff] }
0x135b   :  { %4093 = vmatpush.msra.mxu0 %v4029_v3  ;;  %4113 = vmatpush.msra.mxu1 %v4030_v7  ;;  %v4004_v56 = vld [vmem:[#allocation9 + $0x198] sm:$0xff]  ;;  %v4015_v29 = vld [vmem:[#allocation9 + $0x1f0] sm:$0xff]  ;;  %v3997_v30 = vld [vmem:[#allocation9 + $0x160] sm:$0xff] }
0x135c   :  { %4153 = vmatpush.msra.mxu3 %v4032_v8  ;;  %4132 = vmatpush.msra.mxu2 %v4035_v35  ;;  %v3998_v31 = vld [vmem:[#allocation9 + $0x168] sm:$0xff]  ;;  %v4000_v57 = vld [vmem:[#allocation9 + $0x178] sm:$0xff]  ;;  %v4011_v39 = vld [vmem:[#allocation9 + $0x1d0] sm:$0xff] }
0x135d   :  { %4094 = vmatpush.msra.mxu0 %v4025_v44  ;;  %4114 = vmatpush.msra.mxu1 %v4026_v18  ;;  %v3993_v16 = vld [vmem:[#allocation9 + $0x140] sm:$0xff]  ;;  %v3994_v40 = vld [vmem:[#allocation9 + $0x148] sm:$0xff]  ;;  %v3996_v48 = vld [vmem:[#allocation9 + $0x158] sm:$0xff] }
0x135e   :  { %4154 = vmatpush.msra.mxu3 %v4028_v26  ;;  %4133 = vmatpush.msra.mxu2 %v4031_v12  ;;  %v4007_v14 = vld [vmem:[#allocation9 + $0x1b0] sm:$0xff]  ;;  %v3989_v54 = vld [vmem:[#allocation9 + $0x120] sm:$0xff]  ;;  %v8686_v5 = vld [vmem:[#allocation2] sm:$0xff] }
0x135f   :  { %4095 = vmatpush.msra.mxu0 %v4021_v22  ;;  %4115 = vmatpush.msra.mxu1 %v4022_v25  ;;  %v5437_v41 = vld [vmem:[%s9084_s2 + $0x28] sm:$0xff]  ;;  %v3990_v4 = vld [vmem:[#allocation9 + $0x128] sm:$0xff]  ;;  %v3992_v62 = vld [vmem:[#allocation9 + $0x138] sm:$0xff] }
0x1360   :  { %4155 = vmatpush.msra.mxu3 %v4024_v11  ;;  %4134 = vmatpush.msra.mxu2 %v4027_v17  ;;  %4353 = vst [vmem:[#allocation2] sm:$0xff] %v5437_v41  ;;  %v4003_v61 = vld [vmem:[#allocation9 + $0x190] sm:$0xff]  ;;  %v3985_v60 = vld [vmem:[#allocation9 + $0x100] sm:$0xff]  ;;  %v3986_v23 = vld [vmem:[#allocation9 + $0x108] sm:$0xff] }
0x1361   :  { %4096 = vmatpush.msra.mxu0 %v4017_v27  ;;  %4116 = vmatpush.msra.mxu1 %v4018_v32  ;;  %v3988_v6 = vld [vmem:[#allocation9 + $0x118] sm:$0xff]  ;;  %v3999_v49 = vld [vmem:[#allocation9 + $0x170] sm:$0xff]  ;;  %v3981_v42 = vld [vmem:[#allocation9 + $0xe0] sm:$0xff] }
0x1362   :  { %4156 = vmatpush.msra.mxu3 %v4020_v38  ;;  %4135 = vmatpush.msra.mxu2 %v4023_v47  ;;  %v3982_v24 = vld [vmem:[#allocation9 + $0xe8] sm:$0xff]  ;;  %v3984_v46 = vld [vmem:[#allocation9 + $0xf8] sm:$0xff]  ;;  %v3995_v50 = vld [vmem:[#allocation9 + $0x150] sm:$0xff] }
0x1363   :  { %4161 = vmatpush.msrb.mxu0 %v4013_v19  ;;  %4181 = vmatpush.msrb.mxu1 %v4014_v13  ;;  %v3977_v55 = vld [vmem:[#allocation9 + $0xc0] sm:$0xff]  ;;  %v3978_v53 = vld [vmem:[#allocation9 + $0xc8] sm:$0xff]  ;;  %v3980_v59 = vld [vmem:[#allocation9 + $0xd8] sm:$0xff] }
0x1364   :  { %4221 = vmatpush.msrb.mxu3 %v4016_v20  ;;  %4136 = vmatpush.msra.mxu2 %v4019_v45  ;;  %v3991_v51 = vld [vmem:[#allocation9 + $0x130] sm:$0xff]  ;;  %v3973_v37 = vld [vmem:[#allocation9 + $0xa0] sm:$0xff]  ;;  %v3974_v36 = vld [vmem:[#allocation9 + $0xa8] sm:$0xff] }
0x1365   :  { %4162 = vmatpush.msrb.mxu0 %v4009_v15  ;;  %4182 = vmatpush.msrb.mxu1 %v4010_v43  ;;  %v3976_v0 = vld [vmem:[#allocation9 + $0xb8] sm:$0xff]  ;;  %v3987_v1 = vld [vmem:[#allocation9 + $0x110] sm:$0xff]  ;;  %v3969_v2 = vld [vmem:[#allocation9 + $0x80] sm:$0xff] }
0x1366   :  { %4222 = vmatpush.msrb.mxu3 %v4012_v34  ;;  %4201 = vmatpush.msrb.mxu2 %v4015_v29  ;;  %v3970_v3 = vld [vmem:[#allocation9 + $0x88] sm:$0xff]  ;;  %v3972_v7 = vld [vmem:[#allocation9 + $0x98] sm:$0xff]  ;;  %v3983_v8 = vld [vmem:[#allocation9 + $0xf0] sm:$0xff] }
0x1367   :  { %4163 = vmatpush.msrb.mxu0 %v4005_v21  ;;  %4183 = vmatpush.msrb.mxu1 %v4006_v28  ;;  %v3965_v9 = vld [vmem:[#allocation9 + $0x60] sm:$0xff]  ;;  %v3966_v44 = vld [vmem:[#allocation9 + $0x68] sm:$0xff]  ;;  %v3968_v18 = vld [vmem:[#allocation9 + $0x78] sm:$0xff] }
0x1368   :  { %4223 = vmatpush.msrb.mxu3 %v4008_v52  ;;  %4202 = vmatpush.msrb.mxu2 %v4011_v39  ;;  %v3979_v26 = vld [vmem:[#allocation9 + $0xd0] sm:$0xff]  ;;  %v3961_v35 = vld [vmem:[#allocation9 + $0x40] sm:$0xff]  ;;  %v3962_v22 = vld [vmem:[#allocation9 + $0x48] sm:$0xff] }
0x1369   :  { %4164 = vmatpush.msrb.mxu0 %v4001_v10  ;;  %4184 = vmatpush.msrb.mxu1 %v4002_v63  ;;  %v3964_v25 = vld [vmem:[#allocation9 + $0x58] sm:$0xff]  ;;  %v3975_v11 = vld [vmem:[#allocation9 + $0xb0] sm:$0xff]  ;;  %v3957_v12 = vld [vmem:[#allocation9 + $0x20] sm:$0xff] }
0x136a   :  { %4224 = vmatpush.msrb.mxu3 %v4004_v56  ;;  %4203 = vmatpush.msrb.mxu2 %v4007_v14  ;;  %v3958_v27 = vld [vmem:[#allocation9 + $0x28] sm:$0xff]  ;;  %v3960_v32 = vld [vmem:[#allocation9 + $0x38] sm:$0xff]  ;;  %v3971_v38 = vld [vmem:[#allocation9 + $0x90] sm:$0xff] }
0x136b   :  { %4165 = vmatpush.msrb.mxu0 %v3997_v30  ;;  %4185 = vmatpush.msrb.mxu1 %v3998_v31  ;;  %v3953_v19 = vld [vmem:[#allocation9] sm:$0xff]  ;;  %v3954_v13 = vld [vmem:[#allocation9 + $0x8] sm:$0xff]  ;;  %v3956_v20 = vld [vmem:[#allocation9 + $0x18] sm:$0xff] }
0x136c   :  { %4225 = vmatpush.msrb.mxu3 %v4000_v57  ;;  %4204 = vmatpush.msrb.mxu2 %v4003_v61  ;;  %v3967_v17 = vld [vmem:[#allocation9 + $0x70] sm:$0xff]  ;;  %v4326_v47 = vld [vmem:[%s9092_s10 + $0x70] sm:$0xff]  ;;  %v4325_v21 = vld [vmem:[%s9092_s10 + $0x68] sm:$0xff] }
0x136d   :  { %4166 = vmatpush.msrb.mxu0 %v3993_v16  ;;  %4186 = vmatpush.msrb.mxu1 %v3994_v40  ;;  %v3963_v15 = vld [vmem:[#allocation9 + $0x50] sm:$0xff]  ;;  %v4324_v45 = vld [vmem:[%s9092_s10 + $0x60] sm:$0xff]  ;;  %v4322_v63 = vld [vmem:[%s9092_s10 + $0x50] sm:$0xff] }
0x136e   :  { %4226 = vmatpush.msrb.mxu3 %v3996_v48  ;;  %4205 = vmatpush.msrb.mxu2 %v3999_v49  ;;  %v3959_v43 = vld [vmem:[#allocation9 + $0x30] sm:$0xff]  ;;  %v4321_v56 = vld [vmem:[%s9092_s10 + $0x48] sm:$0xff]  ;;  %v4320_v30 = vld [vmem:[%s9092_s10 + $0x40] sm:$0xff] }
0x136f   :  { %4167 = vmatpush.msrb.mxu0 %v3989_v54  ;;  %4187 = vmatpush.msrb.mxu1 %v3990_v4  ;;  %v3955_v34 = vld [vmem:[#allocation9 + $0x10] sm:$0xff]  ;;  %v4241_v57 = vld [vmem:[%s9091_s9] sm:$0xff]  ;;  %v4242_v16 = vld [vmem:[%s9091_s9 + $0x8] sm:$0xff] }
0x1370   :  { %4227 = vmatpush.msrb.mxu3 %v3992_v62  ;;  %4206 = vmatpush.msrb.mxu2 %v3995_v50  ;;  %v4323_v10 = vld [vmem:[%s9092_s10 + $0x58] sm:$0xff]  ;;  %v4318_v54 = vld [vmem:[%s9092_s10 + $0x30] sm:$0xff]  ;;  %v4317_v4 = vld [vmem:[%s9092_s10 + $0x28] sm:$0xff] }
0x1371   :  { %4168 = vmatpush.msrb.mxu0 %v3985_v60  ;;  %4188 = vmatpush.msrb.mxu1 %v3986_v23  ;;  %v4319_v40 = vld [vmem:[%s9092_s10 + $0x38] sm:$0xff]  ;;  %v4316_v23 = vld [vmem:[%s9092_s10 + $0x20] sm:$0xff] }
0x1372   :  { %4228 = vmatpush.msrb.mxu3 %v3988_v6  ;;  %4207 = vmatpush.msrb.mxu2 %v3991_v51  ;;  %v4315_v6 = vld [vmem:[%s9092_s10 + $0x18] sm:$0xff] }
0x1373   :  { %4169 = vmatpush.msrb.mxu0 %v3981_v42  ;;  %4189 = vmatpush.msrb.mxu1 %v3982_v24  ;;  %v4244_v42 = vld [vmem:[%s9091_s9 + $0x18] sm:$0xff] }
0x1374   :  { %4229 = vmatpush.msrb.mxu3 %v3984_v46  ;;  %4208 = vmatpush.msrb.mxu2 %v3987_v1  ;;  %v4314_v46 = vld [vmem:[%s9092_s10 + $0x10] sm:$0xff] }
0x1375   :  { %4170 = vmatpush.msrb.mxu0 %v3977_v55  ;;  %4190 = vmatpush.msrb.mxu1 %v3978_v53  ;;  %v4313_v55 = vld [vmem:[%s9092_s10 + $0x8] sm:$0xff] }
0x1376   :  { %4230 = vmatpush.msrb.mxu3 %v3980_v59  ;;  %4097 = vmatmul.f32.vlgmr.msra.gmra.mxu0 %v8629_v58  ;;  %v4312_v59 = vld [vmem:[%s9092_s10] sm:$0xff] }
0x1377   :  { %4171 = vmatpush.msrb.mxu0 %v3973_v37  ;;  %4191 = vmatpush.msrb.mxu1 %v3974_v36 }
0x1378   :  { %4231 = vmatpush.msrb.mxu3 %v3976_v0  ;;  %4117 = vmatmul.f32.vlgmr.msra.gmra.mxu1 %v8629_v58 }
0x1379   :  { %4172 = vmatpush.msrb.mxu0 %v3969_v2  ;;  %4192 = vmatpush.msrb.mxu1 %v3970_v3  ;;  %v4243_v3 = vld [vmem:[%s9091_s9 + $0x10] sm:$0xff] }
0x137a   :  { %4232 = vmatpush.msrb.mxu3 %v3972_v7  ;;  %4209 = vmatpush.msrb.mxu2 %v3983_v8 }
0x137b   :  { %4157 = vmatmul.f32.vlgmr.msra.gmra.mxu3 %v8629_v58  ;;  %4173 = vmatpush.msrb.mxu0 %v3965_v9 }
0x137c   :  { %4193 = vmatpush.msrb.mxu1 %v3966_v44  ;;  %4233 = vmatpush.msrb.mxu3 %v3968_v18 }
0x137d   :  { %4210 = vmatpush.msrb.mxu2 %v3979_v26  ;;  %4174 = vmatpush.msrb.mxu0 %v3961_v35 }
0x137e   :  { %4194 = vmatpush.msrb.mxu1 %v3962_v22  ;;  %4234 = vmatpush.msrb.mxu3 %v3964_v25 }
0x137f   :  { %4211 = vmatpush.msrb.mxu2 %v3975_v11  ;;  %4175 = vmatpush.msrb.mxu0 %v3957_v12 }
0x1380   :  { %4195 = vmatpush.msrb.mxu1 %v3958_v27  ;;  %4235 = vmatpush.msrb.mxu3 %v3960_v32 }
0x1381   :  { %4212 = vmatpush.msrb.mxu2 %v3971_v38  ;;  %4176 = vmatpush.msrb.mxu0 %v3953_v19 }
0x1382   :  { %4137 = vmatmul.f32.vlgmr.msra.gmra.mxu2 %v8629_v58  ;;  %4196 = vmatpush.msrb.mxu1 %v3954_v13  ;;  %v4327_v58 = vld [vmem:[%s9092_s10 + $0x78] sm:$0xff] }
0x1383   :  { %4236 = vmatpush.msrb.mxu3 %v3956_v20  ;;  %4177 = vmatmul.f32.vlgmr.msrb.gmra.mxu0 %v8686_v5 }
0x1384   :  { %4197 = vmatmul.f32.vlgmr.msrb.gmra.mxu1 %v8686_v5  ;;  %4213 = vmatpush.msrb.mxu2 %v3967_v17 }
0x1385   :  { %4237 = vmatmul.f32.vlgmr.msrb.gmra.mxu3 %v8686_v5  ;;  %4329 = vmatpush.msra.mxu0 %v4327_v58 }
0x1386   :  { %4214 = vmatpush.msrb.mxu2 %v3963_v15 }
0x1387   :  { %4330 = vmatpush.msra.mxu0 %v4326_v47 }
0x1388   :  { %4215 = vmatpush.msrb.mxu2 %v3959_v43 }
0x1389   :  { %4331 = vmatpush.msra.mxu0 %v4325_v21 }
0x138a   :  { %4216 = vmatpush.msrb.mxu2 %v3955_v34 }
0x138b   :  { %4217 = vmatmul.f32.vlgmr.msrb.gmra.mxu2 %v8686_v5  ;;  %4332 = vmatpush.msra.mxu0 %v4324_v45 }
0x138d   :  { %4333 = vmatpush.msra.mxu0 %v4323_v10 }
0x138f   :  { %4334 = vmatpush.msra.mxu0 %v4322_v63 }
0x1391   :  { %4335 = vmatpush.msra.mxu0 %v4321_v56 }
0x1393   :  { %4336 = vmatpush.msra.mxu0 %v4320_v30 }
0x1395   :  { %4337 = vmatpush.msra.mxu0 %v4319_v40 }
0x1397   :  { %4338 = vmatpush.msra.mxu0 %v4318_v54 }
0x1399   :  { %4339 = vmatpush.msra.mxu0 %v4317_v4 }
0x139b   :  { %4340 = vmatpush.msra.mxu0 %v4316_v23 }
0x139d   :  { %4341 = vmatpush.msra.mxu0 %v4315_v6 }
0x139f   :  { %4342 = vmatpush.msra.mxu0 %v4314_v46 }
0x13a1   :  { %4343 = vmatpush.msra.mxu0 %v4313_v55 }
0x13a3   :  { %4344 = vmatpush.msra.mxu0 %v4312_v59 }
0x13f3   :  { %v4098_v28 = vpop.f32.mrf.mxu0 }
0x13f5   :  { %v4118_v52 = vpop.f32.mrf.mxu1 }
0x13fe   :  { %v4158_v29 = vpop.f32.mrf.mxu3 }
0x1400   :  { %v4178_v31 = vpop.f32.mrf.mxu0 }
0x1401   :  { %v4198_v39 = vpop.f32.mrf.mxu1  ;;  %v4179_v48 = vadd.f32 %v4178_v31, %v4098_v28 }
0x1402   :  { %v4199_v14 = vadd.f32 %v4198_v39, %v4118_v52 }
0x1403   :  { %v4245_v5 = vadd.f32 %v4241_v57, %v4179_v48 }
0x1404   :  { %v4246_v41 = vadd.f32 %v4242_v16, %v4199_v14 }
0x1405   :  { %v5433_v62 = vmul.f32 -1.442695, %v4245_v5  ;;  %v4138_v60 = vpop.f32.mrf.mxu2 }
0x1406   :  { %v5434_v61 = vmul.f32 -1.442695, %v4246_v41 }
0x1407   :  { %5931 = vpow2.f32 %v5433_v62 }
0x1408   :  { %v4238_v49 = vpop.f32.mrf.mxu3  ;;  %5933 = vpow2.f32 %v5434_v61 }
0x1409   :  { %v4239_v24 = vadd.f32 %v4238_v49, %v4158_v29 }
0x140b   :  { %v4248_v50 = vadd.f32 %v4244_v42, %v4239_v24 }
0x140d   :  { %v5435_v53 = vmul.f32 -1.442695, %v4248_v50  ;;  %v5932_v51 = vpop.eup %5931 }
0x140e   :  { %v5934_v37 = vpop.eup %5933  ;;  %v4252_v36 = vadd.f32 1.0, %v5932_v51  ;;  %v4218_v1 = vpop.f32.mrf.mxu2 }
0x140f   :  { %5935 = vpow2.f32 %v5435_v53  ;;  %v4271_v0 = vadd.f32 1.0, %v5934_v37  ;;  %v4219_v2 = vadd.f32 %v4218_v1, %v4138_v60 }
0x1410   :  { %5937 = vrcp.f32 %v4252_v36  ;;  %v4264_v11 = vand.u32 2147483648, %v4252_v36  ;;  %v4262_v32 = vand.u32 2147483647, %v4252_v36  ;;  %vm4258_vm2 = vweird.f32 %v4252_v36 }
0x1411   :  { %5939 = vrcp.f32 %v4271_v0  ;;  %v4247_v44 = vadd.f32 %v4243_v3, %v4219_v2  ;;  %v4283_v12 = vand.u32 2147483648, %v4271_v0  ;;  %v4281_v19 = vand.u32 2147483647, %v4271_v0 }
0x1412   :  { %vm4277_vm3 = vweird.f32 %v4271_v0  ;;  %v4265_v15 = vor.u32 1.1754944e-38, %v4264_v11  ;;  %vm4263_vm5 = vcmp.eq.f32.partialorder %v4262_v32, 8.507059e+37 }
0x1413   :  { %v4284_v34 = vor.u32 1.1754944e-38, %v4283_v12  ;;  %vm4282_vm7 = vcmp.eq.f32.partialorder %v4281_v19, 8.507059e+37 }
0x1415   :  { %v5936_v7 = vpop.eup %5935 }
0x1416   :  { %v4291_v8 = vadd.f32 1.0, %v5936_v7  ;;  %v5938_v9 = vpop.eup %5937 }
0x1417   :  { %v5940_v18 = vpop.eup %5939  ;;  %v4254_v26 = vmul.f32 %v5938_v9, %v4252_v36  ;;  %vm4259_vm0 = vweird.f32 %v5938_v9 }
0x1418   :  { %5941 = vrcp.f32 %v4291_v8  ;;  %v4273_v35 = vmul.f32 %v5940_v18, %v4271_v0  ;;  %vm4278_vm1 = vweird.f32 %v5940_v18  ;;  %vm4260_vm4 = vmor %vm4258_vm2, %vm4259_vm0  ;;  %v4303_v31 = vand.u32 2147483648, %v4291_v8 }
0x1419   :  { %v4255_v22 = vsub.f32 1.0, %v4254_v26  ;;  %5943 = vtanh.f32 %v4247_v44  ;;  %vm4279_vm6 = vmor %vm4277_vm3, %vm4278_vm1  ;;  %vm4297_vm9 = vweird.f32 %v4291_v8  ;;  %v4301_v57 = vand.u32 2147483647, %v4291_v8 }
0x141a   :  { %v4274_v25 = vsub.f32 1.0, %v4273_v35  ;;  %v4304_v16 = vor.u32 1.1754944e-38, %v4303_v31 }
0x141b   :  { %v4256_v27 = vmul.f32 %v5938_v9, %v4255_v22  ;;  %vm4302_vm11 = vcmp.eq.f32.partialorder %v4301_v57, 8.507059e+37 }
0x141c   :  { %v4275_v38 = vmul.f32 %v5940_v18, %v4274_v25 }
0x141d   :  { %v4257_v20 = vadd.f32 %v5938_v9, %v4256_v27 }
0x141e   :  { %v5942_v13 = vpop.eup %5941  ;;  %v4276_v43 = vadd.f32 %v5940_v18, %v4275_v38 }
0x141f   :  { %v4293_v17 = vmul.f32 %v5942_v13, %v4291_v8  ;;  %v4261_v58 = vsel %vm4260_vm4, %v5938_v9, %v4257_v20  ;;  %v5944_v47 = vpop.eup %5943  ;;  %vm4298_vm8 = vweird.f32 %v5942_v13 }
0x1420   :  { %v4266_v28 = vsel %vm4263_vm5, %v4265_v15, %v4261_v58  ;;  %v4280_v52 = vsel %vm4279_vm6, %v5940_v18, %v4276_v43  ;;  %vm4299_vm10 = vmor %vm4297_vm9, %vm4298_vm8 }
0x1421   :  { %v4294_v21 = vsub.f32 1.0, %v4293_v17  ;;  %v4285_v45 = vsel %vm4282_vm7, %v4284_v34, %v4280_v52  ;;  %v4308_v10 = vmul.f32 %v5944_v47, %v4266_v28 }
0x1422   :  { %v4307_v63 = vmul.f32 %v4285_v45, %v8626_v33  ;;  %v4328_v33 = vld [vmem:[%s9093_s11] sm:$0xff] }
0x1423   :  { %v4295_v56 = vmul.f32 %v5942_v13, %v4294_v21 }
0x1424   :  { %v8760_v29 = vadd.f32 %v4308_v10, %v4307_v63 }
0x1425   :  { %v4296_v30 = vadd.f32 %v5942_v13, %v4295_v56 }
0x1426   :  { %5945 = vtanh.f32 %v8760_v29 }
0x1427   :  { %v4300_v39 = vsel %vm4299_vm10, %v5942_v13, %v4296_v30 }
0x1428   :  { %v4305_v48 = vsel %vm4302_vm11, %v4304_v16, %v4300_v39 }
0x142c   :  { %v5946_v40 = vpop.eup %5945 }
0x142d   :  { %v8763_v14 = vmul.f32 %v5946_v40, %v4305_v48 }
0x142f   :  { %4345 = vmatmul.f32.vlgmr.msra.gmra.mxu0 %v8763_v14 }
0x14ab   :  { %4358 = sbr.rel (%p5439_p4) target bundleno = 5790 (0x169e), region = 81 }
0x14ac   :  { %v4346_v54 = vpop.f32.mrf.mxu0 }
0x14ad   :  { %v4347_v5 = vadd.f32 %v4346_v54, %v4328_v33 }
0x14af   :  { %5436 = vst [vmem:[%s9094_s12 + $0x28] sm:$0xff] %v4347_v5 }
0x14b0   :  { %v4359_v41 = vlaneseq  ;;  %v4399_v49 = vld [vmem:[%s9085_s3 + $0x78] sm:$0xff]  ;;  %v4398_v42 = vld [vmem:[%s9085_s3 + $0x70] sm:$0xff]  ;;  %v4397_v24 = vld [vmem:[%s9085_s3 + $0x68] sm:$0xff]  ;;  %v6107_v12 = vmov 1.0  }
0x14b1   :  { %4400 = vmatpush.msra.mxu0 %v4399_v49  ;;  %v4396_v46 = vld [vmem:[%s9085_s3 + $0x60] sm:$0xff]  ;;  %v4395_v50 = vld [vmem:[%s9085_s3 + $0x58] sm:$0xff]  ;;  %v4394_v55 = vld [vmem:[%s9085_s3 + $0x50] sm:$0xff] }
0x14b2   :  { %v4360_v4 = vand.u32 127, %v4359_v41  ;;  %v4393_v53 = vld [vmem:[%s9085_s3 + $0x48] sm:$0xff]  ;;  %v4392_v59 = vld [vmem:[%s9085_s3 + $0x40] sm:$0xff]  ;;  %v4391_v51 = vld [vmem:[%s9085_s3 + $0x38] sm:$0xff] }
0x14b3   :  { %4401 = vmatpush.msra.mxu0 %v4398_v42  ;;  %v4390_v37 = vld [vmem:[%s9085_s3 + $0x30] sm:$0xff]  ;;  %v4389_v36 = vld [vmem:[%s9085_s3 + $0x28] sm:$0xff]  ;;  %v4388_v0 = vld [vmem:[%s9085_s3 + $0x20] sm:$0xff] }
0x14b4   :  { %vm4361_vm12 = vcmp.lt.s32.totalorder %v4360_v4, 16  ;;  %v4387_v1 = vld [vmem:[%s9085_s3 + $0x18] sm:$0xff]  ;;  %v4386_v9 = vld [vmem:[%s9085_s3 + $0x10] sm:$0xff]  ;;  %v4385_v44 = vld [vmem:[%s9085_s3 + $0x8] sm:$0xff] }
0x14b5   :  { %v4362_v62 = vsel %vm4361_vm12, %v4347_v5, -1e+30  ;;  %4402 = vmatpush.msra.mxu0 %v4397_v24  ;;  %v4384_v18 = vld [vmem:[%s9085_s3] sm:$0xff] }
0x14b6   :  { %4363 = vmax.xlane.f32.xlu0 %v4362_v62 }
0x14b7   :  { %4403 = vmatpush.msra.mxu0 %v4396_v46 }
0x14b9   :  { %4404 = vmatpush.msra.mxu0 %v4395_v50 }
0x14bb   :  { %4405 = vmatpush.msra.mxu0 %v4394_v55 }
0x14bd   :  { %4406 = vmatpush.msra.mxu0 %v4393_v53 }
0x14bf   :  { %4407 = vmatpush.msra.mxu0 %v4392_v59 }
0x14c1   :  { %4408 = vmatpush.msra.mxu0 %v4391_v51 }
0x14c3   :  { %4409 = vmatpush.msra.mxu0 %v4390_v37 }
0x14c5   :  { %4410 = vmatpush.msra.mxu0 %v4389_v36 }
0x14c7   :  { %4411 = vmatpush.msra.mxu0 %v4388_v0 }
0x14c9   :  { %4412 = vmatpush.msra.mxu0 %v4387_v1 }
0x14cb   :  { %4413 = vmatpush.msra.mxu0 %v4386_v9 }
0x14cd   :  { %4414 = vmatpush.msra.mxu0 %v4385_v44 }
0x14cf   :  { %4415 = vmatpush.msra.mxu0 %v4384_v18 }
0x1529   :  { %v4364_v61 = vpop.xlane.xlu0 %4363 }
0x152a   :  { %vm4365_vm13 = vcmp.eq.f32.partialorder %v4362_v62, %v4364_v61 }
0x152b   :  { %v4366_v60 = vsel %vm4365_vm13, %v4360_v4, 128 }
0x152c   :  { %v4368_v23 = vshra.s32 %v4366_v60, 16  ;;  %v4367_v2 = vand.u32 65535, %v4366_v60 }
0x152e   :  { %v4370_v6 = vcvt.s32.f32 %v4368_v23  ;;  %v4369_v7 = vcvt.s32.f32 %v4367_v2 }
0x1530   :  { %4371 = vmin.xlane.f32.xlu0 %v4370_v6 }
0x15a3   :  { %v4372_v3 = vpop.xlane.xlu0 %4371 }
0x15a4   :  { %vm4373_vm14 = vcmp.eq.f32.partialorder %v4370_v6, %v4372_v3  ;;  %v4378_v26 = vcvt.f32.s32 %v4372_v3 }
0x15a5   :  { %v4374_v8 = vsel %vm4373_vm14, %v4369_v7, inf }
0x15a6   :  { %4375 = vmin.xlane.f32.xlu1 %v4374_v8  ;;  %v4379_v22 = vshll.u32 %v4378_v26, 16 }
0x1619   :  { %v4376_v35 = vpop.xlane.xlu1 %4375 }
0x161a   :  { %v4377_v25 = vcvt.f32.s32 %v4376_v35 }
0x161c   :  { %v4380_v11 = vadd.s32 %v4379_v22, %v4377_v25 }
0x161e   :  { %vm4381_vm15 = vcmp.eq.s32.totalorder %v4360_v4, %v4380_v11 }
0x161f   :  { %5441 = vmatmul.msk.f32.vlgmr.msra.gmra.mxu0 %vm4381_vm15, %v6107_v12 }
0x169c   :  { %v4417_v27 = vpop.f32.mrf.mxu0 }
0x169d   :  { %4420 = vst [vmem:[#allocation2] sm:$0xff] %v4417_v27 }
0x169e PF:  { %v4546_v32 = vld [vmem:[#allocation10 + $0x1e0] sm:$0xff]  ;;  %v4547_v38 = vld [vmem:[#allocation10 + $0x1e8] sm:$0xff]  ;;  %v4549_v19 = vld [vmem:[#allocation10 + $0x1f8] sm:$0xff]  ;;  %s5447_s16 = sld [smem:[#allocation4 + $0x6]] }
0x169f   :  { %4550 = vmatpush.msra.mxu0 %v4546_v32  ;;  %4570 = vmatpush.msra.mxu1 %v4547_v38  ;;  %v4542_v13 = vld [vmem:[#allocation10 + $0x1c0] sm:$0xff]  ;;  %v4543_v20 = vld [vmem:[#allocation10 + $0x1c8] sm:$0xff]  ;;  %v4545_v17 = vld [vmem:[#allocation10 + $0x1d8] sm:$0xff] }
0x16a0   :  { %4610 = vmatpush.msra.mxu3 %v4549_v19  ;;  %v4538_v15 = vld [vmem:[#allocation10 + $0x1a0] sm:$0xff]  ;;  %v4539_v43 = vld [vmem:[#allocation10 + $0x1a8] sm:$0xff]  ;;  %v4541_v34 = vld [vmem:[#allocation10 + $0x1b8] sm:$0xff] }
0x16a1   :  { %4551 = vmatpush.msra.mxu0 %v4542_v13  ;;  %4571 = vmatpush.msra.mxu1 %v4543_v20  ;;  %v4534_v58 = vld [vmem:[#allocation10 + $0x180] sm:$0xff]  ;;  %v4535_v47 = vld [vmem:[#allocation10 + $0x188] sm:$0xff]  ;;  %v4548_v21 = vld [vmem:[#allocation10 + $0x1f0] sm:$0xff] }
0x16a2   :  { %4611 = vmatpush.msra.mxu3 %v4545_v17  ;;  %v4537_v28 = vld [vmem:[#allocation10 + $0x198] sm:$0xff]  ;;  %v4544_v52 = vld [vmem:[#allocation10 + $0x1d0] sm:$0xff]  ;;  %4590 = vmatpush.msra.mxu2 %v4548_v21  ;;  %v4530_v45 = vld [vmem:[#allocation10 + $0x160] sm:$0xff] }
0x16a3   :  { %4552 = vmatpush.msra.mxu0 %v4538_v15  ;;  %4572 = vmatpush.msra.mxu1 %v4539_v43  ;;  %v4531_v10 = vld [vmem:[#allocation10 + $0x168] sm:$0xff]  ;;  %v4533_v63 = vld [vmem:[#allocation10 + $0x178] sm:$0xff]  ;;  %v4540_v56 = vld [vmem:[#allocation10 + $0x1b0] sm:$0xff] }
0x16a4   :  { %4612 = vmatpush.msra.mxu3 %v4541_v34  ;;  %4591 = vmatpush.msra.mxu2 %v4544_v52  ;;  %v4526_v30 = vld [vmem:[#allocation10 + $0x140] sm:$0xff]  ;;  %v4527_v31 = vld [vmem:[#allocation10 + $0x148] sm:$0xff]  ;;  %v4529_v57 = vld [vmem:[#allocation10 + $0x158] sm:$0xff]  ;;  %p5448_p5 = scmp.ne.s32.totalorder %s5447_s16, 0 }
0x16a5   :  { %4553 = vmatpush.msra.mxu0 %v4534_v58  ;;  %4573 = vmatpush.msra.mxu1 %v4535_v47  ;;  %v4536_v39 = vld [vmem:[#allocation10 + $0x190] sm:$0xff]  ;;  %v4522_v16 = vld [vmem:[#allocation10 + $0x120] sm:$0xff]  ;;  %v4523_v40 = vld [vmem:[#allocation10 + $0x128] sm:$0xff] }
0x16a6   :  { %4613 = vmatpush.msra.mxu3 %v4537_v28  ;;  %4592 = vmatpush.msra.mxu2 %v4540_v56  ;;  %v4525_v48 = vld [vmem:[#allocation10 + $0x138] sm:$0xff]  ;;  %v4532_v33 = vld [vmem:[#allocation10 + $0x170] sm:$0xff]  ;;  %v4518_v54 = vld [vmem:[#allocation10 + $0x100] sm:$0xff] }
0x16a7   :  { %4554 = vmatpush.msra.mxu0 %v4530_v45  ;;  %4574 = vmatpush.msra.mxu1 %v4531_v10  ;;  %v4519_v5 = vld [vmem:[#allocation10 + $0x108] sm:$0xff]  ;;  %v4521_v41 = vld [vmem:[#allocation10 + $0x118] sm:$0xff]  ;;  %v4528_v4 = vld [vmem:[#allocation10 + $0x150] sm:$0xff] }
0x16a8   :  { %4614 = vmatpush.msra.mxu3 %v4533_v63  ;;  %4593 = vmatpush.msra.mxu2 %v4536_v39  ;;  %v4514_v62 = vld [vmem:[#allocation10 + $0xe0] sm:$0xff]  ;;  %v4515_v61 = vld [vmem:[#allocation10 + $0xe8] sm:$0xff]  ;;  %v4517_v60 = vld [vmem:[#allocation10 + $0xf8] sm:$0xff] }
0x16a9   :  { %4555 = vmatpush.msra.mxu0 %v4526_v30  ;;  %4575 = vmatpush.msra.mxu1 %v4527_v31  ;;  %v4524_v23 = vld [vmem:[#allocation10 + $0x130] sm:$0xff]  ;;  %v4510_v6 = vld [vmem:[#allocation10 + $0xc0] sm:$0xff]  ;;  %v4511_v49 = vld [vmem:[#allocation10 + $0xc8] sm:$0xff] }
0x16aa   :  { %4615 = vmatpush.msra.mxu3 %v4529_v57  ;;  %4594 = vmatpush.msra.mxu2 %v4532_v33  ;;  %v4513_v42 = vld [vmem:[#allocation10 + $0xd8] sm:$0xff]  ;;  %v4520_v24 = vld [vmem:[#allocation10 + $0x110] sm:$0xff]  ;;  %v4506_v46 = vld [vmem:[#allocation10 + $0xa0] sm:$0xff] }
0x16ab   :  { %4556 = vmatpush.msra.mxu0 %v4522_v16  ;;  %4576 = vmatpush.msra.mxu1 %v4523_v40  ;;  %v4507_v50 = vld [vmem:[#allocation10 + $0xa8] sm:$0xff]  ;;  %v4509_v55 = vld [vmem:[#allocation10 + $0xb8] sm:$0xff]  ;;  %v4516_v53 = vld [vmem:[#allocation10 + $0xf0] sm:$0xff] }
0x16ac   :  { %4616 = vmatpush.msra.mxu3 %v4525_v48  ;;  %4595 = vmatpush.msra.mxu2 %v4528_v4  ;;  %v4502_v59 = vld [vmem:[#allocation10 + $0x80] sm:$0xff]  ;;  %v4503_v51 = vld [vmem:[#allocation10 + $0x88] sm:$0xff]  ;;  %v4505_v37 = vld [vmem:[#allocation10 + $0x98] sm:$0xff] }
0x16ad   :  { %4557 = vmatpush.msra.mxu0 %v4518_v54  ;;  %4577 = vmatpush.msra.mxu1 %v4519_v5  ;;  %v4512_v36 = vld [vmem:[#allocation10 + $0xd0] sm:$0xff]  ;;  %v4498_v0 = vld [vmem:[#allocation10 + $0x60] sm:$0xff]  ;;  %v4499_v1 = vld [vmem:[#allocation10 + $0x68] sm:$0xff] }
0x16ae   :  { %4617 = vmatpush.msra.mxu3 %v4521_v41  ;;  %4596 = vmatpush.msra.mxu2 %v4524_v23  ;;  %v4501_v2 = vld [vmem:[#allocation10 + $0x78] sm:$0xff]  ;;  %v4508_v3 = vld [vmem:[#allocation10 + $0xb0] sm:$0xff]  ;;  %v4494_v7 = vld [vmem:[#allocation10 + $0x40] sm:$0xff] }
0x16af   :  { %4558 = vmatpush.msra.mxu0 %v4514_v62  ;;  %4578 = vmatpush.msra.mxu1 %v4515_v61  ;;  %v4495_v8 = vld [vmem:[#allocation10 + $0x48] sm:$0xff]  ;;  %v4497_v9 = vld [vmem:[#allocation10 + $0x58] sm:$0xff]  ;;  %v4504_v44 = vld [vmem:[#allocation10 + $0x90] sm:$0xff] }
0x16b0   :  { %4618 = vmatpush.msra.mxu3 %v4517_v60  ;;  %4597 = vmatpush.msra.mxu2 %v4520_v24  ;;  %v4490_v18 = vld [vmem:[#allocation10 + $0x20] sm:$0xff]  ;;  %v4491_v26 = vld [vmem:[#allocation10 + $0x28] sm:$0xff]  ;;  %v4493_v35 = vld [vmem:[#allocation10 + $0x38] sm:$0xff] }
0x16b1   :  { %4559 = vmatpush.msra.mxu0 %v4510_v6  ;;  %4579 = vmatpush.msra.mxu1 %v4511_v49  ;;  %v4500_v22 = vld [vmem:[#allocation10 + $0x70] sm:$0xff]  ;;  %v4486_v25 = vld [vmem:[#allocation10] sm:$0xff]  ;;  %v4487_v11 = vld [vmem:[#allocation10 + $0x8] sm:$0xff] }
0x16b2   :  { %4619 = vmatpush.msra.mxu3 %v4513_v42  ;;  %4598 = vmatpush.msra.mxu2 %v4516_v53  ;;  %v4489_v12 = vld [vmem:[#allocation10 + $0x18] sm:$0xff]  ;;  %v4482_v27 = vld [vmem:[#allocation9 + $0x1e0] sm:$0xff]  ;;  %v4483_v32 = vld [vmem:[#allocation9 + $0x1e8] sm:$0xff] }
0x16b3   :  { %4560 = vmatpush.msra.mxu0 %v4506_v46  ;;  %4580 = vmatpush.msra.mxu1 %v4507_v50  ;;  %v4485_v38 = vld [vmem:[#allocation9 + $0x1f8] sm:$0xff]  ;;  %v4496_v19 = vld [vmem:[#allocation10 + $0x50] sm:$0xff]  ;;  %v4478_v13 = vld [vmem:[#allocation9 + $0x1c0] sm:$0xff] }
0x16b4   :  { %4620 = vmatpush.msra.mxu3 %v4509_v55  ;;  %4599 = vmatpush.msra.mxu2 %v4512_v36  ;;  %v4479_v20 = vld [vmem:[#allocation9 + $0x1c8] sm:$0xff]  ;;  %v4481_v17 = vld [vmem:[#allocation9 + $0x1d8] sm:$0xff]  ;;  %v4492_v15 = vld [vmem:[#allocation10 + $0x30] sm:$0xff] }
0x16b5   :  { %4561 = vmatpush.msra.mxu0 %v4502_v59  ;;  %4581 = vmatpush.msra.mxu1 %v4503_v51  ;;  %v4474_v43 = vld [vmem:[#allocation9 + $0x1a0] sm:$0xff]  ;;  %v4475_v34 = vld [vmem:[#allocation9 + $0x1a8] sm:$0xff]  ;;  %v4477_v58 = vld [vmem:[#allocation9 + $0x1b8] sm:$0xff] }
0x16b6   :  { %4621 = vmatpush.msra.mxu3 %v4505_v37  ;;  %4600 = vmatpush.msra.mxu2 %v4508_v3  ;;  %v4488_v47 = vld [vmem:[#allocation10 + $0x10] sm:$0xff]  ;;  %v4470_v21 = vld [vmem:[#allocation9 + $0x180] sm:$0xff]  ;;  %v4471_v28 = vld [vmem:[#allocation9 + $0x188] sm:$0xff] }
0x16b7   :  { %4562 = vmatpush.msra.mxu0 %v4498_v0  ;;  %4582 = vmatpush.msra.mxu1 %v4499_v1  ;;  %v4473_v52 = vld [vmem:[#allocation9 + $0x198] sm:$0xff]  ;;  %v4484_v45 = vld [vmem:[#allocation9 + $0x1f0] sm:$0xff]  ;;  %v4466_v10 = vld [vmem:[#allocation9 + $0x160] sm:$0xff] }
0x16b8   :  { %4622 = vmatpush.msra.mxu3 %v4501_v2  ;;  %4601 = vmatpush.msra.mxu2 %v4504_v44  ;;  %v4467_v63 = vld [vmem:[#allocation9 + $0x168] sm:$0xff]  ;;  %v4469_v56 = vld [vmem:[#allocation9 + $0x178] sm:$0xff]  ;;  %v4480_v30 = vld [vmem:[#allocation9 + $0x1d0] sm:$0xff] }
0x16b9   :  { %4563 = vmatpush.msra.mxu0 %v4494_v7  ;;  %4583 = vmatpush.msra.mxu1 %v4495_v8  ;;  %v4462_v31 = vld [vmem:[#allocation9 + $0x140] sm:$0xff]  ;;  %v4463_v57 = vld [vmem:[#allocation9 + $0x148] sm:$0xff]  ;;  %v4465_v39 = vld [vmem:[#allocation9 + $0x158] sm:$0xff] }
0x16ba   :  { %4623 = vmatpush.msra.mxu3 %v4497_v9  ;;  %4602 = vmatpush.msra.mxu2 %v4500_v22  ;;  %v4476_v16 = vld [vmem:[#allocation9 + $0x1b0] sm:$0xff]  ;;  %v4458_v40 = vld [vmem:[#allocation9 + $0x120] sm:$0xff]  ;;  %v8820_v48 = vld [vmem:[#allocation2] sm:$0xff] }
0x16bb   :  { %4564 = vmatpush.msra.mxu0 %v4490_v18  ;;  %4584 = vmatpush.msra.mxu1 %v4491_v26  ;;  %v5446_v33 = vld [vmem:[%s9084_s2 + $0x30] sm:$0xff]  ;;  %v4461_v5 = vld [vmem:[#allocation9 + $0x138] sm:$0xff]  ;;  %v4472_v41 = vld [vmem:[#allocation9 + $0x190] sm:$0xff] }
0x16bc   :  { %4624 = vmatpush.msra.mxu3 %v4493_v35  ;;  %4603 = vmatpush.msra.mxu2 %v4496_v19  ;;  %v4459_v54 = vld [vmem:[#allocation9 + $0x128] sm:$0xff]  ;;  %4822 = vst [vmem:[#allocation2] sm:$0xff] %v5446_v33  ;;  %v4454_v4 = vld [vmem:[#allocation9 + $0x100] sm:$0xff]  ;;  %v4457_v61 = vld [vmem:[#allocation9 + $0x118] sm:$0xff] }
0x16bd   :  { %4565 = vmatpush.msra.mxu0 %v4486_v25  ;;  %4585 = vmatpush.msra.mxu1 %v4487_v11  ;;  %v4455_v62 = vld [vmem:[#allocation9 + $0x108] sm:$0xff]  ;;  %v4468_v60 = vld [vmem:[#allocation9 + $0x170] sm:$0xff]  ;;  %v4450_v23 = vld [vmem:[#allocation9 + $0xe0] sm:$0xff] }
0x16be   :  { %4625 = vmatpush.msra.mxu3 %v4489_v12  ;;  %4604 = vmatpush.msra.mxu2 %v4492_v15  ;;  %v4451_v6 = vld [vmem:[#allocation9 + $0xe8] sm:$0xff]  ;;  %v4453_v49 = vld [vmem:[#allocation9 + $0xf8] sm:$0xff]  ;;  %v4464_v42 = vld [vmem:[#allocation9 + $0x150] sm:$0xff] }
0x16bf   :  { %4630 = vmatpush.msrb.mxu0 %v4482_v27  ;;  %4650 = vmatpush.msrb.mxu1 %v4483_v32  ;;  %v4446_v24 = vld [vmem:[#allocation9 + $0xc0] sm:$0xff]  ;;  %v4447_v46 = vld [vmem:[#allocation9 + $0xc8] sm:$0xff]  ;;  %v4449_v50 = vld [vmem:[#allocation9 + $0xd8] sm:$0xff] }
0x16c0   :  { %4690 = vmatpush.msrb.mxu3 %v4485_v38  ;;  %4605 = vmatpush.msra.mxu2 %v4488_v47  ;;  %v4460_v55 = vld [vmem:[#allocation9 + $0x130] sm:$0xff]  ;;  %v4442_v53 = vld [vmem:[#allocation9 + $0xa0] sm:$0xff]  ;;  %v4443_v59 = vld [vmem:[#allocation9 + $0xa8] sm:$0xff] }
0x16c1   :  { %4631 = vmatpush.msrb.mxu0 %v4478_v13  ;;  %4651 = vmatpush.msrb.mxu1 %v4479_v20  ;;  %v4445_v51 = vld [vmem:[#allocation9 + $0xb8] sm:$0xff]  ;;  %v4456_v37 = vld [vmem:[#allocation9 + $0x110] sm:$0xff]  ;;  %v4438_v36 = vld [vmem:[#allocation9 + $0x80] sm:$0xff] }
0x16c2   :  { %4691 = vmatpush.msrb.mxu3 %v4481_v17  ;;  %4670 = vmatpush.msrb.mxu2 %v4484_v45  ;;  %v4439_v0 = vld [vmem:[#allocation9 + $0x88] sm:$0xff]  ;;  %v4441_v1 = vld [vmem:[#allocation9 + $0x98] sm:$0xff]  ;;  %v4452_v2 = vld [vmem:[#allocation9 + $0xf0] sm:$0xff] }
0x16c3   :  { %4632 = vmatpush.msrb.mxu0 %v4474_v43  ;;  %4652 = vmatpush.msrb.mxu1 %v4475_v34  ;;  %v4434_v3 = vld [vmem:[#allocation9 + $0x60] sm:$0xff]  ;;  %v4435_v7 = vld [vmem:[#allocation9 + $0x68] sm:$0xff]  ;;  %v4437_v8 = vld [vmem:[#allocation9 + $0x78] sm:$0xff] }
0x16c4   :  { %4692 = vmatpush.msrb.mxu3 %v4477_v58  ;;  %4671 = vmatpush.msrb.mxu2 %v4480_v30  ;;  %v4448_v9 = vld [vmem:[#allocation9 + $0xd0] sm:$0xff]  ;;  %v4430_v44 = vld [vmem:[#allocation9 + $0x40] sm:$0xff]  ;;  %v4431_v18 = vld [vmem:[#allocation9 + $0x48] sm:$0xff] }
0x16c5   :  { %4633 = vmatpush.msrb.mxu0 %v4470_v21  ;;  %4653 = vmatpush.msrb.mxu1 %v4471_v28  ;;  %v4433_v26 = vld [vmem:[#allocation9 + $0x58] sm:$0xff]  ;;  %v4444_v35 = vld [vmem:[#allocation9 + $0xb0] sm:$0xff]  ;;  %v4426_v22 = vld [vmem:[#allocation9 + $0x20] sm:$0xff] }
0x16c6   :  { %4693 = vmatpush.msrb.mxu3 %v4473_v52  ;;  %4672 = vmatpush.msrb.mxu2 %v4476_v16  ;;  %v4427_v25 = vld [vmem:[#allocation9 + $0x28] sm:$0xff]  ;;  %v4429_v11 = vld [vmem:[#allocation9 + $0x38] sm:$0xff]  ;;  %v4440_v12 = vld [vmem:[#allocation9 + $0x90] sm:$0xff] }
0x16c7   :  { %4634 = vmatpush.msrb.mxu0 %v4466_v10  ;;  %4654 = vmatpush.msrb.mxu1 %v4467_v63  ;;  %v4422_v27 = vld [vmem:[#allocation9] sm:$0xff]  ;;  %v4423_v32 = vld [vmem:[#allocation9 + $0x8] sm:$0xff]  ;;  %v4425_v38 = vld [vmem:[#allocation9 + $0x18] sm:$0xff] }
0x16c8   :  { %4694 = vmatpush.msrb.mxu3 %v4469_v56  ;;  %4673 = vmatpush.msrb.mxu2 %v4472_v41  ;;  %v4436_v19 = vld [vmem:[#allocation9 + $0x70] sm:$0xff]  ;;  %v4795_v15 = vld [vmem:[%s9092_s10 + $0x70] sm:$0xff]  ;;  %v4794_v43 = vld [vmem:[%s9092_s10 + $0x68] sm:$0xff] }
0x16c9   :  { %4635 = vmatpush.msrb.mxu0 %v4462_v31  ;;  %4655 = vmatpush.msrb.mxu1 %v4463_v57  ;;  %v4432_v13 = vld [vmem:[#allocation9 + $0x50] sm:$0xff]  ;;  %v4793_v47 = vld [vmem:[%s9092_s10 + $0x60] sm:$0xff]  ;;  %v4791_v28 = vld [vmem:[%s9092_s10 + $0x50] sm:$0xff] }
0x16ca   :  { %4695 = vmatpush.msrb.mxu3 %v4465_v39  ;;  %4674 = vmatpush.msrb.mxu2 %v4468_v60  ;;  %v4428_v20 = vld [vmem:[#allocation9 + $0x30] sm:$0xff]  ;;  %v4790_v52 = vld [vmem:[%s9092_s10 + $0x48] sm:$0xff]  ;;  %v4789_v10 = vld [vmem:[%s9092_s10 + $0x40] sm:$0xff] }
0x16cb   :  { %4636 = vmatpush.msrb.mxu0 %v4458_v40  ;;  %4656 = vmatpush.msrb.mxu1 %v4459_v54  ;;  %v4424_v17 = vld [vmem:[#allocation9 + $0x10] sm:$0xff]  ;;  %v4710_v56 = vld [vmem:[%s9091_s9] sm:$0xff]  ;;  %v4711_v31 = vld [vmem:[%s9091_s9 + $0x8] sm:$0xff] }
0x16cc   :  { %4696 = vmatpush.msrb.mxu3 %v4461_v5  ;;  %4675 = vmatpush.msrb.mxu2 %v4464_v42  ;;  %v4792_v21 = vld [vmem:[%s9092_s10 + $0x58] sm:$0xff]  ;;  %v4787_v40 = vld [vmem:[%s9092_s10 + $0x30] sm:$0xff]  ;;  %v4786_v54 = vld [vmem:[%s9092_s10 + $0x28] sm:$0xff] }
0x16cd   :  { %4637 = vmatpush.msrb.mxu0 %v4454_v4  ;;  %4657 = vmatpush.msrb.mxu1 %v4455_v62  ;;  %v4788_v57 = vld [vmem:[%s9092_s10 + $0x38] sm:$0xff]  ;;  %v4785_v62 = vld [vmem:[%s9092_s10 + $0x20] sm:$0xff] }
0x16ce   :  { %4697 = vmatpush.msrb.mxu3 %v4457_v61  ;;  %4676 = vmatpush.msrb.mxu2 %v4460_v55  ;;  %v4784_v61 = vld [vmem:[%s9092_s10 + $0x18] sm:$0xff] }
0x16cf   :  { %4638 = vmatpush.msrb.mxu0 %v4450_v23  ;;  %4658 = vmatpush.msrb.mxu1 %v4451_v6  ;;  %v4713_v23 = vld [vmem:[%s9091_s9 + $0x18] sm:$0xff] }
0x16d0   :  { %4698 = vmatpush.msrb.mxu3 %v4453_v49  ;;  %4677 = vmatpush.msrb.mxu2 %v4456_v37  ;;  %v4783_v49 = vld [vmem:[%s9092_s10 + $0x10] sm:$0xff] }
0x16d1   :  { %4639 = vmatpush.msrb.mxu0 %v4446_v24  ;;  %4659 = vmatpush.msrb.mxu1 %v4447_v46  ;;  %v4782_v24 = vld [vmem:[%s9092_s10 + $0x8] sm:$0xff] }
0x16d2   :  { %4699 = vmatpush.msrb.mxu3 %v4449_v50  ;;  %4566 = vmatmul.f32.vlgmr.msra.gmra.mxu0 %v8763_v14  ;;  %v4781_v50 = vld [vmem:[%s9092_s10] sm:$0xff] }
0x16d3   :  { %4640 = vmatpush.msrb.mxu0 %v4442_v53  ;;  %4660 = vmatpush.msrb.mxu1 %v4443_v59 }
0x16d4   :  { %4700 = vmatpush.msrb.mxu3 %v4445_v51  ;;  %4586 = vmatmul.f32.vlgmr.msra.gmra.mxu1 %v8763_v14 }
0x16d5   :  { %4641 = vmatpush.msrb.mxu0 %v4438_v36  ;;  %4661 = vmatpush.msrb.mxu1 %v4439_v0  ;;  %v4712_v0 = vld [vmem:[%s9091_s9 + $0x10] sm:$0xff] }
0x16d6   :  { %4701 = vmatpush.msrb.mxu3 %v4441_v1  ;;  %4678 = vmatpush.msrb.mxu2 %v4452_v2 }
0x16d7   :  { %4626 = vmatmul.f32.vlgmr.msra.gmra.mxu3 %v8763_v14  ;;  %4642 = vmatpush.msrb.mxu0 %v4434_v3 }
0x16d8   :  { %4662 = vmatpush.msrb.mxu1 %v4435_v7  ;;  %4702 = vmatpush.msrb.mxu3 %v4437_v8 }
0x16d9   :  { %4679 = vmatpush.msrb.mxu2 %v4448_v9  ;;  %4643 = vmatpush.msrb.mxu0 %v4430_v44 }
0x16da   :  { %4663 = vmatpush.msrb.mxu1 %v4431_v18  ;;  %4703 = vmatpush.msrb.mxu3 %v4433_v26 }
0x16db   :  { %4680 = vmatpush.msrb.mxu2 %v4444_v35  ;;  %4644 = vmatpush.msrb.mxu0 %v4426_v22 }
0x16dc   :  { %4664 = vmatpush.msrb.mxu1 %v4427_v25  ;;  %4704 = vmatpush.msrb.mxu3 %v4429_v11 }
0x16dd   :  { %4681 = vmatpush.msrb.mxu2 %v4440_v12  ;;  %4645 = vmatpush.msrb.mxu0 %v4422_v27 }
0x16de   :  { %4606 = vmatmul.f32.vlgmr.msra.gmra.mxu2 %v8763_v14  ;;  %4665 = vmatpush.msrb.mxu1 %v4423_v32  ;;  %v4796_v14 = vld [vmem:[%s9092_s10 + $0x78] sm:$0xff] }
0x16df   :  { %4705 = vmatpush.msrb.mxu3 %v4425_v38  ;;  %4646 = vmatmul.f32.vlgmr.msrb.gmra.mxu0 %v8820_v48 }
0x16e0   :  { %4666 = vmatmul.f32.vlgmr.msrb.gmra.mxu1 %v8820_v48  ;;  %4682 = vmatpush.msrb.mxu2 %v4436_v19 }
0x16e1   :  { %4706 = vmatmul.f32.vlgmr.msrb.gmra.mxu3 %v8820_v48  ;;  %4798 = vmatpush.msra.mxu0 %v4796_v14 }
0x16e2   :  { %4683 = vmatpush.msrb.mxu2 %v4432_v13 }
0x16e3   :  { %4799 = vmatpush.msra.mxu0 %v4795_v15 }
0x16e4   :  { %4684 = vmatpush.msrb.mxu2 %v4428_v20 }
0x16e5   :  { %4800 = vmatpush.msra.mxu0 %v4794_v43 }
0x16e6   :  { %4685 = vmatpush.msrb.mxu2 %v4424_v17 }
0x16e7   :  { %4686 = vmatmul.f32.vlgmr.msrb.gmra.mxu2 %v8820_v48  ;;  %4801 = vmatpush.msra.mxu0 %v4793_v47 }
0x16e9   :  { %4802 = vmatpush.msra.mxu0 %v4792_v21 }
0x16eb   :  { %4803 = vmatpush.msra.mxu0 %v4791_v28 }
0x16ed   :  { %4804 = vmatpush.msra.mxu0 %v4790_v52 }
0x16ef   :  { %4805 = vmatpush.msra.mxu0 %v4789_v10 }
0x16f1   :  { %4806 = vmatpush.msra.mxu0 %v4788_v57 }
0x16f3   :  { %4807 = vmatpush.msra.mxu0 %v4787_v40 }
0x16f5   :  { %4808 = vmatpush.msra.mxu0 %v4786_v54 }
0x16f7   :  { %4809 = vmatpush.msra.mxu0 %v4785_v62 }
0x16f9   :  { %4810 = vmatpush.msra.mxu0 %v4784_v61 }
0x16fb   :  { %4811 = vmatpush.msra.mxu0 %v4783_v49 }
0x16fd   :  { %4812 = vmatpush.msra.mxu0 %v4782_v24 }
0x16ff   :  { %4813 = vmatpush.msra.mxu0 %v4781_v50 }
0x174f   :  { %v4567_v34 = vpop.f32.mrf.mxu0 }
0x1751   :  { %v4587_v58 = vpop.f32.mrf.mxu1 }
0x175a   :  { %v4627_v45 = vpop.f32.mrf.mxu3 }
0x175c   :  { %v4647_v63 = vpop.f32.mrf.mxu0 }
0x175d   :  { %v4667_v30 = vpop.f32.mrf.mxu1  ;;  %v4648_v39 = vadd.f32 %v4647_v63, %v4567_v34 }
0x175e   :  { %v4668_v16 = vadd.f32 %v4667_v30, %v4587_v58 }
0x175f   :  { %v4714_v48 = vadd.f32 %v4710_v56, %v4648_v39 }
0x1760   :  { %v4715_v33 = vadd.f32 %v4711_v31, %v4668_v16 }
0x1761   :  { %v5442_v5 = vmul.f32 -1.442695, %v4714_v48  ;;  %v4607_v4 = vpop.f32.mrf.mxu2 }
0x1762   :  { %v5443_v41 = vmul.f32 -1.442695, %v4715_v33 }
0x1763   :  { %5947 = vpow2.f32 %v5442_v5 }
0x1764   :  { %v4707_v60 = vpop.f32.mrf.mxu3  ;;  %5949 = vpow2.f32 %v5443_v41 }
0x1765   :  { %v4708_v6 = vadd.f32 %v4707_v60, %v4627_v45 }
0x1767   :  { %v4717_v42 = vadd.f32 %v4713_v23, %v4708_v6 }
0x1769   :  { %v5444_v46 = vmul.f32 -1.442695, %v4717_v42  ;;  %v5948_v55 = vpop.eup %5947 }
0x176a   :  { %v5950_v53 = vpop.eup %5949  ;;  %v4721_v59 = vadd.f32 1.0, %v5948_v55  ;;  %v4687_v37 = vpop.f32.mrf.mxu2 }
0x176b   :  { %5951 = vpow2.f32 %v5444_v46  ;;  %v4740_v51 = vadd.f32 1.0, %v5950_v53  ;;  %v4688_v36 = vadd.f32 %v4687_v37, %v4607_v4 }
0x176c   :  { %5953 = vrcp.f32 %v4721_v59  ;;  %v4733_v35 = vand.u32 2147483648, %v4721_v59  ;;  %v4731_v11 = vand.u32 2147483647, %v4721_v59  ;;  %vm4727_vm2 = vweird.f32 %v4721_v59 }
0x176d   :  { %5955 = vrcp.f32 %v4740_v51  ;;  %v4716_v7 = vadd.f32 %v4712_v0, %v4688_v36  ;;  %v4752_v22 = vand.u32 2147483648, %v4740_v51  ;;  %v4750_v27 = vand.u32 2147483647, %v4740_v51 }
0x176e   :  { %vm4746_vm3 = vweird.f32 %v4740_v51  ;;  %v4734_v13 = vor.u32 1.1754944e-38, %v4733_v35  ;;  %vm4732_vm5 = vcmp.eq.f32.partialorder %v4731_v11, 8.507059e+37 }
0x176f   :  { %v4753_v17 = vor.u32 1.1754944e-38, %v4752_v22  ;;  %vm4751_vm7 = vcmp.eq.f32.partialorder %v4750_v27, 8.507059e+37 }
0x1771   :  { %v5952_v1 = vpop.eup %5951 }
0x1772   :  { %v4760_v2 = vadd.f32 1.0, %v5952_v1  ;;  %v5954_v3 = vpop.eup %5953 }
0x1773   :  { %v5956_v8 = vpop.eup %5955  ;;  %v4723_v9 = vmul.f32 %v5954_v3, %v4721_v59  ;;  %vm4728_vm0 = vweird.f32 %v5954_v3 }
0x1774   :  { %5957 = vrcp.f32 %v4760_v2  ;;  %v4742_v44 = vmul.f32 %v5956_v8, %v4740_v51  ;;  %vm4747_vm1 = vweird.f32 %v5956_v8  ;;  %vm4729_vm4 = vmor %vm4727_vm2, %vm4728_vm0  ;;  %v4772_v63 = vand.u32 2147483648, %v4760_v2 }
0x1775   :  { %v4724_v18 = vsub.f32 1.0, %v4723_v9  ;;  %5959 = vtanh.f32 %v4716_v7  ;;  %vm4748_vm6 = vmor %vm4746_vm3, %vm4747_vm1  ;;  %vm4766_vm9 = vweird.f32 %v4760_v2  ;;  %v4770_v56 = vand.u32 2147483647, %v4760_v2 }
0x1776   :  { %v4743_v26 = vsub.f32 1.0, %v4742_v44  ;;  %v4773_v31 = vor.u32 1.1754944e-38, %v4772_v63 }
0x1777   :  { %v4725_v25 = vmul.f32 %v5954_v3, %v4724_v18  ;;  %vm4771_vm11 = vcmp.eq.f32.partialorder %v4770_v56, 8.507059e+37 }
0x1778   :  { %v4744_v12 = vmul.f32 %v5956_v8, %v4743_v26 }
0x1779   :  { %v4726_v38 = vadd.f32 %v5954_v3, %v4725_v25 }
0x177a   :  { %v5958_v32 = vpop.eup %5957  ;;  %v4745_v20 = vadd.f32 %v5956_v8, %v4744_v12 }
0x177b   :  { %v4762_v19 = vmul.f32 %v5958_v32, %v4760_v2  ;;  %v4730_v14 = vsel %vm4729_vm4, %v5954_v3, %v4726_v38  ;;  %v5960_v15 = vpop.eup %5959  ;;  %vm4767_vm8 = vweird.f32 %v5958_v32 }
0x177c   :  { %v4735_v34 = vsel %vm4732_vm5, %v4734_v13, %v4730_v14  ;;  %v4749_v58 = vsel %vm4748_vm6, %v5956_v8, %v4745_v20  ;;  %vm4768_vm10 = vmor %vm4766_vm9, %vm4767_vm8 }
0x177d   :  { %v4763_v43 = vsub.f32 1.0, %v4762_v19  ;;  %v4754_v47 = vsel %vm4751_vm7, %v4753_v17, %v4749_v58  ;;  %v4777_v21 = vmul.f32 %v5960_v15, %v4735_v34 }
0x177e   :  { %v4776_v28 = vmul.f32 %v4754_v47, %v8760_v29  ;;  %v4797_v29 = vld [vmem:[%s9093_s11] sm:$0xff] }
0x177f   :  { %v4764_v52 = vmul.f32 %v5958_v32, %v4763_v43 }
0x1780   :  { %v8894_v45 = vadd.f32 %v4777_v21, %v4776_v28 }
0x1781   :  { %v4765_v10 = vadd.f32 %v5958_v32, %v4764_v52 }
0x1782   :  { %5961 = vtanh.f32 %v8894_v45 }
0x1783   :  { %v4769_v30 = vsel %vm4768_vm10, %v5958_v32, %v4765_v10 }
0x1784   :  { %v4774_v39 = vsel %vm4771_vm11, %v4773_v31, %v4769_v30 }
0x1788   :  { %v5962_v57 = vpop.eup %5961 }
0x1789   :  { %v8897_v16 = vmul.f32 %v5962_v57, %v4774_v39 }
0x178b   :  { %4814 = vmatmul.f32.vlgmr.msra.gmra.mxu0 %v8897_v16 }
0x1807   :  { %4827 = sbr.rel (%p5448_p5) target bundleno = 6650 (0x19fa), region = 85 }
0x1808   :  { %v4815_v40 = vpop.f32.mrf.mxu0 }
0x1809   :  { %v4816_v48 = vadd.f32 %v4815_v40, %v4797_v29 }
0x180b   :  { %5445 = vst [vmem:[%s9094_s12 + $0x30] sm:$0xff] %v4816_v48 }
0x180c   :  { %v4828_v33 = vlaneseq  ;;  %v4868_v60 = vld [vmem:[%s9085_s3 + $0x78] sm:$0xff]  ;;  %v4867_v23 = vld [vmem:[%s9085_s3 + $0x70] sm:$0xff]  ;;  %v4866_v6 = vld [vmem:[%s9085_s3 + $0x68] sm:$0xff]  ;;  %v6108_v22 = vmov 1.0  }
0x180d   :  { %4869 = vmatpush.msra.mxu0 %v4868_v60  ;;  %v4865_v49 = vld [vmem:[%s9085_s3 + $0x60] sm:$0xff]  ;;  %v4864_v42 = vld [vmem:[%s9085_s3 + $0x58] sm:$0xff]  ;;  %v4863_v24 = vld [vmem:[%s9085_s3 + $0x50] sm:$0xff] }
0x180e   :  { %v4829_v54 = vand.u32 127, %v4828_v33  ;;  %v4862_v46 = vld [vmem:[%s9085_s3 + $0x48] sm:$0xff]  ;;  %v4861_v50 = vld [vmem:[%s9085_s3 + $0x40] sm:$0xff]  ;;  %v4860_v55 = vld [vmem:[%s9085_s3 + $0x38] sm:$0xff] }
0x180f   :  { %4870 = vmatpush.msra.mxu0 %v4867_v23  ;;  %v4859_v53 = vld [vmem:[%s9085_s3 + $0x30] sm:$0xff]  ;;  %v4858_v59 = vld [vmem:[%s9085_s3 + $0x28] sm:$0xff]  ;;  %v4857_v51 = vld [vmem:[%s9085_s3 + $0x20] sm:$0xff] }
0x1810   :  { %vm4830_vm12 = vcmp.lt.s32.totalorder %v4829_v54, 16  ;;  %v4856_v37 = vld [vmem:[%s9085_s3 + $0x18] sm:$0xff]  ;;  %v4855_v3 = vld [vmem:[%s9085_s3 + $0x10] sm:$0xff]  ;;  %v4854_v7 = vld [vmem:[%s9085_s3 + $0x8] sm:$0xff] }
0x1811   :  { %v4831_v5 = vsel %vm4830_vm12, %v4816_v48, -1e+30  ;;  %4871 = vmatpush.msra.mxu0 %v4866_v6  ;;  %v4853_v8 = vld [vmem:[%s9085_s3] sm:$0xff] }
0x1812   :  { %4832 = vmax.xlane.f32.xlu0 %v4831_v5 }
0x1813   :  { %4872 = vmatpush.msra.mxu0 %v4865_v49 }
0x1815   :  { %4873 = vmatpush.msra.mxu0 %v4864_v42 }
0x1817   :  { %4874 = vmatpush.msra.mxu0 %v4863_v24 }
0x1819   :  { %4875 = vmatpush.msra.mxu0 %v4862_v46 }
0x181b   :  { %4876 = vmatpush.msra.mxu0 %v4861_v50 }
0x181d   :  { %4877 = vmatpush.msra.mxu0 %v4860_v55 }
0x181f   :  { %4878 = vmatpush.msra.mxu0 %v4859_v53 }
0x1821   :  { %4879 = vmatpush.msra.mxu0 %v4858_v59 }
0x1823   :  { %4880 = vmatpush.msra.mxu0 %v4857_v51 }
0x1825   :  { %4881 = vmatpush.msra.mxu0 %v4856_v37 }
0x1827   :  { %4882 = vmatpush.msra.mxu0 %v4855_v3 }
0x1829   :  { %4883 = vmatpush.msra.mxu0 %v4854_v7 }
0x182b   :  { %4884 = vmatpush.msra.mxu0 %v4853_v8 }
0x1885   :  { %v4833_v41 = vpop.xlane.xlu0 %4832 }
0x1886   :  { %vm4834_vm13 = vcmp.eq.f32.partialorder %v4831_v5, %v4833_v41 }
0x1887   :  { %v4835_v4 = vsel %vm4834_vm13, %v4829_v54, 128 }
0x1888   :  { %v4837_v62 = vshra.s32 %v4835_v4, 16  ;;  %v4836_v36 = vand.u32 65535, %v4835_v4 }
0x188a   :  { %v4839_v61 = vcvt.s32.f32 %v4837_v62  ;;  %v4838_v1 = vcvt.s32.f32 %v4836_v36 }
0x188c   :  { %4840 = vmin.xlane.f32.xlu0 %v4839_v61 }
0x18ff   :  { %v4841_v0 = vpop.xlane.xlu0 %4840 }
0x1900   :  { %vm4842_vm14 = vcmp.eq.f32.partialorder %v4839_v61, %v4841_v0  ;;  %v4847_v9 = vcvt.f32.s32 %v4841_v0 }
0x1901   :  { %v4843_v2 = vsel %vm4842_vm14, %v4838_v1, inf }
0x1902   :  { %4844 = vmin.xlane.f32.xlu1 %v4843_v2  ;;  %v4848_v18 = vshll.u32 %v4847_v9, 16 }
0x1975   :  { %v4845_v44 = vpop.xlane.xlu1 %4844 }
0x1976   :  { %v4846_v26 = vcvt.f32.s32 %v4845_v44 }
0x1978   :  { %v4849_v35 = vadd.s32 %v4848_v18, %v4846_v26 }
0x197a   :  { %vm4850_vm15 = vcmp.eq.s32.totalorder %v4829_v54, %v4849_v35 }
0x197b   :  { %5450 = vmatmul.msk.f32.vlgmr.msra.gmra.mxu0 %vm4850_vm15, %v6108_v22 }
0x19f8   :  { %v4886_v25 = vpop.f32.mrf.mxu0 }
0x19f9   :  { %4889 = vst [vmem:[#allocation2] sm:$0xff] %v4886_v25 }
0x19fa PF:  { %v5015_v11 = vld [vmem:[#allocation10 + $0x1e0] sm:$0xff]  ;;  %v5016_v12 = vld [vmem:[#allocation10 + $0x1e8] sm:$0xff]  ;;  %v5018_v27 = vld [vmem:[#allocation10 + $0x1f8] sm:$0xff] }
0x19fb   :  { %5019 = vmatpush.msra.mxu0 %v5015_v11  ;;  %5039 = vmatpush.msra.mxu1 %v5016_v12  ;;  %v5011_v32 = vld [vmem:[#allocation10 + $0x1c0] sm:$0xff]  ;;  %v5012_v38 = vld [vmem:[#allocation10 + $0x1c8] sm:$0xff]  ;;  %v5014_v19 = vld [vmem:[#allocation10 + $0x1d8] sm:$0xff] }
0x19fc   :  { %5079 = vmatpush.msra.mxu3 %v5018_v27  ;;  %v5007_v13 = vld [vmem:[#allocation10 + $0x1a0] sm:$0xff]  ;;  %v5008_v20 = vld [vmem:[#allocation10 + $0x1a8] sm:$0xff]  ;;  %v5010_v17 = vld [vmem:[#allocation10 + $0x1b8] sm:$0xff] }
0x19fd   :  { %5020 = vmatpush.msra.mxu0 %v5011_v32  ;;  %5040 = vmatpush.msra.mxu1 %v5012_v38  ;;  %v5003_v14 = vld [vmem:[#allocation10 + $0x180] sm:$0xff]  ;;  %v5004_v15 = vld [vmem:[#allocation10 + $0x188] sm:$0xff]  ;;  %v5017_v43 = vld [vmem:[#allocation10 + $0x1f0] sm:$0xff] }
0x19fe   :  { %5080 = vmatpush.msra.mxu3 %v5014_v19  ;;  %v5006_v34 = vld [vmem:[#allocation10 + $0x198] sm:$0xff]  ;;  %v5013_v58 = vld [vmem:[#allocation10 + $0x1d0] sm:$0xff]  ;;  %5059 = vmatpush.msra.mxu2 %v5017_v43  ;;  %v4999_v47 = vld [vmem:[#allocation10 + $0x160] sm:$0xff] }
0x19ff   :  { %5021 = vmatpush.msra.mxu0 %v5007_v13  ;;  %5041 = vmatpush.msra.mxu1 %v5008_v20  ;;  %v5000_v21 = vld [vmem:[#allocation10 + $0x168] sm:$0xff]  ;;  %v5002_v28 = vld [vmem:[#allocation10 + $0x178] sm:$0xff]  ;;  %v5009_v52 = vld [vmem:[#allocation10 + $0x1b0] sm:$0xff] }
0x1a00   :  { %5081 = vmatpush.msra.mxu3 %v5010_v17  ;;  %5060 = vmatpush.msra.mxu2 %v5013_v58  ;;  %v4995_v10 = vld [vmem:[#allocation10 + $0x140] sm:$0xff]  ;;  %v4996_v63 = vld [vmem:[#allocation10 + $0x148] sm:$0xff]  ;;  %v4998_v56 = vld [vmem:[#allocation10 + $0x158] sm:$0xff] }
0x1a01   :  { %5022 = vmatpush.msra.mxu0 %v5003_v14  ;;  %5042 = vmatpush.msra.mxu1 %v5004_v15  ;;  %v5005_v30 = vld [vmem:[#allocation10 + $0x190] sm:$0xff]  ;;  %v4991_v31 = vld [vmem:[#allocation10 + $0x120] sm:$0xff]  ;;  %v4992_v57 = vld [vmem:[#allocation10 + $0x128] sm:$0xff] }
0x1a02   :  { %5082 = vmatpush.msra.mxu3 %v5006_v34  ;;  %5061 = vmatpush.msra.mxu2 %v5009_v52  ;;  %v4994_v39 = vld [vmem:[#allocation10 + $0x138] sm:$0xff]  ;;  %v5001_v29 = vld [vmem:[#allocation10 + $0x170] sm:$0xff]  ;;  %v4987_v40 = vld [vmem:[#allocation10 + $0x100] sm:$0xff] }
0x1a03   :  { %5023 = vmatpush.msra.mxu0 %v4999_v47  ;;  %5043 = vmatpush.msra.mxu1 %v5000_v21  ;;  %v4988_v48 = vld [vmem:[#allocation10 + $0x108] sm:$0xff]  ;;  %v4990_v33 = vld [vmem:[#allocation10 + $0x118] sm:$0xff]  ;;  %v4997_v54 = vld [vmem:[#allocation10 + $0x150] sm:$0xff] }
0x1a04   :  { %5083 = vmatpush.msra.mxu3 %v5002_v28  ;;  %5062 = vmatpush.msra.mxu2 %v5005_v30  ;;  %v4983_v5 = vld [vmem:[#allocation10 + $0xe0] sm:$0xff]  ;;  %v4984_v41 = vld [vmem:[#allocation10 + $0xe8] sm:$0xff]  ;;  %v4986_v4 = vld [vmem:[#allocation10 + $0xf8] sm:$0xff] }
0x1a05   :  { %5024 = vmatpush.msra.mxu0 %v4995_v10  ;;  %5044 = vmatpush.msra.mxu1 %v4996_v63  ;;  %v4993_v62 = vld [vmem:[#allocation10 + $0x130] sm:$0xff]  ;;  %v4979_v61 = vld [vmem:[#allocation10 + $0xc0] sm:$0xff]  ;;  %v4980_v60 = vld [vmem:[#allocation10 + $0xc8] sm:$0xff] }
0x1a06   :  { %5084 = vmatpush.msra.mxu3 %v4998_v56  ;;  %5063 = vmatpush.msra.mxu2 %v5001_v29  ;;  %v4982_v23 = vld [vmem:[#allocation10 + $0xd8] sm:$0xff]  ;;  %v4989_v6 = vld [vmem:[#allocation10 + $0x110] sm:$0xff]  ;;  %v4975_v49 = vld [vmem:[#allocation10 + $0xa0] sm:$0xff] }
0x1a07   :  { %5025 = vmatpush.msra.mxu0 %v4991_v31  ;;  %5045 = vmatpush.msra.mxu1 %v4992_v57  ;;  %v4976_v42 = vld [vmem:[#allocation10 + $0xa8] sm:$0xff]  ;;  %v4978_v24 = vld [vmem:[#allocation10 + $0xb8] sm:$0xff]  ;;  %v4985_v46 = vld [vmem:[#allocation10 + $0xf0] sm:$0xff] }
0x1a08   :  { %5085 = vmatpush.msra.mxu3 %v4994_v39  ;;  %5064 = vmatpush.msra.mxu2 %v4997_v54  ;;  %v4971_v50 = vld [vmem:[#allocation10 + $0x80] sm:$0xff]  ;;  %v4972_v55 = vld [vmem:[#allocation10 + $0x88] sm:$0xff]  ;;  %v4974_v53 = vld [vmem:[#allocation10 + $0x98] sm:$0xff] }
0x1a09   :  { %5026 = vmatpush.msra.mxu0 %v4987_v40  ;;  %5046 = vmatpush.msra.mxu1 %v4988_v48  ;;  %v4981_v59 = vld [vmem:[#allocation10 + $0xd0] sm:$0xff]  ;;  %v4967_v51 = vld [vmem:[#allocation10 + $0x60] sm:$0xff]  ;;  %v4968_v37 = vld [vmem:[#allocation10 + $0x68] sm:$0xff] }
0x1a0a   :  { %5086 = vmatpush.msra.mxu3 %v4990_v33  ;;  %5065 = vmatpush.msra.mxu2 %v4993_v62  ;;  %v4970_v36 = vld [vmem:[#allocation10 + $0x78] sm:$0xff]  ;;  %v4977_v0 = vld [vmem:[#allocation10 + $0xb0] sm:$0xff]  ;;  %v4963_v1 = vld [vmem:[#allocation10 + $0x40] sm:$0xff] }
0x1a0b   :  { %5027 = vmatpush.msra.mxu0 %v4983_v5  ;;  %5047 = vmatpush.msra.mxu1 %v4984_v41  ;;  %v4964_v2 = vld [vmem:[#allocation10 + $0x48] sm:$0xff]  ;;  %v4966_v3 = vld [vmem:[#allocation10 + $0x58] sm:$0xff]  ;;  %v4973_v7 = vld [vmem:[#allocation10 + $0x90] sm:$0xff] }
0x1a0c   :  { %5087 = vmatpush.msra.mxu3 %v4986_v4  ;;  %5066 = vmatpush.msra.mxu2 %v4989_v6  ;;  %v4959_v8 = vld [vmem:[#allocation10 + $0x20] sm:$0xff]  ;;  %v4960_v9 = vld [vmem:[#allocation10 + $0x28] sm:$0xff]  ;;  %v4962_v44 = vld [vmem:[#allocation10 + $0x38] sm:$0xff] }
0x1a0d   :  { %5028 = vmatpush.msra.mxu0 %v4979_v61  ;;  %5048 = vmatpush.msra.mxu1 %v4980_v60  ;;  %v4969_v18 = vld [vmem:[#allocation10 + $0x70] sm:$0xff]  ;;  %v4955_v26 = vld [vmem:[#allocation10] sm:$0xff]  ;;  %v4956_v35 = vld [vmem:[#allocation10 + $0x8] sm:$0xff] }
0x1a0e   :  { %5088 = vmatpush.msra.mxu3 %v4982_v23  ;;  %5067 = vmatpush.msra.mxu2 %v4985_v46  ;;  %v4958_v22 = vld [vmem:[#allocation10 + $0x18] sm:$0xff]  ;;  %v4951_v25 = vld [vmem:[#allocation9 + $0x1e0] sm:$0xff]  ;;  %v4952_v11 = vld [vmem:[#allocation9 + $0x1e8] sm:$0xff] }
0x1a0f   :  { %5029 = vmatpush.msra.mxu0 %v4975_v49  ;;  %5049 = vmatpush.msra.mxu1 %v4976_v42  ;;  %v4954_v12 = vld [vmem:[#allocation9 + $0x1f8] sm:$0xff]  ;;  %v4965_v27 = vld [vmem:[#allocation10 + $0x50] sm:$0xff]  ;;  %v4947_v32 = vld [vmem:[#allocation9 + $0x1c0] sm:$0xff] }
0x1a10   :  { %5089 = vmatpush.msra.mxu3 %v4978_v24  ;;  %5068 = vmatpush.msra.mxu2 %v4981_v59  ;;  %v4948_v38 = vld [vmem:[#allocation9 + $0x1c8] sm:$0xff]  ;;  %v4950_v19 = vld [vmem:[#allocation9 + $0x1d8] sm:$0xff]  ;;  %v4961_v13 = vld [vmem:[#allocation10 + $0x30] sm:$0xff] }
0x1a11   :  { %5030 = vmatpush.msra.mxu0 %v4971_v50  ;;  %5050 = vmatpush.msra.mxu1 %v4972_v55  ;;  %v4943_v20 = vld [vmem:[#allocation9 + $0x1a0] sm:$0xff]  ;;  %v4944_v17 = vld [vmem:[#allocation9 + $0x1a8] sm:$0xff]  ;;  %v4946_v14 = vld [vmem:[#allocation9 + $0x1b8] sm:$0xff] }
0x1a12   :  { %5090 = vmatpush.msra.mxu3 %v4974_v53  ;;  %5069 = vmatpush.msra.mxu2 %v4977_v0  ;;  %v4957_v15 = vld [vmem:[#allocation10 + $0x10] sm:$0xff]  ;;  %v4939_v43 = vld [vmem:[#allocation9 + $0x180] sm:$0xff]  ;;  %v4940_v34 = vld [vmem:[#allocation9 + $0x188] sm:$0xff] }
0x1a13   :  { %5031 = vmatpush.msra.mxu0 %v4967_v51  ;;  %5051 = vmatpush.msra.mxu1 %v4968_v37  ;;  %v4942_v58 = vld [vmem:[#allocation9 + $0x198] sm:$0xff]  ;;  %v4953_v47 = vld [vmem:[#allocation9 + $0x1f0] sm:$0xff]  ;;  %v4935_v21 = vld [vmem:[#allocation9 + $0x160] sm:$0xff] }
0x1a14   :  { %5091 = vmatpush.msra.mxu3 %v4970_v36  ;;  %5070 = vmatpush.msra.mxu2 %v4973_v7  ;;  %v4936_v28 = vld [vmem:[#allocation9 + $0x168] sm:$0xff]  ;;  %v4938_v52 = vld [vmem:[#allocation9 + $0x178] sm:$0xff]  ;;  %v4949_v10 = vld [vmem:[#allocation9 + $0x1d0] sm:$0xff] }
0x1a15   :  { %5032 = vmatpush.msra.mxu0 %v4963_v1  ;;  %5052 = vmatpush.msra.mxu1 %v4964_v2  ;;  %v4931_v63 = vld [vmem:[#allocation9 + $0x140] sm:$0xff]  ;;  %v4932_v56 = vld [vmem:[#allocation9 + $0x148] sm:$0xff]  ;;  %v4934_v30 = vld [vmem:[#allocation9 + $0x158] sm:$0xff] }
0x1a16   :  { %5092 = vmatpush.msra.mxu3 %v4966_v3  ;;  %5071 = vmatpush.msra.mxu2 %v4969_v18  ;;  %v4945_v31 = vld [vmem:[#allocation9 + $0x1b0] sm:$0xff]  ;;  %v4927_v57 = vld [vmem:[#allocation9 + $0x120] sm:$0xff]  ;;  %v8954_v39 = vld [vmem:[#allocation2] sm:$0xff] }
0x1a17   :  { %5033 = vmatpush.msra.mxu0 %v4959_v8  ;;  %5053 = vmatpush.msra.mxu1 %v4960_v9  ;;  %v5455_v29 = vld [vmem:[%s9084_s2 + $0x38] sm:$0xff]  ;;  %v4928_v40 = vld [vmem:[#allocation9 + $0x128] sm:$0xff]  ;;  %v4930_v48 = vld [vmem:[#allocation9 + $0x138] sm:$0xff] }
0x1a18   :  { %5093 = vmatpush.msra.mxu3 %v4962_v44  ;;  %5072 = vmatpush.msra.mxu2 %v4965_v27  ;;  %5291 = vst [vmem:[#allocation2] sm:$0xff] %v5455_v29  ;;  %v4941_v33 = vld [vmem:[#allocation9 + $0x190] sm:$0xff]  ;;  %v4923_v54 = vld [vmem:[#allocation9 + $0x100] sm:$0xff]  ;;  %v4924_v5 = vld [vmem:[#allocation9 + $0x108] sm:$0xff] }
0x1a19   :  { %5034 = vmatpush.msra.mxu0 %v4955_v26  ;;  %5054 = vmatpush.msra.mxu1 %v4956_v35  ;;  %v4926_v41 = vld [vmem:[#allocation9 + $0x118] sm:$0xff]  ;;  %v4937_v4 = vld [vmem:[#allocation9 + $0x170] sm:$0xff]  ;;  %v4919_v62 = vld [vmem:[#allocation9 + $0xe0] sm:$0xff] }
0x1a1a   :  { %5094 = vmatpush.msra.mxu3 %v4958_v22  ;;  %5073 = vmatpush.msra.mxu2 %v4961_v13  ;;  %v4920_v61 = vld [vmem:[#allocation9 + $0xe8] sm:$0xff]  ;;  %v4922_v60 = vld [vmem:[#allocation9 + $0xf8] sm:$0xff]  ;;  %v4933_v23 = vld [vmem:[#allocation9 + $0x150] sm:$0xff] }
0x1a1b   :  { %5099 = vmatpush.msrb.mxu0 %v4951_v25  ;;  %5119 = vmatpush.msrb.mxu1 %v4952_v11  ;;  %v4915_v6 = vld [vmem:[#allocation9 + $0xc0] sm:$0xff]  ;;  %v4916_v49 = vld [vmem:[#allocation9 + $0xc8] sm:$0xff]  ;;  %v4918_v42 = vld [vmem:[#allocation9 + $0xd8] sm:$0xff] }
0x1a1c   :  { %5159 = vmatpush.msrb.mxu3 %v4954_v12  ;;  %5074 = vmatpush.msra.mxu2 %v4957_v15  ;;  %v4929_v24 = vld [vmem:[#allocation9 + $0x130] sm:$0xff]  ;;  %v4911_v46 = vld [vmem:[#allocation9 + $0xa0] sm:$0xff]  ;;  %v4912_v50 = vld [vmem:[#allocation9 + $0xa8] sm:$0xff] }
0x1a1d   :  { %5100 = vmatpush.msrb.mxu0 %v4947_v32  ;;  %5120 = vmatpush.msrb.mxu1 %v4948_v38  ;;  %v4914_v55 = vld [vmem:[#allocation9 + $0xb8] sm:$0xff]  ;;  %v4925_v53 = vld [vmem:[#allocation9 + $0x110] sm:$0xff]  ;;  %v4907_v59 = vld [vmem:[#allocation9 + $0x80] sm:$0xff] }
0x1a1e   :  { %5160 = vmatpush.msrb.mxu3 %v4950_v19  ;;  %5139 = vmatpush.msrb.mxu2 %v4953_v47  ;;  %v4908_v51 = vld [vmem:[#allocation9 + $0x88] sm:$0xff]  ;;  %v4910_v37 = vld [vmem:[#allocation9 + $0x98] sm:$0xff]  ;;  %v4921_v36 = vld [vmem:[#allocation9 + $0xf0] sm:$0xff] }
0x1a1f   :  { %5101 = vmatpush.msrb.mxu0 %v4943_v20  ;;  %5121 = vmatpush.msrb.mxu1 %v4944_v17  ;;  %v4903_v0 = vld [vmem:[#allocation9 + $0x60] sm:$0xff]  ;;  %v4904_v1 = vld [vmem:[#allocation9 + $0x68] sm:$0xff]  ;;  %v4906_v2 = vld [vmem:[#allocation9 + $0x78] sm:$0xff] }
0x1a20   :  { %5161 = vmatpush.msrb.mxu3 %v4946_v14  ;;  %5140 = vmatpush.msrb.mxu2 %v4949_v10  ;;  %v4917_v3 = vld [vmem:[#allocation9 + $0xd0] sm:$0xff]  ;;  %v4899_v7 = vld [vmem:[#allocation9 + $0x40] sm:$0xff]  ;;  %v4900_v8 = vld [vmem:[#allocation9 + $0x48] sm:$0xff] }
0x1a21   :  { %5102 = vmatpush.msrb.mxu0 %v4939_v43  ;;  %5122 = vmatpush.msrb.mxu1 %v4940_v34  ;;  %v4902_v9 = vld [vmem:[#allocation9 + $0x58] sm:$0xff]  ;;  %v4913_v44 = vld [vmem:[#allocation9 + $0xb0] sm:$0xff]  ;;  %v4895_v18 = vld [vmem:[#allocation9 + $0x20] sm:$0xff] }
0x1a22   :  { %5162 = vmatpush.msrb.mxu3 %v4942_v58  ;;  %5141 = vmatpush.msrb.mxu2 %v4945_v31  ;;  %v4896_v26 = vld [vmem:[#allocation9 + $0x28] sm:$0xff]  ;;  %v4898_v35 = vld [vmem:[#allocation9 + $0x38] sm:$0xff]  ;;  %v4909_v22 = vld [vmem:[#allocation9 + $0x90] sm:$0xff] }
0x1a23   :  { %5103 = vmatpush.msrb.mxu0 %v4935_v21  ;;  %5123 = vmatpush.msrb.mxu1 %v4936_v28  ;;  %v4891_v25 = vld [vmem:[#allocation9] sm:$0xff]  ;;  %v4892_v11 = vld [vmem:[#allocation9 + $0x8] sm:$0xff]  ;;  %v4894_v12 = vld [vmem:[#allocation9 + $0x18] sm:$0xff] }
0x1a24   :  { %5163 = vmatpush.msrb.mxu3 %v4938_v52  ;;  %5142 = vmatpush.msrb.mxu2 %v4941_v33  ;;  %v4905_v27 = vld [vmem:[#allocation9 + $0x70] sm:$0xff]  ;;  %v5264_v13 = vld [vmem:[%s9092_s10 + $0x70] sm:$0xff]  ;;  %v5263_v20 = vld [vmem:[%s9092_s10 + $0x68] sm:$0xff] }
0x1a25   :  { %5104 = vmatpush.msrb.mxu0 %v4931_v63  ;;  %5124 = vmatpush.msrb.mxu1 %v4932_v56  ;;  %v4901_v32 = vld [vmem:[#allocation9 + $0x50] sm:$0xff]  ;;  %v5262_v15 = vld [vmem:[%s9092_s10 + $0x60] sm:$0xff]  ;;  %v5260_v34 = vld [vmem:[%s9092_s10 + $0x50] sm:$0xff] }
0x1a26   :  { %5164 = vmatpush.msrb.mxu3 %v4934_v30  ;;  %5143 = vmatpush.msrb.mxu2 %v4937_v4  ;;  %v4897_v38 = vld [vmem:[#allocation9 + $0x30] sm:$0xff]  ;;  %v5259_v58 = vld [vmem:[%s9092_s10 + $0x48] sm:$0xff]  ;;  %v5258_v21 = vld [vmem:[%s9092_s10 + $0x40] sm:$0xff] }
0x1a27   :  { %5105 = vmatpush.msrb.mxu0 %v4927_v57  ;;  %5125 = vmatpush.msrb.mxu1 %v4928_v40  ;;  %v4893_v19 = vld [vmem:[#allocation9 + $0x10] sm:$0xff]  ;;  %v5179_v52 = vld [vmem:[%s9091_s9] sm:$0xff]  ;;  %v5180_v63 = vld [vmem:[%s9091_s9 + $0x8] sm:$0xff] }
0x1a28   :  { %5165 = vmatpush.msrb.mxu3 %v4930_v48  ;;  %5144 = vmatpush.msrb.mxu2 %v4933_v23  ;;  %v5261_v43 = vld [vmem:[%s9092_s10 + $0x58] sm:$0xff]  ;;  %v5256_v57 = vld [vmem:[%s9092_s10 + $0x30] sm:$0xff]  ;;  %v5255_v40 = vld [vmem:[%s9092_s10 + $0x28] sm:$0xff] }
0x1a29   :  { %5106 = vmatpush.msrb.mxu0 %v4923_v54  ;;  %5126 = vmatpush.msrb.mxu1 %v4924_v5  ;;  %v5257_v56 = vld [vmem:[%s9092_s10 + $0x38] sm:$0xff]  ;;  %v5254_v5 = vld [vmem:[%s9092_s10 + $0x20] sm:$0xff] }
0x1a2a   :  { %5166 = vmatpush.msrb.mxu3 %v4926_v41  ;;  %5145 = vmatpush.msrb.mxu2 %v4929_v24  ;;  %v5253_v41 = vld [vmem:[%s9092_s10 + $0x18] sm:$0xff] }
0x1a2b   :  { %5107 = vmatpush.msrb.mxu0 %v4919_v62  ;;  %5127 = vmatpush.msrb.mxu1 %v4920_v61  ;;  %v5182_v62 = vld [vmem:[%s9091_s9 + $0x18] sm:$0xff] }
0x1a2c   :  { %5167 = vmatpush.msrb.mxu3 %v4922_v60  ;;  %5146 = vmatpush.msrb.mxu2 %v4925_v53  ;;  %v5252_v60 = vld [vmem:[%s9092_s10 + $0x10] sm:$0xff] }
0x1a2d   :  { %5108 = vmatpush.msrb.mxu0 %v4915_v6  ;;  %5128 = vmatpush.msrb.mxu1 %v4916_v49  ;;  %v5251_v6 = vld [vmem:[%s9092_s10 + $0x8] sm:$0xff] }
0x1a2e   :  { %5168 = vmatpush.msrb.mxu3 %v4918_v42  ;;  %5035 = vmatmul.f32.vlgmr.msra.gmra.mxu0 %v8897_v16  ;;  %v5250_v42 = vld [vmem:[%s9092_s10] sm:$0xff] }
0x1a2f   :  { %5109 = vmatpush.msrb.mxu0 %v4911_v46  ;;  %5129 = vmatpush.msrb.mxu1 %v4912_v50 }
0x1a30   :  { %5169 = vmatpush.msrb.mxu3 %v4914_v55  ;;  %5055 = vmatmul.f32.vlgmr.msra.gmra.mxu1 %v8897_v16 }
0x1a31   :  { %5110 = vmatpush.msrb.mxu0 %v4907_v59  ;;  %5130 = vmatpush.msrb.mxu1 %v4908_v51  ;;  %v5181_v51 = vld [vmem:[%s9091_s9 + $0x10] sm:$0xff]  ;;  %s5456_s9 = sld [smem:[#allocation4 + $0x7]] }
0x1a32   :  { %5170 = vmatpush.msrb.mxu3 %v4910_v37  ;;  %5147 = vmatpush.msrb.mxu2 %v4921_v36 }
0x1a33   :  { %5095 = vmatmul.f32.vlgmr.msra.gmra.mxu3 %v8897_v16  ;;  %5111 = vmatpush.msrb.mxu0 %v4903_v0 }
0x1a34   :  { %5131 = vmatpush.msrb.mxu1 %v4904_v1  ;;  %5171 = vmatpush.msrb.mxu3 %v4906_v2 }
0x1a35   :  { %5148 = vmatpush.msrb.mxu2 %v4917_v3  ;;  %5112 = vmatpush.msrb.mxu0 %v4899_v7 }
0x1a36   :  { %5132 = vmatpush.msrb.mxu1 %v4900_v8  ;;  %5172 = vmatpush.msrb.mxu3 %v4902_v9 }
0x1a37   :  { %5149 = vmatpush.msrb.mxu2 %v4913_v44  ;;  %5113 = vmatpush.msrb.mxu0 %v4895_v18  ;;  %p5457_p6 = scmp.ne.s32.totalorder %s5456_s9, 0 }
0x1a38   :  { %5133 = vmatpush.msrb.mxu1 %v4896_v26  ;;  %5173 = vmatpush.msrb.mxu3 %v4898_v35 }
0x1a39   :  { %5150 = vmatpush.msrb.mxu2 %v4909_v22  ;;  %5114 = vmatpush.msrb.mxu0 %v4891_v25 }
0x1a3a   :  { %5075 = vmatmul.f32.vlgmr.msra.gmra.mxu2 %v8897_v16  ;;  %5134 = vmatpush.msrb.mxu1 %v4892_v11  ;;  %v5265_v16 = vld [vmem:[%s9092_s10 + $0x78] sm:$0xff] }
0x1a3b   :  { %5174 = vmatpush.msrb.mxu3 %v4894_v12  ;;  %5115 = vmatmul.f32.vlgmr.msrb.gmra.mxu0 %v8954_v39 }
0x1a3c   :  { %5135 = vmatmul.f32.vlgmr.msrb.gmra.mxu1 %v8954_v39  ;;  %5151 = vmatpush.msrb.mxu2 %v4905_v27 }
0x1a3d   :  { %5175 = vmatmul.f32.vlgmr.msrb.gmra.mxu3 %v8954_v39  ;;  %5267 = vmatpush.msra.mxu0 %v5265_v16 }
0x1a3e   :  { %5152 = vmatpush.msrb.mxu2 %v4901_v32 }
0x1a3f   :  { %5268 = vmatpush.msra.mxu0 %v5264_v13 }
0x1a40   :  { %5153 = vmatpush.msrb.mxu2 %v4897_v38 }
0x1a41   :  { %5269 = vmatpush.msra.mxu0 %v5263_v20 }
0x1a42   :  { %5154 = vmatpush.msrb.mxu2 %v4893_v19 }
0x1a43   :  { %5155 = vmatmul.f32.vlgmr.msrb.gmra.mxu2 %v8954_v39  ;;  %5270 = vmatpush.msra.mxu0 %v5262_v15 }
0x1a45   :  { %5271 = vmatpush.msra.mxu0 %v5261_v43 }
0x1a47   :  { %5272 = vmatpush.msra.mxu0 %v5260_v34 }
0x1a49   :  { %5273 = vmatpush.msra.mxu0 %v5259_v58 }
0x1a4b   :  { %5274 = vmatpush.msra.mxu0 %v5258_v21 }
0x1a4d   :  { %5275 = vmatpush.msra.mxu0 %v5257_v56 }
0x1a4f   :  { %5276 = vmatpush.msra.mxu0 %v5256_v57 }
0x1a51   :  { %5277 = vmatpush.msra.mxu0 %v5255_v40 }
0x1a53   :  { %5278 = vmatpush.msra.mxu0 %v5254_v5 }
0x1a55   :  { %5279 = vmatpush.msra.mxu0 %v5253_v41 }
0x1a57   :  { %5280 = vmatpush.msra.mxu0 %v5252_v60 }
0x1a59   :  { %5281 = vmatpush.msra.mxu0 %v5251_v6 }
0x1a5b   :  { %5282 = vmatpush.msra.mxu0 %v5250_v42 }
0x1aab   :  { %v5036_v17 = vpop.f32.mrf.mxu0 }
0x1aad   :  { %v5056_v14 = vpop.f32.mrf.mxu1 }
0x1ab6   :  { %v5096_v47 = vpop.f32.mrf.mxu3 }
0x1ab8   :  { %v5116_v28 = vpop.f32.mrf.mxu0 }
0x1ab9   :  { %v5136_v10 = vpop.f32.mrf.mxu1  ;;  %v5117_v30 = vadd.f32 %v5116_v28, %v5036_v17 }
0x1aba   :  { %v5137_v31 = vadd.f32 %v5136_v10, %v5056_v14 }
0x1abb   :  { %v5183_v39 = vadd.f32 %v5179_v52, %v5117_v30 }
0x1abc   :  { %v5184_v29 = vadd.f32 %v5180_v63, %v5137_v31 }
0x1abd   :  { %v5451_v48 = vmul.f32 -1.442695, %v5183_v39  ;;  %v5076_v54 = vpop.f32.mrf.mxu2 }
0x1abe   :  { %v5452_v33 = vmul.f32 -1.442695, %v5184_v29 }
0x1abf   :  { %5963 = vpow2.f32 %v5451_v48 }
0x1ac0   :  { %v5176_v4 = vpop.f32.mrf.mxu3  ;;  %5965 = vpow2.f32 %v5452_v33 }
0x1ac1   :  { %v5177_v61 = vadd.f32 %v5176_v4, %v5096_v47 }
0x1ac3   :  { %v5186_v23 = vadd.f32 %v5182_v62, %v5177_v61 }
0x1ac5   :  { %v5453_v49 = vmul.f32 -1.442695, %v5186_v23  ;;  %v5964_v24 = vpop.eup %5963 }
0x1ac6   :  { %v5966_v46 = vpop.eup %5965  ;;  %v5190_v50 = vadd.f32 1.0, %v5964_v24  ;;  %v5156_v53 = vpop.f32.mrf.mxu2 }
0x1ac7   :  { %5967 = vpow2.f32 %v5453_v49  ;;  %v5209_v55 = vadd.f32 1.0, %v5966_v46  ;;  %v5157_v59 = vadd.f32 %v5156_v53, %v5076_v54 }
0x1ac8   :  { %5969 = vrcp.f32 %v5190_v50  ;;  %v5202_v44 = vand.u32 2147483648, %v5190_v50  ;;  %v5200_v35 = vand.u32 2147483647, %v5190_v50  ;;  %vm5196_vm2 = vweird.f32 %v5190_v50 }
0x1ac9   :  { %5971 = vrcp.f32 %v5209_v55  ;;  %v5185_v1 = vadd.f32 %v5181_v51, %v5157_v59  ;;  %v5221_v18 = vand.u32 2147483648, %v5209_v55  ;;  %v5219_v25 = vand.u32 2147483647, %v5209_v55 }
0x1aca   :  { %vm5215_vm3 = vweird.f32 %v5209_v55  ;;  %v5203_v32 = vor.u32 1.1754944e-38, %v5202_v44  ;;  %vm5201_vm5 = vcmp.eq.f32.partialorder %v5200_v35, 8.507059e+37 }
0x1acb   :  { %v5222_v19 = vor.u32 1.1754944e-38, %v5221_v18  ;;  %vm5220_vm7 = vcmp.eq.f32.partialorder %v5219_v25, 8.507059e+37 }
0x1acd   :  { %v5968_v37 = vpop.eup %5967 }
0x1ace   :  { %v5229_v36 = vadd.f32 1.0, %v5968_v37  ;;  %v5970_v0 = vpop.eup %5969 }
0x1acf   :  { %v5972_v2 = vpop.eup %5971  ;;  %v5192_v3 = vmul.f32 %v5970_v0, %v5190_v50  ;;  %vm5197_vm0 = vweird.f32 %v5970_v0 }
0x1ad0   :  { %5973 = vrcp.f32 %v5229_v36  ;;  %v5211_v7 = vmul.f32 %v5972_v2, %v5209_v55  ;;  %vm5216_vm1 = vweird.f32 %v5972_v2  ;;  %vm5198_vm4 = vmor %vm5196_vm2, %vm5197_vm0  ;;  %v5241_v28 = vand.u32 2147483648, %v5229_v36 }
0x1ad1   :  { %v5193_v8 = vsub.f32 1.0, %v5192_v3  ;;  %5975 = vtanh.f32 %v5185_v1  ;;  %vm5217_vm6 = vmor %vm5215_vm3, %vm5216_vm1  ;;  %vm5235_vm9 = vweird.f32 %v5229_v36  ;;  %v5239_v52 = vand.u32 2147483647, %v5229_v36 }
0x1ad2   :  { %v5212_v9 = vsub.f32 1.0, %v5211_v7  ;;  %v5242_v63 = vor.u32 1.1754944e-38, %v5241_v28 }
0x1ad3   :  { %v5194_v26 = vmul.f32 %v5970_v0, %v5193_v8  ;;  %vm5240_vm11 = vcmp.eq.f32.partialorder %v5239_v52, 8.507059e+37 }
0x1ad4   :  { %v5213_v22 = vmul.f32 %v5972_v2, %v5212_v9 }
0x1ad5   :  { %v5195_v12 = vadd.f32 %v5970_v0, %v5194_v26 }
0x1ad6   :  { %v5974_v11 = vpop.eup %5973  ;;  %v5214_v38 = vadd.f32 %v5972_v2, %v5213_v22 }
0x1ad7   :  { %v5231_v27 = vmul.f32 %v5974_v11, %v5229_v36  ;;  %v5199_v16 = vsel %vm5198_vm4, %v5970_v0, %v5195_v12  ;;  %v5976_v13 = vpop.eup %5975  ;;  %vm5236_vm8 = vweird.f32 %v5974_v11 }
0x1ad8   :  { %v5204_v17 = vsel %vm5201_vm5, %v5203_v32, %v5199_v16  ;;  %v5218_v14 = vsel %vm5217_vm6, %v5972_v2, %v5214_v38  ;;  %vm5237_vm10 = vmor %vm5235_vm9, %vm5236_vm8 }
0x1ad9   :  { %v5232_v20 = vsub.f32 1.0, %v5231_v27  ;;  %v5223_v15 = vsel %vm5220_vm7, %v5222_v19, %v5218_v14  ;;  %v5246_v43 = vmul.f32 %v5976_v13, %v5204_v17 }
0x1ada   :  { %v5245_v34 = vmul.f32 %v5223_v15, %v8894_v45  ;;  %v5266_v45 = vld [vmem:[%s9093_s11] sm:$0xff] }
0x1adb   :  { %v5233_v58 = vmul.f32 %v5974_v11, %v5232_v20 }
0x1adc   :  { %v5247_v47 = vadd.f32 %v5246_v43, %v5245_v34 }
0x1add   :  { %v5234_v21 = vadd.f32 %v5974_v11, %v5233_v58 }
0x1ade   :  { %5977 = vtanh.f32 %v5247_v47 }
0x1adf   :  { %v5238_v10 = vsel %vm5237_vm10, %v5974_v11, %v5234_v21 }
0x1ae0   :  { %v5243_v30 = vsel %vm5240_vm11, %v5242_v63, %v5238_v10 }
0x1ae4   :  { %v5978_v56 = vpop.eup %5977 }
0x1ae5   :  { %v5249_v31 = vmul.f32 %v5978_v56, %v5243_v30 }
0x1ae7   :  { %5283 = vmatmul.f32.vlgmr.msra.gmra.mxu0 %v5249_v31 }
0x1b63   :  { %5296 = sbr.rel (%p5457_p6) target bundleno = 7510 (0x1d56), region = 89 }
0x1b64   :  { %v5284_v57 = vpop.f32.mrf.mxu0 }
0x1b65   :  { %v5285_v39 = vadd.f32 %v5284_v57, %v5266_v45 }
0x1b67   :  { %5454 = vst [vmem:[%s9094_s12 + $0x38] sm:$0xff] %v5285_v39 }
0x1b68   :  { %v5297_v29 = vlaneseq  ;;  %v5337_v4 = vld [vmem:[%s9085_s3 + $0x78] sm:$0xff]  ;;  %v5336_v62 = vld [vmem:[%s9085_s3 + $0x70] sm:$0xff]  ;;  %v5335_v61 = vld [vmem:[%s9085_s3 + $0x68] sm:$0xff]  ;;  %v6109_v18 = vmov 1.0  }
0x1b69   :  { %5338 = vmatpush.msra.mxu0 %v5337_v4  ;;  %v5334_v60 = vld [vmem:[%s9085_s3 + $0x60] sm:$0xff]  ;;  %v5333_v23 = vld [vmem:[%s9085_s3 + $0x58] sm:$0xff]  ;;  %v5332_v6 = vld [vmem:[%s9085_s3 + $0x50] sm:$0xff] }
0x1b6a   :  { %v5298_v40 = vand.u32 127, %v5297_v29  ;;  %v5331_v49 = vld [vmem:[%s9085_s3 + $0x48] sm:$0xff]  ;;  %v5330_v42 = vld [vmem:[%s9085_s3 + $0x40] sm:$0xff]  ;;  %v5329_v24 = vld [vmem:[%s9085_s3 + $0x38] sm:$0xff] }
0x1b6b   :  { %5339 = vmatpush.msra.mxu0 %v5336_v62  ;;  %v5328_v46 = vld [vmem:[%s9085_s3 + $0x30] sm:$0xff]  ;;  %v5327_v50 = vld [vmem:[%s9085_s3 + $0x28] sm:$0xff]  ;;  %v5326_v55 = vld [vmem:[%s9085_s3 + $0x20] sm:$0xff] }
0x1b6c   :  { %vm5299_vm12 = vcmp.lt.s32.totalorder %v5298_v40, 16  ;;  %v5325_v53 = vld [vmem:[%s9085_s3 + $0x18] sm:$0xff]  ;;  %v5324_v0 = vld [vmem:[%s9085_s3 + $0x10] sm:$0xff]  ;;  %v5323_v1 = vld [vmem:[%s9085_s3 + $0x8] sm:$0xff] }
0x1b6d   :  { %v5300_v48 = vsel %vm5299_vm12, %v5285_v39, -1e+30  ;;  %5340 = vmatpush.msra.mxu0 %v5335_v61  ;;  %v5322_v2 = vld [vmem:[%s9085_s3] sm:$0xff] }
0x1b6e   :  { %5301 = vmax.xlane.f32.xlu0 %v5300_v48 }
0x1b6f   :  { %5341 = vmatpush.msra.mxu0 %v5334_v60 }
0x1b71   :  { %5342 = vmatpush.msra.mxu0 %v5333_v23 }
0x1b73   :  { %5343 = vmatpush.msra.mxu0 %v5332_v6 }
0x1b75   :  { %5344 = vmatpush.msra.mxu0 %v5331_v49 }
0x1b77   :  { %5345 = vmatpush.msra.mxu0 %v5330_v42 }
0x1b79   :  { %5346 = vmatpush.msra.mxu0 %v5329_v24 }
0x1b7b   :  { %5347 = vmatpush.msra.mxu0 %v5328_v46 }
0x1b7d   :  { %5348 = vmatpush.msra.mxu0 %v5327_v50 }
0x1b7f   :  { %5349 = vmatpush.msra.mxu0 %v5326_v55 }
0x1b81   :  { %5350 = vmatpush.msra.mxu0 %v5325_v53 }
0x1b83   :  { %5351 = vmatpush.msra.mxu0 %v5324_v0 }
0x1b85   :  { %5352 = vmatpush.msra.mxu0 %v5323_v1 }
0x1b87   :  { %5353 = vmatpush.msra.mxu0 %v5322_v2 }
0x1be1   :  { %v5302_v33 = vpop.xlane.xlu0 %5301 }
0x1be2   :  { %vm5303_vm13 = vcmp.eq.f32.partialorder %v5300_v48, %v5302_v33 }
0x1be3   :  { %v5304_v54 = vsel %vm5303_vm13, %v5298_v40, 128 }
0x1be4   :  { %v5306_v5 = vshra.s32 %v5304_v54, 16  ;;  %v5305_v59 = vand.u32 65535, %v5304_v54 }
0x1be6   :  { %v5308_v41 = vcvt.s32.f32 %v5306_v5  ;;  %v5307_v37 = vcvt.s32.f32 %v5305_v59 }
0x1be8   :  { %5309 = vmin.xlane.f32.xlu0 %v5308_v41 }
0x1c5b   :  { %v5310_v51 = vpop.xlane.xlu0 %5309 }
0x1c5c   :  { %vm5311_vm14 = vcmp.eq.f32.partialorder %v5308_v41, %v5310_v51  ;;  %v5316_v3 = vcvt.f32.s32 %v5310_v51 }
0x1c5d   :  { %v5312_v36 = vsel %vm5311_vm14, %v5307_v37, inf }
0x1c5e   :  { %5313 = vmin.xlane.f32.xlu1 %v5312_v36  ;;  %v5317_v8 = vshll.u32 %v5316_v3, 16 }
0x1cd1   :  { %v5314_v7 = vpop.xlane.xlu1 %5313 }
0x1cd2   :  { %v5315_v9 = vcvt.f32.s32 %v5314_v7 }
0x1cd4   :  { %v5318_v44 = vadd.s32 %v5317_v8, %v5315_v9 }
0x1cd6   :  { %vm5319_vm15 = vcmp.eq.s32.totalorder %v5298_v40, %v5318_v44 }
0x1cd7   :  { %5459 = vmatmul.msk.f32.vlgmr.msra.gmra.mxu0 %vm5319_vm15, %v6109_v18 }
0x1d54   :  { %v5355_v26 = vpop.f32.mrf.mxu0 }
0x1d55   :  { %5358 = vst [vmem:[#allocation2] sm:$0xff] %v5355_v26 }
0x1d56 PF:  { %5363 = vsyncpa [#allocation6], 1 }
0x1d57   :  { %5364 = vsyncpa [#allocation8], 1 }
0x1d58   :  { %5365 = vsyncpa [#allocation11], 1 }

</bundles_post_ra>
